<compile_context>
chip_gen: v6e
topology: v6e:2x2x1
jax: 0.10.0
libtpu: 0.0.40
codegen_flags: <defaults>
</compile_context>

<pallas_src>
import functools

import jax
import jax.numpy as jnp
from jax.experimental import pallas as pl
from jax.experimental.pallas import tpu as pltpu


def _round_up(x, m):
    return ((x + m - 1) // m) * m


def _tiles(m, tm_max=512):
    """Token-dim padding + row-tile size.

    - pad M to a multiple of 16 (safe second-minor for bf16 blocks)
    - tile by <= tm_max rows (512 ~= 85% of HBM roofline for mem-bound kernels)
    - once a tensor is big enough, keep >= 2 grid steps (v7x has 2 TCs).
    """
    mp = _round_up(max(m, 16), 16)
    if mp <= tm_max:
        tm = mp
        if mp >= 256 and mp % 32 == 0:
            tm = mp // 2
    else:
        tm = tm_max
    return _round_up(mp, tm), tm


def _pad_rows(x, mp):
    m = x.shape[0]
    return x if mp == m else jnp.pad(x, ((0, mp - m), (0, 0)))


# ----------------------------------------------------------------------------
# In-kernel helpers (LN/gelu math in f32, MXU operands bf16, f32 accumulation)
# ----------------------------------------------------------------------------
def _ln(x, g, b, eps=1e-5):
    mu = jnp.mean(x, axis=-1, keepdims=True)
    var = jnp.mean((x - mu) ** 2, axis=-1, keepdims=True)
    return (x - mu) * jax.lax.rsqrt(var + eps) * g + b


def _mxu(x, w):
    return jnp.dot(x.astype(jnp.bfloat16), w, preferred_element_type=jnp.float32)


# ----------------------------------------------------------------------------
# Pallas kernels
# ----------------------------------------------------------------------------
def _blocks_kernel(*refs, has_skip, n_blocks):
    """n_blocks fused residual blocks: x[+skip]; repeat x += MLP(LN(x))."""
    o_ref = refs[-1]
    it = iter(refs[:-1])
    x = next(it)[...].astype(jnp.float32)
    if has_skip:
        x = x + next(it)[...].astype(jnp.float32)      # fused skip-connection add
    for _ in range(n_blocks):
        g = next(it); b = next(it)
        w1 = next(it); b1 = next(it)
        w2 = next(it); b2 = next(it)
        h = _ln(x, g[...], b[...])
        h = jax.nn.gelu(_mxu(h, w1[...]) + b1[...])
        h = _mxu(h, w2[...]) + b2[...]
        x = x + h                                      # fused residual add
    o_ref[...] = x.astype(o_ref.dtype)


def _ln_linear_kernel(x_ref, g_ref, be_ref, w_ref, b_ref, o_ref):
    """Fused patch-merge: LayerNorm then linear."""
    h = _ln(x_ref[...].astype(jnp.float32), g_ref[...], be_ref[...])
    o_ref[...] = (_mxu(h, w_ref[...]) + b_ref[...]).astype(o_ref.dtype)


def _linear_ln_kernel(x_ref, w_ref, b_ref, g_ref, be_ref, o_ref):
    """Fused patch-embed: linear then LayerNorm."""
    y = _mxu(x_ref[...], w_ref[...]) + b_ref[...]
    o_ref[...] = _ln(y, g_ref[...], be_ref[...]).astype(o_ref.dtype)


def _linear_kernel(x_ref, w_ref, b_ref, o_ref):
    """Plain linear (patch-expand / folded final projection)."""
    o_ref[...] = (_mxu(x_ref[...], w_ref[...]) + b_ref[...]).astype(o_ref.dtype)


def _vq_kernel(z_ref, e_ref, e2_ref, zq_ref, loss_ref, *, n_codes, n_rows, dim):
    zv = z_ref[...]                                   # (Mp, D) bf16
    ev = e_ref[...]                                   # (Kp, D) bf16 (rows>=n_codes are 0)
    dn = (((1,), (1,)), ((), ()))                     # contract last dims: z @ e^T
    ze = jax.lax.dot_general(zv, ev, dn, preferred_element_type=jnp.float32)
    d = e2_ref[...] - 2.0 * ze                        # distances up to per-row const
    col = jax.lax.broadcasted_iota(jnp.int32, d.shape, 1)
    d = jnp.where(col < n_codes, d, 1e30)             # mask padded codes
    dmin = jnp.min(d, axis=-1, keepdims=True)
    cand = jnp.where(d <= dmin, col, d.shape[1])
    idx = jnp.min(cand, axis=-1, keepdims=True)       # argmin, first-hit tie-break
    onehot = (col == idx).astype(jnp.bfloat16)        # exact 0/1 in bf16
    zq = jnp.dot(onehot, ev, preferred_element_type=jnp.float32)
    zq_ref[...] = zq.astype(zq_ref.dtype)
    row = jax.lax.broadcasted_iota(jnp.int32, zq.shape, 0)
    rmask = (row < n_rows).astype(jnp.float32)
    diff = (zq - zv.astype(jnp.float32)) * rmask
    mse = jnp.sum(diff * diff) / float(n_rows * dim)
    loss_ref[0] = 1.25 * mse                          # codebook + 0.25*commitment


# ----------------------------------------------------------------------------
# pallas_call wrappers
# ----------------------------------------------------------------------------
def _call_rowwise(kernel, row_inputs, param_inputs, n_out, out_dtype=jnp.bfloat16):
    """Row-wise fused kernel with a parallel grid over the token dim."""
    m = row_inputs[0].shape[0]
    mp, tm = _tiles(m)
    rows = [_pad_rows(r, mp) for r in row_inputs]
    row_specs = [pl.BlockSpec((tm, r.shape[1]), lambda i: (i, 0)) for r in rows]
    par_specs = [pl.BlockSpec(q.shape, lambda i: (0, 0)) for q in param_inputs]
    out = pl.pallas_call(
        kernel,
        out_shape=jax.ShapeDtypeStruct((mp, n_out), out_dtype),
        grid=(mp // tm,),
        in_specs=row_specs + par_specs,
        out_specs=pl.BlockSpec((tm, n_out), lambda i: (i, 0)),
        compiler_params=pltpu.CompilerParams(
            dimension_semantics=("parallel",),
            vmem_limit_bytes=32 * 1024 * 1024),
    )(*rows, *param_inputs)
    return out[:m] if mp != m else out


def fused_stage(x, p, prefix, n_blocks, skip=None):
    """One pallas_call for all residual blocks of a stage (+optional skip add)."""
    rows = [x] if skip is None else [x, skip]
    params = []
    for i in range(n_blocks):
        nm = f"{prefix}{i}"
        params += [p[f"{nm}.ln_g"], p[f"{nm}.ln_b"],
                   p[f"{nm}.w1"], p[f"{nm}.b1"],
                   p[f"{nm}.w2"], p[f"{nm}.b2"]]
    kernel = functools.partial(_blocks_kernel, has_skip=skip is not None,
                               n_blocks=n_blocks)
    return _call_rowwise(kernel, rows, params, n_out=x.shape[1])


def ln_linear(x, p, name):
    params = [p[f"{name}.ln_g"], p[f"{name}.ln_b"], p[f"{name}.w"], p[f"{name}.b"]]
    return _call_rowwise(_ln_linear_kernel, [x], params,
                         n_out=p[f"{name}.b"].shape[1])


def linear_ln(x, p, name):
    params = [p[f"{name}.w"], p[f"{name}.b"], p[f"{name}.ln_g"], p[f"{name}.ln_b"]]
    return _call_rowwise(_linear_ln_kernel, [x], params,
                         n_out=p[f"{name}.b"].shape[1])


def pallas_linear(x, w, b, out_dtype=jnp.bfloat16):
    return _call_rowwise(_linear_kernel, [x], [w, b], n_out=b.shape[1],
                         out_dtype=out_dtype)


def pallas_vq(z, codebook, code_sqnorm, num_codes):
    """Vector-quantization bottleneck (tiny M -> single-block kernel)."""
    m, d = z.shape
    mp = _round_up(max(m, 16), 16)
    zp = _pad_rows(z, mp)
    kernel = functools.partial(_vq_kernel, n_codes=num_codes, n_rows=m, dim=d)
    zq, loss = pl.pallas_call(
        kernel,
        out_shape=(jax.ShapeDtypeStruct((mp, d), jnp.bfloat16),
                   jax.ShapeDtypeStruct((1,), jnp.float32)),
        in_specs=[pl.BlockSpec(memory_space=pltpu.MemorySpace.VMEM)] * 3,
        out_specs=(pl.BlockSpec(memory_space=pltpu.MemorySpace.VMEM),
                   pl.BlockSpec(memory_space=pltpu.MemorySpace.SMEM)),
        compiler_params=pltpu.CompilerParams(vmem_limit_bytes=32 * 1024 * 1024),
    )(zp, codebook, code_sqnorm)
    return zq[:m], loss[0]


# ----------------------------------------------------------------------------
# Glue: spatial reshapes (pixel un/shuffle) + parameter setup
# ----------------------------------------------------------------------------
def patch_merge(x_img, p, name):
    B, H, W, C = x_img.shape
    t = (x_img.reshape(B, H // 2, 2, W // 2, 2, C)
              .transpose(0, 1, 3, 2, 4, 5)
              .reshape(B * (H // 2) * (W // 2), 4 * C))
    return ln_linear(t, p, name)                       # (B*H/2*W/2, Cout)


def patch_expand(x_img, p, name, scale):
    B, H, W, C = x_img.shape
    t = pallas_linear(x_img.reshape(-1, C), p[f"{name}.w"], p[f"{name}.b"])
    cout = t.shape[-1] // (scale * scale)
    t = (t.reshape(B, H, W, scale, scale, cout)
          .transpose(0, 1, 3, 2, 4, 5)
          .reshape(B * H * scale * W * scale, cout))
    return t


def init_params(t_length=3, n_channel=3, num_embeddings=50):
    base = jax.random.PRNGKey(42)
    counter = [0]

    def rnd(shape, scale=0.02):
        counter[0] += 1
        return scale * jax.random.normal(
            jax.random.fold_in(base, counter[0]), shape, jnp.float32)

    p = {}

    def add_linear(name, din, dout, dout_pad=None):
        doutp = dout_pad or dout
        w = jnp.zeros((din, doutp), jnp.float32).at[:, :dout].set(rnd((din, dout)))
        p[f"{name}.w"] = w.astype(jnp.bfloat16)          # pre-padded, pre-cast once
        p[f"{name}.b"] = jnp.zeros((1, doutp), jnp.float32)

    def add_ln(name, d):
        p[f"{name}.ln_g"] = jnp.ones((1, d), jnp.float32)
        p[f"{name}.ln_b"] = jnp.zeros((1, d), jnp.float32)

    def add_block(name, d):
        add_ln(name, d)
        p[f"{name}.w1"] = rnd((d, 2 * d)).astype(jnp.bfloat16)
        p[f"{name}.b1"] = jnp.zeros((1, 2 * d), jnp.float32)
        p[f"{name}.w2"] = rnd((2 * d, d)).astype(jnp.bfloat16)
        p[f"{name}.b2"] = jnp.zeros((1, d), jnp.float32)

    cin16 = t_length * n_channel * 16                    # 4x4 patch of all input chans
    add_linear("patch_embed", cin16, 64)                 # K=144 kept (full-dim block)
    add_ln("patch_embed", 64)
    for i in range(2):
        add_block(f"enc0.{i}", 64)
    add_ln("merge0", 256)
    add_linear("merge0", 256, 128)
    for i in range(2):
        add_block(f"enc1.{i}", 128)
    add_ln("merge1", 512)
    add_linear("merge1", 512, 256)
    for i in range(2):
        add_block(f"enc2.{i}", 256)

    kp = _round_up(num_embeddings, 128)
    cb = jnp.zeros((kp, 256), jnp.float32).at[:num_embeddings].set(
        rnd((num_embeddings, 256), scale=1.0))
    cbb = cb.astype(jnp.bfloat16)
    p["vq.codebook"] = cbb                               # pre-padded bf16
    p["vq.e2"] = jnp.sum(cbb.astype(jnp.float32) ** 2, axis=-1)[None, :]  # (1, kp) f32

    for i in range(1):
        add_block(f"dec2.{i}", 256)
    add_linear("expand2", 256, 512)
    for i in range(2):
        add_block(f"dec1.{i}", 128)
    add_linear("expand1", 128, 256)
    for i in range(2):
        add_block(f"dec0.{i}", 64)

    # Fold final 4x patch-expand (64 -> 16*64) with the 64 -> n_channel
    # projection into one 64 -> 16*n_channel linear (padded to 128 lanes).
    w_exp = rnd((64, 16 * 64))
    b_exp = jnp.zeros((16 * 64,), jnp.float32)
    w_proj = rnd((64, n_channel))
    b_proj = jnp.zeros((n_channel,), jnp.float32)
    w_fold = jnp.einsum("dse,ec->dsc", w_exp.reshape(64, 16, 64),
                        w_proj).reshape(64, 16 * n_channel)
    b_fold = (b_exp.reshape(16, 64) @ w_proj + b_proj[None, :]).reshape(-1)
    nf = 16 * n_channel
    p["final_fold.w"] = (jnp.zeros((64, 128), jnp.float32)
                         .at[:, :nf].set(w_fold).astype(jnp.bfloat16))
    p["final_fold.b"] = jnp.zeros((1, 128), jnp.float32).at[0, :nf].set(b_fold)
    return p


@functools.partial(jax.jit, static_argnames=("n_channel", "num_codes"))
def forward(params, fx, *, n_channel=3, num_codes=50):
    p = params
    B, Cin, H, W = fx.shape
    Hc, Wc = H // 4, W // 4

    # patch embedding: 4x4 non-overlapping patches -> dim 64 (fused linear+LN)
    x = fx.reshape(B, Cin, Hc, 4, Wc, 4)
    x = x.transpose(0, 2, 4, 1, 3, 5).reshape(B * Hc * Wc, Cin * 16)
    x = linear_ln(x, p, "patch_embed")                   # (B*Hc*Wc, 64) bf16

    # encoder (both residual blocks of each stage fused into one kernel)
    x = fused_stage(x, p, "enc0.", 2)
    skip0 = x                                            # (B*Hc*Wc, 64) bf16
    x = patch_merge(x.reshape(B, Hc, Wc, 64), p, "merge0")
    Hc, Wc = Hc // 2, Wc // 2
    x = fused_stage(x, p, "enc1.", 2)
    skip1 = x                                            # (B*Hc*Wc, 128) bf16
    x = patch_merge(x.reshape(B, Hc, Wc, 128), p, "merge1")
    Hc, Wc = Hc // 2, Wc // 2
    x = fused_stage(x, p, "enc2.", 2)

    # vector-quantization bottleneck (num_embeddings=50)
    zq, z_loss = pallas_vq(x, p["vq.codebook"], p["vq.e2"], num_codes)
    x = zq            # straight-through: forward value of x + sg(zq - x) == zq

    # decoder (skip-connection adds fused into the stage kernels)
    x = fused_stage(x, p, "dec2.", 1)
    x = patch_expand(x.reshape(B, Hc, Wc, 256), p, "expand2", scale=2)
    Hc, Wc = Hc * 2, Wc * 2
    x = fused_stage(x, p, "dec1.", 2, skip=skip1)
    x = patch_expand(x.reshape(B, Hc, Wc, 128), p, "expand1", scale=2)
    Hc, Wc = Hc * 2, Wc * 2
    x = fused_stage(x, p, "dec0.", 2, skip=skip0)

    # folded final 4x expand + projection: one linear, then pixel-shuffle
    y = pallas_linear(x, p["final_fold.w"], p["final_fold.b"],
                      out_dtype=jnp.float32)[:, :16 * n_channel]
    y = (y.reshape(B, Hc, Wc, 4, 4, n_channel)
          .transpose(0, 1, 3, 2, 4, 5)
          .reshape(B, H, W, n_channel)
          .transpose(0, 3, 1, 2))                        # back to NCHW
    return y, z_loss


if __name__ == "__main__":
    t_length, n_channel = 3, 3
    B, H, W = 2, 16, 16
    key = jax.random.PRNGKey(0)
    fx = jax.random.normal(key, (B, t_length * n_channel, H, W), jnp.float32)

    params = init_params(t_length=t_length, n_channel=n_channel, num_embeddings=50)
    out, z_loss = forward(params, fx, n_channel=n_channel, num_codes=50)
    jax.block_until_ready((out, z_loss))

    assert out.shape == (B, n_channel, H, W), out.shape
    assert z_loss.shape == (), z_loss.shape
    assert jnp.all(jnp.isfinite(out)) and jnp.isfinite(z_loss)
    print("KERNEL_OK")
</pallas_src>

<mosaic_0001>
module attributes {stable_mosaic.version = 11 : i64} {
  func.func @_linear_ln_kernel(%arg0: i32, %arg1: memref<32x144xf32, #tpu.memory_space<vmem>>, %arg2: memref<144x64xbf16, #tpu.memory_space<vmem>>, %arg3: memref<1x64xf32, #tpu.memory_space<vmem>>, %arg4: memref<1x64xf32, #tpu.memory_space<vmem>>, %arg5: memref<1x64xf32, #tpu.memory_space<vmem>>, %arg6: memref<32x64xbf16, #tpu.memory_space<vmem>>) attributes {dimension_semantics = [#tpu.dimension_semantics<parallel>], iteration_bounds = array<i64: 1>, scalar_prefetch = 0 : i64, scratch_operands = 0 : i64, tpu.core_type = #tpu.core_type<tc>, window_params = [{transform_indices = @transform_0, window_bounds = array<i64: 32, 144>}, {pipeline_mode = #tpu.pipeline_mode<synchronous>, transform_indices = @transform_1, window_bounds = array<i64: 144, 64>}, {pipeline_mode = #tpu.pipeline_mode<synchronous>, transform_indices = @transform_2, window_bounds = array<i64: 1, 64>}, {pipeline_mode = #tpu.pipeline_mode<synchronous>, transform_indices = @transform_3, window_bounds = array<i64: 1, 64>}, {pipeline_mode = #tpu.pipeline_mode<synchronous>, transform_indices = @transform_4, window_bounds = array<i64: 1, 64>}, {transform_indices = @transform_5, window_bounds = array<i64: 32, 64>}]} {
    %c0 = arith.constant 0 : index
    %c0_0 = arith.constant 0 : index
    %0 = vector.load %arg1[%c0, %c0_0] : memref<32x144xf32, #tpu.memory_space<vmem>>, vector<32x144xf32>
    %c0_1 = arith.constant 0 : index
    %c0_2 = arith.constant 0 : index
    %1 = vector.load %arg2[%c0_1, %c0_2] : memref<144x64xbf16, #tpu.memory_space<vmem>>, vector<144x64xbf16>
    %2 = arith.truncf %0 : vector<32x144xf32> to vector<32x144xbf16>
    %cst = arith.constant dense<0.000000e+00> : vector<32x64xf32>
    %3 = tpu.matmul %2, %1, %cst {dimension_numbers = #tpu.dot_dimension_numbers<[1], [0], [0], [1], [0, 0, 1, 1], [], []>} : vector<32x144xbf16>, vector<144x64xbf16>, vector<32x64xf32> -> vector<32x64xf32>
    %c0_3 = arith.constant 0 : index
    %c0_4 = arith.constant 0 : index
    %4 = vector.load %arg3[%c0_3, %c0_4] : memref<1x64xf32, #tpu.memory_space<vmem>>, vector<1x64xf32>
    %5 = vector.broadcast %4 : vector<1x64xf32> to vector<32x64xf32>
    %6 = arith.addf %3, %5 : vector<32x64xf32>
    %c0_5 = arith.constant 0 : index
    %c0_6 = arith.constant 0 : index
    %7 = vector.load %arg4[%c0_5, %c0_6] : memref<1x64xf32, #tpu.memory_space<vmem>>, vector<1x64xf32>
    %c0_7 = arith.constant 0 : index
    %c0_8 = arith.constant 0 : index
    %8 = vector.load %arg5[%c0_7, %c0_8] : memref<1x64xf32, #tpu.memory_space<vmem>>, vector<1x64xf32>
    %cst_9 = arith.constant dense<0.000000e+00> : vector<32xf32>
    %9 = vector.multi_reduction <add>, %6, %cst_9 [1] : vector<32x64xf32> to vector<32xf32>
    %10 = vector.shape_cast %9 : vector<32xf32> to vector<32x1xf32>
    %cst_10 = arith.constant 6.400000e+01 : f32
    %11 = vector.broadcast %cst_10 : f32 to vector<32x1xf32>
    %12 = arith.divf %10, %11 : vector<32x1xf32>
    %13 = vector.broadcast %12 : vector<32x1xf32> to vector<32x64xf32>
    %14 = arith.subf %6, %13 : vector<32x64xf32>
    %15 = arith.mulf %14, %14 : vector<32x64xf32>
    %cst_11 = arith.constant dense<0.000000e+00> : vector<32xf32>
    %16 = vector.multi_reduction <add>, %15, %cst_11 [1] : vector<32x64xf32> to vector<32xf32>
    %17 = vector.shape_cast %16 : vector<32xf32> to vector<32x1xf32>
    %cst_12 = arith.constant 6.400000e+01 : f32
    %18 = vector.broadcast %cst_12 : f32 to vector<32x1xf32>
    %19 = arith.divf %17, %18 : vector<32x1xf32>
    %20 = vector.broadcast %12 : vector<32x1xf32> to vector<32x64xf32>
    %21 = arith.subf %6, %20 : vector<32x64xf32>
    %cst_13 = arith.constant 9.99999974E-6 : f32
    %22 = vector.broadcast %cst_13 : f32 to vector<32x1xf32>
    %23 = arith.addf %19, %22 : vector<32x1xf32>
    %24 = math.rsqrt %23 : vector<32x1xf32>
    %25 = vector.broadcast %24 : vector<32x1xf32> to vector<32x64xf32>
    %26 = arith.mulf %21, %25 : vector<32x64xf32>
    %27 = vector.broadcast %7 : vector<1x64xf32> to vector<32x64xf32>
    %28 = arith.mulf %26, %27 : vector<32x64xf32>
    %29 = vector.broadcast %8 : vector<1x64xf32> to vector<32x64xf32>
    %30 = arith.addf %28, %29 : vector<32x64xf32>
    %31 = arith.truncf %30 : vector<32x64xf32> to vector<32x64xbf16>
    %c0_14 = arith.constant 0 : index
    %c0_15 = arith.constant 0 : index
    %32 = vector.load %arg6[%c0_14, %c0_15] : memref<32x64xbf16, #tpu.memory_space<vmem>>, vector<32x64xbf16>
    tpu.vector_store %arg6[%c0_14, %c0_15], %31 {strides = array<i32>} : memref<32x64xbf16, #tpu.memory_space<vmem>>, vector<32x64xbf16>,
    return
  }
  func.func @transform_0(%arg0: i32) -> (i32, i32) {
    %c0_i32 = arith.constant 0 : i32
    %c0_i32_0 = arith.constant 0 : i32
    return %arg0, %c0_i32 : i32, i32
  }
  func.func @transform_1(%arg0: i32) -> (i32, i32) {
    %c0_i32 = arith.constant 0 : i32
    %c0_i32_0 = arith.constant 0 : i32
    %c0_i32_1 = arith.constant 0 : i32
    return %c0_i32, %c0_i32_0 : i32, i32
  }
  func.func @transform_2(%arg0: i32) -> (i32, i32) {
    %c0_i32 = arith.constant 0 : i32
    %c0_i32_0 = arith.constant 0 : i32
    %c0_i32_1 = arith.constant 0 : i32
    return %c0_i32, %c0_i32_0 : i32, i32
  }
  func.func @transform_3(%arg0: i32) -> (i32, i32) {
    %c0_i32 = arith.constant 0 : i32
    %c0_i32_0 = arith.constant 0 : i32
    %c0_i32_1 = arith.constant 0 : i32
    return %c0_i32, %c0_i32_0 : i32, i32
  }
  func.func @transform_4(%arg0: i32) -> (i32, i32) {
    %c0_i32 = arith.constant 0 : i32
    %c0_i32_0 = arith.constant 0 : i32
    %c0_i32_1 = arith.constant 0 : i32
    return %c0_i32, %c0_i32_0 : i32, i32
  }
  func.func @transform_5(%arg0: i32) -> (i32, i32) {
    %c0_i32 = arith.constant 0 : i32
    %c0_i32_0 = arith.constant 0 : i32
    return %arg0, %c0_i32 : i32, i32
  }
}

module attributes {stable_mosaic.version = 11 : i64} {
  func.func @_blocks_kernel(%arg0: i32, %arg1: memref<32x64xbf16, #tpu.memory_space<vmem>>, %arg2: memref<1x64xf32, #tpu.memory_space<vmem>>, %arg3: memref<1x64xf32, #tpu.memory_space<vmem>>, %arg4: memref<64x128xbf16, #tpu.memory_space<vmem>>, %arg5: memref<1x128xf32, #tpu.memory_space<vmem>>, %arg6: memref<128x64xbf16, #tpu.memory_space<vmem>>, %arg7: memref<1x64xf32, #tpu.memory_space<vmem>>, %arg8: memref<1x64xf32, #tpu.memory_space<vmem>>, %arg9: memref<1x64xf32, #tpu.memory_space<vmem>>, %arg10: memref<64x128xbf16, #tpu.memory_space<vmem>>, %arg11: memref<1x128xf32, #tpu.memory_space<vmem>>, %arg12: memref<128x64xbf16, #tpu.memory_space<vmem>>, %arg13: memref<1x64xf32, #tpu.memory_space<vmem>>, %arg14: memref<32x64xbf16, #tpu.memory_space<vmem>>) attributes {dimension_semantics = [#tpu.dimension_semantics<parallel>], iteration_bounds = array<i64: 1>, scalar_prefetch = 0 : i64, scratch_operands = 0 : i64, tpu.core_type = #tpu.core_type<tc>, window_params = [{transform_indices = @transform_0, window_bounds = array<i64: 32, 64>}, {pipeline_mode = #tpu.pipeline_mode<synchronous>, transform_indices = @transform_1, window_bounds = array<i64: 1, 64>}, {pipeline_mode = #tpu.pipeline_mode<synchronous>, transform_indices = @transform_2, window_bounds = array<i64: 1, 64>}, {pipeline_mode = #tpu.pipeline_mode<synchronous>, transform_indices = @transform_3, window_bounds = array<i64: 64, 128>}, {pipeline_mode = #tpu.pipeline_mode<synchronous>, transform_indices = @transform_4, window_bounds = array<i64: 1, 128>}, {pipeline_mode = #tpu.pipeline_mode<synchronous>, transform_indices = @transform_5, window_bounds = array<i64: 128, 64>}, {pipeline_mode = #tpu.pipeline_mode<synchronous>, transform_indices = @transform_6, window_bounds = array<i64: 1, 64>}, {pipeline_mode = #tpu.pipeline_mode<synchronous>, transform_indices = @transform_7, window_bounds = array<i64: 1, 64>}, {pipeline_mode = #tpu.pipeline_mode<synchronous>, transform_indices = @transform_8, window_bounds = array<i64: 1, 64>}, {pipeline_mode = #tpu.pipeline_mode<synchronous>, transform_indices = @transform_9, window_bounds = array<i64: 64, 128>}, {pipeline_mode = #tpu.pipeline_mode<synchronous>, transform_indices = @transform_10, window_bounds = array<i64: 1, 128>}, {pipeline_mode = #tpu.pipeline_mode<synchronous>, transform_indices = @transform_11, window_bounds = array<i64: 128, 64>}, {pipeline_mode = #tpu.pipeline_mode<synchronous>, transform_indices = @transform_12, window_bounds = array<i64: 1, 64>}, {transform_indices = @transform_13, window_bounds = array<i64: 32, 64>}]} {
    %c0 = arith.constant 0 : index
    %c0_0 = arith.constant 0 : index
    %0 = vector.load %arg1[%c0, %c0_0] : memref<32x64xbf16, #tpu.memory_space<vmem>>, vector<32x64xbf16>
    %1 = arith.extf %0 : vector<32x64xbf16> to vector<32x64xf32>
    %c0_1 = arith.constant 0 : index
    %c0_2 = arith.constant 0 : index
    %2 = vector.load %arg2[%c0_1, %c0_2] : memref<1x64xf32, #tpu.memory_space<vmem>>, vector<1x64xf32>
    %c0_3 = arith.constant 0 : index
    %c0_4 = arith.constant 0 : index
    %3 = vector.load %arg3[%c0_3, %c0_4] : memref<1x64xf32, #tpu.memory_space<vmem>>, vector<1x64xf32>
    %cst = arith.constant dense<0.000000e+00> : vector<32xf32>
    %4 = vector.multi_reduction <add>, %1, %cst [1] : vector<32x64xf32> to vector<32xf32>
    %5 = vector.shape_cast %4 : vector<32xf32> to vector<32x1xf32>
    %cst_5 = arith.constant 6.400000e+01 : f32
    %6 = vector.broadcast %cst_5 : f32 to vector<32x1xf32>
    %7 = arith.divf %5, %6 : vector<32x1xf32>
    %8 = vector.broadcast %7 : vector<32x1xf32> to vector<32x64xf32>
    %9 = arith.subf %1, %8 : vector<32x64xf32>
    %10 = arith.mulf %9, %9 : vector<32x64xf32>
    %cst_6 = arith.constant dense<0.000000e+00> : vector<32xf32>
    %11 = vector.multi_reduction <add>, %10, %cst_6 [1] : vector<32x64xf32> to vector<32xf32>
    %12 = vector.shape_cast %11 : vector<32xf32> to vector<32x1xf32>
    %cst_7 = arith.constant 6.400000e+01 : f32
    %13 = vector.broadcast %cst_7 : f32 to vector<32x1xf32>
    %14 = arith.divf %12, %13 : vector<32x1xf32>
    %15 = vector.broadcast %7 : vector<32x1xf32> to vector<32x64xf32>
    %16 = arith.subf %1, %15 : vector<32x64xf32>
    %cst_8 = arith.constant 9.99999974E-6 : f32
    %17 = vector.broadcast %cst_8 : f32 to vector<32x1xf32>
    %18 = arith.addf %14, %17 : vector<32x1xf32>
    %19 = math.rsqrt %18 : vector<32x1xf32>
    %20 = vector.broadcast %19 : vector<32x1xf32> to vector<32x64xf32>
    %21 = arith.mulf %16, %20 : vector<32x64xf32>
    %22 = vector.broadcast %2 : vector<1x64xf32> to vector<32x64xf32>
    %23 = arith.mulf %21, %22 : vector<32x64xf32>
    %24 = vector.broadcast %3 : vector<1x64xf32> to vector<32x64xf32>
    %25 = arith.addf %23, %24 : vector<32x64xf32>
    %c0_9 = arith.constant 0 : index
    %c0_10 = arith.constant 0 : index
    %26 = vector.load %arg4[%c0_9, %c0_10] : memref<64x128xbf16, #tpu.memory_space<vmem>>, vector<64x128xbf16>
    %27 = arith.truncf %25 : vector<32x64xf32> to vector<32x64xbf16>
    %cst_11 = arith.constant dense<0.000000e+00> : vector<32x128xf32>
    %28 = tpu.matmul %27, %26, %cst_11 {dimension_numbers = #tpu.dot_dimension_numbers<[1], [0], [0], [1], [0, 0, 1, 1], [], []>} : vector<32x64xbf16>, vector<64x128xbf16>, vector<32x128xf32> -> vector<32x128xf32>
    %c0_12 = arith.constant 0 : index
    %c0_13 = arith.constant 0 : index
    %29 = vector.load %arg5[%c0_12, %c0_13] : memref<1x128xf32, #tpu.memory_space<vmem>>, vector<1x128xf32>
    %30 = vector.broadcast %29 : vector<1x128xf32> to vector<32x128xf32>
    %31 = arith.addf %28, %30 : vector<32x128xf32>
    %32 = arith.mulf %31, %31 : vector<32x128xf32>
    %33 = arith.mulf %31, %32 : vector<32x128xf32>
    %cst_14 = arith.constant 4.471500e-02 : f32
    %34 = vector.broadcast %cst_14 : f32 to vector<32x128xf32>
    %35 = arith.mulf %34, %33 : vector<32x128xf32>
    %36 = arith.addf %31, %35 : vector<32x128xf32>
    %cst_15 = arith.constant 0.797884583 : f32
    %37 = vector.broadcast %cst_15 : f32 to vector<32x128xf32>
    %38 = arith.mulf %37, %36 : vector<32x128xf32>
    %39 = math.tanh %38 : vector<32x128xf32>
    %cst_16 = arith.constant 1.000000e+00 : f32
    %40 = vector.broadcast %cst_16 : f32 to vector<32x128xf32>
    %41 = arith.addf %40, %39 : vector<32x128xf32>
    %cst_17 = arith.constant 5.000000e-01 : f32
    %42 = vector.broadcast %cst_17 : f32 to vector<32x128xf32>
    %43 = arith.mulf %42, %41 : vector<32x128xf32>
    %44 = arith.mulf %31, %43 : vector<32x128xf32>
    %c0_18 = arith.constant 0 : index
    %c0_19 = arith.constant 0 : index
    %45 = vector.load %arg6[%c0_18, %c0_19] : memref<128x64xbf16, #tpu.memory_space<vmem>>, vector<128x64xbf16>
    %46 = arith.truncf %44 : vector<32x128xf32> to vector<32x128xbf16>
    %cst_20 = arith.constant dense<0.000000e+00> : vector<32x64xf32>
    %47 = tpu.matmul %46, %45, %cst_20 {dimension_numbers = #tpu.dot_dimension_numbers<[1], [0], [0], [1], [0, 0, 1, 1], [], []>} : vector<32x128xbf16>, vector<128x64xbf16>, vector<32x64xf32> -> vector<32x64xf32>
    %c0_21 = arith.constant 0 : index
    %c0_22 = arith.constant 0 : index
    %48 = vector.load %arg7[%c0_21, %c0_22] : memref<1x64xf32, #tpu.memory_space<vmem>>, vector<1x64xf32>
    %49 = vector.broadcast %48 : vector<1x64xf32> to vector<32x64xf32>
    %50 = arith.addf %47, %49 : vector<32x64xf32>
    %51 = arith.addf %1, %50 : vector<32x64xf32>
    %c0_23 = arith.constant 0 : index
    %c0_24 = arith.constant 0 : index
    %52 = vector.load %arg8[%c0_23, %c0_24] : memref<1x64xf32, #tpu.memory_space<vmem>>, vector<1x64xf32>
    %c0_25 = arith.constant 0 : index
    %c0_26 = arith.constant 0 : index
    %53 = vector.load %arg9[%c0_25, %c0_26] : memref<1x64xf32, #tpu.memory_space<vmem>>, vector<1x64xf32>
    %cst_27 = arith.constant dense<0.000000e+00> : vector<32xf32>
    %54 = vector.multi_reduction <add>, %51, %cst_27 [1] : vector<32x64xf32> to vector<32xf32>
    %55 = vector.shape_cast %54 : vector<32xf32> to vector<32x1xf32>
    %cst_28 = arith.constant 6.400000e+01 : f32
    %56 = vector.broadcast %cst_28 : f32 to vector<32x1xf32>
    %57 = arith.divf %55, %56 : vector<32x1xf32>
    %58 = vector.broadcast %57 : vector<32x1xf32> to vector<32x64xf32>
    %59 = arith.subf %51, %58 : vector<32x64xf32>
    %60 = arith.mulf %59, %59 : vector<32x64xf32>
    %cst_29 = arith.constant dense<0.000000e+00> : vector<32xf32>
    %61 = vector.multi_reduction <add>, %60, %cst_29 [1] : vector<32x64xf32> to vector<32xf32>
    %62 = vector.shape_cast %61 : vector<32xf32> to vector<32x1xf32>
    %cst_30 = arith.constant 6.400000e+01 : f32
    %63 = vector.broadcast %cst_30 : f32 to vector<32x1xf32>
    %64 = arith.divf %62, %63 : vector<32x1xf32>
    %65 = vector.broadcast %57 : vector<32x1xf32> to vector<32x64xf32>
    %66 = arith.subf %51, %65 : vector<32x64xf32>
    %cst_31 = arith.constant 9.99999974E-6 : f32
    %67 = vector.broadcast %cst_31 : f32 to vector<32x1xf32>
    %68 = arith.addf %64, %67 : vector<32x1xf32>
    %69 = math.rsqrt %68 : vector<32x1xf32>
    %70 = vector.broadcast %69 : vector<32x1xf32> to vector<32x64xf32>
    %71 = arith.mulf %66, %70 : vector<32x64xf32>
    %72 = vector.broadcast %52 : vector<1x64xf32> to vector<32x64xf32>
    %73 = arith.mulf %71, %72 : vector<32x64xf32>
    %74 = vector.broadcast %53 : vector<1x64xf32> to vector<32x64xf32>
    %75 = arith.addf %73, %74 : vector<32x64xf32>
    %c0_32 = arith.constant 0 : index
    %c0_33 = arith.constant 0 : index
    %76 = vector.load %arg10[%c0_32, %c0_33] : memref<64x128xbf16, #tpu.memory_space<vmem>>, vector<64x128xbf16>
    %77 = arith.truncf %75 : vector<32x64xf32> to vector<32x64xbf16>
    %cst_34 = arith.constant dense<0.000000e+00> : vector<32x128xf32>
    %78 = tpu.matmul %77, %76, %cst_34 {dimension_numbers = #tpu.dot_dimension_numbers<[1], [0], [0], [1], [0, 0, 1, 1], [], []>} : vector<32x64xbf16>, vector<64x128xbf16>, vector<32x128xf32> -> vector<32x128xf32>
    %c0_35 = arith.constant 0 : index
    %c0_36 = arith.constant 0 : index
    %79 = vector.load %arg11[%c0_35, %c0_36] : memref<1x128xf32, #tpu.memory_space<vmem>>, vector<1x128xf32>
    %80 = vector.broadcast %79 : vector<1x128xf32> to vector<32x128xf32>
    %81 = arith.addf %78, %80 : vector<32x128xf32>
    %82 = arith.mulf %81, %81 : vector<32x128xf32>
    %83 = arith.mulf %81, %82 : vector<32x128xf32>
    %cst_37 = arith.constant 4.471500e-02 : f32
    %84 = vector.broadcast %cst_37 : f32 to vector<32x128xf32>
    %85 = arith.mulf %84, %83 : vector<32x128xf32>
    %86 = arith.addf %81, %85 : vector<32x128xf32>
    %cst_38 = arith.constant 0.797884583 : f32
    %87 = vector.broadcast %cst_38 : f32 to vector<32x128xf32>
    %88 = arith.mulf %87, %86 : vector<32x128xf32>
    %89 = math.tanh %88 : vector<32x128xf32>
    %cst_39 = arith.constant 1.000000e+00 : f32
    %90 = vector.broadcast %cst_39 : f32 to vector<32x128xf32>
    %91 = arith.addf %90, %89 : vector<32x128xf32>
    %cst_40 = arith.constant 5.000000e-01 : f32
    %92 = vector.broadcast %cst_40 : f32 to vector<32x128xf32>
    %93 = arith.mulf %92, %91 : vector<32x128xf32>
    %94 = arith.mulf %81, %93 : vector<32x128xf32>
    %c0_41 = arith.constant 0 : index
    %c0_42 = arith.constant 0 : index
    %95 = vector.load %arg12[%c0_41, %c0_42] : memref<128x64xbf16, #tpu.memory_space<vmem>>, vector<128x64xbf16>
    %96 = arith.truncf %94 : vector<32x128xf32> to vector<32x128xbf16>
    %cst_43 = arith.constant dense<0.000000e+00> : vector<32x64xf32>
    %97 = tpu.matmul %96, %95, %cst_43 {dimension_numbers = #tpu.dot_dimension_numbers<[1], [0], [0], [1], [0, 0, 1, 1], [], []>} : vector<32x128xbf16>, vector<128x64xbf16>, vector<32x64xf32> -> vector<32x64xf32>
    %c0_44 = arith.constant 0 : index
    %c0_45 = arith.constant 0 : index
    %98 = vector.load %arg13[%c0_44, %c0_45] : memref<1x64xf32, #tpu.memory_space<vmem>>, vector<1x64xf32>
    %99 = vector.broadcast %98 : vector<1x64xf32> to vector<32x64xf32>
    %100 = arith.addf %97, %99 : vector<32x64xf32>
    %101 = arith.addf %51, %100 : vector<32x64xf32>
    %102 = arith.truncf %101 : vector<32x64xf32> to vector<32x64xbf16>
    %c0_46 = arith.constant 0 : index
    %c0_47 = arith.constant 0 : index
    %103 = vector.load %arg14[%c0_46, %c0_47] : memref<32x64xbf16, #tpu.memory_space<vmem>>, vector<32x64xbf16>
    tpu.vector_store %arg14[%c0_46, %c0_47], %102 {strides = array<i32>} : memref<32x64xbf16, #tpu.memory_space<vmem>>, vector<32x64xbf16>,
    return
  }
  func.func @transform_0(%arg0: i32) -> (i32, i32) {
    %c0_i32 = arith.constant 0 : i32
    %c0_i32_0 = arith.constant 0 : i32
    return %arg0, %c0_i32 : i32, i32
  }
  func.func @transform_1(%arg0: i32) -> (i32, i32) {
    %c0_i32 = arith.constant 0 : i32
    %c0_i32_0 = arith.constant 0 : i32
    %c0_i32_1 = arith.constant 0 : i32
    return %c0_i32, %c0_i32_0 : i32, i32
  }
  func.func @transform_2(%arg0: i32) -> (i32, i32) {
    %c0_i32 = arith.constant 0 : i32
    %c0_i32_0 = arith.constant 0 : i32
    %c0_i32_1 = arith.constant 0 : i32
    return %c0_i32, %c0_i32_0 : i32, i32
  }
  func.func @transform_3(%arg0: i32) -> (i32, i32) {
    %c0_i32 = arith.constant 0 : i32
    %c0_i32_0 = arith.constant 0 : i32
    %c0_i32_1 = arith.constant 0 : i32
    return %c0_i32, %c0_i32_0 : i32, i32
  }
  func.func @transform_4(%arg0: i32) -> (i32, i32) {
    %c0_i32 = arith.constant 0 : i32
    %c0_i32_0 = arith.constant 0 : i32
    %c0_i32_1 = arith.constant 0 : i32
    return %c0_i32, %c0_i32_0 : i32, i32
  }
  func.func @transform_5(%arg0: i32) -> (i32, i32) {
    %c0_i32 = arith.constant 0 : i32
    %c0_i32_0 = arith.constant 0 : i32
    %c0_i32_1 = arith.constant 0 : i32
    return %c0_i32, %c0_i32_0 : i32, i32
  }
  func.func @transform_6(%arg0: i32) -> (i32, i32) {
    %c0_i32 = arith.constant 0 : i32
    %c0_i32_0 = arith.constant 0 : i32
    %c0_i32_1 = arith.constant 0 : i32
    return %c0_i32, %c0_i32_0 : i32, i32
  }
  func.func @transform_7(%arg0: i32) -> (i32, i32) {
    %c0_i32 = arith.constant 0 : i32
    %c0_i32_0 = arith.constant 0 : i32
    %c0_i32_1 = arith.constant 0 : i32
    return %c0_i32, %c0_i32_0 : i32, i32
  }
  func.func @transform_8(%arg0: i32) -> (i32, i32) {
    %c0_i32 = arith.constant 0 : i32
    %c0_i32_0 = arith.constant 0 : i32
    %c0_i32_1 = arith.constant 0 : i32
    return %c0_i32, %c0_i32_0 : i32, i32
  }
  func.func @transform_9(%arg0: i32) -> (i32, i32) {
    %c0_i32 = arith.constant 0 : i32
    %c0_i32_0 = arith.constant 0 : i32
    %c0_i32_1 = arith.constant 0 : i32
    return %c0_i32, %c0_i32_0 : i32, i32
  }
  func.func @transform_10(%arg0: i32) -> (i32, i32) {
    %c0_i32 = arith.constant 0 : i32
    %c0_i32_0 = arith.constant 0 : i32
    %c0_i32_1 = arith.constant 0 : i32
    return %c0_i32, %c0_i32_0 : i32, i32
  }
  func.func @transform_11(%arg0: i32) -> (i32, i32) {
    %c0_i32 = arith.constant 0 : i32
    %c0_i32_0 = arith.constant 0 : i32
    %c0_i32_1 = arith.constant 0 : i32
    return %c0_i32, %c0_i32_0 : i32, i32
  }
  func.func @transform_12(%arg0: i32) -> (i32, i32) {
    %c0_i32 = arith.constant 0 : i32
    %c0_i32_0 = arith.constant 0 : i32
    %c0_i32_1 = arith.constant 0 : i32
    return %c0_i32, %c0_i32_0 : i32, i32
  }
  func.func @transform_13(%arg0: i32) -> (i32, i32) {
    %c0_i32 = arith.constant 0 : i32
    %c0_i32_0 = arith.constant 0 : i32
    return %arg0, %c0_i32 : i32, i32
  }
}

module attributes {stable_mosaic.version = 11 : i64} {
  func.func @_ln_linear_kernel(%arg0: i32, %arg1: memref<16x256xbf16, #tpu.memory_space<vmem>>, %arg2: memref<1x256xf32, #tpu.memory_space<vmem>>, %arg3: memref<1x256xf32, #tpu.memory_space<vmem>>, %arg4: memref<256x128xbf16, #tpu.memory_space<vmem>>, %arg5: memref<1x128xf32, #tpu.memory_space<vmem>>, %arg6: memref<16x128xbf16, #tpu.memory_space<vmem>>) attributes {dimension_semantics = [#tpu.dimension_semantics<parallel>], iteration_bounds = array<i64: 1>, scalar_prefetch = 0 : i64, scratch_operands = 0 : i64, tpu.core_type = #tpu.core_type<tc>, window_params = [{transform_indices = @transform_0, window_bounds = array<i64: 16, 256>}, {pipeline_mode = #tpu.pipeline_mode<synchronous>, transform_indices = @transform_1, window_bounds = array<i64: 1, 256>}, {pipeline_mode = #tpu.pipeline_mode<synchronous>, transform_indices = @transform_2, window_bounds = array<i64: 1, 256>}, {pipeline_mode = #tpu.pipeline_mode<synchronous>, transform_indices = @transform_3, window_bounds = array<i64: 256, 128>}, {pipeline_mode = #tpu.pipeline_mode<synchronous>, transform_indices = @transform_4, window_bounds = array<i64: 1, 128>}, {transform_indices = @transform_5, window_bounds = array<i64: 16, 128>}]} {
    %c0 = arith.constant 0 : index
    %c0_0 = arith.constant 0 : index
    %0 = vector.load %arg1[%c0, %c0_0] : memref<16x256xbf16, #tpu.memory_space<vmem>>, vector<16x256xbf16>
    %1 = arith.extf %0 : vector<16x256xbf16> to vector<16x256xf32>
    %c0_1 = arith.constant 0 : index
    %c0_2 = arith.constant 0 : index
    %2 = vector.load %arg2[%c0_1, %c0_2] : memref<1x256xf32, #tpu.memory_space<vmem>>, vector<1x256xf32>
    %c0_3 = arith.constant 0 : index
    %c0_4 = arith.constant 0 : index
    %3 = vector.load %arg3[%c0_3, %c0_4] : memref<1x256xf32, #tpu.memory_space<vmem>>, vector<1x256xf32>
    %cst = arith.constant dense<0.000000e+00> : vector<16xf32>
    %4 = vector.multi_reduction <add>, %1, %cst [1] : vector<16x256xf32> to vector<16xf32>
    %5 = vector.shape_cast %4 : vector<16xf32> to vector<16x1xf32>
    %cst_5 = arith.constant 2.560000e+02 : f32
    %6 = vector.broadcast %cst_5 : f32 to vector<16x1xf32>
    %7 = arith.divf %5, %6 : vector<16x1xf32>
    %8 = vector.broadcast %7 : vector<16x1xf32> to vector<16x256xf32>
    %9 = arith.subf %1, %8 : vector<16x256xf32>
    %10 = arith.mulf %9, %9 : vector<16x256xf32>
    %cst_6 = arith.constant dense<0.000000e+00> : vector<16xf32>
    %11 = vector.multi_reduction <add>, %10, %cst_6 [1] : vector<16x256xf32> to vector<16xf32>
    %12 = vector.shape_cast %11 : vector<16xf32> to vector<16x1xf32>
    %cst_7 = arith.constant 2.560000e+02 : f32
    %13 = vector.broadcast %cst_7 : f32 to vector<16x1xf32>
    %14 = arith.divf %12, %13 : vector<16x1xf32>
    %15 = vector.broadcast %7 : vector<16x1xf32> to vector<16x256xf32>
    %16 = arith.subf %1, %15 : vector<16x256xf32>
    %cst_8 = arith.constant 9.99999974E-6 : f32
    %17 = vector.broadcast %cst_8 : f32 to vector<16x1xf32>
    %18 = arith.addf %14, %17 : vector<16x1xf32>
    %19 = math.rsqrt %18 : vector<16x1xf32>
    %20 = vector.broadcast %19 : vector<16x1xf32> to vector<16x256xf32>
    %21 = arith.mulf %16, %20 : vector<16x256xf32>
    %22 = vector.broadcast %2 : vector<1x256xf32> to vector<16x256xf32>
    %23 = arith.mulf %21, %22 : vector<16x256xf32>
    %24 = vector.broadcast %3 : vector<1x256xf32> to vector<16x256xf32>
    %25 = arith.addf %23, %24 : vector<16x256xf32>
    %c0_9 = arith.constant 0 : index
    %c0_10 = arith.constant 0 : index
    %26 = vector.load %arg4[%c0_9, %c0_10] : memref<256x128xbf16, #tpu.memory_space<vmem>>, vector<256x128xbf16>
    %27 = arith.truncf %25 : vector<16x256xf32> to vector<16x256xbf16>
    %cst_11 = arith.constant dense<0.000000e+00> : vector<16x128xf32>
    %28 = tpu.matmul %27, %26, %cst_11 {dimension_numbers = #tpu.dot_dimension_numbers<[1], [0], [0], [1], [0, 0, 1, 1], [], []>} : vector<16x256xbf16>, vector<256x128xbf16>, vector<16x128xf32> -> vector<16x128xf32>
    %c0_12 = arith.constant 0 : index
    %c0_13 = arith.constant 0 : index
    %29 = vector.load %arg5[%c0_12, %c0_13] : memref<1x128xf32, #tpu.memory_space<vmem>>, vector<1x128xf32>
    %30 = vector.broadcast %29 : vector<1x128xf32> to vector<16x128xf32>
    %31 = arith.addf %28, %30 : vector<16x128xf32>
    %32 = arith.truncf %31 : vector<16x128xf32> to vector<16x128xbf16>
    %c0_14 = arith.constant 0 : index
    %c0_15 = arith.constant 0 : index
    %33 = vector.load %arg6[%c0_14, %c0_15] : memref<16x128xbf16, #tpu.memory_space<vmem>>, vector<16x128xbf16>
    tpu.vector_store %arg6[%c0_14, %c0_15], %32 {strides = array<i32>} : memref<16x128xbf16, #tpu.memory_space<vmem>>, vector<16x128xbf16>,
    return
  }
  func.func @transform_0(%arg0: i32) -> (i32, i32) {
    %c0_i32 = arith.constant 0 : i32
    %c0_i32_0 = arith.constant 0 : i32
    return %arg0, %c0_i32 : i32, i32
  }
  func.func @transform_1(%arg0: i32) -> (i32, i32) {
    %c0_i32 = arith.constant 0 : i32
    %c0_i32_0 = arith.constant 0 : i32
    %c0_i32_1 = arith.constant 0 : i32
    return %c0_i32, %c0_i32_0 : i32, i32
  }
  func.func @transform_2(%arg0: i32) -> (i32, i32) {
    %c0_i32 = arith.constant 0 : i32
    %c0_i32_0 = arith.constant 0 : i32
    %c0_i32_1 = arith.constant 0 : i32
    return %c0_i32, %c0_i32_0 : i32, i32
  }
  func.func @transform_3(%arg0: i32) -> (i32, i32) {
    %c0_i32 = arith.constant 0 : i32
    %c0_i32_0 = arith.constant 0 : i32
    %c0_i32_1 = arith.constant 0 : i32
    return %c0_i32, %c0_i32_0 : i32, i32
  }
  func.func @transform_4(%arg0: i32) -> (i32, i32) {
    %c0_i32 = arith.constant 0 : i32
    %c0_i32_0 = arith.constant 0 : i32
    %c0_i32_1 = arith.constant 0 : i32
    return %c0_i32, %c0_i32_0 : i32, i32
  }
  func.func @transform_5(%arg0: i32) -> (i32, i32) {
    %c0_i32 = arith.constant 0 : i32
    %c0_i32_0 = arith.constant 0 : i32
    return %arg0, %c0_i32 : i32, i32
  }
}

module attributes {stable_mosaic.version = 11 : i64} {
  func.func @_blocks_kernel(%arg0: i32, %arg1: memref<16x128xbf16, #tpu.memory_space<vmem>>, %arg2: memref<1x128xf32, #tpu.memory_space<vmem>>, %arg3: memref<1x128xf32, #tpu.memory_space<vmem>>, %arg4: memref<128x256xbf16, #tpu.memory_space<vmem>>, %arg5: memref<1x256xf32, #tpu.memory_space<vmem>>, %arg6: memref<256x128xbf16, #tpu.memory_space<vmem>>, %arg7: memref<1x128xf32, #tpu.memory_space<vmem>>, %arg8: memref<1x128xf32, #tpu.memory_space<vmem>>, %arg9: memref<1x128xf32, #tpu.memory_space<vmem>>, %arg10: memref<128x256xbf16, #tpu.memory_space<vmem>>, %arg11: memref<1x256xf32, #tpu.memory_space<vmem>>, %arg12: memref<256x128xbf16, #tpu.memory_space<vmem>>, %arg13: memref<1x128xf32, #tpu.memory_space<vmem>>, %arg14: memref<16x128xbf16, #tpu.memory_space<vmem>>) attributes {dimension_semantics = [#tpu.dimension_semantics<parallel>], iteration_bounds = array<i64: 1>, scalar_prefetch = 0 : i64, scratch_operands = 0 : i64, tpu.core_type = #tpu.core_type<tc>, window_params = [{transform_indices = @transform_0, window_bounds = array<i64: 16, 128>}, {pipeline_mode = #tpu.pipeline_mode<synchronous>, transform_indices = @transform_1, window_bounds = array<i64: 1, 128>}, {pipeline_mode = #tpu.pipeline_mode<synchronous>, transform_indices = @transform_2, window_bounds = array<i64: 1, 128>}, {pipeline_mode = #tpu.pipeline_mode<synchronous>, transform_indices = @transform_3, window_bounds = array<i64: 128, 256>}, {pipeline_mode = #tpu.pipeline_mode<synchronous>, transform_indices = @transform_4, window_bounds = array<i64: 1, 256>}, {pipeline_mode = #tpu.pipeline_mode<synchronous>, transform_indices = @transform_5, window_bounds = array<i64: 256, 128>}, {pipeline_mode = #tpu.pipeline_mode<synchronous>, transform_indices = @transform_6, window_bounds = array<i64: 1, 128>}, {pipeline_mode = #tpu.pipeline_mode<synchronous>, transform_indices = @transform_7, window_bounds = array<i64: 1, 128>}, {pipeline_mode = #tpu.pipeline_mode<synchronous>, transform_indices = @transform_8, window_bounds = array<i64: 1, 128>}, {pipeline_mode = #tpu.pipeline_mode<synchronous>, transform_indices = @transform_9, window_bounds = array<i64: 128, 256>}, {pipeline_mode = #tpu.pipeline_mode<synchronous>, transform_indices = @transform_10, window_bounds = array<i64: 1, 256>}, {pipeline_mode = #tpu.pipeline_mode<synchronous>, transform_indices = @transform_11, window_bounds = array<i64: 256, 128>}, {pipeline_mode = #tpu.pipeline_mode<synchronous>, transform_indices = @transform_12, window_bounds = array<i64: 1, 128>}, {transform_indices = @transform_13, window_bounds = array<i64: 16, 128>}]} {
    %c0 = arith.constant 0 : index
    %c0_0 = arith.constant 0 : index
    %0 = vector.load %arg1[%c0, %c0_0] : memref<16x128xbf16, #tpu.memory_space<vmem>>, vector<16x128xbf16>
    %1 = arith.extf %0 : vector<16x128xbf16> to vector<16x128xf32>
    %c0_1 = arith.constant 0 : index
    %c0_2 = arith.constant 0 : index
    %2 = vector.load %arg2[%c0_1, %c0_2] : memref<1x128xf32, #tpu.memory_space<vmem>>, vector<1x128xf32>
    %c0_3 = arith.constant 0 : index
    %c0_4 = arith.constant 0 : index
    %3 = vector.load %arg3[%c0_3, %c0_4] : memref<1x128xf32, #tpu.memory_space<vmem>>, vector<1x128xf32>
    %cst = arith.constant dense<0.000000e+00> : vector<16xf32>
    %4 = vector.multi_reduction <add>, %1, %cst [1] : vector<16x128xf32> to vector<16xf32>
    %5 = vector.shape_cast %4 : vector<16xf32> to vector<16x1xf32>
    %cst_5 = arith.constant 1.280000e+02 : f32
    %6 = vector.broadcast %cst_5 : f32 to vector<16x1xf32>
    %7 = arith.divf %5, %6 : vector<16x1xf32>
    %8 = vector.broadcast %7 : vector<16x1xf32> to vector<16x128xf32>
    %9 = arith.subf %1, %8 : vector<16x128xf32>
    %10 = arith.mulf %9, %9 : vector<16x128xf32>
    %cst_6 = arith.constant dense<0.000000e+00> : vector<16xf32>
    %11 = vector.multi_reduction <add>, %10, %cst_6 [1] : vector<16x128xf32> to vector<16xf32>
    %12 = vector.shape_cast %11 : vector<16xf32> to vector<16x1xf32>
    %cst_7 = arith.constant 1.280000e+02 : f32
    %13 = vector.broadcast %cst_7 : f32 to vector<16x1xf32>
    %14 = arith.divf %12, %13 : vector<16x1xf32>
    %15 = vector.broadcast %7 : vector<16x1xf32> to vector<16x128xf32>
    %16 = arith.subf %1, %15 : vector<16x128xf32>
    %cst_8 = arith.constant 9.99999974E-6 : f32
    %17 = vector.broadcast %cst_8 : f32 to vector<16x1xf32>
    %18 = arith.addf %14, %17 : vector<16x1xf32>
    %19 = math.rsqrt %18 : vector<16x1xf32>
    %20 = vector.broadcast %19 : vector<16x1xf32> to vector<16x128xf32>
    %21 = arith.mulf %16, %20 : vector<16x128xf32>
    %22 = vector.broadcast %2 : vector<1x128xf32> to vector<16x128xf32>
    %23 = arith.mulf %21, %22 : vector<16x128xf32>
    %24 = vector.broadcast %3 : vector<1x128xf32> to vector<16x128xf32>
    %25 = arith.addf %23, %24 : vector<16x128xf32>
    %c0_9 = arith.constant 0 : index
    %c0_10 = arith.constant 0 : index
    %26 = vector.load %arg4[%c0_9, %c0_10] : memref<128x256xbf16, #tpu.memory_space<vmem>>, vector<128x256xbf16>
    %27 = arith.truncf %25 : vector<16x128xf32> to vector<16x128xbf16>
    %cst_11 = arith.constant dense<0.000000e+00> : vector<16x256xf32>
    %28 = tpu.matmul %27, %26, %cst_11 {dimension_numbers = #tpu.dot_dimension_numbers<[1], [0], [0], [1], [0, 0, 1, 1], [], []>} : vector<16x128xbf16>, vector<128x256xbf16>, vector<16x256xf32> -> vector<16x256xf32>
    %c0_12 = arith.constant 0 : index
    %c0_13 = arith.constant 0 : index
    %29 = vector.load %arg5[%c0_12, %c0_13] : memref<1x256xf32, #tpu.memory_space<vmem>>, vector<1x256xf32>
    %30 = vector.broadcast %29 : vector<1x256xf32> to vector<16x256xf32>
    %31 = arith.addf %28, %30 : vector<16x256xf32>
    %32 = arith.mulf %31, %31 : vector<16x256xf32>
    %33 = arith.mulf %31, %32 : vector<16x256xf32>
    %cst_14 = arith.constant 4.471500e-02 : f32
    %34 = vector.broadcast %cst_14 : f32 to vector<16x256xf32>
    %35 = arith.mulf %34, %33 : vector<16x256xf32>
    %36 = arith.addf %31, %35 : vector<16x256xf32>
    %cst_15 = arith.constant 0.797884583 : f32
    %37 = vector.broadcast %cst_15 : f32 to vector<16x256xf32>
    %38 = arith.mulf %37, %36 : vector<16x256xf32>
    %39 = math.tanh %38 : vector<16x256xf32>
    %cst_16 = arith.constant 1.000000e+00 : f32
    %40 = vector.broadcast %cst_16 : f32 to vector<16x256xf32>
    %41 = arith.addf %40, %39 : vector<16x256xf32>
    %cst_17 = arith.constant 5.000000e-01 : f32
    %42 = vector.broadcast %cst_17 : f32 to vector<16x256xf32>
    %43 = arith.mulf %42, %41 : vector<16x256xf32>
    %44 = arith.mulf %31, %43 : vector<16x256xf32>
    %c0_18 = arith.constant 0 : index
    %c0_19 = arith.constant 0 : index
    %45 = vector.load %arg6[%c0_18, %c0_19] : memref<256x128xbf16, #tpu.memory_space<vmem>>, vector<256x128xbf16>
    %46 = arith.truncf %44 : vector<16x256xf32> to vector<16x256xbf16>
    %cst_20 = arith.constant dense<0.000000e+00> : vector<16x128xf32>
    %47 = tpu.matmul %46, %45, %cst_20 {dimension_numbers = #tpu.dot_dimension_numbers<[1], [0], [0], [1], [0, 0, 1, 1], [], []>} : vector<16x256xbf16>, vector<256x128xbf16>, vector<16x128xf32> -> vector<16x128xf32>
    %c0_21 = arith.constant 0 : index
    %c0_22 = arith.constant 0 : index
    %48 = vector.load %arg7[%c0_21, %c0_22] : memref<1x128xf32, #tpu.memory_space<vmem>>, vector<1x128xf32>
    %49 = vector.broadcast %48 : vector<1x128xf32> to vector<16x128xf32>
    %50 = arith.addf %47, %49 : vector<16x128xf32>
    %51 = arith.addf %1, %50 : vector<16x128xf32>
    %c0_23 = arith.constant 0 : index
    %c0_24 = arith.constant 0 : index
    %52 = vector.load %arg8[%c0_23, %c0_24] : memref<1x128xf32, #tpu.memory_space<vmem>>, vector<1x128xf32>
    %c0_25 = arith.constant 0 : index
    %c0_26 = arith.constant 0 : index
    %53 = vector.load %arg9[%c0_25, %c0_26] : memref<1x128xf32, #tpu.memory_space<vmem>>, vector<1x128xf32>
    %cst_27 = arith.constant dense<0.000000e+00> : vector<16xf32>
    %54 = vector.multi_reduction <add>, %51, %cst_27 [1] : vector<16x128xf32> to vector<16xf32>
    %55 = vector.shape_cast %54 : vector<16xf32> to vector<16x1xf32>
    %cst_28 = arith.constant 1.280000e+02 : f32
    %56 = vector.broadcast %cst_28 : f32 to vector<16x1xf32>
    %57 = arith.divf %55, %56 : vector<16x1xf32>
    %58 = vector.broadcast %57 : vector<16x1xf32> to vector<16x128xf32>
    %59 = arith.subf %51, %58 : vector<16x128xf32>
    %60 = arith.mulf %59, %59 : vector<16x128xf32>
    %cst_29 = arith.constant dense<0.000000e+00> : vector<16xf32>
    %61 = vector.multi_reduction <add>, %60, %cst_29 [1] : vector<16x128xf32> to vector<16xf32>
    %62 = vector.shape_cast %61 : vector<16xf32> to vector<16x1xf32>
    %cst_30 = arith.constant 1.280000e+02 : f32
    %63 = vector.broadcast %cst_30 : f32 to vector<16x1xf32>
    %64 = arith.divf %62, %63 : vector<16x1xf32>
    %65 = vector.broadcast %57 : vector<16x1xf32> to vector<16x128xf32>
    %66 = arith.subf %51, %65 : vector<16x128xf32>
    %cst_31 = arith.constant 9.99999974E-6 : f32
    %67 = vector.broadcast %cst_31 : f32 to vector<16x1xf32>
    %68 = arith.addf %64, %67 : vector<16x1xf32>
    %69 = math.rsqrt %68 : vector<16x1xf32>
    %70 = vector.broadcast %69 : vector<16x1xf32> to vector<16x128xf32>
    %71 = arith.mulf %66, %70 : vector<16x128xf32>
    %72 = vector.broadcast %52 : vector<1x128xf32> to vector<16x128xf32>
    %73 = arith.mulf %71, %72 : vector<16x128xf32>
    %74 = vector.broadcast %53 : vector<1x128xf32> to vector<16x128xf32>
    %75 = arith.addf %73, %74 : vector<16x128xf32>
    %c0_32 = arith.constant 0 : index
    %c0_33 = arith.constant 0 : index
    %76 = vector.load %arg10[%c0_32, %c0_33] : memref<128x256xbf16, #tpu.memory_space<vmem>>, vector<128x256xbf16>
    %77 = arith.truncf %75 : vector<16x128xf32> to vector<16x128xbf16>
    %cst_34 = arith.constant dense<0.000000e+00> : vector<16x256xf32>
    %78 = tpu.matmul %77, %76, %cst_34 {dimension_numbers = #tpu.dot_dimension_numbers<[1], [0], [0], [1], [0, 0, 1, 1], [], []>} : vector<16x128xbf16>, vector<128x256xbf16>, vector<16x256xf32> -> vector<16x256xf32>
    %c0_35 = arith.constant 0 : index
    %c0_36 = arith.constant 0 : index
    %79 = vector.load %arg11[%c0_35, %c0_36] : memref<1x256xf32, #tpu.memory_space<vmem>>, vector<1x256xf32>
    %80 = vector.broadcast %79 : vector<1x256xf32> to vector<16x256xf32>
    %81 = arith.addf %78, %80 : vector<16x256xf32>
    %82 = arith.mulf %81, %81 : vector<16x256xf32>
    %83 = arith.mulf %81, %82 : vector<16x256xf32>
    %cst_37 = arith.constant 4.471500e-02 : f32
    %84 = vector.broadcast %cst_37 : f32 to vector<16x256xf32>
    %85 = arith.mulf %84, %83 : vector<16x256xf32>
    %86 = arith.addf %81, %85 : vector<16x256xf32>
    %cst_38 = arith.constant 0.797884583 : f32
    %87 = vector.broadcast %cst_38 : f32 to vector<16x256xf32>
    %88 = arith.mulf %87, %86 : vector<16x256xf32>
    %89 = math.tanh %88 : vector<16x256xf32>
    %cst_39 = arith.constant 1.000000e+00 : f32
    %90 = vector.broadcast %cst_39 : f32 to vector<16x256xf32>
    %91 = arith.addf %90, %89 : vector<16x256xf32>
    %cst_40 = arith.constant 5.000000e-01 : f32
    %92 = vector.broadcast %cst_40 : f32 to vector<16x256xf32>
    %93 = arith.mulf %92, %91 : vector<16x256xf32>
    %94 = arith.mulf %81, %93 : vector<16x256xf32>
    %c0_41 = arith.constant 0 : index
    %c0_42 = arith.constant 0 : index
    %95 = vector.load %arg12[%c0_41, %c0_42] : memref<256x128xbf16, #tpu.memory_space<vmem>>, vector<256x128xbf16>
    %96 = arith.truncf %94 : vector<16x256xf32> to vector<16x256xbf16>
    %cst_43 = arith.constant dense<0.000000e+00> : vector<16x128xf32>
    %97 = tpu.matmul %96, %95, %cst_43 {dimension_numbers = #tpu.dot_dimension_numbers<[1], [0], [0], [1], [0, 0, 1, 1], [], []>} : vector<16x256xbf16>, vector<256x128xbf16>, vector<16x128xf32> -> vector<16x128xf32>
    %c0_44 = arith.constant 0 : index
    %c0_45 = arith.constant 0 : index
    %98 = vector.load %arg13[%c0_44, %c0_45] : memref<1x128xf32, #tpu.memory_space<vmem>>, vector<1x128xf32>
    %99 = vector.broadcast %98 : vector<1x128xf32> to vector<16x128xf32>
    %100 = arith.addf %97, %99 : vector<16x128xf32>
    %101 = arith.addf %51, %100 : vector<16x128xf32>
    %102 = arith.truncf %101 : vector<16x128xf32> to vector<16x128xbf16>
    %c0_46 = arith.constant 0 : index
    %c0_47 = arith.constant 0 : index
    %103 = vector.load %arg14[%c0_46, %c0_47] : memref<16x128xbf16, #tpu.memory_space<vmem>>, vector<16x128xbf16>
    tpu.vector_store %arg14[%c0_46, %c0_47], %102 {strides = array<i32>} : memref<16x128xbf16, #tpu.memory_space<vmem>>, vector<16x128xbf16>,
    return
  }
  func.func @transform_0(%arg0: i32) -> (i32, i32) {
    %c0_i32 = arith.constant 0 : i32
    %c0_i32_0 = arith.constant 0 : i32
    return %arg0, %c0_i32 : i32, i32
  }
  func.func @transform_1(%arg0: i32) -> (i32, i32) {
    %c0_i32 = arith.constant 0 : i32
    %c0_i32_0 = arith.constant 0 : i32
    %c0_i32_1 = arith.constant 0 : i32
    return %c0_i32, %c0_i32_0 : i32, i32
  }
  func.func @transform_2(%arg0: i32) -> (i32, i32) {
    %c0_i32 = arith.constant 0 : i32
    %c0_i32_0 = arith.constant 0 : i32
    %c0_i32_1 = arith.constant 0 : i32
    return %c0_i32, %c0_i32_0 : i32, i32
  }
  func.func @transform_3(%arg0: i32) -> (i32, i32) {
    %c0_i32 = arith.constant 0 : i32
    %c0_i32_0 = arith.constant 0 : i32
    %c0_i32_1 = arith.constant 0 : i32
    return %c0_i32, %c0_i32_0 : i32, i32
  }
  func.func @transform_4(%arg0: i32) -> (i32, i32) {
    %c0_i32 = arith.constant 0 : i32
    %c0_i32_0 = arith.constant 0 : i32
    %c0_i32_1 = arith.constant 0 : i32
    return %c0_i32, %c0_i32_0 : i32, i32
  }
  func.func @transform_5(%arg0: i32) -> (i32, i32) {
    %c0_i32 = arith.constant 0 : i32
    %c0_i32_0 = arith.constant 0 : i32
    %c0_i32_1 = arith.constant 0 : i32
    return %c0_i32, %c0_i32_0 : i32, i32
  }
  func.func @transform_6(%arg0: i32) -> (i32, i32) {
    %c0_i32 = arith.constant 0 : i32
    %c0_i32_0 = arith.constant 0 : i32
    %c0_i32_1 = arith.constant 0 : i32
    return %c0_i32, %c0_i32_0 : i32, i32
  }
  func.func @transform_7(%arg0: i32) -> (i32, i32) {
    %c0_i32 = arith.constant 0 : i32
    %c0_i32_0 = arith.constant 0 : i32
    %c0_i32_1 = arith.constant 0 : i32
    return %c0_i32, %c0_i32_0 : i32, i32
  }
  func.func @transform_8(%arg0: i32) -> (i32, i32) {
    %c0_i32 = arith.constant 0 : i32
    %c0_i32_0 = arith.constant 0 : i32
    %c0_i32_1 = arith.constant 0 : i32
    return %c0_i32, %c0_i32_0 : i32, i32
  }
  func.func @transform_9(%arg0: i32) -> (i32, i32) {
    %c0_i32 = arith.constant 0 : i32
    %c0_i32_0 = arith.constant 0 : i32
    %c0_i32_1 = arith.constant 0 : i32
    return %c0_i32, %c0_i32_0 : i32, i32
  }
  func.func @transform_10(%arg0: i32) -> (i32, i32) {
    %c0_i32 = arith.constant 0 : i32
    %c0_i32_0 = arith.constant 0 : i32
    %c0_i32_1 = arith.constant 0 : i32
    return %c0_i32, %c0_i32_0 : i32, i32
  }
  func.func @transform_11(%arg0: i32) -> (i32, i32) {
    %c0_i32 = arith.constant 0 : i32
    %c0_i32_0 = arith.constant 0 : i32
    %c0_i32_1 = arith.constant 0 : i32
    return %c0_i32, %c0_i32_0 : i32, i32
  }
  func.func @transform_12(%arg0: i32) -> (i32, i32) {
    %c0_i32 = arith.constant 0 : i32
    %c0_i32_0 = arith.constant 0 : i32
    %c0_i32_1 = arith.constant 0 : i32
    return %c0_i32, %c0_i32_0 : i32, i32
  }
  func.func @transform_13(%arg0: i32) -> (i32, i32) {
    %c0_i32 = arith.constant 0 : i32
    %c0_i32_0 = arith.constant 0 : i32
    return %arg0, %c0_i32 : i32, i32
  }
}

module attributes {stable_mosaic.version = 11 : i64} {
  func.func @_ln_linear_kernel(%arg0: i32, %arg1: memref<16x512xbf16, #tpu.memory_space<vmem>>, %arg2: memref<1x512xf32, #tpu.memory_space<vmem>>, %arg3: memref<1x512xf32, #tpu.memory_space<vmem>>, %arg4: memref<512x256xbf16, #tpu.memory_space<vmem>>, %arg5: memref<1x256xf32, #tpu.memory_space<vmem>>, %arg6: memref<16x256xbf16, #tpu.memory_space<vmem>>) attributes {dimension_semantics = [#tpu.dimension_semantics<parallel>], iteration_bounds = array<i64: 1>, scalar_prefetch = 0 : i64, scratch_operands = 0 : i64, tpu.core_type = #tpu.core_type<tc>, window_params = [{transform_indices = @transform_0, window_bounds = array<i64: 16, 512>}, {pipeline_mode = #tpu.pipeline_mode<synchronous>, transform_indices = @transform_1, window_bounds = array<i64: 1, 512>}, {pipeline_mode = #tpu.pipeline_mode<synchronous>, transform_indices = @transform_2, window_bounds = array<i64: 1, 512>}, {pipeline_mode = #tpu.pipeline_mode<synchronous>, transform_indices = @transform_3, window_bounds = array<i64: 512, 256>}, {pipeline_mode = #tpu.pipeline_mode<synchronous>, transform_indices = @transform_4, window_bounds = array<i64: 1, 256>}, {transform_indices = @transform_5, window_bounds = array<i64: 16, 256>}]} {
    %c0 = arith.constant 0 : index
    %c0_0 = arith.constant 0 : index
    %0 = vector.load %arg1[%c0, %c0_0] : memref<16x512xbf16, #tpu.memory_space<vmem>>, vector<16x512xbf16>
    %1 = arith.extf %0 : vector<16x512xbf16> to vector<16x512xf32>
    %c0_1 = arith.constant 0 : index
    %c0_2 = arith.constant 0 : index
    %2 = vector.load %arg2[%c0_1, %c0_2] : memref<1x512xf32, #tpu.memory_space<vmem>>, vector<1x512xf32>
    %c0_3 = arith.constant 0 : index
    %c0_4 = arith.constant 0 : index
    %3 = vector.load %arg3[%c0_3, %c0_4] : memref<1x512xf32, #tpu.memory_space<vmem>>, vector<1x512xf32>
    %cst = arith.constant dense<0.000000e+00> : vector<16xf32>
    %4 = vector.multi_reduction <add>, %1, %cst [1] : vector<16x512xf32> to vector<16xf32>
    %5 = vector.shape_cast %4 : vector<16xf32> to vector<16x1xf32>
    %cst_5 = arith.constant 5.120000e+02 : f32
    %6 = vector.broadcast %cst_5 : f32 to vector<16x1xf32>
    %7 = arith.divf %5, %6 : vector<16x1xf32>
    %8 = vector.broadcast %7 : vector<16x1xf32> to vector<16x512xf32>
    %9 = arith.subf %1, %8 : vector<16x512xf32>
    %10 = arith.mulf %9, %9 : vector<16x512xf32>
    %cst_6 = arith.constant dense<0.000000e+00> : vector<16xf32>
    %11 = vector.multi_reduction <add>, %10, %cst_6 [1] : vector<16x512xf32> to vector<16xf32>
    %12 = vector.shape_cast %11 : vector<16xf32> to vector<16x1xf32>
    %cst_7 = arith.constant 5.120000e+02 : f32
    %13 = vector.broadcast %cst_7 : f32 to vector<16x1xf32>
    %14 = arith.divf %12, %13 : vector<16x1xf32>
    %15 = vector.broadcast %7 : vector<16x1xf32> to vector<16x512xf32>
    %16 = arith.subf %1, %15 : vector<16x512xf32>
    %cst_8 = arith.constant 9.99999974E-6 : f32
    %17 = vector.broadcast %cst_8 : f32 to vector<16x1xf32>
    %18 = arith.addf %14, %17 : vector<16x1xf32>
    %19 = math.rsqrt %18 : vector<16x1xf32>
    %20 = vector.broadcast %19 : vector<16x1xf32> to vector<16x512xf32>
    %21 = arith.mulf %16, %20 : vector<16x512xf32>
    %22 = vector.broadcast %2 : vector<1x512xf32> to vector<16x512xf32>
    %23 = arith.mulf %21, %22 : vector<16x512xf32>
    %24 = vector.broadcast %3 : vector<1x512xf32> to vector<16x512xf32>
    %25 = arith.addf %23, %24 : vector<16x512xf32>
    %c0_9 = arith.constant 0 : index
    %c0_10 = arith.constant 0 : index
    %26 = vector.load %arg4[%c0_9, %c0_10] : memref<512x256xbf16, #tpu.memory_space<vmem>>, vector<512x256xbf16>
    %27 = arith.truncf %25 : vector<16x512xf32> to vector<16x512xbf16>
    %cst_11 = arith.constant dense<0.000000e+00> : vector<16x256xf32>
    %28 = tpu.matmul %27, %26, %cst_11 {dimension_numbers = #tpu.dot_dimension_numbers<[1], [0], [0], [1], [0, 0, 1, 1], [], []>} : vector<16x512xbf16>, vector<512x256xbf16>, vector<16x256xf32> -> vector<16x256xf32>
    %c0_12 = arith.constant 0 : index
    %c0_13 = arith.constant 0 : index
    %29 = vector.load %arg5[%c0_12, %c0_13] : memref<1x256xf32, #tpu.memory_space<vmem>>, vector<1x256xf32>
    %30 = vector.broadcast %29 : vector<1x256xf32> to vector<16x256xf32>
    %31 = arith.addf %28, %30 : vector<16x256xf32>
    %32 = arith.truncf %31 : vector<16x256xf32> to vector<16x256xbf16>
    %c0_14 = arith.constant 0 : index
    %c0_15 = arith.constant 0 : index
    %33 = vector.load %arg6[%c0_14, %c0_15] : memref<16x256xbf16, #tpu.memory_space<vmem>>, vector<16x256xbf16>
    tpu.vector_store %arg6[%c0_14, %c0_15], %32 {strides = array<i32>} : memref<16x256xbf16, #tpu.memory_space<vmem>>, vector<16x256xbf16>,
    return
  }
  func.func @transform_0(%arg0: i32) -> (i32, i32) {
    %c0_i32 = arith.constant 0 : i32
    %c0_i32_0 = arith.constant 0 : i32
    return %arg0, %c0_i32 : i32, i32
  }
  func.func @transform_1(%arg0: i32) -> (i32, i32) {
    %c0_i32 = arith.constant 0 : i32
    %c0_i32_0 = arith.constant 0 : i32
    %c0_i32_1 = arith.constant 0 : i32
    return %c0_i32, %c0_i32_0 : i32, i32
  }
  func.func @transform_2(%arg0: i32) -> (i32, i32) {
    %c0_i32 = arith.constant 0 : i32
    %c0_i32_0 = arith.constant 0 : i32
    %c0_i32_1 = arith.constant 0 : i32
    return %c0_i32, %c0_i32_0 : i32, i32
  }
  func.func @transform_3(%arg0: i32) -> (i32, i32) {
    %c0_i32 = arith.constant 0 : i32
    %c0_i32_0 = arith.constant 0 : i32
    %c0_i32_1 = arith.constant 0 : i32
    return %c0_i32, %c0_i32_0 : i32, i32
  }
  func.func @transform_4(%arg0: i32) -> (i32, i32) {
    %c0_i32 = arith.constant 0 : i32
    %c0_i32_0 = arith.constant 0 : i32
    %c0_i32_1 = arith.constant 0 : i32
    return %c0_i32, %c0_i32_0 : i32, i32
  }
  func.func @transform_5(%arg0: i32) -> (i32, i32) {
    %c0_i32 = arith.constant 0 : i32
    %c0_i32_0 = arith.constant 0 : i32
    return %arg0, %c0_i32 : i32, i32
  }
}

module attributes {stable_mosaic.version = 11 : i64} {
  func.func @_blocks_kernel(%arg0: i32, %arg1: memref<16x256xbf16, #tpu.memory_space<vmem>>, %arg2: memref<1x256xf32, #tpu.memory_space<vmem>>, %arg3: memref<1x256xf32, #tpu.memory_space<vmem>>, %arg4: memref<256x512xbf16, #tpu.memory_space<vmem>>, %arg5: memref<1x512xf32, #tpu.memory_space<vmem>>, %arg6: memref<512x256xbf16, #tpu.memory_space<vmem>>, %arg7: memref<1x256xf32, #tpu.memory_space<vmem>>, %arg8: memref<1x256xf32, #tpu.memory_space<vmem>>, %arg9: memref<1x256xf32, #tpu.memory_space<vmem>>, %arg10: memref<256x512xbf16, #tpu.memory_space<vmem>>, %arg11: memref<1x512xf32, #tpu.memory_space<vmem>>, %arg12: memref<512x256xbf16, #tpu.memory_space<vmem>>, %arg13: memref<1x256xf32, #tpu.memory_space<vmem>>, %arg14: memref<16x256xbf16, #tpu.memory_space<vmem>>) attributes {dimension_semantics = [#tpu.dimension_semantics<parallel>], iteration_bounds = array<i64: 1>, scalar_prefetch = 0 : i64, scratch_operands = 0 : i64, tpu.core_type = #tpu.core_type<tc>, window_params = [{transform_indices = @transform_0, window_bounds = array<i64: 16, 256>}, {pipeline_mode = #tpu.pipeline_mode<synchronous>, transform_indices = @transform_1, window_bounds = array<i64: 1, 256>}, {pipeline_mode = #tpu.pipeline_mode<synchronous>, transform_indices = @transform_2, window_bounds = array<i64: 1, 256>}, {pipeline_mode = #tpu.pipeline_mode<synchronous>, transform_indices = @transform_3, window_bounds = array<i64: 256, 512>}, {pipeline_mode = #tpu.pipeline_mode<synchronous>, transform_indices = @transform_4, window_bounds = array<i64: 1, 512>}, {pipeline_mode = #tpu.pipeline_mode<synchronous>, transform_indices = @transform_5, window_bounds = array<i64: 512, 256>}, {pipeline_mode = #tpu.pipeline_mode<synchronous>, transform_indices = @transform_6, window_bounds = array<i64: 1, 256>}, {pipeline_mode = #tpu.pipeline_mode<synchronous>, transform_indices = @transform_7, window_bounds = array<i64: 1, 256>}, {pipeline_mode = #tpu.pipeline_mode<synchronous>, transform_indices = @transform_8, window_bounds = array<i64: 1, 256>}, {pipeline_mode = #tpu.pipeline_mode<synchronous>, transform_indices = @transform_9, window_bounds = array<i64: 256, 512>}, {pipeline_mode = #tpu.pipeline_mode<synchronous>, transform_indices = @transform_10, window_bounds = array<i64: 1, 512>}, {pipeline_mode = #tpu.pipeline_mode<synchronous>, transform_indices = @transform_11, window_bounds = array<i64: 512, 256>}, {pipeline_mode = #tpu.pipeline_mode<synchronous>, transform_indices = @transform_12, window_bounds = array<i64: 1, 256>}, {transform_indices = @transform_13, window_bounds = array<i64: 16, 256>}]} {
    %c0 = arith.constant 0 : index
    %c0_0 = arith.constant 0 : index
    %0 = vector.load %arg1[%c0, %c0_0] : memref<16x256xbf16, #tpu.memory_space<vmem>>, vector<16x256xbf16>
    %1 = arith.extf %0 : vector<16x256xbf16> to vector<16x256xf32>
    %c0_1 = arith.constant 0 : index
    %c0_2 = arith.constant 0 : index
    %2 = vector.load %arg2[%c0_1, %c0_2] : memref<1x256xf32, #tpu.memory_space<vmem>>, vector<1x256xf32>
    %c0_3 = arith.constant 0 : index
    %c0_4 = arith.constant 0 : index
    %3 = vector.load %arg3[%c0_3, %c0_4] : memref<1x256xf32, #tpu.memory_space<vmem>>, vector<1x256xf32>
    %cst = arith.constant dense<0.000000e+00> : vector<16xf32>
    %4 = vector.multi_reduction <add>, %1, %cst [1] : vector<16x256xf32> to vector<16xf32>
    %5 = vector.shape_cast %4 : vector<16xf32> to vector<16x1xf32>
    %cst_5 = arith.constant 2.560000e+02 : f32
    %6 = vector.broadcast %cst_5 : f32 to vector<16x1xf32>
    %7 = arith.divf %5, %6 : vector<16x1xf32>
    %8 = vector.broadcast %7 : vector<16x1xf32> to vector<16x256xf32>
    %9 = arith.subf %1, %8 : vector<16x256xf32>
    %10 = arith.mulf %9, %9 : vector<16x256xf32>
    %cst_6 = arith.constant dense<0.000000e+00> : vector<16xf32>
    %11 = vector.multi_reduction <add>, %10, %cst_6 [1] : vector<16x256xf32> to vector<16xf32>
    %12 = vector.shape_cast %11 : vector<16xf32> to vector<16x1xf32>
    %cst_7 = arith.constant 2.560000e+02 : f32
    %13 = vector.broadcast %cst_7 : f32 to vector<16x1xf32>
    %14 = arith.divf %12, %13 : vector<16x1xf32>
    %15 = vector.broadcast %7 : vector<16x1xf32> to vector<16x256xf32>
    %16 = arith.subf %1, %15 : vector<16x256xf32>
    %cst_8 = arith.constant 9.99999974E-6 : f32
    %17 = vector.broadcast %cst_8 : f32 to vector<16x1xf32>
    %18 = arith.addf %14, %17 : vector<16x1xf32>
    %19 = math.rsqrt %18 : vector<16x1xf32>
    %20 = vector.broadcast %19 : vector<16x1xf32> to vector<16x256xf32>
    %21 = arith.mulf %16, %20 : vector<16x256xf32>
    %22 = vector.broadcast %2 : vector<1x256xf32> to vector<16x256xf32>
    %23 = arith.mulf %21, %22 : vector<16x256xf32>
    %24 = vector.broadcast %3 : vector<1x256xf32> to vector<16x256xf32>
    %25 = arith.addf %23, %24 : vector<16x256xf32>
    %c0_9 = arith.constant 0 : index
    %c0_10 = arith.constant 0 : index
    %26 = vector.load %arg4[%c0_9, %c0_10] : memref<256x512xbf16, #tpu.memory_space<vmem>>, vector<256x512xbf16>
    %27 = arith.truncf %25 : vector<16x256xf32> to vector<16x256xbf16>
    %cst_11 = arith.constant dense<0.000000e+00> : vector<16x512xf32>
    %28 = tpu.matmul %27, %26, %cst_11 {dimension_numbers = #tpu.dot_dimension_numbers<[1], [0], [0], [1], [0, 0, 1, 1], [], []>} : vector<16x256xbf16>, vector<256x512xbf16>, vector<16x512xf32> -> vector<16x512xf32>
    %c0_12 = arith.constant 0 : index
    %c0_13 = arith.constant 0 : index
    %29 = vector.load %arg5[%c0_12, %c0_13] : memref<1x512xf32, #tpu.memory_space<vmem>>, vector<1x512xf32>
    %30 = vector.broadcast %29 : vector<1x512xf32> to vector<16x512xf32>
    %31 = arith.addf %28, %30 : vector<16x512xf32>
    %32 = arith.mulf %31, %31 : vector<16x512xf32>
    %33 = arith.mulf %31, %32 : vector<16x512xf32>
    %cst_14 = arith.constant 4.471500e-02 : f32
    %34 = vector.broadcast %cst_14 : f32 to vector<16x512xf32>
    %35 = arith.mulf %34, %33 : vector<16x512xf32>
    %36 = arith.addf %31, %35 : vector<16x512xf32>
    %cst_15 = arith.constant 0.797884583 : f32
    %37 = vector.broadcast %cst_15 : f32 to vector<16x512xf32>
    %38 = arith.mulf %37, %36 : vector<16x512xf32>
    %39 = math.tanh %38 : vector<16x512xf32>
    %cst_16 = arith.constant 1.000000e+00 : f32
    %40 = vector.broadcast %cst_16 : f32 to vector<16x512xf32>
    %41 = arith.addf %40, %39 : vector<16x512xf32>
    %cst_17 = arith.constant 5.000000e-01 : f32
    %42 = vector.broadcast %cst_17 : f32 to vector<16x512xf32>
    %43 = arith.mulf %42, %41 : vector<16x512xf32>
    %44 = arith.mulf %31, %43 : vector<16x512xf32>
    %c0_18 = arith.constant 0 : index
    %c0_19 = arith.constant 0 : index
    %45 = vector.load %arg6[%c0_18, %c0_19] : memref<512x256xbf16, #tpu.memory_space<vmem>>, vector<512x256xbf16>
    %46 = arith.truncf %44 : vector<16x512xf32> to vector<16x512xbf16>
    %cst_20 = arith.constant dense<0.000000e+00> : vector<16x256xf32>
    %47 = tpu.matmul %46, %45, %cst_20 {dimension_numbers = #tpu.dot_dimension_numbers<[1], [0], [0], [1], [0, 0, 1, 1], [], []>} : vector<16x512xbf16>, vector<512x256xbf16>, vector<16x256xf32> -> vector<16x256xf32>
    %c0_21 = arith.constant 0 : index
    %c0_22 = arith.constant 0 : index
    %48 = vector.load %arg7[%c0_21, %c0_22] : memref<1x256xf32, #tpu.memory_space<vmem>>, vector<1x256xf32>
    %49 = vector.broadcast %48 : vector<1x256xf32> to vector<16x256xf32>
    %50 = arith.addf %47, %49 : vector<16x256xf32>
    %51 = arith.addf %1, %50 : vector<16x256xf32>
    %c0_23 = arith.constant 0 : index
    %c0_24 = arith.constant 0 : index
    %52 = vector.load %arg8[%c0_23, %c0_24] : memref<1x256xf32, #tpu.memory_space<vmem>>, vector<1x256xf32>
    %c0_25 = arith.constant 0 : index
    %c0_26 = arith.constant 0 : index
    %53 = vector.load %arg9[%c0_25, %c0_26] : memref<1x256xf32, #tpu.memory_space<vmem>>, vector<1x256xf32>
    %cst_27 = arith.constant dense<0.000000e+00> : vector<16xf32>
    %54 = vector.multi_reduction <add>, %51, %cst_27 [1] : vector<16x256xf32> to vector<16xf32>
    %55 = vector.shape_cast %54 : vector<16xf32> to vector<16x1xf32>
    %cst_28 = arith.constant 2.560000e+02 : f32
    %56 = vector.broadcast %cst_28 : f32 to vector<16x1xf32>
    %57 = arith.divf %55, %56 : vector<16x1xf32>
    %58 = vector.broadcast %57 : vector<16x1xf32> to vector<16x256xf32>
    %59 = arith.subf %51, %58 : vector<16x256xf32>
    %60 = arith.mulf %59, %59 : vector<16x256xf32>
    %cst_29 = arith.constant dense<0.000000e+00> : vector<16xf32>
    %61 = vector.multi_reduction <add>, %60, %cst_29 [1] : vector<16x256xf32> to vector<16xf32>
    %62 = vector.shape_cast %61 : vector<16xf32> to vector<16x1xf32>
    %cst_30 = arith.constant 2.560000e+02 : f32
    %63 = vector.broadcast %cst_30 : f32 to vector<16x1xf32>
    %64 = arith.divf %62, %63 : vector<16x1xf32>
    %65 = vector.broadcast %57 : vector<16x1xf32> to vector<16x256xf32>
    %66 = arith.subf %51, %65 : vector<16x256xf32>
    %cst_31 = arith.constant 9.99999974E-6 : f32
    %67 = vector.broadcast %cst_31 : f32 to vector<16x1xf32>
    %68 = arith.addf %64, %67 : vector<16x1xf32>
    %69 = math.rsqrt %68 : vector<16x1xf32>
    %70 = vector.broadcast %69 : vector<16x1xf32> to vector<16x256xf32>
    %71 = arith.mulf %66, %70 : vector<16x256xf32>
    %72 = vector.broadcast %52 : vector<1x256xf32> to vector<16x256xf32>
    %73 = arith.mulf %71, %72 : vector<16x256xf32>
    %74 = vector.broadcast %53 : vector<1x256xf32> to vector<16x256xf32>
    %75 = arith.addf %73, %74 : vector<16x256xf32>
    %c0_32 = arith.constant 0 : index
    %c0_33 = arith.constant 0 : index
    %76 = vector.load %arg10[%c0_32, %c0_33] : memref<256x512xbf16, #tpu.memory_space<vmem>>, vector<256x512xbf16>
    %77 = arith.truncf %75 : vector<16x256xf32> to vector<16x256xbf16>
    %cst_34 = arith.constant dense<0.000000e+00> : vector<16x512xf32>
    %78 = tpu.matmul %77, %76, %cst_34 {dimension_numbers = #tpu.dot_dimension_numbers<[1], [0], [0], [1], [0, 0, 1, 1], [], []>} : vector<16x256xbf16>, vector<256x512xbf16>, vector<16x512xf32> -> vector<16x512xf32>
    %c0_35 = arith.constant 0 : index
    %c0_36 = arith.constant 0 : index
    %79 = vector.load %arg11[%c0_35, %c0_36] : memref<1x512xf32, #tpu.memory_space<vmem>>, vector<1x512xf32>
    %80 = vector.broadcast %79 : vector<1x512xf32> to vector<16x512xf32>
    %81 = arith.addf %78, %80 : vector<16x512xf32>
    %82 = arith.mulf %81, %81 : vector<16x512xf32>
    %83 = arith.mulf %81, %82 : vector<16x512xf32>
    %cst_37 = arith.constant 4.471500e-02 : f32
    %84 = vector.broadcast %cst_37 : f32 to vector<16x512xf32>
    %85 = arith.mulf %84, %83 : vector<16x512xf32>
    %86 = arith.addf %81, %85 : vector<16x512xf32>
    %cst_38 = arith.constant 0.797884583 : f32
    %87 = vector.broadcast %cst_38 : f32 to vector<16x512xf32>
    %88 = arith.mulf %87, %86 : vector<16x512xf32>
    %89 = math.tanh %88 : vector<16x512xf32>
    %cst_39 = arith.constant 1.000000e+00 : f32
    %90 = vector.broadcast %cst_39 : f32 to vector<16x512xf32>
    %91 = arith.addf %90, %89 : vector<16x512xf32>
    %cst_40 = arith.constant 5.000000e-01 : f32
    %92 = vector.broadcast %cst_40 : f32 to vector<16x512xf32>
    %93 = arith.mulf %92, %91 : vector<16x512xf32>
    %94 = arith.mulf %81, %93 : vector<16x512xf32>
    %c0_41 = arith.constant 0 : index
    %c0_42 = arith.constant 0 : index
    %95 = vector.load %arg12[%c0_41, %c0_42] : memref<512x256xbf16, #tpu.memory_space<vmem>>, vector<512x256xbf16>
    %96 = arith.truncf %94 : vector<16x512xf32> to vector<16x512xbf16>
    %cst_43 = arith.constant dense<0.000000e+00> : vector<16x256xf32>
    %97 = tpu.matmul %96, %95, %cst_43 {dimension_numbers = #tpu.dot_dimension_numbers<[1], [0], [0], [1], [0, 0, 1, 1], [], []>} : vector<16x512xbf16>, vector<512x256xbf16>, vector<16x256xf32> -> vector<16x256xf32>
    %c0_44 = arith.constant 0 : index
    %c0_45 = arith.constant 0 : index
    %98 = vector.load %arg13[%c0_44, %c0_45] : memref<1x256xf32, #tpu.memory_space<vmem>>, vector<1x256xf32>
    %99 = vector.broadcast %98 : vector<1x256xf32> to vector<16x256xf32>
    %100 = arith.addf %97, %99 : vector<16x256xf32>
    %101 = arith.addf %51, %100 : vector<16x256xf32>
    %102 = arith.truncf %101 : vector<16x256xf32> to vector<16x256xbf16>
    %c0_46 = arith.constant 0 : index
    %c0_47 = arith.constant 0 : index
    %103 = vector.load %arg14[%c0_46, %c0_47] : memref<16x256xbf16, #tpu.memory_space<vmem>>, vector<16x256xbf16>
    tpu.vector_store %arg14[%c0_46, %c0_47], %102 {strides = array<i32>} : memref<16x256xbf16, #tpu.memory_space<vmem>>, vector<16x256xbf16>,
    return
  }
  func.func @transform_0(%arg0: i32) -> (i32, i32) {
    %c0_i32 = arith.constant 0 : i32
    %c0_i32_0 = arith.constant 0 : i32
    return %arg0, %c0_i32 : i32, i32
  }
  func.func @transform_1(%arg0: i32) -> (i32, i32) {
    %c0_i32 = arith.constant 0 : i32
    %c0_i32_0 = arith.constant 0 : i32
    %c0_i32_1 = arith.constant 0 : i32
    return %c0_i32, %c0_i32_0 : i32, i32
  }
  func.func @transform_2(%arg0: i32) -> (i32, i32) {
    %c0_i32 = arith.constant 0 : i32
    %c0_i32_0 = arith.constant 0 : i32
    %c0_i32_1 = arith.constant 0 : i32
    return %c0_i32, %c0_i32_0 : i32, i32
  }
  func.func @transform_3(%arg0: i32) -> (i32, i32) {
    %c0_i32 = arith.constant 0 : i32
    %c0_i32_0 = arith.constant 0 : i32
    %c0_i32_1 = arith.constant 0 : i32
    return %c0_i32, %c0_i32_0 : i32, i32
  }
  func.func @transform_4(%arg0: i32) -> (i32, i32) {
    %c0_i32 = arith.constant 0 : i32
    %c0_i32_0 = arith.constant 0 : i32
    %c0_i32_1 = arith.constant 0 : i32
    return %c0_i32, %c0_i32_0 : i32, i32
  }
  func.func @transform_5(%arg0: i32) -> (i32, i32) {
    %c0_i32 = arith.constant 0 : i32
    %c0_i32_0 = arith.constant 0 : i32
    %c0_i32_1 = arith.constant 0 : i32
    return %c0_i32, %c0_i32_0 : i32, i32
  }
  func.func @transform_6(%arg0: i32) -> (i32, i32) {
    %c0_i32 = arith.constant 0 : i32
    %c0_i32_0 = arith.constant 0 : i32
    %c0_i32_1 = arith.constant 0 : i32
    return %c0_i32, %c0_i32_0 : i32, i32
  }
  func.func @transform_7(%arg0: i32) -> (i32, i32) {
    %c0_i32 = arith.constant 0 : i32
    %c0_i32_0 = arith.constant 0 : i32
    %c0_i32_1 = arith.constant 0 : i32
    return %c0_i32, %c0_i32_0 : i32, i32
  }
  func.func @transform_8(%arg0: i32) -> (i32, i32) {
    %c0_i32 = arith.constant 0 : i32
    %c0_i32_0 = arith.constant 0 : i32
    %c0_i32_1 = arith.constant 0 : i32
    return %c0_i32, %c0_i32_0 : i32, i32
  }
  func.func @transform_9(%arg0: i32) -> (i32, i32) {
    %c0_i32 = arith.constant 0 : i32
    %c0_i32_0 = arith.constant 0 : i32
    %c0_i32_1 = arith.constant 0 : i32
    return %c0_i32, %c0_i32_0 : i32, i32
  }
  func.func @transform_10(%arg0: i32) -> (i32, i32) {
    %c0_i32 = arith.constant 0 : i32
    %c0_i32_0 = arith.constant 0 : i32
    %c0_i32_1 = arith.constant 0 : i32
    return %c0_i32, %c0_i32_0 : i32, i32
  }
  func.func @transform_11(%arg0: i32) -> (i32, i32) {
    %c0_i32 = arith.constant 0 : i32
    %c0_i32_0 = arith.constant 0 : i32
    %c0_i32_1 = arith.constant 0 : i32
    return %c0_i32, %c0_i32_0 : i32, i32
  }
  func.func @transform_12(%arg0: i32) -> (i32, i32) {
    %c0_i32 = arith.constant 0 : i32
    %c0_i32_0 = arith.constant 0 : i32
    %c0_i32_1 = arith.constant 0 : i32
    return %c0_i32, %c0_i32_0 : i32, i32
  }
  func.func @transform_13(%arg0: i32) -> (i32, i32) {
    %c0_i32 = arith.constant 0 : i32
    %c0_i32_0 = arith.constant 0 : i32
    return %arg0, %c0_i32 : i32, i32
  }
}

module attributes {stable_mosaic.version = 11 : i64} {
  func.func @_vq_kernel(%arg0: memref<16x256xbf16, #tpu.memory_space<vmem>>, %arg1: memref<128x256xbf16, #tpu.memory_space<vmem>>, %arg2: memref<1x128xf32, #tpu.memory_space<vmem>>, %arg3: memref<16x256xbf16, #tpu.memory_space<vmem>>, %arg4: memref<1xf32, #tpu.memory_space<smem>>) attributes {dimension_semantics = [], scalar_prefetch = 0 : i64, scratch_operands = 0 : i64, tpu.core_type = #tpu.core_type<tc>} {
    %c0 = arith.constant 0 : index
    %c0_0 = arith.constant 0 : index
    %0 = vector.load %arg0[%c0, %c0_0] : memref<16x256xbf16, #tpu.memory_space<vmem>>, vector<16x256xbf16>
    %c0_1 = arith.constant 0 : index
    %c0_2 = arith.constant 0 : index
    %1 = vector.load %arg1[%c0_1, %c0_2] : memref<128x256xbf16, #tpu.memory_space<vmem>>, vector<128x256xbf16>
    %cst = arith.constant dense<0.000000e+00> : vector<16x128xf32>
    %2 = tpu.matmul %0, %1, %cst {dimension_numbers = #tpu.dot_dimension_numbers<[1], [1], [0], [0], [0, 0, 1, 0], [], []>} : vector<16x256xbf16>, vector<128x256xbf16>, vector<16x128xf32> -> vector<16x128xf32>
    %c0_3 = arith.constant 0 : index
    %c0_4 = arith.constant 0 : index
    %3 = vector.load %arg2[%c0_3, %c0_4] : memref<1x128xf32, #tpu.memory_space<vmem>>, vector<1x128xf32>
    %cst_5 = arith.constant 2.000000e+00 : f32
    %4 = vector.broadcast %cst_5 : f32 to vector<16x128xf32>
    %5 = arith.mulf %4, %2 : vector<16x128xf32>
    %6 = vector.broadcast %3 : vector<1x128xf32> to vector<16x128xf32>
    %7 = arith.subf %6, %5 : vector<16x128xf32>
    %8 = tpu.iota {dimensions = array<i32: 1>} : vector<16x128xi32>
    %c50_i32 = arith.constant 50 : i32
    %9 = vector.broadcast %c50_i32 : i32 to vector<16x128xi32>
    %10 = arith.cmpi slt, %8, %9 : vector<16x128xi32>
    %cst_6 = arith.constant 1.000000e+30 : f32
    %11 = vector.broadcast %cst_6 : f32 to vector<16x128xf32>
    %12 = arith.select %10, %7, %11 : vector<16x128xi1>, vector<16x128xf32>
    %cst_7 = arith.constant dense<0x7F800000> : vector<16xf32>
    %13 = vector.multi_reduction <minimumf>, %12, %cst_7 [1] : vector<16x128xf32> to vector<16xf32>
    %14 = vector.shape_cast %13 : vector<16xf32> to vector<16x1xf32>
    %15 = vector.broadcast %14 : vector<16x1xf32> to vector<16x128xf32>
    %16 = arith.cmpf ole, %12, %15 : vector<16x128xf32>
    %c128_i32 = arith.constant 128 : i32
    %17 = vector.broadcast %c128_i32 : i32 to vector<16x128xi32>
    %18 = arith.select %16, %8, %17 : vector<16x128xi1>, vector<16x128xi32>
    %cst_8 = arith.constant dense<2147483647> : vector<16xi32>
    %19 = vector.multi_reduction <minsi>, %18, %cst_8 [1] : vector<16x128xi32> to vector<16xi32>
    %20 = vector.shape_cast %19 : vector<16xi32> to vector<16x1xi32>
    %21 = vector.broadcast %20 : vector<16x1xi32> to vector<16x128xi32>
    %22 = arith.cmpi eq, %8, %21 : vector<16x128xi32>
    %23 = arith.extui %22 : vector<16x128xi1> to vector<16x128xi32>
    %24 = arith.sitofp %23 : vector<16x128xi32> to vector<16x128xf32>
    %25 = arith.truncf %24 : vector<16x128xf32> to vector<16x128xbf16>
    %cst_9 = arith.constant dense<0.000000e+00> : vector<16x256xf32>
    %26 = tpu.matmul %25, %1, %cst_9 {dimension_numbers = #tpu.dot_dimension_numbers<[1], [0], [0], [1], [0, 0, 1, 1], [], []>} : vector<16x128xbf16>, vector<128x256xbf16>, vector<16x256xf32> -> vector<16x256xf32>
    %27 = arith.truncf %26 : vector<16x256xf32> to vector<16x256xbf16>
    %c0_10 = arith.constant 0 : index
    %c0_11 = arith.constant 0 : index
    %28 = vector.load %arg3[%c0_10, %c0_11] : memref<16x256xbf16, #tpu.memory_space<vmem>>, vector<16x256xbf16>
    tpu.vector_store %arg3[%c0_10, %c0_11], %27 {strides = array<i32>} : memref<16x256xbf16, #tpu.memory_space<vmem>>, vector<16x256xbf16>,
    %29 = tpu.iota {dimensions = array<i32: 0>} : vector<16x256xi32>
    %c2_i32 = arith.constant 2 : i32
    %30 = vector.broadcast %c2_i32 : i32 to vector<16x256xi32>
    %31 = arith.cmpi slt, %29, %30 : vector<16x256xi32>
    %32 = arith.extui %31 : vector<16x256xi1> to vector<16x256xi32>
    %33 = arith.sitofp %32 : vector<16x256xi32> to vector<16x256xf32>
    %34 = arith.extf %0 : vector<16x256xbf16> to vector<16x256xf32>
    %35 = arith.subf %26, %34 : vector<16x256xf32>
    %36 = arith.mulf %35, %33 : vector<16x256xf32>
    %37 = arith.mulf %36, %36 : vector<16x256xf32>
    %38 = vector.shape_cast %37 : vector<16x256xf32> to vector<1x16x256xf32>
    %cst_12 = arith.constant dense<0.000000e+00> : vector<1xf32>
    %39 = vector.multi_reduction <add>, %38, %cst_12 [1, 2] : vector<1x16x256xf32> to vector<1xf32>
    %40 = vector.shape_cast %39 : vector<1xf32> to vector<1x1x1xf32>
    %41 = vector.extract %40[0, 0, 0] : f32 from vector<1x1x1xf32>
    %cst_13 = arith.constant 5.120000e+02 : f32
    %42 = arith.divf %41, %cst_13 : f32
    %cst_14 = arith.constant 1.250000e+00 : f32
    %43 = arith.mulf %cst_14, %42 : f32
    %c0_15 = arith.constant 0 : index
    %44 = memref.load %arg4[%c0_15] : memref<1xf32, #tpu.memory_space<smem>>
    memref.store %43, %arg4[%c0_15] : memref<1xf32, #tpu.memory_space<smem>>
    return
  }
}

module attributes {stable_mosaic.version = 11 : i64} {
  func.func @_blocks_kernel(%arg0: i32, %arg1: memref<16x256xbf16, #tpu.memory_space<vmem>>, %arg2: memref<1x256xf32, #tpu.memory_space<vmem>>, %arg3: memref<1x256xf32, #tpu.memory_space<vmem>>, %arg4: memref<256x512xbf16, #tpu.memory_space<vmem>>, %arg5: memref<1x512xf32, #tpu.memory_space<vmem>>, %arg6: memref<512x256xbf16, #tpu.memory_space<vmem>>, %arg7: memref<1x256xf32, #tpu.memory_space<vmem>>, %arg8: memref<16x256xbf16, #tpu.memory_space<vmem>>) attributes {dimension_semantics = [#tpu.dimension_semantics<parallel>], iteration_bounds = array<i64: 1>, scalar_prefetch = 0 : i64, scratch_operands = 0 : i64, tpu.core_type = #tpu.core_type<tc>, window_params = [{transform_indices = @transform_0, window_bounds = array<i64: 16, 256>}, {pipeline_mode = #tpu.pipeline_mode<synchronous>, transform_indices = @transform_1, window_bounds = array<i64: 1, 256>}, {pipeline_mode = #tpu.pipeline_mode<synchronous>, transform_indices = @transform_2, window_bounds = array<i64: 1, 256>}, {pipeline_mode = #tpu.pipeline_mode<synchronous>, transform_indices = @transform_3, window_bounds = array<i64: 256, 512>}, {pipeline_mode = #tpu.pipeline_mode<synchronous>, transform_indices = @transform_4, window_bounds = array<i64: 1, 512>}, {pipeline_mode = #tpu.pipeline_mode<synchronous>, transform_indices = @transform_5, window_bounds = array<i64: 512, 256>}, {pipeline_mode = #tpu.pipeline_mode<synchronous>, transform_indices = @transform_6, window_bounds = array<i64: 1, 256>}, {transform_indices = @transform_7, window_bounds = array<i64: 16, 256>}]} {
    %c0 = arith.constant 0 : index
    %c0_0 = arith.constant 0 : index
    %0 = vector.load %arg1[%c0, %c0_0] : memref<16x256xbf16, #tpu.memory_space<vmem>>, vector<16x256xbf16>
    %1 = arith.extf %0 : vector<16x256xbf16> to vector<16x256xf32>
    %c0_1 = arith.constant 0 : index
    %c0_2 = arith.constant 0 : index
    %2 = vector.load %arg2[%c0_1, %c0_2] : memref<1x256xf32, #tpu.memory_space<vmem>>, vector<1x256xf32>
    %c0_3 = arith.constant 0 : index
    %c0_4 = arith.constant 0 : index
    %3 = vector.load %arg3[%c0_3, %c0_4] : memref<1x256xf32, #tpu.memory_space<vmem>>, vector<1x256xf32>
    %cst = arith.constant dense<0.000000e+00> : vector<16xf32>
    %4 = vector.multi_reduction <add>, %1, %cst [1] : vector<16x256xf32> to vector<16xf32>
    %5 = vector.shape_cast %4 : vector<16xf32> to vector<16x1xf32>
    %cst_5 = arith.constant 2.560000e+02 : f32
    %6 = vector.broadcast %cst_5 : f32 to vector<16x1xf32>
    %7 = arith.divf %5, %6 : vector<16x1xf32>
    %8 = vector.broadcast %7 : vector<16x1xf32> to vector<16x256xf32>
    %9 = arith.subf %1, %8 : vector<16x256xf32>
    %10 = arith.mulf %9, %9 : vector<16x256xf32>
    %cst_6 = arith.constant dense<0.000000e+00> : vector<16xf32>
    %11 = vector.multi_reduction <add>, %10, %cst_6 [1] : vector<16x256xf32> to vector<16xf32>
    %12 = vector.shape_cast %11 : vector<16xf32> to vector<16x1xf32>
    %cst_7 = arith.constant 2.560000e+02 : f32
    %13 = vector.broadcast %cst_7 : f32 to vector<16x1xf32>
    %14 = arith.divf %12, %13 : vector<16x1xf32>
    %15 = vector.broadcast %7 : vector<16x1xf32> to vector<16x256xf32>
    %16 = arith.subf %1, %15 : vector<16x256xf32>
    %cst_8 = arith.constant 9.99999974E-6 : f32
    %17 = vector.broadcast %cst_8 : f32 to vector<16x1xf32>
    %18 = arith.addf %14, %17 : vector<16x1xf32>
    %19 = math.rsqrt %18 : vector<16x1xf32>
    %20 = vector.broadcast %19 : vector<16x1xf32> to vector<16x256xf32>
    %21 = arith.mulf %16, %20 : vector<16x256xf32>
    %22 = vector.broadcast %2 : vector<1x256xf32> to vector<16x256xf32>
    %23 = arith.mulf %21, %22 : vector<16x256xf32>
    %24 = vector.broadcast %3 : vector<1x256xf32> to vector<16x256xf32>
    %25 = arith.addf %23, %24 : vector<16x256xf32>
    %c0_9 = arith.constant 0 : index
    %c0_10 = arith.constant 0 : index
    %26 = vector.load %arg4[%c0_9, %c0_10] : memref<256x512xbf16, #tpu.memory_space<vmem>>, vector<256x512xbf16>
    %27 = arith.truncf %25 : vector<16x256xf32> to vector<16x256xbf16>
    %cst_11 = arith.constant dense<0.000000e+00> : vector<16x512xf32>
    %28 = tpu.matmul %27, %26, %cst_11 {dimension_numbers = #tpu.dot_dimension_numbers<[1], [0], [0], [1], [0, 0, 1, 1], [], []>} : vector<16x256xbf16>, vector<256x512xbf16>, vector<16x512xf32> -> vector<16x512xf32>
    %c0_12 = arith.constant 0 : index
    %c0_13 = arith.constant 0 : index
    %29 = vector.load %arg5[%c0_12, %c0_13] : memref<1x512xf32, #tpu.memory_space<vmem>>, vector<1x512xf32>
    %30 = vector.broadcast %29 : vector<1x512xf32> to vector<16x512xf32>
    %31 = arith.addf %28, %30 : vector<16x512xf32>
    %32 = arith.mulf %31, %31 : vector<16x512xf32>
    %33 = arith.mulf %31, %32 : vector<16x512xf32>
    %cst_14 = arith.constant 4.471500e-02 : f32
    %34 = vector.broadcast %cst_14 : f32 to vector<16x512xf32>
    %35 = arith.mulf %34, %33 : vector<16x512xf32>
    %36 = arith.addf %31, %35 : vector<16x512xf32>
    %cst_15 = arith.constant 0.797884583 : f32
    %37 = vector.broadcast %cst_15 : f32 to vector<16x512xf32>
    %38 = arith.mulf %37, %36 : vector<16x512xf32>
    %39 = math.tanh %38 : vector<16x512xf32>
    %cst_16 = arith.constant 1.000000e+00 : f32
    %40 = vector.broadcast %cst_16 : f32 to vector<16x512xf32>
    %41 = arith.addf %40, %39 : vector<16x512xf32>
    %cst_17 = arith.constant 5.000000e-01 : f32
    %42 = vector.broadcast %cst_17 : f32 to vector<16x512xf32>
    %43 = arith.mulf %42, %41 : vector<16x512xf32>
    %44 = arith.mulf %31, %43 : vector<16x512xf32>
    %c0_18 = arith.constant 0 : index
    %c0_19 = arith.constant 0 : index
    %45 = vector.load %arg6[%c0_18, %c0_19] : memref<512x256xbf16, #tpu.memory_space<vmem>>, vector<512x256xbf16>
    %46 = arith.truncf %44 : vector<16x512xf32> to vector<16x512xbf16>
    %cst_20 = arith.constant dense<0.000000e+00> : vector<16x256xf32>
    %47 = tpu.matmul %46, %45, %cst_20 {dimension_numbers = #tpu.dot_dimension_numbers<[1], [0], [0], [1], [0, 0, 1, 1], [], []>} : vector<16x512xbf16>, vector<512x256xbf16>, vector<16x256xf32> -> vector<16x256xf32>
    %c0_21 = arith.constant 0 : index
    %c0_22 = arith.constant 0 : index
    %48 = vector.load %arg7[%c0_21, %c0_22] : memref<1x256xf32, #tpu.memory_space<vmem>>, vector<1x256xf32>
    %49 = vector.broadcast %48 : vector<1x256xf32> to vector<16x256xf32>
    %50 = arith.addf %47, %49 : vector<16x256xf32>
    %51 = arith.addf %1, %50 : vector<16x256xf32>
    %52 = arith.truncf %51 : vector<16x256xf32> to vector<16x256xbf16>
    %c0_23 = arith.constant 0 : index
    %c0_24 = arith.constant 0 : index
    %53 = vector.load %arg8[%c0_23, %c0_24] : memref<16x256xbf16, #tpu.memory_space<vmem>>, vector<16x256xbf16>
    tpu.vector_store %arg8[%c0_23, %c0_24], %52 {strides = array<i32>} : memref<16x256xbf16, #tpu.memory_space<vmem>>, vector<16x256xbf16>,
    return
  }
  func.func @transform_0(%arg0: i32) -> (i32, i32) {
    %c0_i32 = arith.constant 0 : i32
    %c0_i32_0 = arith.constant 0 : i32
    return %arg0, %c0_i32 : i32, i32
  }
  func.func @transform_1(%arg0: i32) -> (i32, i32) {
    %c0_i32 = arith.constant 0 : i32
    %c0_i32_0 = arith.constant 0 : i32
    %c0_i32_1 = arith.constant 0 : i32
    return %c0_i32, %c0_i32_0 : i32, i32
  }
  func.func @transform_2(%arg0: i32) -> (i32, i32) {
    %c0_i32 = arith.constant 0 : i32
    %c0_i32_0 = arith.constant 0 : i32
    %c0_i32_1 = arith.constant 0 : i32
    return %c0_i32, %c0_i32_0 : i32, i32
  }
  func.func @transform_3(%arg0: i32) -> (i32, i32) {
    %c0_i32 = arith.constant 0 : i32
    %c0_i32_0 = arith.constant 0 : i32
    %c0_i32_1 = arith.constant 0 : i32
    return %c0_i32, %c0_i32_0 : i32, i32
  }
  func.func @transform_4(%arg0: i32) -> (i32, i32) {
    %c0_i32 = arith.constant 0 : i32
    %c0_i32_0 = arith.constant 0 : i32
    %c0_i32_1 = arith.constant 0 : i32
    return %c0_i32, %c0_i32_0 : i32, i32
  }
  func.func @transform_5(%arg0: i32) -> (i32, i32) {
    %c0_i32 = arith.constant 0 : i32
    %c0_i32_0 = arith.constant 0 : i32
    %c0_i32_1 = arith.constant 0 : i32
    return %c0_i32, %c0_i32_0 : i32, i32
  }
  func.func @transform_6(%arg0: i32) -> (i32, i32) {
    %c0_i32 = arith.constant 0 : i32
    %c0_i32_0 = arith.constant 0 : i32
    %c0_i32_1 = arith.constant 0 : i32
    return %c0_i32, %c0_i32_0 : i32, i32
  }
  func.func @transform_7(%arg0: i32) -> (i32, i32) {
    %c0_i32 = arith.constant 0 : i32
    %c0_i32_0 = arith.constant 0 : i32
    return %arg0, %c0_i32 : i32, i32
  }
}

module attributes {stable_mosaic.version = 11 : i64} {
  func.func @_linear_kernel(%arg0: i32, %arg1: memref<16x256xbf16, #tpu.memory_space<vmem>>, %arg2: memref<256x512xbf16, #tpu.memory_space<vmem>>, %arg3: memref<1x512xf32, #tpu.memory_space<vmem>>, %arg4: memref<16x512xbf16, #tpu.memory_space<vmem>>) attributes {dimension_semantics = [#tpu.dimension_semantics<parallel>], iteration_bounds = array<i64: 1>, scalar_prefetch = 0 : i64, scratch_operands = 0 : i64, tpu.core_type = #tpu.core_type<tc>, window_params = [{transform_indices = @transform_0, window_bounds = array<i64: 16, 256>}, {pipeline_mode = #tpu.pipeline_mode<synchronous>, transform_indices = @transform_1, window_bounds = array<i64: 256, 512>}, {pipeline_mode = #tpu.pipeline_mode<synchronous>, transform_indices = @transform_2, window_bounds = array<i64: 1, 512>}, {transform_indices = @transform_3, window_bounds = array<i64: 16, 512>}]} {
    %c0 = arith.constant 0 : index
    %c0_0 = arith.constant 0 : index
    %0 = vector.load %arg1[%c0, %c0_0] : memref<16x256xbf16, #tpu.memory_space<vmem>>, vector<16x256xbf16>
    %c0_1 = arith.constant 0 : index
    %c0_2 = arith.constant 0 : index
    %1 = vector.load %arg2[%c0_1, %c0_2] : memref<256x512xbf16, #tpu.memory_space<vmem>>, vector<256x512xbf16>
    %cst = arith.constant dense<0.000000e+00> : vector<16x512xf32>
    %2 = tpu.matmul %0, %1, %cst {dimension_numbers = #tpu.dot_dimension_numbers<[1], [0], [0], [1], [0, 0, 1, 1], [], []>} : vector<16x256xbf16>, vector<256x512xbf16>, vector<16x512xf32> -> vector<16x512xf32>
    %c0_3 = arith.constant 0 : index
    %c0_4 = arith.constant 0 : index
    %3 = vector.load %arg3[%c0_3, %c0_4] : memref<1x512xf32, #tpu.memory_space<vmem>>, vector<1x512xf32>
    %4 = vector.broadcast %3 : vector<1x512xf32> to vector<16x512xf32>
    %5 = arith.addf %2, %4 : vector<16x512xf32>
    %6 = arith.truncf %5 : vector<16x512xf32> to vector<16x512xbf16>
    %c0_5 = arith.constant 0 : index
    %c0_6 = arith.constant 0 : index
    %7 = vector.load %arg4[%c0_5, %c0_6] : memref<16x512xbf16, #tpu.memory_space<vmem>>, vector<16x512xbf16>
    tpu.vector_store %arg4[%c0_5, %c0_6], %6 {strides = array<i32>} : memref<16x512xbf16, #tpu.memory_space<vmem>>, vector<16x512xbf16>,
    return
  }
  func.func @transform_0(%arg0: i32) -> (i32, i32) {
    %c0_i32 = arith.constant 0 : i32
    %c0_i32_0 = arith.constant 0 : i32
    return %arg0, %c0_i32 : i32, i32
  }
  func.func @transform_1(%arg0: i32) -> (i32, i32) {
    %c0_i32 = arith.constant 0 : i32
    %c0_i32_0 = arith.constant 0 : i32
    %c0_i32_1 = arith.constant 0 : i32
    return %c0_i32, %c0_i32_0 : i32, i32
  }
  func.func @transform_2(%arg0: i32) -> (i32, i32) {
    %c0_i32 = arith.constant 0 : i32
    %c0_i32_0 = arith.constant 0 : i32
    %c0_i32_1 = arith.constant 0 : i32
    return %c0_i32, %c0_i32_0 : i32, i32
  }
  func.func @transform_3(%arg0: i32) -> (i32, i32) {
    %c0_i32 = arith.constant 0 : i32
    %c0_i32_0 = arith.constant 0 : i32
    return %arg0, %c0_i32 : i32, i32
  }
}

module attributes {stable_mosaic.version = 11 : i64} {
  func.func @_blocks_kernel(%arg0: i32, %arg1: memref<16x128xbf16, #tpu.memory_space<vmem>>, %arg2: memref<16x128xbf16, #tpu.memory_space<vmem>>, %arg3: memref<1x128xf32, #tpu.memory_space<vmem>>, %arg4: memref<1x128xf32, #tpu.memory_space<vmem>>, %arg5: memref<128x256xbf16, #tpu.memory_space<vmem>>, %arg6: memref<1x256xf32, #tpu.memory_space<vmem>>, %arg7: memref<256x128xbf16, #tpu.memory_space<vmem>>, %arg8: memref<1x128xf32, #tpu.memory_space<vmem>>, %arg9: memref<1x128xf32, #tpu.memory_space<vmem>>, %arg10: memref<1x128xf32, #tpu.memory_space<vmem>>, %arg11: memref<128x256xbf16, #tpu.memory_space<vmem>>, %arg12: memref<1x256xf32, #tpu.memory_space<vmem>>, %arg13: memref<256x128xbf16, #tpu.memory_space<vmem>>, %arg14: memref<1x128xf32, #tpu.memory_space<vmem>>, %arg15: memref<16x128xbf16, #tpu.memory_space<vmem>>) attributes {dimension_semantics = [#tpu.dimension_semantics<parallel>], iteration_bounds = array<i64: 1>, scalar_prefetch = 0 : i64, scratch_operands = 0 : i64, tpu.core_type = #tpu.core_type<tc>, window_params = [{transform_indices = @transform_0, window_bounds = array<i64: 16, 128>}, {transform_indices = @transform_1, window_bounds = array<i64: 16, 128>}, {pipeline_mode = #tpu.pipeline_mode<synchronous>, transform_indices = @transform_2, window_bounds = array<i64: 1, 128>}, {pipeline_mode = #tpu.pipeline_mode<synchronous>, transform_indices = @transform_3, window_bounds = array<i64: 1, 128>}, {pipeline_mode = #tpu.pipeline_mode<synchronous>, transform_indices = @transform_4, window_bounds = array<i64: 128, 256>}, {pipeline_mode = #tpu.pipeline_mode<synchronous>, transform_indices = @transform_5, window_bounds = array<i64: 1, 256>}, {pipeline_mode = #tpu.pipeline_mode<synchronous>, transform_indices = @transform_6, window_bounds = array<i64: 256, 128>}, {pipeline_mode = #tpu.pipeline_mode<synchronous>, transform_indices = @transform_7, window_bounds = array<i64: 1, 128>}, {pipeline_mode = #tpu.pipeline_mode<synchronous>, transform_indices = @transform_8, window_bounds = array<i64: 1, 128>}, {pipeline_mode = #tpu.pipeline_mode<synchronous>, transform_indices = @transform_9, window_bounds = array<i64: 1, 128>}, {pipeline_mode = #tpu.pipeline_mode<synchronous>, transform_indices = @transform_10, window_bounds = array<i64: 128, 256>}, {pipeline_mode = #tpu.pipeline_mode<synchronous>, transform_indices = @transform_11, window_bounds = array<i64: 1, 256>}, {pipeline_mode = #tpu.pipeline_mode<synchronous>, transform_indices = @transform_12, window_bounds = array<i64: 256, 128>}, {pipeline_mode = #tpu.pipeline_mode<synchronous>, transform_indices = @transform_13, window_bounds = array<i64: 1, 128>}, {transform_indices = @transform_14, window_bounds = array<i64: 16, 128>}]} {
    %c0 = arith.constant 0 : index
    %c0_0 = arith.constant 0 : index
    %0 = vector.load %arg1[%c0, %c0_0] : memref<16x128xbf16, #tpu.memory_space<vmem>>, vector<16x128xbf16>
    %1 = arith.extf %0 : vector<16x128xbf16> to vector<16x128xf32>
    %c0_1 = arith.constant 0 : index
    %c0_2 = arith.constant 0 : index
    %2 = vector.load %arg2[%c0_1, %c0_2] : memref<16x128xbf16, #tpu.memory_space<vmem>>, vector<16x128xbf16>
    %3 = arith.extf %2 : vector<16x128xbf16> to vector<16x128xf32>
    %4 = arith.addf %1, %3 : vector<16x128xf32>
    %c0_3 = arith.constant 0 : index
    %c0_4 = arith.constant 0 : index
    %5 = vector.load %arg3[%c0_3, %c0_4] : memref<1x128xf32, #tpu.memory_space<vmem>>, vector<1x128xf32>
    %c0_5 = arith.constant 0 : index
    %c0_6 = arith.constant 0 : index
    %6 = vector.load %arg4[%c0_5, %c0_6] : memref<1x128xf32, #tpu.memory_space<vmem>>, vector<1x128xf32>
    %cst = arith.constant dense<0.000000e+00> : vector<16xf32>
    %7 = vector.multi_reduction <add>, %4, %cst [1] : vector<16x128xf32> to vector<16xf32>
    %8 = vector.shape_cast %7 : vector<16xf32> to vector<16x1xf32>
    %cst_7 = arith.constant 1.280000e+02 : f32
    %9 = vector.broadcast %cst_7 : f32 to vector<16x1xf32>
    %10 = arith.divf %8, %9 : vector<16x1xf32>
    %11 = vector.broadcast %10 : vector<16x1xf32> to vector<16x128xf32>
    %12 = arith.subf %4, %11 : vector<16x128xf32>
    %13 = arith.mulf %12, %12 : vector<16x128xf32>
    %cst_8 = arith.constant dense<0.000000e+00> : vector<16xf32>
    %14 = vector.multi_reduction <add>, %13, %cst_8 [1] : vector<16x128xf32> to vector<16xf32>
    %15 = vector.shape_cast %14 : vector<16xf32> to vector<16x1xf32>
    %cst_9 = arith.constant 1.280000e+02 : f32
    %16 = vector.broadcast %cst_9 : f32 to vector<16x1xf32>
    %17 = arith.divf %15, %16 : vector<16x1xf32>
    %18 = vector.broadcast %10 : vector<16x1xf32> to vector<16x128xf32>
    %19 = arith.subf %4, %18 : vector<16x128xf32>
    %cst_10 = arith.constant 9.99999974E-6 : f32
    %20 = vector.broadcast %cst_10 : f32 to vector<16x1xf32>
    %21 = arith.addf %17, %20 : vector<16x1xf32>
    %22 = math.rsqrt %21 : vector<16x1xf32>
    %23 = vector.broadcast %22 : vector<16x1xf32> to vector<16x128xf32>
    %24 = arith.mulf %19, %23 : vector<16x128xf32>
    %25 = vector.broadcast %5 : vector<1x128xf32> to vector<16x128xf32>
    %26 = arith.mulf %24, %25 : vector<16x128xf32>
    %27 = vector.broadcast %6 : vector<1x128xf32> to vector<16x128xf32>
    %28 = arith.addf %26, %27 : vector<16x128xf32>
    %c0_11 = arith.constant 0 : index
    %c0_12 = arith.constant 0 : index
    %29 = vector.load %arg5[%c0_11, %c0_12] : memref<128x256xbf16, #tpu.memory_space<vmem>>, vector<128x256xbf16>
    %30 = arith.truncf %28 : vector<16x128xf32> to vector<16x128xbf16>
    %cst_13 = arith.constant dense<0.000000e+00> : vector<16x256xf32>
    %31 = tpu.matmul %30, %29, %cst_13 {dimension_numbers = #tpu.dot_dimension_numbers<[1], [0], [0], [1], [0, 0, 1, 1], [], []>} : vector<16x128xbf16>, vector<128x256xbf16>, vector<16x256xf32> -> vector<16x256xf32>
    %c0_14 = arith.constant 0 : index
    %c0_15 = arith.constant 0 : index
    %32 = vector.load %arg6[%c0_14, %c0_15] : memref<1x256xf32, #tpu.memory_space<vmem>>, vector<1x256xf32>
    %33 = vector.broadcast %32 : vector<1x256xf32> to vector<16x256xf32>
    %34 = arith.addf %31, %33 : vector<16x256xf32>
    %35 = arith.mulf %34, %34 : vector<16x256xf32>
    %36 = arith.mulf %34, %35 : vector<16x256xf32>
    %cst_16 = arith.constant 4.471500e-02 : f32
    %37 = vector.broadcast %cst_16 : f32 to vector<16x256xf32>
    %38 = arith.mulf %37, %36 : vector<16x256xf32>
    %39 = arith.addf %34, %38 : vector<16x256xf32>
    %cst_17 = arith.constant 0.797884583 : f32
    %40 = vector.broadcast %cst_17 : f32 to vector<16x256xf32>
    %41 = arith.mulf %40, %39 : vector<16x256xf32>
    %42 = math.tanh %41 : vector<16x256xf32>
    %cst_18 = arith.constant 1.000000e+00 : f32
    %43 = vector.broadcast %cst_18 : f32 to vector<16x256xf32>
    %44 = arith.addf %43, %42 : vector<16x256xf32>
    %cst_19 = arith.constant 5.000000e-01 : f32
    %45 = vector.broadcast %cst_19 : f32 to vector<16x256xf32>
    %46 = arith.mulf %45, %44 : vector<16x256xf32>
    %47 = arith.mulf %34, %46 : vector<16x256xf32>
    %c0_20 = arith.constant 0 : index
    %c0_21 = arith.constant 0 : index
    %48 = vector.load %arg7[%c0_20, %c0_21] : memref<256x128xbf16, #tpu.memory_space<vmem>>, vector<256x128xbf16>
    %49 = arith.truncf %47 : vector<16x256xf32> to vector<16x256xbf16>
    %cst_22 = arith.constant dense<0.000000e+00> : vector<16x128xf32>
    %50 = tpu.matmul %49, %48, %cst_22 {dimension_numbers = #tpu.dot_dimension_numbers<[1], [0], [0], [1], [0, 0, 1, 1], [], []>} : vector<16x256xbf16>, vector<256x128xbf16>, vector<16x128xf32> -> vector<16x128xf32>
    %c0_23 = arith.constant 0 : index
    %c0_24 = arith.constant 0 : index
    %51 = vector.load %arg8[%c0_23, %c0_24] : memref<1x128xf32, #tpu.memory_space<vmem>>, vector<1x128xf32>
    %52 = vector.broadcast %51 : vector<1x128xf32> to vector<16x128xf32>
    %53 = arith.addf %50, %52 : vector<16x128xf32>
    %54 = arith.addf %4, %53 : vector<16x128xf32>
    %c0_25 = arith.constant 0 : index
    %c0_26 = arith.constant 0 : index
    %55 = vector.load %arg9[%c0_25, %c0_26] : memref<1x128xf32, #tpu.memory_space<vmem>>, vector<1x128xf32>
    %c0_27 = arith.constant 0 : index
    %c0_28 = arith.constant 0 : index
    %56 = vector.load %arg10[%c0_27, %c0_28] : memref<1x128xf32, #tpu.memory_space<vmem>>, vector<1x128xf32>
    %cst_29 = arith.constant dense<0.000000e+00> : vector<16xf32>
    %57 = vector.multi_reduction <add>, %54, %cst_29 [1] : vector<16x128xf32> to vector<16xf32>
    %58 = vector.shape_cast %57 : vector<16xf32> to vector<16x1xf32>
    %cst_30 = arith.constant 1.280000e+02 : f32
    %59 = vector.broadcast %cst_30 : f32 to vector<16x1xf32>
    %60 = arith.divf %58, %59 : vector<16x1xf32>
    %61 = vector.broadcast %60 : vector<16x1xf32> to vector<16x128xf32>
    %62 = arith.subf %54, %61 : vector<16x128xf32>
    %63 = arith.mulf %62, %62 : vector<16x128xf32>
    %cst_31 = arith.constant dense<0.000000e+00> : vector<16xf32>
    %64 = vector.multi_reduction <add>, %63, %cst_31 [1] : vector<16x128xf32> to vector<16xf32>
    %65 = vector.shape_cast %64 : vector<16xf32> to vector<16x1xf32>
    %cst_32 = arith.constant 1.280000e+02 : f32
    %66 = vector.broadcast %cst_32 : f32 to vector<16x1xf32>
    %67 = arith.divf %65, %66 : vector<16x1xf32>
    %68 = vector.broadcast %60 : vector<16x1xf32> to vector<16x128xf32>
    %69 = arith.subf %54, %68 : vector<16x128xf32>
    %cst_33 = arith.constant 9.99999974E-6 : f32
    %70 = vector.broadcast %cst_33 : f32 to vector<16x1xf32>
    %71 = arith.addf %67, %70 : vector<16x1xf32>
    %72 = math.rsqrt %71 : vector<16x1xf32>
    %73 = vector.broadcast %72 : vector<16x1xf32> to vector<16x128xf32>
    %74 = arith.mulf %69, %73 : vector<16x128xf32>
    %75 = vector.broadcast %55 : vector<1x128xf32> to vector<16x128xf32>
    %76 = arith.mulf %74, %75 : vector<16x128xf32>
    %77 = vector.broadcast %56 : vector<1x128xf32> to vector<16x128xf32>
    %78 = arith.addf %76, %77 : vector<16x128xf32>
    %c0_34 = arith.constant 0 : index
    %c0_35 = arith.constant 0 : index
    %79 = vector.load %arg11[%c0_34, %c0_35] : memref<128x256xbf16, #tpu.memory_space<vmem>>, vector<128x256xbf16>
    %80 = arith.truncf %78 : vector<16x128xf32> to vector<16x128xbf16>
    %cst_36 = arith.constant dense<0.000000e+00> : vector<16x256xf32>
    %81 = tpu.matmul %80, %79, %cst_36 {dimension_numbers = #tpu.dot_dimension_numbers<[1], [0], [0], [1], [0, 0, 1, 1], [], []>} : vector<16x128xbf16>, vector<128x256xbf16>, vector<16x256xf32> -> vector<16x256xf32>
    %c0_37 = arith.constant 0 : index
    %c0_38 = arith.constant 0 : index
    %82 = vector.load %arg12[%c0_37, %c0_38] : memref<1x256xf32, #tpu.memory_space<vmem>>, vector<1x256xf32>
    %83 = vector.broadcast %82 : vector<1x256xf32> to vector<16x256xf32>
    %84 = arith.addf %81, %83 : vector<16x256xf32>
    %85 = arith.mulf %84, %84 : vector<16x256xf32>
    %86 = arith.mulf %84, %85 : vector<16x256xf32>
    %cst_39 = arith.constant 4.471500e-02 : f32
    %87 = vector.broadcast %cst_39 : f32 to vector<16x256xf32>
    %88 = arith.mulf %87, %86 : vector<16x256xf32>
    %89 = arith.addf %84, %88 : vector<16x256xf32>
    %cst_40 = arith.constant 0.797884583 : f32
    %90 = vector.broadcast %cst_40 : f32 to vector<16x256xf32>
    %91 = arith.mulf %90, %89 : vector<16x256xf32>
    %92 = math.tanh %91 : vector<16x256xf32>
    %cst_41 = arith.constant 1.000000e+00 : f32
    %93 = vector.broadcast %cst_41 : f32 to vector<16x256xf32>
    %94 = arith.addf %93, %92 : vector<16x256xf32>
    %cst_42 = arith.constant 5.000000e-01 : f32
    %95 = vector.broadcast %cst_42 : f32 to vector<16x256xf32>
    %96 = arith.mulf %95, %94 : vector<16x256xf32>
    %97 = arith.mulf %84, %96 : vector<16x256xf32>
    %c0_43 = arith.constant 0 : index
    %c0_44 = arith.constant 0 : index
    %98 = vector.load %arg13[%c0_43, %c0_44] : memref<256x128xbf16, #tpu.memory_space<vmem>>, vector<256x128xbf16>
    %99 = arith.truncf %97 : vector<16x256xf32> to vector<16x256xbf16>
    %cst_45 = arith.constant dense<0.000000e+00> : vector<16x128xf32>
    %100 = tpu.matmul %99, %98, %cst_45 {dimension_numbers = #tpu.dot_dimension_numbers<[1], [0], [0], [1], [0, 0, 1, 1], [], []>} : vector<16x256xbf16>, vector<256x128xbf16>, vector<16x128xf32> -> vector<16x128xf32>
    %c0_46 = arith.constant 0 : index
    %c0_47 = arith.constant 0 : index
    %101 = vector.load %arg14[%c0_46, %c0_47] : memref<1x128xf32, #tpu.memory_space<vmem>>, vector<1x128xf32>
    %102 = vector.broadcast %101 : vector<1x128xf32> to vector<16x128xf32>
    %103 = arith.addf %100, %102 : vector<16x128xf32>
    %104 = arith.addf %54, %103 : vector<16x128xf32>
    %105 = arith.truncf %104 : vector<16x128xf32> to vector<16x128xbf16>
    %c0_48 = arith.constant 0 : index
    %c0_49 = arith.constant 0 : index
    %106 = vector.load %arg15[%c0_48, %c0_49] : memref<16x128xbf16, #tpu.memory_space<vmem>>, vector<16x128xbf16>
    tpu.vector_store %arg15[%c0_48, %c0_49], %105 {strides = array<i32>} : memref<16x128xbf16, #tpu.memory_space<vmem>>, vector<16x128xbf16>,
    return
  }
  func.func @transform_0(%arg0: i32) -> (i32, i32) {
    %c0_i32 = arith.constant 0 : i32
    %c0_i32_0 = arith.constant 0 : i32
    return %arg0, %c0_i32 : i32, i32
  }
  func.func @transform_1(%arg0: i32) -> (i32, i32) {
    %c0_i32 = arith.constant 0 : i32
    %c0_i32_0 = arith.constant 0 : i32
    return %arg0, %c0_i32 : i32, i32
  }
  func.func @transform_2(%arg0: i32) -> (i32, i32) {
    %c0_i32 = arith.constant 0 : i32
    %c0_i32_0 = arith.constant 0 : i32
    %c0_i32_1 = arith.constant 0 : i32
    return %c0_i32, %c0_i32_0 : i32, i32
  }
  func.func @transform_3(%arg0: i32) -> (i32, i32) {
    %c0_i32 = arith.constant 0 : i32
    %c0_i32_0 = arith.constant 0 : i32
    %c0_i32_1 = arith.constant 0 : i32
    return %c0_i32, %c0_i32_0 : i32, i32
  }
  func.func @transform_4(%arg0: i32) -> (i32, i32) {
    %c0_i32 = arith.constant 0 : i32
    %c0_i32_0 = arith.constant 0 : i32
    %c0_i32_1 = arith.constant 0 : i32
    return %c0_i32, %c0_i32_0 : i32, i32
  }
  func.func @transform_5(%arg0: i32) -> (i32, i32) {
    %c0_i32 = arith.constant 0 : i32
    %c0_i32_0 = arith.constant 0 : i32
    %c0_i32_1 = arith.constant 0 : i32
    return %c0_i32, %c0_i32_0 : i32, i32
  }
  func.func @transform_6(%arg0: i32) -> (i32, i32) {
    %c0_i32 = arith.constant 0 : i32
    %c0_i32_0 = arith.constant 0 : i32
    %c0_i32_1 = arith.constant 0 : i32
    return %c0_i32, %c0_i32_0 : i32, i32
  }
  func.func @transform_7(%arg0: i32) -> (i32, i32) {
    %c0_i32 = arith.constant 0 : i32
    %c0_i32_0 = arith.constant 0 : i32
    %c0_i32_1 = arith.constant 0 : i32
    return %c0_i32, %c0_i32_0 : i32, i32
  }
  func.func @transform_8(%arg0: i32) -> (i32, i32) {
    %c0_i32 = arith.constant 0 : i32
    %c0_i32_0 = arith.constant 0 : i32
    %c0_i32_1 = arith.constant 0 : i32
    return %c0_i32, %c0_i32_0 : i32, i32
  }
  func.func @transform_9(%arg0: i32) -> (i32, i32) {
    %c0_i32 = arith.constant 0 : i32
    %c0_i32_0 = arith.constant 0 : i32
    %c0_i32_1 = arith.constant 0 : i32
    return %c0_i32, %c0_i32_0 : i32, i32
  }
  func.func @transform_10(%arg0: i32) -> (i32, i32) {
    %c0_i32 = arith.constant 0 : i32
    %c0_i32_0 = arith.constant 0 : i32
    %c0_i32_1 = arith.constant 0 : i32
    return %c0_i32, %c0_i32_0 : i32, i32
  }
  func.func @transform_11(%arg0: i32) -> (i32, i32) {
    %c0_i32 = arith.constant 0 : i32
    %c0_i32_0 = arith.constant 0 : i32
    %c0_i32_1 = arith.constant 0 : i32
    return %c0_i32, %c0_i32_0 : i32, i32
  }
  func.func @transform_12(%arg0: i32) -> (i32, i32) {
    %c0_i32 = arith.constant 0 : i32
    %c0_i32_0 = arith.constant 0 : i32
    %c0_i32_1 = arith.constant 0 : i32
    return %c0_i32, %c0_i32_0 : i32, i32
  }
  func.func @transform_13(%arg0: i32) -> (i32, i32) {
    %c0_i32 = arith.constant 0 : i32
    %c0_i32_0 = arith.constant 0 : i32
    %c0_i32_1 = arith.constant 0 : i32
    return %c0_i32, %c0_i32_0 : i32, i32
  }
  func.func @transform_14(%arg0: i32) -> (i32, i32) {
    %c0_i32 = arith.constant 0 : i32
    %c0_i32_0 = arith.constant 0 : i32
    return %arg0, %c0_i32 : i32, i32
  }
}

module attributes {stable_mosaic.version = 11 : i64} {
  func.func @_linear_kernel(%arg0: i32, %arg1: memref<16x128xbf16, #tpu.memory_space<vmem>>, %arg2: memref<128x256xbf16, #tpu.memory_space<vmem>>, %arg3: memref<1x256xf32, #tpu.memory_space<vmem>>, %arg4: memref<16x256xbf16, #tpu.memory_space<vmem>>) attributes {dimension_semantics = [#tpu.dimension_semantics<parallel>], iteration_bounds = array<i64: 1>, scalar_prefetch = 0 : i64, scratch_operands = 0 : i64, tpu.core_type = #tpu.core_type<tc>, window_params = [{transform_indices = @transform_0, window_bounds = array<i64: 16, 128>}, {pipeline_mode = #tpu.pipeline_mode<synchronous>, transform_indices = @transform_1, window_bounds = array<i64: 128, 256>}, {pipeline_mode = #tpu.pipeline_mode<synchronous>, transform_indices = @transform_2, window_bounds = array<i64: 1, 256>}, {transform_indices = @transform_3, window_bounds = array<i64: 16, 256>}]} {
    %c0 = arith.constant 0 : index
    %c0_0 = arith.constant 0 : index
    %0 = vector.load %arg1[%c0, %c0_0] : memref<16x128xbf16, #tpu.memory_space<vmem>>, vector<16x128xbf16>
    %c0_1 = arith.constant 0 : index
    %c0_2 = arith.constant 0 : index
    %1 = vector.load %arg2[%c0_1, %c0_2] : memref<128x256xbf16, #tpu.memory_space<vmem>>, vector<128x256xbf16>
    %cst = arith.constant dense<0.000000e+00> : vector<16x256xf32>
    %2 = tpu.matmul %0, %1, %cst {dimension_numbers = #tpu.dot_dimension_numbers<[1], [0], [0], [1], [0, 0, 1, 1], [], []>} : vector<16x128xbf16>, vector<128x256xbf16>, vector<16x256xf32> -> vector<16x256xf32>
    %c0_3 = arith.constant 0 : index
    %c0_4 = arith.constant 0 : index
    %3 = vector.load %arg3[%c0_3, %c0_4] : memref<1x256xf32, #tpu.memory_space<vmem>>, vector<1x256xf32>
    %4 = vector.broadcast %3 : vector<1x256xf32> to vector<16x256xf32>
    %5 = arith.addf %2, %4 : vector<16x256xf32>
    %6 = arith.truncf %5 : vector<16x256xf32> to vector<16x256xbf16>
    %c0_5 = arith.constant 0 : index
    %c0_6 = arith.constant 0 : index
    %7 = vector.load %arg4[%c0_5, %c0_6] : memref<16x256xbf16, #tpu.memory_space<vmem>>, vector<16x256xbf16>
    tpu.vector_store %arg4[%c0_5, %c0_6], %6 {strides = array<i32>} : memref<16x256xbf16, #tpu.memory_space<vmem>>, vector<16x256xbf16>,
    return
  }
  func.func @transform_0(%arg0: i32) -> (i32, i32) {
    %c0_i32 = arith.constant 0 : i32
    %c0_i32_0 = arith.constant 0 : i32
    return %arg0, %c0_i32 : i32, i32
  }
  func.func @transform_1(%arg0: i32) -> (i32, i32) {
    %c0_i32 = arith.constant 0 : i32
    %c0_i32_0 = arith.constant 0 : i32
    %c0_i32_1 = arith.constant 0 : i32
    return %c0_i32, %c0_i32_0 : i32, i32
  }
  func.func @transform_2(%arg0: i32) -> (i32, i32) {
    %c0_i32 = arith.constant 0 : i32
    %c0_i32_0 = arith.constant 0 : i32
    %c0_i32_1 = arith.constant 0 : i32
    return %c0_i32, %c0_i32_0 : i32, i32
  }
  func.func @transform_3(%arg0: i32) -> (i32, i32) {
    %c0_i32 = arith.constant 0 : i32
    %c0_i32_0 = arith.constant 0 : i32
    return %arg0, %c0_i32 : i32, i32
  }
}

module attributes {stable_mosaic.version = 11 : i64} {
  func.func @_linear_kernel(%arg0: i32, %arg1: memref<32x64xbf16, #tpu.memory_space<vmem>>, %arg2: memref<64x128xbf16, #tpu.memory_space<vmem>>, %arg3: memref<1x128xf32, #tpu.memory_space<vmem>>, %arg4: memref<32x128xf32, #tpu.memory_space<vmem>>) attributes {dimension_semantics = [#tpu.dimension_semantics<parallel>], iteration_bounds = array<i64: 1>, scalar_prefetch = 0 : i64, scratch_operands = 0 : i64, tpu.core_type = #tpu.core_type<tc>, window_params = [{transform_indices = @transform_0, window_bounds = array<i64: 32, 64>}, {pipeline_mode = #tpu.pipeline_mode<synchronous>, transform_indices = @transform_1, window_bounds = array<i64: 64, 128>}, {pipeline_mode = #tpu.pipeline_mode<synchronous>, transform_indices = @transform_2, window_bounds = array<i64: 1, 128>}, {transform_indices = @transform_3, window_bounds = array<i64: 32, 128>}]} {
    %c0 = arith.constant 0 : index
    %c0_0 = arith.constant 0 : index
    %0 = vector.load %arg1[%c0, %c0_0] : memref<32x64xbf16, #tpu.memory_space<vmem>>, vector<32x64xbf16>
    %c0_1 = arith.constant 0 : index
    %c0_2 = arith.constant 0 : index
    %1 = vector.load %arg2[%c0_1, %c0_2] : memref<64x128xbf16, #tpu.memory_space<vmem>>, vector<64x128xbf16>
    %cst = arith.constant dense<0.000000e+00> : vector<32x128xf32>
    %2 = tpu.matmul %0, %1, %cst {dimension_numbers = #tpu.dot_dimension_numbers<[1], [0], [0], [1], [0, 0, 1, 1], [], []>} : vector<32x64xbf16>, vector<64x128xbf16>, vector<32x128xf32> -> vector<32x128xf32>
    %c0_3 = arith.constant 0 : index
    %c0_4 = arith.constant 0 : index
    %3 = vector.load %arg3[%c0_3, %c0_4] : memref<1x128xf32, #tpu.memory_space<vmem>>, vector<1x128xf32>
    %4 = vector.broadcast %3 : vector<1x128xf32> to vector<32x128xf32>
    %5 = arith.addf %2, %4 : vector<32x128xf32>
    %c0_5 = arith.constant 0 : index
    %c0_6 = arith.constant 0 : index
    %6 = vector.load %arg4[%c0_5, %c0_6] : memref<32x128xf32, #tpu.memory_space<vmem>>, vector<32x128xf32>
    tpu.vector_store %arg4[%c0_5, %c0_6], %5 {strides = array<i32>} : memref<32x128xf32, #tpu.memory_space<vmem>>, vector<32x128xf32>,
    return
  }
  func.func @transform_0(%arg0: i32) -> (i32, i32) {
    %c0_i32 = arith.constant 0 : i32
    %c0_i32_0 = arith.constant 0 : i32
    return %arg0, %c0_i32 : i32, i32
  }
  func.func @transform_1(%arg0: i32) -> (i32, i32) {
    %c0_i32 = arith.constant 0 : i32
    %c0_i32_0 = arith.constant 0 : i32
    %c0_i32_1 = arith.constant 0 : i32
    return %c0_i32, %c0_i32_0 : i32, i32
  }
  func.func @transform_2(%arg0: i32) -> (i32, i32) {
    %c0_i32 = arith.constant 0 : i32
    %c0_i32_0 = arith.constant 0 : i32
    %c0_i32_1 = arith.constant 0 : i32
    return %c0_i32, %c0_i32_0 : i32, i32
  }
  func.func @transform_3(%arg0: i32) -> (i32, i32) {
    %c0_i32 = arith.constant 0 : i32
    %c0_i32_0 = arith.constant 0 : i32
    return %arg0, %c0_i32 : i32, i32
  }
}

module attributes {stable_mosaic.version = 11 : i64} {
  func.func @_blocks_kernel(%arg0: i32, %arg1: memref<32x64xbf16, #tpu.memory_space<vmem>>, %arg2: memref<32x64xbf16, #tpu.memory_space<vmem>>, %arg3: memref<1x64xf32, #tpu.memory_space<vmem>>, %arg4: memref<1x64xf32, #tpu.memory_space<vmem>>, %arg5: memref<64x128xbf16, #tpu.memory_space<vmem>>, %arg6: memref<1x128xf32, #tpu.memory_space<vmem>>, %arg7: memref<128x64xbf16, #tpu.memory_space<vmem>>, %arg8: memref<1x64xf32, #tpu.memory_space<vmem>>, %arg9: memref<1x64xf32, #tpu.memory_space<vmem>>, %arg10: memref<1x64xf32, #tpu.memory_space<vmem>>, %arg11: memref<64x128xbf16, #tpu.memory_space<vmem>>, %arg12: memref<1x128xf32, #tpu.memory_space<vmem>>, %arg13: memref<128x64xbf16, #tpu.memory_space<vmem>>, %arg14: memref<1x64xf32, #tpu.memory_space<vmem>>, %arg15: memref<32x64xbf16, #tpu.memory_space<vmem>>) attributes {dimension_semantics = [#tpu.dimension_semantics<parallel>], iteration_bounds = array<i64: 1>, scalar_prefetch = 0 : i64, scratch_operands = 0 : i64, tpu.core_type = #tpu.core_type<tc>, window_params = [{transform_indices = @transform_0, window_bounds = array<i64: 32, 64>}, {transform_indices = @transform_1, window_bounds = array<i64: 32, 64>}, {pipeline_mode = #tpu.pipeline_mode<synchronous>, transform_indices = @transform_2, window_bounds = array<i64: 1, 64>}, {pipeline_mode = #tpu.pipeline_mode<synchronous>, transform_indices = @transform_3, window_bounds = array<i64: 1, 64>}, {pipeline_mode = #tpu.pipeline_mode<synchronous>, transform_indices = @transform_4, window_bounds = array<i64: 64, 128>}, {pipeline_mode = #tpu.pipeline_mode<synchronous>, transform_indices = @transform_5, window_bounds = array<i64: 1, 128>}, {pipeline_mode = #tpu.pipeline_mode<synchronous>, transform_indices = @transform_6, window_bounds = array<i64: 128, 64>}, {pipeline_mode = #tpu.pipeline_mode<synchronous>, transform_indices = @transform_7, window_bounds = array<i64: 1, 64>}, {pipeline_mode = #tpu.pipeline_mode<synchronous>, transform_indices = @transform_8, window_bounds = array<i64: 1, 64>}, {pipeline_mode = #tpu.pipeline_mode<synchronous>, transform_indices = @transform_9, window_bounds = array<i64: 1, 64>}, {pipeline_mode = #tpu.pipeline_mode<synchronous>, transform_indices = @transform_10, window_bounds = array<i64: 64, 128>}, {pipeline_mode = #tpu.pipeline_mode<synchronous>, transform_indices = @transform_11, window_bounds = array<i64: 1, 128>}, {pipeline_mode = #tpu.pipeline_mode<synchronous>, transform_indices = @transform_12, window_bounds = array<i64: 128, 64>}, {pipeline_mode = #tpu.pipeline_mode<synchronous>, transform_indices = @transform_13, window_bounds = array<i64: 1, 64>}, {transform_indices = @transform_14, window_bounds = array<i64: 32, 64>}]} {
    %c0 = arith.constant 0 : index
    %c0_0 = arith.constant 0 : index
    %0 = vector.load %arg1[%c0, %c0_0] : memref<32x64xbf16, #tpu.memory_space<vmem>>, vector<32x64xbf16>
    %1 = arith.extf %0 : vector<32x64xbf16> to vector<32x64xf32>
    %c0_1 = arith.constant 0 : index
    %c0_2 = arith.constant 0 : index
    %2 = vector.load %arg2[%c0_1, %c0_2] : memref<32x64xbf16, #tpu.memory_space<vmem>>, vector<32x64xbf16>
    %3 = arith.extf %2 : vector<32x64xbf16> to vector<32x64xf32>
    %4 = arith.addf %1, %3 : vector<32x64xf32>
    %c0_3 = arith.constant 0 : index
    %c0_4 = arith.constant 0 : index
    %5 = vector.load %arg3[%c0_3, %c0_4] : memref<1x64xf32, #tpu.memory_space<vmem>>, vector<1x64xf32>
    %c0_5 = arith.constant 0 : index
    %c0_6 = arith.constant 0 : index
    %6 = vector.load %arg4[%c0_5, %c0_6] : memref<1x64xf32, #tpu.memory_space<vmem>>, vector<1x64xf32>
    %cst = arith.constant dense<0.000000e+00> : vector<32xf32>
    %7 = vector.multi_reduction <add>, %4, %cst [1] : vector<32x64xf32> to vector<32xf32>
    %8 = vector.shape_cast %7 : vector<32xf32> to vector<32x1xf32>
    %cst_7 = arith.constant 6.400000e+01 : f32
    %9 = vector.broadcast %cst_7 : f32 to vector<32x1xf32>
    %10 = arith.divf %8, %9 : vector<32x1xf32>
    %11 = vector.broadcast %10 : vector<32x1xf32> to vector<32x64xf32>
    %12 = arith.subf %4, %11 : vector<32x64xf32>
    %13 = arith.mulf %12, %12 : vector<32x64xf32>
    %cst_8 = arith.constant dense<0.000000e+00> : vector<32xf32>
    %14 = vector.multi_reduction <add>, %13, %cst_8 [1] : vector<32x64xf32> to vector<32xf32>
    %15 = vector.shape_cast %14 : vector<32xf32> to vector<32x1xf32>
    %cst_9 = arith.constant 6.400000e+01 : f32
    %16 = vector.broadcast %cst_9 : f32 to vector<32x1xf32>
    %17 = arith.divf %15, %16 : vector<32x1xf32>
    %18 = vector.broadcast %10 : vector<32x1xf32> to vector<32x64xf32>
    %19 = arith.subf %4, %18 : vector<32x64xf32>
    %cst_10 = arith.constant 9.99999974E-6 : f32
    %20 = vector.broadcast %cst_10 : f32 to vector<32x1xf32>
    %21 = arith.addf %17, %20 : vector<32x1xf32>
    %22 = math.rsqrt %21 : vector<32x1xf32>
    %23 = vector.broadcast %22 : vector<32x1xf32> to vector<32x64xf32>
    %24 = arith.mulf %19, %23 : vector<32x64xf32>
    %25 = vector.broadcast %5 : vector<1x64xf32> to vector<32x64xf32>
    %26 = arith.mulf %24, %25 : vector<32x64xf32>
    %27 = vector.broadcast %6 : vector<1x64xf32> to vector<32x64xf32>
    %28 = arith.addf %26, %27 : vector<32x64xf32>
    %c0_11 = arith.constant 0 : index
    %c0_12 = arith.constant 0 : index
    %29 = vector.load %arg5[%c0_11, %c0_12] : memref<64x128xbf16, #tpu.memory_space<vmem>>, vector<64x128xbf16>
    %30 = arith.truncf %28 : vector<32x64xf32> to vector<32x64xbf16>
    %cst_13 = arith.constant dense<0.000000e+00> : vector<32x128xf32>
    %31 = tpu.matmul %30, %29, %cst_13 {dimension_numbers = #tpu.dot_dimension_numbers<[1], [0], [0], [1], [0, 0, 1, 1], [], []>} : vector<32x64xbf16>, vector<64x128xbf16>, vector<32x128xf32> -> vector<32x128xf32>
    %c0_14 = arith.constant 0 : index
    %c0_15 = arith.constant 0 : index
    %32 = vector.load %arg6[%c0_14, %c0_15] : memref<1x128xf32, #tpu.memory_space<vmem>>, vector<1x128xf32>
    %33 = vector.broadcast %32 : vector<1x128xf32> to vector<32x128xf32>
    %34 = arith.addf %31, %33 : vector<32x128xf32>
    %35 = arith.mulf %34, %34 : vector<32x128xf32>
    %36 = arith.mulf %34, %35 : vector<32x128xf32>
    %cst_16 = arith.constant 4.471500e-02 : f32
    %37 = vector.broadcast %cst_16 : f32 to vector<32x128xf32>
    %38 = arith.mulf %37, %36 : vector<32x128xf32>
    %39 = arith.addf %34, %38 : vector<32x128xf32>
    %cst_17 = arith.constant 0.797884583 : f32
    %40 = vector.broadcast %cst_17 : f32 to vector<32x128xf32>
    %41 = arith.mulf %40, %39 : vector<32x128xf32>
    %42 = math.tanh %41 : vector<32x128xf32>
    %cst_18 = arith.constant 1.000000e+00 : f32
    %43 = vector.broadcast %cst_18 : f32 to vector<32x128xf32>
    %44 = arith.addf %43, %42 : vector<32x128xf32>
    %cst_19 = arith.constant 5.000000e-01 : f32
    %45 = vector.broadcast %cst_19 : f32 to vector<32x128xf32>
    %46 = arith.mulf %45, %44 : vector<32x128xf32>
    %47 = arith.mulf %34, %46 : vector<32x128xf32>
    %c0_20 = arith.constant 0 : index
    %c0_21 = arith.constant 0 : index
    %48 = vector.load %arg7[%c0_20, %c0_21] : memref<128x64xbf16, #tpu.memory_space<vmem>>, vector<128x64xbf16>
    %49 = arith.truncf %47 : vector<32x128xf32> to vector<32x128xbf16>
    %cst_22 = arith.constant dense<0.000000e+00> : vector<32x64xf32>
    %50 = tpu.matmul %49, %48, %cst_22 {dimension_numbers = #tpu.dot_dimension_numbers<[1], [0], [0], [1], [0, 0, 1, 1], [], []>} : vector<32x128xbf16>, vector<128x64xbf16>, vector<32x64xf32> -> vector<32x64xf32>
    %c0_23 = arith.constant 0 : index
    %c0_24 = arith.constant 0 : index
    %51 = vector.load %arg8[%c0_23, %c0_24] : memref<1x64xf32, #tpu.memory_space<vmem>>, vector<1x64xf32>
    %52 = vector.broadcast %51 : vector<1x64xf32> to vector<32x64xf32>
    %53 = arith.addf %50, %52 : vector<32x64xf32>
    %54 = arith.addf %4, %53 : vector<32x64xf32>
    %c0_25 = arith.constant 0 : index
    %c0_26 = arith.constant 0 : index
    %55 = vector.load %arg9[%c0_25, %c0_26] : memref<1x64xf32, #tpu.memory_space<vmem>>, vector<1x64xf32>
    %c0_27 = arith.constant 0 : index
    %c0_28 = arith.constant 0 : index
    %56 = vector.load %arg10[%c0_27, %c0_28] : memref<1x64xf32, #tpu.memory_space<vmem>>, vector<1x64xf32>
    %cst_29 = arith.constant dense<0.000000e+00> : vector<32xf32>
    %57 = vector.multi_reduction <add>, %54, %cst_29 [1] : vector<32x64xf32> to vector<32xf32>
    %58 = vector.shape_cast %57 : vector<32xf32> to vector<32x1xf32>
    %cst_30 = arith.constant 6.400000e+01 : f32
    %59 = vector.broadcast %cst_30 : f32 to vector<32x1xf32>
    %60 = arith.divf %58, %59 : vector<32x1xf32>
    %61 = vector.broadcast %60 : vector<32x1xf32> to vector<32x64xf32>
    %62 = arith.subf %54, %61 : vector<32x64xf32>
    %63 = arith.mulf %62, %62 : vector<32x64xf32>
    %cst_31 = arith.constant dense<0.000000e+00> : vector<32xf32>
    %64 = vector.multi_reduction <add>, %63, %cst_31 [1] : vector<32x64xf32> to vector<32xf32>
    %65 = vector.shape_cast %64 : vector<32xf32> to vector<32x1xf32>
    %cst_32 = arith.constant 6.400000e+01 : f32
    %66 = vector.broadcast %cst_32 : f32 to vector<32x1xf32>
    %67 = arith.divf %65, %66 : vector<32x1xf32>
    %68 = vector.broadcast %60 : vector<32x1xf32> to vector<32x64xf32>
    %69 = arith.subf %54, %68 : vector<32x64xf32>
    %cst_33 = arith.constant 9.99999974E-6 : f32
    %70 = vector.broadcast %cst_33 : f32 to vector<32x1xf32>
    %71 = arith.addf %67, %70 : vector<32x1xf32>
    %72 = math.rsqrt %71 : vector<32x1xf32>
    %73 = vector.broadcast %72 : vector<32x1xf32> to vector<32x64xf32>
    %74 = arith.mulf %69, %73 : vector<32x64xf32>
    %75 = vector.broadcast %55 : vector<1x64xf32> to vector<32x64xf32>
    %76 = arith.mulf %74, %75 : vector<32x64xf32>
    %77 = vector.broadcast %56 : vector<1x64xf32> to vector<32x64xf32>
    %78 = arith.addf %76, %77 : vector<32x64xf32>
    %c0_34 = arith.constant 0 : index
    %c0_35 = arith.constant 0 : index
    %79 = vector.load %arg11[%c0_34, %c0_35] : memref<64x128xbf16, #tpu.memory_space<vmem>>, vector<64x128xbf16>
    %80 = arith.truncf %78 : vector<32x64xf32> to vector<32x64xbf16>
    %cst_36 = arith.constant dense<0.000000e+00> : vector<32x128xf32>
    %81 = tpu.matmul %80, %79, %cst_36 {dimension_numbers = #tpu.dot_dimension_numbers<[1], [0], [0], [1], [0, 0, 1, 1], [], []>} : vector<32x64xbf16>, vector<64x128xbf16>, vector<32x128xf32> -> vector<32x128xf32>
    %c0_37 = arith.constant 0 : index
    %c0_38 = arith.constant 0 : index
    %82 = vector.load %arg12[%c0_37, %c0_38] : memref<1x128xf32, #tpu.memory_space<vmem>>, vector<1x128xf32>
    %83 = vector.broadcast %82 : vector<1x128xf32> to vector<32x128xf32>
    %84 = arith.addf %81, %83 : vector<32x128xf32>
    %85 = arith.mulf %84, %84 : vector<32x128xf32>
    %86 = arith.mulf %84, %85 : vector<32x128xf32>
    %cst_39 = arith.constant 4.471500e-02 : f32
    %87 = vector.broadcast %cst_39 : f32 to vector<32x128xf32>
    %88 = arith.mulf %87, %86 : vector<32x128xf32>
    %89 = arith.addf %84, %88 : vector<32x128xf32>
    %cst_40 = arith.constant 0.797884583 : f32
    %90 = vector.broadcast %cst_40 : f32 to vector<32x128xf32>
    %91 = arith.mulf %90, %89 : vector<32x128xf32>
    %92 = math.tanh %91 : vector<32x128xf32>
    %cst_41 = arith.constant 1.000000e+00 : f32
    %93 = vector.broadcast %cst_41 : f32 to vector<32x128xf32>
    %94 = arith.addf %93, %92 : vector<32x128xf32>
    %cst_42 = arith.constant 5.000000e-01 : f32
    %95 = vector.broadcast %cst_42 : f32 to vector<32x128xf32>
    %96 = arith.mulf %95, %94 : vector<32x128xf32>
    %97 = arith.mulf %84, %96 : vector<32x128xf32>
    %c0_43 = arith.constant 0 : index
    %c0_44 = arith.constant 0 : index
    %98 = vector.load %arg13[%c0_43, %c0_44] : memref<128x64xbf16, #tpu.memory_space<vmem>>, vector<128x64xbf16>
    %99 = arith.truncf %97 : vector<32x128xf32> to vector<32x128xbf16>
    %cst_45 = arith.constant dense<0.000000e+00> : vector<32x64xf32>
    %100 = tpu.matmul %99, %98, %cst_45 {dimension_numbers = #tpu.dot_dimension_numbers<[1], [0], [0], [1], [0, 0, 1, 1], [], []>} : vector<32x128xbf16>, vector<128x64xbf16>, vector<32x64xf32> -> vector<32x64xf32>
    %c0_46 = arith.constant 0 : index
    %c0_47 = arith.constant 0 : index
    %101 = vector.load %arg14[%c0_46, %c0_47] : memref<1x64xf32, #tpu.memory_space<vmem>>, vector<1x64xf32>
    %102 = vector.broadcast %101 : vector<1x64xf32> to vector<32x64xf32>
    %103 = arith.addf %100, %102 : vector<32x64xf32>
    %104 = arith.addf %54, %103 : vector<32x64xf32>
    %105 = arith.truncf %104 : vector<32x64xf32> to vector<32x64xbf16>
    %c0_48 = arith.constant 0 : index
    %c0_49 = arith.constant 0 : index
    %106 = vector.load %arg15[%c0_48, %c0_49] : memref<32x64xbf16, #tpu.memory_space<vmem>>, vector<32x64xbf16>
    tpu.vector_store %arg15[%c0_48, %c0_49], %105 {strides = array<i32>} : memref<32x64xbf16, #tpu.memory_space<vmem>>, vector<32x64xbf16>,
    return
  }
  func.func @transform_0(%arg0: i32) -> (i32, i32) {
    %c0_i32 = arith.constant 0 : i32
    %c0_i32_0 = arith.constant 0 : i32
    return %arg0, %c0_i32 : i32, i32
  }
  func.func @transform_1(%arg0: i32) -> (i32, i32) {
    %c0_i32 = arith.constant 0 : i32
    %c0_i32_0 = arith.constant 0 : i32
    return %arg0, %c0_i32 : i32, i32
  }
  func.func @transform_2(%arg0: i32) -> (i32, i32) {
    %c0_i32 = arith.constant 0 : i32
    %c0_i32_0 = arith.constant 0 : i32
    %c0_i32_1 = arith.constant 0 : i32
    return %c0_i32, %c0_i32_0 : i32, i32
  }
  func.func @transform_3(%arg0: i32) -> (i32, i32) {
    %c0_i32 = arith.constant 0 : i32
    %c0_i32_0 = arith.constant 0 : i32
    %c0_i32_1 = arith.constant 0 : i32
    return %c0_i32, %c0_i32_0 : i32, i32
  }
  func.func @transform_4(%arg0: i32) -> (i32, i32) {
    %c0_i32 = arith.constant 0 : i32
    %c0_i32_0 = arith.constant 0 : i32
    %c0_i32_1 = arith.constant 0 : i32
    return %c0_i32, %c0_i32_0 : i32, i32
  }
  func.func @transform_5(%arg0: i32) -> (i32, i32) {
    %c0_i32 = arith.constant 0 : i32
    %c0_i32_0 = arith.constant 0 : i32
    %c0_i32_1 = arith.constant 0 : i32
    return %c0_i32, %c0_i32_0 : i32, i32
  }
  func.func @transform_6(%arg0: i32) -> (i32, i32) {
    %c0_i32 = arith.constant 0 : i32
    %c0_i32_0 = arith.constant 0 : i32
    %c0_i32_1 = arith.constant 0 : i32
    return %c0_i32, %c0_i32_0 : i32, i32
  }
  func.func @transform_7(%arg0: i32) -> (i32, i32) {
    %c0_i32 = arith.constant 0 : i32
    %c0_i32_0 = arith.constant 0 : i32
    %c0_i32_1 = arith.constant 0 : i32
    return %c0_i32, %c0_i32_0 : i32, i32
  }
  func.func @transform_8(%arg0: i32) -> (i32, i32) {
    %c0_i32 = arith.constant 0 : i32
    %c0_i32_0 = arith.constant 0 : i32
    %c0_i32_1 = arith.constant 0 : i32
    return %c0_i32, %c0_i32_0 : i32, i32
  }
  func.func @transform_9(%arg0: i32) -> (i32, i32) {
    %c0_i32 = arith.constant 0 : i32
    %c0_i32_0 = arith.constant 0 : i32
    %c0_i32_1 = arith.constant 0 : i32
    return %c0_i32, %c0_i32_0 : i32, i32
  }
  func.func @transform_10(%arg0: i32) -> (i32, i32) {
    %c0_i32 = arith.constant 0 : i32
    %c0_i32_0 = arith.constant 0 : i32
    %c0_i32_1 = arith.constant 0 : i32
    return %c0_i32, %c0_i32_0 : i32, i32
  }
  func.func @transform_11(%arg0: i32) -> (i32, i32) {
    %c0_i32 = arith.constant 0 : i32
    %c0_i32_0 = arith.constant 0 : i32
    %c0_i32_1 = arith.constant 0 : i32
    return %c0_i32, %c0_i32_0 : i32, i32
  }
  func.func @transform_12(%arg0: i32) -> (i32, i32) {
    %c0_i32 = arith.constant 0 : i32
    %c0_i32_0 = arith.constant 0 : i32
    %c0_i32_1 = arith.constant 0 : i32
    return %c0_i32, %c0_i32_0 : i32, i32
  }
  func.func @transform_13(%arg0: i32) -> (i32, i32) {
    %c0_i32 = arith.constant 0 : i32
    %c0_i32_0 = arith.constant 0 : i32
    %c0_i32_1 = arith.constant 0 : i32
    return %c0_i32, %c0_i32_0 : i32, i32
  }
  func.func @transform_14(%arg0: i32) -> (i32, i32) {
    %c0_i32 = arith.constant 0 : i32
    %c0_i32_0 = arith.constant 0 : i32
    return %arg0, %c0_i32 : i32, i32
  }
}

</mosaic_0001>

<bundles_post_ra>
// kernel: forward.13
= control target key start
LH: loop header
LB: loop body
LE: loop exit
PB: predicated region body
PF: predicated region fallthrough
CT: control target
= control target key end

     0   :  { %v327_v0 = vmov 0   ;;  %vm112_vm0 = vcmask 130048   ;;  %vm170_vm1 = vcmask 523264   ;;  %vm260_vm2 = vcmask 519168   ;;  %s442_s1 = inlined_call_operand.vmem [shape: bf16[144,64], index: 1, kind: input, shape index: {}]   ;;  %s443_s0 = inlined_call_operand.vmem [shape: f32[32,144], index: 0, kind: input, shape index: {}]   ;;  %s444_s2 = inlined_call_operand.vmem [shape: f32[1,64], index: 2, kind: input, shape index: {}]   ;;  %s445_s3 = inlined_call_operand.vmem [shape: f32[1,64], index: 3, kind: input, shape index: {}]   ;;  %s446_s4 = inlined_call_operand.vmem [shape: f32[1,64], index: 4, kind: input, shape index: {}]   ;;  %s447_s5 = inlined_call_operand.vmem [shape: bf16[32,64], index: 5, kind: output, shape index: {}]  }
   0x1   :  { %119 = vmatprep.subr.bf16.mxu0 %v327_v0  ;;  %291 = vmatprep.subr.bf16.mxu1 %v327_v0  ;;  %v310_v1 = vld [vmem:[%s442_s1 + $0x38] sm:$0xff]   ;;  %v311_v2 = vld [vmem:[%s442_s1 + $0x30] sm:$0xff]   ;;  %v312_v3 = vld [vmem:[%s442_s1 + $0x28] sm:$0xff]  }
   0x2   :  { %120 = vmatpush1.bf16.msra.mxu0 %v310_v1  ;;  %300 = vmatpush1.bf16.msra.mxu1 %v310_v1  ;;  %v22_v4 = vld [vmem:[%s443_s0 + $0x8] sm:$0xff]  ;;  %v24_v5 = vld [vmem:[%s443_s0 + $0x18] sm:$0xff]  ;;  %v313_v7 = vld [vmem:[%s442_s1 + $0x20] sm:$0xff]  }
   0x3   :  { %121 = vmatprep.subr.bf16.mxu0 %v327_v0  ;;  %292 = vmatprep.subr.bf16.mxu1 %v327_v0  ;;  %v26_v6 = vld [vmem:[%s443_s0 + $0x28] sm:$0xff]  ;;  %v48_v8 = vpack.c.bf16 %v24_v5, %v22_v4  ;;  %v28_v9 = vld [vmem:[%s443_s0 + $0x38] sm:$0xff]  ;;  %v315_v12 = vld [vmem:[%s442_s1 + $0x10] sm:$0xff]  }
   0x4   :  { %v50_v10 = vpack.c.bf16 %v28_v9, %v26_v6  ;;  %v314_v11 = vld [vmem:[%s442_s1 + $0x18] sm:$0xff]   ;;  %v316_v13 = vld [vmem:[%s442_s1 + $0x8] sm:$0xff]   ;;  %v317_v14 = vld [vmem:[%s442_s1] sm:$0xff]  }
   0x5   :  { %279 = vmatprep.mubr.msk.bf16.mxu0 %vm112_vm0, %v48_v8  ;;  %v318_v15 = vld [vmem:[%s442_s1 + $0x40] sm:$0xff]   ;;  %v23_v17 = vld [vmem:[%s443_s0 + $0x10] sm:$0xff] }
   0x6   :  { %122 = vmatpush1.bf16.msra.mxu0 %v311_v2  ;;  %301 = vmatpush1.bf16.msra.mxu1 %v311_v2  ;;  %v21_v16 = vld [vmem:[%s443_s0] sm:$0xff]  ;;  %v27_v19 = vld [vmem:[%s443_s0 + $0x30] sm:$0xff] }
   0x7   :  { %123 = vmatprep.subr.bf16.mxu0 %v327_v0  ;;  %293 = vmatprep.subr.bf16.mxu1 %v327_v0  ;;  %v25_v18 = vld [vmem:[%s443_s0 + $0x20] sm:$0xff]  ;;  %v47_v20 = vpack.c.bf16 %v23_v17, %v21_v16 }
   0x8   :  { %280 = vmatprep.mubr.msk.bf16.mxu1 %vm112_vm0, %v50_v10  ;;  %v49_v21 = vpack.c.bf16 %v27_v19, %v25_v18  ;;  %v269_v22 = vld [vmem:[%s444_s2] ss:$0 sm:$0xff] }
   0x9   :  { %v281_v8 = vld [vmem:[%s445_s3] ss:$0 sm:$0xff] }
   0xa   :  { %124 = vmatpush1.bf16.msra.mxu0 %v312_v3  ;;  %302 = vmatpush1.bf16.msra.mxu1 %v312_v3  ;;  %v282_v10 = vld [vmem:[%s446_s4] ss:$0 sm:$0xff] }
   0xb   :  { %125 = vmatprep.subr.bf16.mxu0 %v327_v0  ;;  %294 = vmatprep.subr.bf16.mxu1 %v327_v0 }
   0xe   :  { %126 = vmatpush1.bf16.msra.mxu0 %v313_v7  ;;  %303 = vmatpush1.bf16.msra.mxu1 %v313_v7 }
   0xf   :  { %127 = vmatprep.subr.bf16.mxu0 %v327_v0  ;;  %295 = vmatprep.subr.bf16.mxu1 %v327_v0 }
  0x12   :  { %128 = vmatpush1.bf16.msra.mxu0 %v314_v11  ;;  %304 = vmatpush1.bf16.msra.mxu1 %v314_v11 }
  0x13   :  { %129 = vmatprep.subr.bf16.mxu0 %v327_v0  ;;  %296 = vmatprep.subr.bf16.mxu1 %v327_v0 }
  0x16   :  { %130 = vmatpush1.bf16.msra.mxu0 %v315_v12  ;;  %305 = vmatpush1.bf16.msra.mxu1 %v315_v12 }
  0x17   :  { %131 = vmatprep.subr.bf16.mxu0 %v327_v0  ;;  %297 = vmatprep.subr.bf16.mxu1 %v327_v0 }
  0x1a   :  { %132 = vmatpush1.bf16.msra.mxu0 %v316_v13  ;;  %306 = vmatpush1.bf16.msra.mxu1 %v316_v13 }
  0x1b   :  { %133 = vmatprep.subr.bf16.mxu0 %v327_v0  ;;  %298 = vmatprep.subr.bf16.mxu1 %v327_v0 }
  0x1e   :  { %134 = vmatpush1.bf16.msra.mxu0 %v317_v14  ;;  %307 = vmatpush1.bf16.msra.mxu1 %v317_v14 }
  0x1f   :  { %149 = vmatprep.subr.bf16.mxu0 %v327_v0  ;;  %299 = vmatprep.subr.bf16.mxu1 %v327_v0 }
  0x22   :  { %150 = vmatpush2.bf16.msra.mxu0 %v318_v15  ;;  %308 = vmatpush2.bf16.msra.mxu1 %v318_v15 }
  0x25   :  { %152 = vmatmul.mubr.bf16.vlgmr.msra.gmra.mxu0 %v47_v20  ;;  %160 = vmatmul.mubr.bf16.vlgmr.msra.gmra.mxu1 %v49_v21 }
  0xe5   :  { %v153_v23 = vpop.f32.mrf.mxu0  ;;  %v161_v24 = vpop.f32.mrf.mxu1 }
  0xe6   :  { %v154_v25 = vadd.f32 %v269_v22, %v153_v23  ;;  %v162_v26 = vadd.f32 %v269_v22, %v161_v24 }
  0xe7   :  { %v155_v27 = vpop.f32.mrf.mxu0  ;;  %v163_v28 = vpop.f32.mrf.mxu1 }
  0xe8   :  { %v177_v29 = vsel %vm170_vm1, %v162_v26, 0.0  ;;  %v171_v30 = vsel %vm170_vm1, %v154_v25, 0.0 }
  0xe9   :  { %v164_v31 = vpop.f32.mrf.mxu1  ;;  %178 = vadd.xlane.f32.xlu1 %v177_v29  ;;  %v156_v32 = vpop.f32.mrf.mxu0  ;;  %172 = vadd.xlane.f32.xlu0 %v171_v30 }
  0xea   :  { %v165_v33 = vadd.f32 %v269_v22, %v164_v31  ;;  %v157_v34 = vadd.f32 %v269_v22, %v156_v32 }
  0xeb   :  { %v158_v35 = vpop.f32.mrf.mxu0  ;;  %v166_v36 = vpop.f32.mrf.mxu1 }
  0xec   :  { %v180_v37 = vsel %vm170_vm1, %v165_v33, 0.0  ;;  %v174_v38 = vsel %vm170_vm1, %v157_v34, 0.0 }
  0xed   :  { %181 = vadd.xlane.f32.xlu1 %v180_v37  ;;  %175 = vadd.xlane.f32.xlu0 %v174_v38 }
 0x172   :  { %v179_v39 = vpop.xlane.xlu1 %178  ;;  %v173_v40 = vpop.xlane.xlu0 %172 }
 0x173   :  { %v186_v41 = vmul.f32 0.015625, %v179_v39  ;;  %v184_v42 = vmul.f32 0.015625, %v173_v40 }
 0x175   :  { %v190_v43 = vsub.f32 %v162_v26, %v186_v41  ;;  %v188_v44 = vsub.f32 %v154_v25, %v184_v42 }
 0x176   :  { %v182_v45 = vpop.xlane.xlu1 %181  ;;  %v176_v46 = vpop.xlane.xlu0 %175 }
 0x177   :  { %v187_v47 = vmul.f32 0.015625, %v182_v45  ;;  %v185_v48 = vmul.f32 0.015625, %v176_v46  ;;  %v192_v49 = vmul.f32 %v188_v44, %v188_v44  ;;  %v194_v53 = vmul.f32 %v190_v43, %v190_v43 }
 0x179   :  { %v191_v50 = vsub.f32 %v165_v33, %v187_v47  ;;  %v189_v51 = vsub.f32 %v157_v34, %v185_v48  ;;  %v196_v52 = vsel %vm170_vm1, %v192_v49, 0.0  ;;  %v202_v55 = vsel %vm170_vm1, %v194_v53, 0.0 }
 0x17a   :  { %197 = vadd.xlane.f32.xlu0 %v196_v52 }
 0x17b   :  { %v193_v54 = vmul.f32 %v189_v51, %v189_v51  ;;  %v195_v57 = vmul.f32 %v191_v50, %v191_v50 }
 0x17d   :  { %v199_v56 = vsel %vm170_vm1, %v193_v54, 0.0  ;;  %v205_v58 = vsel %vm170_vm1, %v195_v57, 0.0 }
 0x17e   :  { %203 = vadd.xlane.f32.xlu0 %v202_v55  ;;  %200 = vadd.xlane.f32.xlu1 %v199_v56 }
 0x182   :  { %206 = vadd.xlane.f32.xlu1 %v205_v58 }
 0x203   :  { %v198_v59 = vpop.xlane.xlu0 %197 }
 0x204   :  { %v208_v60 = vmul.f32 0.015625, %v198_v59 }
 0x206   :  { %v212_v61 = vadd.f32 1e-05, %v208_v60 }
 0x207   :  { %v201_v62 = vpop.xlane.xlu1 %200  ;;  %v204_v63 = vpop.xlane.xlu0 %203 }
 0x208   :  { %319 = vrsqrt.f32 %v212_v61  ;;  %v209_v0 = vmul.f32 0.015625, %v201_v62  ;;  %v210_v1 = vmul.f32 0.015625, %v204_v63 }
 0x20a   :  { %v213_v2 = vadd.f32 1e-05, %v209_v0  ;;  %v214_v3 = vadd.f32 1e-05, %v210_v1 }
 0x20b   :  { %v207_v4 = vpop.xlane.xlu1 %206 }
 0x20c   :  { %321 = vrsqrt.f32 %v213_v2  ;;  %v211_v5 = vmul.f32 0.015625, %v207_v4 }
 0x20d   :  { %323 = vrsqrt.f32 %v214_v3 }
 0x20e   :  { %v215_v6 = vadd.f32 1e-05, %v211_v5 }
 0x210   :  { %325 = vrsqrt.f32 %v215_v6 }
 0x215   :  { %v320_v7 = vpop.eup %319 }
 0x216   :  { %v220_v9 = vmul.f32 %v320_v7, %v188_v44 }
 0x218   :  { %v230_v11 = vmul.f32 %v281_v8, %v220_v9 }
 0x219   :  { %v322_v12 = vpop.eup %321 }
 0x21a   :  { %v324_v13 = vpop.eup %323  ;;  %v240_v14 = vadd.f32 %v282_v10, %v230_v11  ;;  %v221_v15 = vmul.f32 %v322_v12, %v189_v51 }
 0x21b   :  { %v222_v16 = vmul.f32 %v324_v13, %v190_v43 }
 0x21c   :  { %v287_v17 = vpack.c.bf16 %v240_v14, %v240_v14  ;;  %v231_v18 = vmul.f32 %v281_v8, %v221_v15 }
 0x21d   :  { %v326_v19 = vpop.eup %325  ;;  %v232_v20 = vmul.f32 %v281_v8, %v222_v16 }
 0x21e   :  { %261 = vst.msk [vmem:[%s447_s5] sm:$0xf] %vm260_vm2, %v287_v17  ;;  %v241_v21 = vadd.f32 %v282_v10, %v231_v18  ;;  %v223_v22 = vmul.f32 %v326_v19, %v191_v50 }
 0x21f   :  { %v242_v23 = vadd.f32 %v282_v10, %v232_v20 }
 0x220   :  { %v288_v24 = vpack.c.bf16 %v241_v21, %v241_v21  ;;  %v233_v25 = vmul.f32 %v281_v8, %v223_v22 }
 0x221   :  { %v289_v26 = vpack.c.bf16 %v242_v23, %v242_v23 }
 0x222   :  { %262 = vst.msk [vmem:[%s447_s5 + $0x4] sm:$0xf] %vm260_vm2, %v288_v24  ;;  %v243_v27 = vadd.f32 %v282_v10, %v233_v25 }
 0x223   :  { %263 = vst.msk [vmem:[%s447_s5 + $0x8] sm:$0xf] %vm260_vm2, %v289_v26 }
 0x224   :  { %v290_v28 = vpack.c.bf16 %v243_v27, %v243_v27 }
 0x226   :  { %264 = vst.msk [vmem:[%s447_s5 + $0xc] sm:$0xf] %vm260_vm2, %v290_v28 }

// kernel: forward.15
= control target key start
LH: loop header
LB: loop body
LE: loop exit
PB: predicated region body
PF: predicated region fallthrough
CT: control target
= control target key end

     0   :  { %v63_v44 = vlaneseq  ;;  %s458_s0 = inlined_call_operand.vmem [shape: bf16[16,256], index: 0, kind: input, shape index: {}]   ;;  %s459_s3 = inlined_call_operand.vmem [shape: bf16[256,128], index: 3, kind: input, shape index: {}]   ;;  %s460_s1 = inlined_call_operand.vmem [shape: f32[1,256], index: 1, kind: input, shape index: {}]   ;;  %s461_s2 = inlined_call_operand.vmem [shape: f32[1,256], index: 2, kind: input, shape index: {}]   ;;  %s462_s4 = inlined_call_operand.vmem [shape: f32[1,128], index: 4, kind: input, shape index: {}]   ;;  %s463_s5 = inlined_call_operand.vmem [shape: bf16[16,128], index: 5, kind: output, shape index: {}]  }
   0x1   :  { %v21_v0 = vld [vmem:[%s458_s0] sm:$0xff]  ;;  %v22_v1 = vld [vmem:[%s458_s0 + $0x8] sm:$0xff]  ;;  %v332_v8 = vld [vmem:[%s459_s3 + $0x78] sm:$0xff]  }
   0x2   :  { %v23_v2 = vunpack.c.l.bf16 %v21_v0  ;;  %v24_v3 = vunpack.c.h.bf16 %v21_v0  ;;  %v25_v4 = vunpack.c.l.bf16 %v22_v1  ;;  %v26_v5 = vunpack.c.h.bf16 %v22_v1  ;;  %310 = vmatprep.subr.bf16.mxu0 %v332_v8  ;;  %v333_v23 = vld [vmem:[%s459_s3 + $0x38] sm:$0xff]   ;;  %v334_v24 = vld [vmem:[%s459_s3 + $0x70] sm:$0xff]   ;;  %v336_v26 = vld [vmem:[%s459_s3 + $0x68] sm:$0xff]  }
   0x3   :  { %311 = vmatpush3.bf16.msra.mxu0 %v333_v23  ;;  %v335_v25 = vld [vmem:[%s459_s3 + $0x30] sm:$0xff]   ;;  %v337_v27 = vld [vmem:[%s459_s3 + $0x28] sm:$0xff]   ;;  %v338_v28 = vld [vmem:[%s459_s3 + $0x60] sm:$0xff]   ;;  %v64_v45 = vshrl.u32 %v63_v44, 7 }
   0x4   :  { %v29_v6 = vadd.f32 %v24_v3, %v23_v2  ;;  %v32_v7 = vadd.f32 %v26_v5, %v25_v4  ;;  %312 = vmatprep.subr.bf16.mxu0 %v334_v24  ;;  %v339_v29 = vld [vmem:[%s459_s3 + $0x20] sm:$0xff]   ;;  %v340_v30 = vld [vmem:[%s459_s3 + $0x58] sm:$0xff]   ;;  %v342_v32 = vld [vmem:[%s459_s3 + $0x50] sm:$0xff]  }
   0x5   :  { %v341_v31 = vld [vmem:[%s459_s3 + $0x18] sm:$0xff]   ;;  %v343_v33 = vld [vmem:[%s459_s3 + $0x10] sm:$0xff]   ;;  %v344_v34 = vld [vmem:[%s459_s3 + $0x48] sm:$0xff]   ;;  %v65_v46 = vsub.s32 0, %v64_v45  ;;  %v69_v47 = vsub.s32 1, %v64_v45 }
   0x6   :  { %30 = vadd.xlane.f32.xlu0 %v29_v6  ;;  %v345_v35 = vld [vmem:[%s459_s3 + $0x8] sm:$0xff]   ;;  %v346_v36 = vld [vmem:[%s459_s3 + $0x40] sm:$0xff]  }
   0x7   :  { %313 = vmatpush3.bf16.msra.mxu0 %v335_v25  ;;  %v347_v37 = vld [vmem:[%s459_s3] sm:$0xff]  }
   0x8   :  { %314 = vmatprep.subr.bf16.mxu0 %v336_v26  ;;  %v27_v48 = vld [vmem:[%s460_s1] sm:$0x3] }
   0x9   :  { %v28_v50 = vld [vmem:[%s461_s2] sm:$0x3]  ;;  %v66_v52 = vrot.slane %v27_v48, %v65_v46  ;;  %v70_v53 = vrot.slane %v27_v48, %v69_v47 }
   0xa   :  { %33 = vadd.xlane.f32.xlu0 %v32_v7  ;;  %v81_v56 = vrot.slane %v28_v50, %v65_v46  ;;  %v85_v57 = vrot.slane %v28_v50, %v69_v47 }
   0xb   :  { %315 = vmatpush3.bf16.msra.mxu0 %v337_v27 }
   0xc   :  { %316 = vmatprep.subr.bf16.mxu0 %v338_v28 }
   0xf   :  { %317 = vmatpush3.bf16.msra.mxu0 %v339_v29 }
  0x10   :  { %318 = vmatprep.subr.bf16.mxu0 %v340_v30 }
  0x13   :  { %319 = vmatpush3.bf16.msra.mxu0 %v341_v31 }
  0x14   :  { %320 = vmatprep.subr.bf16.mxu0 %v342_v32 }
  0x17   :  { %321 = vmatpush3.bf16.msra.mxu0 %v343_v33 }
  0x18   :  { %322 = vmatprep.subr.bf16.mxu0 %v344_v34 }
  0x1b   :  { %323 = vmatpush3.bf16.msra.mxu0 %v345_v35 }
  0x1c   :  { %324 = vmatprep.subr.bf16.mxu0 %v346_v36 }
  0x1f   :  { %325 = vmatpush3.bf16.msra.mxu0 %v347_v37 }
  0x8f   :  { %v31_v9 = vpop.xlane.xlu0 %30 }
  0x90   :  { %v36_v10 = vmul.f32 0.00390625, %v31_v9 }
  0x92   :  { %v391_v11 = vsub.f32 %v23_v2, %v36_v10  ;;  %v39_v12 = vsub.f32 %v24_v3, %v36_v10  ;;  %v284_v10 = vld [vmem:[%s462_s4] ss:$0 sm:$0xff] }
  0x93   :  { %v34_v13 = vpop.xlane.xlu0 %33 }
  0x94   :  { %v37_v14 = vmul.f32 0.00390625, %v34_v13  ;;  %v42_v15 = vmul.f32 %v391_v11, %v391_v11  ;;  %v43_v16 = vmul.f32 %v39_v12, %v39_v12 }
  0x96   :  { %v395_v17 = vsub.f32 %v25_v4, %v37_v14  ;;  %v41_v18 = vsub.f32 %v26_v5, %v37_v14  ;;  %v46_v19 = vadd.f32 %v43_v16, %v42_v15 }
  0x98   :  { %47 = vadd.xlane.f32.xlu1 %v46_v19  ;;  %v44_v20 = vmul.f32 %v395_v17, %v395_v17  ;;  %v45_v21 = vmul.f32 %v41_v18, %v41_v18 }
  0x9a   :  { %v49_v22 = vadd.f32 %v45_v21, %v44_v20 }
  0x9c   :  { %50 = vadd.xlane.f32.xlu1 %v49_v22 }
 0x121   :  { %v48_v38 = vpop.xlane.xlu1 %47 }
 0x122   :  { %v52_v39 = vmul.f32 0.00390625, %v48_v38 }
 0x124   :  { %v54_v40 = vadd.f32 1e-05, %v52_v39 }
 0x125   :  { %v51_v41 = vpop.xlane.xlu1 %50 }
 0x126   :  { %348 = vrsqrt.f32 %v54_v40  ;;  %v53_v42 = vmul.f32 0.00390625, %v51_v41 }
 0x128   :  { %v55_v43 = vadd.f32 1e-05, %v53_v42 }
 0x12a   :  { %350 = vrsqrt.f32 %v55_v43 }
 0x133   :  { %v349_v49 = vpop.eup %348 }
 0x134   :  { %v59_v51 = vmul.f32 %v349_v49, %v39_v12  ;;  %v58_v54 = vmul.f32 %v349_v49, %v391_v11 }
 0x136   :  { %v74_v59 = vmul.f32 %v70_v53, %v59_v51  ;;  %v73_v61 = vmul.f32 %v66_v52, %v58_v54 }
 0x137   :  { %v351_v55 = vpop.eup %350 }
 0x138   :  { %v61_v58 = vmul.f32 %v351_v55, %v41_v18  ;;  %v60_v60 = vmul.f32 %v351_v55, %v395_v17  ;;  %v89_v0 = vadd.f32 %v85_v57, %v74_v59  ;;  %v88_v2 = vadd.f32 %v81_v56, %v73_v61 }
 0x13a   :  { %v76_v62 = vmul.f32 %v70_v53, %v61_v58  ;;  %v75_v63 = vmul.f32 %v66_v52, %v60_v60 }
 0x13c   :  { %v91_v1 = vadd.f32 %v85_v57, %v76_v62  ;;  %v90_v3 = vadd.f32 %v81_v56, %v75_v63 }
 0x13e   :  { %v125_v4 = vpack.c.bf16 %v91_v1, %v89_v0  ;;  %v124_v5 = vpack.c.bf16 %v90_v3, %v88_v2 }
 0x140   :  { %261 = vmatprep.mubr.bf16.mxu0 %v125_v4 }
 0x141   :  { %262 = vmatmul.mubr.bf16.vlgmr.msra.gmra.mxu0 %v124_v5 }
 0x201   :  { %v326_v6 = vpop.f32.mrf.mxu0 }
 0x203   :  { %v327_v7 = vpop.f32.mrf.mxu0 }
 0x204   :  { %v328_v9 = vadd.f32 %v327_v7, %v326_v6 }
 0x205   :  { %v329_v8 = vpop.f32.mrf.mxu0 }
 0x206   :  { %v264_v13 = vadd.f32 %v328_v9, %v284_v10 }
 0x207   :  { %v330_v11 = vpop.f32.mrf.mxu0 }
 0x208   :  { %v331_v12 = vadd.f32 %v330_v11, %v329_v8 }
 0x20a   :  { %v267_v14 = vadd.f32 %v331_v12, %v284_v10 }
 0x20c   :  { %v308_v15 = vpack.c.bf16 %v267_v14, %v264_v13 }
 0x20e   :  { %309 = vst [vmem:[%s463_s5] sm:$0xff] %v308_v15  }

// kernel: forward.14
= control target key start
LH: loop header
LB: loop body
LE: loop exit
PB: predicated region body
PF: predicated region fallthrough
CT: control target
= control target key end

     0   :  { %vm55_vm0 = vcmask 523264   ;;  %vm735_vm1 = vcmask 519168   ;;  %s1193_s0 = inlined_call_operand.vmem [shape: bf16[32,64], index: 0, kind: input, shape index: {}]   ;;  %s1194_s3 = inlined_call_operand.vmem [shape: bf16[64,128], index: 3, kind: input, shape index: {}]   ;;  %s1195_s1 = inlined_call_operand.vmem [shape: f32[1,64], index: 1, kind: input, shape index: {}]   ;;  %s1196_s2 = inlined_call_operand.vmem [shape: f32[1,64], index: 2, kind: input, shape index: {}]   ;;  %s1197_s5 = inlined_call_operand.vmem [shape: bf16[128,64], index: 5, kind: input, shape index: {}]   ;;  %s1198_s4 = inlined_call_operand.vmem [shape: f32[1,128], index: 4, kind: input, shape index: {}]   ;;  %s1199_s6 = inlined_call_operand.vmem [shape: f32[1,64], index: 6, kind: input, shape index: {}]   ;;  %s1200_s9 = inlined_call_operand.vmem [shape: bf16[64,128], index: 9, kind: input, shape index: {}]   ;;  %s1201_s7 = inlined_call_operand.vmem [shape: f32[1,64], index: 7, kind: input, shape index: {}]   ;;  %s1202_s8 = inlined_call_operand.vmem [shape: f32[1,64], index: 8, kind: input, shape index: {}]   ;;  %s1203_s11 = inlined_call_operand.vmem [shape: bf16[128,64], index: 11, kind: input, shape index: {}]   ;;  %s1204_s10 = inlined_call_operand.vmem [shape: f32[1,128], index: 10, kind: input, shape index: {}]   ;;  %s1205_s12 = inlined_call_operand.vmem [shape: f32[1,64], index: 12, kind: input, shape index: {}]   ;;  %s1206_s13 = inlined_call_operand.vmem [shape: bf16[32,64], index: 13, kind: output, shape index: {}]  }
   0x1   :  { %v789_v0 = vld [vmem:[%s1193_s0] sm:$0xff]   ;;  %v796_v1 = vld [vmem:[%s1193_s0 + $0x8] sm:$0xff]   ;;  %v893_v30 = vld [vmem:[%s1194_s3 + $0x18] sm:$0xff]  }
   0x2   :  { %v1025_v2 = vunpack.c.l.bf16 %v789_v0  ;;  %v1027_v3 = vunpack.c.l.bf16 %v796_v1  ;;  %v1029_v4 = vunpack.c.h.bf16 %v789_v0  ;;  %v1031_v5 = vunpack.c.h.bf16 %v796_v1  ;;  %v894_v31 = vld [vmem:[%s1194_s3 + $0x10] sm:$0xff]   ;;  %829 = vmatprep.subr.bf16.mxu1 %v893_v30  ;;  %v895_v32 = vld [vmem:[%s1194_s3 + $0x8] sm:$0xff]   ;;  %v896_v33 = vld [vmem:[%s1194_s3] sm:$0xff]  }
   0x3   :  { %830 = vmatpush3.bf16.msra.mxu1 %v893_v30  ;;  %v744_v48 = vld [vmem:[%s1195_s1] ss:$0 sm:$0xff] }
   0x4   :  { %v56_v6 = vsel %vm55_vm0, %v1025_v2, 0.0  ;;  %v62_v7 = vsel %vm55_vm0, %v1027_v3, 0.0  ;;  %v59_v8 = vsel %vm55_vm0, %v1029_v4, 0.0  ;;  %v65_v9 = vsel %vm55_vm0, %v1031_v5, 0.0  ;;  %831 = vmatprep.subr.bf16.mxu1 %v894_v31  ;;  %v745_v53 = vld [vmem:[%s1196_s2] ss:$0 sm:$0xff] }
   0x5   :  { %57 = vadd.xlane.f32.xlu0 %v56_v6  ;;  %63 = vadd.xlane.f32.xlu1 %v62_v7  ;;  %v897_v6 = vld [vmem:[%s1197_s5 + $0x38] sm:$0xff]   ;;  %v898_v7 = vld [vmem:[%s1197_s5 + $0x30] sm:$0xff]  }
   0x7   :  { %832 = vmatpush3.bf16.msra.mxu1 %v894_v31 }
   0x8   :  { %833 = vmatprep.subr.bf16.mxu1 %v895_v32 }
   0x9   :  { %60 = vadd.xlane.f32.xlu0 %v59_v8  ;;  %66 = vadd.xlane.f32.xlu1 %v65_v9  ;;  %v899_v8 = vld [vmem:[%s1197_s5 + $0x28] sm:$0xff]   ;;  %v900_v9 = vld [vmem:[%s1197_s5 + $0x20] sm:$0xff]  }
   0xb   :  { %834 = vmatpush3.bf16.msra.mxu1 %v895_v32 }
   0xc   :  { %835 = vmatprep.subr.bf16.mxu1 %v896_v33 }
   0xf   :  { %836 = vmatpush3.bf16.msra.mxu1 %v896_v33 }
  0x10   :  { %841 = vmatprep.subr.bf16.mxu1 %v897_v6 }
  0x8e   :  { %v58_v10 = vpop.xlane.xlu0 %57  ;;  %v64_v11 = vpop.xlane.xlu1 %63 }
  0x8f   :  { %v69_v12 = vmul.f32 0.015625, %v58_v10  ;;  %v71_v13 = vmul.f32 0.015625, %v64_v11  ;;  %v901_v10 = vld [vmem:[%s1197_s5 + $0x18] sm:$0xff]   ;;  %v902_v11 = vld [vmem:[%s1197_s5 + $0x10] sm:$0xff]  }
  0x91   :  { %v73_v14 = vsub.f32 %v1025_v2, %v69_v12  ;;  %v75_v15 = vsub.f32 %v1027_v3, %v71_v13  ;;  %v903_v12 = vld [vmem:[%s1197_s5 + $0x8] sm:$0xff]   ;;  %v904_v13 = vld [vmem:[%s1197_s5] sm:$0xff]  }
  0x92   :  { %v61_v16 = vpop.xlane.xlu0 %60  ;;  %v67_v17 = vpop.xlane.xlu1 %66 }
  0x93   :  { %v70_v18 = vmul.f32 0.015625, %v61_v16  ;;  %v72_v19 = vmul.f32 0.015625, %v67_v17  ;;  %v77_v20 = vmul.f32 %v73_v14, %v73_v14  ;;  %v79_v21 = vmul.f32 %v75_v15, %v75_v15 }
  0x95   :  { %v74_v22 = vsub.f32 %v1029_v4, %v70_v18  ;;  %v76_v23 = vsub.f32 %v1031_v5, %v72_v19  ;;  %v81_v24 = vsel %vm55_vm0, %v77_v20, 0.0  ;;  %v87_v25 = vsel %vm55_vm0, %v79_v21, 0.0 }
  0x96   :  { %82 = vadd.xlane.f32.xlu0 %v81_v24 }
  0x97   :  { %v78_v26 = vmul.f32 %v74_v22, %v74_v22  ;;  %v80_v27 = vmul.f32 %v76_v23, %v76_v23 }
  0x99   :  { %v84_v28 = vsel %vm55_vm0, %v78_v26, 0.0  ;;  %v90_v29 = vsel %vm55_vm0, %v80_v27, 0.0 }
  0x9a   :  { %88 = vadd.xlane.f32.xlu0 %v87_v25  ;;  %85 = vadd.xlane.f32.xlu1 %v84_v28 }
  0x9e   :  { %91 = vadd.xlane.f32.xlu1 %v90_v29 }
 0x11f   :  { %v83_v34 = vpop.xlane.xlu0 %82 }
 0x120   :  { %v93_v35 = vmul.f32 0.015625, %v83_v34 }
 0x122   :  { %v97_v36 = vadd.f32 1e-05, %v93_v35 }
 0x123   :  { %v86_v37 = vpop.xlane.xlu1 %85  ;;  %v89_v38 = vpop.xlane.xlu0 %88 }
 0x124   :  { %917 = vrsqrt.f32 %v97_v36  ;;  %v94_v39 = vmul.f32 0.015625, %v86_v37  ;;  %v95_v40 = vmul.f32 0.015625, %v89_v38 }
 0x126   :  { %v98_v41 = vadd.f32 1e-05, %v94_v39  ;;  %v99_v42 = vadd.f32 1e-05, %v95_v40 }
 0x127   :  { %v92_v43 = vpop.xlane.xlu1 %91 }
 0x128   :  { %919 = vrsqrt.f32 %v98_v41  ;;  %v96_v44 = vmul.f32 0.015625, %v92_v43 }
 0x129   :  { %921 = vrsqrt.f32 %v99_v42 }
 0x12a   :  { %v100_v45 = vadd.f32 1e-05, %v96_v44 }
 0x12c   :  { %923 = vrsqrt.f32 %v100_v45 }
 0x131   :  { %v918_v46 = vpop.eup %917 }
 0x132   :  { %v105_v47 = vmul.f32 %v918_v46, %v73_v14  ;;  %v746_v14 = vld [vmem:[%s1198_s4] ss:$0 sm:$0xff] }
 0x134   :  { %v115_v52 = vmul.f32 %v744_v48, %v105_v47 }
 0x135   :  { %v920_v49 = vpop.eup %919 }
 0x136   :  { %v922_v50 = vpop.eup %921  ;;  %v106_v51 = vmul.f32 %v920_v49, %v74_v22  ;;  %v125_v57 = vadd.f32 %v745_v53, %v115_v52 }
 0x137   :  { %v107_v54 = vmul.f32 %v922_v50, %v75_v15 }
 0x138   :  { %v116_v55 = vmul.f32 %v744_v48, %v106_v51 }
 0x139   :  { %v924_v56 = vpop.eup %923  ;;  %v117_v60 = vmul.f32 %v744_v48, %v107_v54 }
 0x13a   :  { %v126_v58 = vadd.f32 %v745_v53, %v116_v55  ;;  %v108_v59 = vmul.f32 %v924_v56, %v76_v23 }
 0x13b   :  { %v127_v63 = vadd.f32 %v745_v53, %v117_v60 }
 0x13c   :  { %v137_v61 = vpack.c.bf16 %v126_v58, %v125_v57  ;;  %v118_v62 = vmul.f32 %v744_v48, %v108_v59 }
 0x13e   :  { %837 = vmatprep.mubr.msk.bf16.mxu1 %vm55_vm0, %v137_v61  ;;  %v128_v0 = vadd.f32 %v745_v53, %v118_v62  ;;  %v753_v62 = vld [vmem:[%s1199_s6] ss:$0 sm:$0xff] }
 0x140   :  { %v138_v1 = vpack.c.bf16 %v128_v0, %v127_v63 }
 0x142   :  { %838 = vmatmul.mubr.msk.bf16.vlgmr.msra.gmra.mxu1 %vm55_vm0, %v138_v1 }
 0x143   :  { %842 = vmatpush3.bf16.msra.mxu1 %v897_v6 }
 0x144   :  { %843 = vmatprep.subr.bf16.mxu1 %v898_v7 }
 0x147   :  { %844 = vmatpush3.bf16.msra.mxu1 %v898_v7 }
 0x148   :  { %845 = vmatprep.subr.bf16.mxu1 %v899_v8 }
 0x14b   :  { %846 = vmatpush3.bf16.msra.mxu1 %v899_v8 }
 0x14c   :  { %847 = vmatprep.subr.bf16.mxu1 %v900_v9 }
 0x14f   :  { %848 = vmatpush3.bf16.msra.mxu1 %v900_v9 }
 0x150   :  { %849 = vmatprep.subr.bf16.mxu1 %v901_v10 }
 0x153   :  { %850 = vmatpush3.bf16.msra.mxu1 %v901_v10 }
 0x154   :  { %851 = vmatprep.subr.bf16.mxu1 %v902_v11 }
 0x157   :  { %852 = vmatpush3.bf16.msra.mxu1 %v902_v11 }
 0x158   :  { %853 = vmatprep.subr.bf16.mxu1 %v903_v12 }
 0x15b   :  { %854 = vmatpush3.bf16.msra.mxu1 %v903_v12 }
 0x15c   :  { %855 = vmatprep.subr.bf16.mxu1 %v904_v13 }
 0x15f   :  { %856 = vmatpush3.bf16.msra.mxu1 %v904_v13 }
 0x202   :  { %v839_v15 = vpop.f32.mrf.mxu1 }
 0x203   :  { %v219_v16 = vadd.f32 %v839_v15, %v746_v14 }
 0x204   :  { %v210_v17 = vpop.f32.mrf.mxu1 }
 0x205   :  { %v227_v18 = vmul.f32 %v219_v16, %v219_v16  ;;  %v211_v19 = vadd.f32 %v746_v14, %v210_v17 }
 0x206   :  { %v840_v20 = vpop.f32.mrf.mxu1 }
 0x207   :  { %v231_v21 = vmul.f32 %v227_v18, %v219_v16  ;;  %v225_v22 = vmul.f32 %v211_v19, %v211_v19  ;;  %v222_v23 = vadd.f32 %v840_v20, %v746_v14 }
 0x208   :  { %v213_v24 = vpop.f32.mrf.mxu1 }
 0x209   :  { %v235_v25 = vmul.f32 0.044715, %v231_v21  ;;  %v229_v26 = vmul.f32 %v225_v22, %v211_v19  ;;  %v228_v27 = vmul.f32 %v222_v23, %v222_v23  ;;  %v214_v28 = vadd.f32 %v746_v14, %v213_v24 }
 0x20b   :  { %v239_v29 = vadd.f32 %v235_v25, %v219_v16  ;;  %v233_v30 = vmul.f32 0.044715, %v229_v26  ;;  %v232_v31 = vmul.f32 %v228_v27, %v222_v23  ;;  %v226_v32 = vmul.f32 %v214_v28, %v214_v28 }
 0x20d   :  { %v243_v33 = vmul.f32 0.7978846, %v239_v29  ;;  %v237_v34 = vadd.f32 %v233_v30, %v211_v19  ;;  %v236_v35 = vmul.f32 0.044715, %v232_v31  ;;  %v230_v36 = vmul.f32 %v226_v32, %v214_v28 }
 0x20f   :  { %v241_v37 = vmul.f32 0.7978846, %v237_v34  ;;  %v240_v38 = vadd.f32 %v236_v35, %v222_v23  ;;  %v234_v39 = vmul.f32 0.044715, %v230_v36  ;;  %925 = vtanh.f32 %v243_v33  ;;  %v905_v34 = vld [vmem:[%s1200_s9 + $0x18] sm:$0xff]   ;;  %v906_v35 = vld [vmem:[%s1200_s9 + $0x10] sm:$0xff]  }
 0x210   :  { %861 = vmatprep.subr.bf16.mxu0 %v905_v34  ;;  %v907_v36 = vld [vmem:[%s1200_s9 + $0x8] sm:$0xff]  }
 0x211   :  { %927 = vtanh.f32 %v241_v37  ;;  %v244_v40 = vmul.f32 0.7978846, %v240_v38  ;;  %v238_v41 = vadd.f32 %v234_v39, %v214_v28  ;;  %862 = vmatpush3.bf16.msra.mxu0 %v905_v34  ;;  %v908_v37 = vld [vmem:[%s1200_s9] sm:$0xff]  }
 0x212   :  { %863 = vmatprep.subr.bf16.mxu0 %v906_v35 }
 0x213   :  { %929 = vtanh.f32 %v244_v40  ;;  %v242_v42 = vmul.f32 0.7978846, %v238_v41 }
 0x215   :  { %931 = vtanh.f32 %v242_v42  ;;  %864 = vmatpush3.bf16.msra.mxu0 %v906_v35 }
 0x216   :  { %865 = vmatprep.subr.bf16.mxu0 %v907_v36 }
 0x219   :  { %866 = vmatpush3.bf16.msra.mxu0 %v907_v36 }
 0x21a   :  { %867 = vmatprep.subr.bf16.mxu0 %v908_v37 }
 0x21c   :  { %v926_v43 = vpop.eup %925 }
 0x21d   :  { %v251_v47 = vadd.f32 1.0, %v926_v43  ;;  %868 = vmatpush3.bf16.msra.mxu0 %v908_v37 }
 0x21e   :  { %v928_v44 = vpop.eup %927 }
 0x21f   :  { %v249_v45 = vadd.f32 1.0, %v928_v44  ;;  %v255_v53 = vmul.f32 0.5, %v251_v47 }
 0x220   :  { %v930_v46 = vpop.eup %929 }
 0x221   :  { %v252_v48 = vadd.f32 1.0, %v930_v46  ;;  %v253_v52 = vmul.f32 0.5, %v249_v45  ;;  %v259_v58 = vmul.f32 %v255_v53, %v219_v16 }
 0x222   :  { %v932_v49 = vpop.eup %931 }
 0x223   :  { %v256_v50 = vmul.f32 0.5, %v252_v48  ;;  %v250_v51 = vadd.f32 1.0, %v932_v49  ;;  %v257_v56 = vmul.f32 %v253_v52, %v211_v19  ;;  %v762_v52 = vld [vmem:[%s1201_s7] ss:$0 sm:$0xff] }
 0x225   :  { %v254_v54 = vmul.f32 0.5, %v250_v51  ;;  %v260_v55 = vmul.f32 %v256_v50, %v222_v23 }
 0x227   :  { %v258_v57 = vmul.f32 %v254_v54, %v214_v28  ;;  %v278_v60 = vpack.c.bf16 %v260_v55, %v259_v58 }
 0x229   :  { %v277_v59 = vpack.c.bf16 %v258_v57, %v257_v56  ;;  %v763_v57 = vld [vmem:[%s1202_s8] ss:$0 sm:$0xff] }
 0x22b   :  { %857 = vmatprep.mubr.bf16.mxu1 %v277_v59 }
 0x22c   :  { %858 = vmatmul.mubr.bf16.vlgmr.msra.gmra.mxu1 %v278_v60 }
 0x2ec   :  { %v859_v61 = vpop.f32.mrf.mxu1 }
 0x2ed   :  { %v377_v0 = vadd.f32 %v859_v61, %v753_v62 }
 0x2ee   :  { %v368_v63 = vpop.f32.mrf.mxu1 }
 0x2ef   :  { %v369_v1 = vadd.f32 %v753_v62, %v368_v63  ;;  %v1103_v9 = vadd.f32 %v1027_v3, %v377_v0 }
 0x2f0   :  { %v860_v6 = vpop.f32.mrf.mxu1 }
 0x2f1   :  { %v1100_v7 = vadd.f32 %v1025_v2, %v369_v1  ;;  %v380_v10 = vadd.f32 %v860_v6, %v753_v62  ;;  %v395_v15 = vsel %vm55_vm0, %v1103_v9, 0.0 }
 0x2f2   :  { %v371_v8 = vpop.f32.mrf.mxu1 }
 0x2f3   :  { %v372_v11 = vadd.f32 %v753_v62, %v371_v8  ;;  %v389_v12 = vsel %vm55_vm0, %v1100_v7, 0.0  ;;  %v1111_v14 = vadd.f32 %v1031_v5, %v380_v10 }
 0x2f4   :  { %390 = vadd.xlane.f32.xlu0 %v389_v12  ;;  %v909_v12 = vld [vmem:[%s1203_s11 + $0x38] sm:$0xff]  }
 0x2f5   :  { %v1108_v13 = vadd.f32 %v1029_v4, %v372_v11  ;;  %v398_v3 = vsel %vm55_vm0, %v1111_v14, 0.0  ;;  %873 = vmatprep.subr.bf16.mxu0 %v909_v12 }
 0x2f7   :  { %v392_v2 = vsel %vm55_vm0, %v1108_v13, 0.0 }
 0x2f8   :  { %393 = vadd.xlane.f32.xlu1 %v392_v2  ;;  %396 = vadd.xlane.f32.xlu0 %v395_v15  ;;  %v910_v2 = vld [vmem:[%s1203_s11 + $0x30] sm:$0xff]   ;;  %v911_v15 = vld [vmem:[%s1203_s11 + $0x28] sm:$0xff]  }
 0x2fc   :  { %399 = vadd.xlane.f32.xlu1 %v398_v3  ;;  %v912_v3 = vld [vmem:[%s1203_s11 + $0x20] sm:$0xff]  }
 0x37d   :  { %v391_v16 = vpop.xlane.xlu0 %390 }
 0x37e   :  { %v401_v17 = vmul.f32 0.015625, %v391_v16  ;;  %v913_v16 = vld [vmem:[%s1203_s11 + $0x18] sm:$0xff]  }
 0x380   :  { %v405_v4 = vsub.f32 %v1100_v7, %v401_v17  ;;  %v914_v17 = vld [vmem:[%s1203_s11 + $0x10] sm:$0xff]  }
 0x381   :  { %v394_v18 = vpop.xlane.xlu1 %393  ;;  %v397_v19 = vpop.xlane.xlu0 %396 }
 0x382   :  { %v402_v5 = vmul.f32 0.015625, %v394_v18  ;;  %v403_v20 = vmul.f32 0.015625, %v397_v19  ;;  %v409_v21 = vmul.f32 %v405_v4, %v405_v4  ;;  %v916_v18 = vld [vmem:[%s1203_s11] sm:$0xff]  }
 0x383   :  { %v764_v19 = vld [vmem:[%s1204_s10] ss:$0 sm:$0xff] }
 0x384   :  { %v406_v22 = vsub.f32 %v1108_v13, %v402_v5  ;;  %v407_v23 = vsub.f32 %v1103_v9, %v403_v20  ;;  %v413_v24 = vsel %vm55_vm0, %v409_v21, 0.0 }
 0x385   :  { %v400_v25 = vpop.xlane.xlu1 %399  ;;  %414 = vadd.xlane.f32.xlu0 %v413_v24 }
 0x386   :  { %v404_v26 = vmul.f32 0.015625, %v400_v25  ;;  %v410_v27 = vmul.f32 %v406_v22, %v406_v22  ;;  %v411_v28 = vmul.f32 %v407_v23, %v407_v23 }
 0x388   :  { %v408_v29 = vsub.f32 %v1111_v14, %v404_v26  ;;  %v416_v30 = vsel %vm55_vm0, %v410_v27, 0.0  ;;  %v419_v31 = vsel %vm55_vm0, %v411_v28, 0.0 }
 0x389   :  { %417 = vadd.xlane.f32.xlu1 %v416_v30  ;;  %420 = vadd.xlane.f32.xlu0 %v419_v31 }
 0x38a   :  { %v412_v32 = vmul.f32 %v408_v29, %v408_v29 }
 0x38c   :  { %v422_v33 = vsel %vm55_vm0, %v412_v32, 0.0 }
 0x38d   :  { %423 = vadd.xlane.f32.xlu1 %v422_v33 }
 0x40e   :  { %v415_v38 = vpop.xlane.xlu0 %414 }
 0x40f   :  { %v425_v39 = vmul.f32 0.015625, %v415_v38 }
 0x411   :  { %v429_v40 = vadd.f32 1e-05, %v425_v39 }
 0x412   :  { %v418_v41 = vpop.xlane.xlu1 %417  ;;  %v421_v42 = vpop.xlane.xlu0 %420 }
 0x413   :  { %933 = vrsqrt.f32 %v429_v40  ;;  %v426_v43 = vmul.f32 0.015625, %v418_v41  ;;  %v427_v44 = vmul.f32 0.015625, %v421_v42 }
 0x415   :  { %v430_v45 = vadd.f32 1e-05, %v426_v43  ;;  %v431_v46 = vadd.f32 1e-05, %v427_v44 }
 0x416   :  { %v424_v47 = vpop.xlane.xlu1 %423 }
 0x417   :  { %935 = vrsqrt.f32 %v430_v45  ;;  %v428_v48 = vmul.f32 0.015625, %v424_v47 }
 0x418   :  { %937 = vrsqrt.f32 %v431_v46 }
 0x419   :  { %v432_v49 = vadd.f32 1e-05, %v428_v48 }
 0x41b   :  { %939 = vrsqrt.f32 %v432_v49 }
 0x420   :  { %v934_v50 = vpop.eup %933 }
 0x421   :  { %v437_v51 = vmul.f32 %v934_v50, %v405_v4  ;;  %v915_v4 = vld [vmem:[%s1203_s11 + $0x8] sm:$0xff]  }
 0x423   :  { %v447_v56 = vmul.f32 %v762_v52, %v437_v51 }
 0x424   :  { %v936_v53 = vpop.eup %935 }
 0x425   :  { %v938_v54 = vpop.eup %937  ;;  %v438_v55 = vmul.f32 %v936_v53, %v406_v22  ;;  %v457_v61 = vadd.f32 %v763_v57, %v447_v56 }
 0x426   :  { %v439_v58 = vmul.f32 %v938_v54, %v407_v23 }
 0x427   :  { %v448_v59 = vmul.f32 %v762_v52, %v438_v55 }
 0x428   :  { %v940_v60 = vpop.eup %939  ;;  %v449_v0 = vmul.f32 %v762_v52, %v439_v58 }
 0x429   :  { %v458_v62 = vadd.f32 %v763_v57, %v448_v59  ;;  %v440_v63 = vmul.f32 %v940_v60, %v408_v29 }
 0x42a   :  { %v459_v8 = vadd.f32 %v763_v57, %v449_v0 }
 0x42b   :  { %v469_v1 = vpack.c.bf16 %v458_v62, %v457_v61  ;;  %v450_v6 = vmul.f32 %v762_v52, %v440_v63 }
 0x42d   :  { %869 = vmatprep.mubr.msk.bf16.mxu0 %vm55_vm0, %v469_v1  ;;  %v460_v10 = vadd.f32 %v763_v57, %v450_v6  ;;  %v771_v1 = vld [vmem:[%s1205_s12] ss:$0 sm:$0xff] }
 0x42f   :  { %v470_v11 = vpack.c.bf16 %v460_v10, %v459_v8 }
 0x431   :  { %870 = vmatmul.mubr.msk.bf16.vlgmr.msra.gmra.mxu0 %vm55_vm0, %v470_v11 }
 0x432   :  { %874 = vmatpush3.bf16.msra.mxu0 %v909_v12 }
 0x433   :  { %875 = vmatprep.subr.bf16.mxu0 %v910_v2 }
 0x436   :  { %876 = vmatpush3.bf16.msra.mxu0 %v910_v2 }
 0x437   :  { %877 = vmatprep.subr.bf16.mxu0 %v911_v15 }
 0x43a   :  { %878 = vmatpush3.bf16.msra.mxu0 %v911_v15 }
 0x43b   :  { %879 = vmatprep.subr.bf16.mxu0 %v912_v3 }
 0x43e   :  { %880 = vmatpush3.bf16.msra.mxu0 %v912_v3 }
 0x43f   :  { %881 = vmatprep.subr.bf16.mxu0 %v913_v16 }
 0x442   :  { %882 = vmatpush3.bf16.msra.mxu0 %v913_v16 }
 0x443   :  { %883 = vmatprep.subr.bf16.mxu0 %v914_v17 }
 0x446   :  { %884 = vmatpush3.bf16.msra.mxu0 %v914_v17 }
 0x447   :  { %885 = vmatprep.subr.bf16.mxu0 %v915_v4 }
 0x44a   :  { %886 = vmatpush3.bf16.msra.mxu0 %v915_v4 }
 0x44b   :  { %887 = vmatprep.subr.bf16.mxu0 %v916_v18 }
 0x44e   :  { %888 = vmatpush3.bf16.msra.mxu0 %v916_v18 }
 0x4f1   :  { %v871_v5 = vpop.f32.mrf.mxu0 }
 0x4f2   :  { %v551_v20 = vadd.f32 %v871_v5, %v764_v19 }
 0x4f3   :  { %v542_v21 = vpop.f32.mrf.mxu0 }
 0x4f4   :  { %v559_v22 = vmul.f32 %v551_v20, %v551_v20  ;;  %v543_v23 = vadd.f32 %v764_v19, %v542_v21 }
 0x4f5   :  { %v872_v24 = vpop.f32.mrf.mxu0 }
 0x4f6   :  { %v563_v25 = vmul.f32 %v559_v22, %v551_v20  ;;  %v557_v26 = vmul.f32 %v543_v23, %v543_v23  ;;  %v554_v27 = vadd.f32 %v872_v24, %v764_v19 }
 0x4f7   :  { %v545_v28 = vpop.f32.mrf.mxu0 }
 0x4f8   :  { %v567_v29 = vmul.f32 0.044715, %v563_v25  ;;  %v561_v30 = vmul.f32 %v557_v26, %v543_v23  ;;  %v560_v31 = vmul.f32 %v554_v27, %v554_v27  ;;  %v546_v32 = vadd.f32 %v764_v19, %v545_v28 }
 0x4fa   :  { %v571_v33 = vadd.f32 %v567_v29, %v551_v20  ;;  %v565_v34 = vmul.f32 0.044715, %v561_v30  ;;  %v564_v35 = vmul.f32 %v560_v31, %v554_v27  ;;  %v558_v36 = vmul.f32 %v546_v32, %v546_v32 }
 0x4fc   :  { %v575_v37 = vmul.f32 0.7978846, %v571_v33  ;;  %v569_v38 = vadd.f32 %v565_v34, %v543_v23  ;;  %v568_v39 = vmul.f32 0.044715, %v564_v35  ;;  %v562_v40 = vmul.f32 %v558_v36, %v546_v32 }
 0x4fe   :  { %v573_v41 = vmul.f32 0.7978846, %v569_v38  ;;  %v572_v42 = vadd.f32 %v568_v39, %v554_v27  ;;  %v566_v43 = vmul.f32 0.044715, %v562_v40  ;;  %941 = vtanh.f32 %v575_v37 }
 0x500   :  { %943 = vtanh.f32 %v573_v41  ;;  %v576_v44 = vmul.f32 0.7978846, %v572_v42  ;;  %v570_v45 = vadd.f32 %v566_v43, %v546_v32 }
 0x502   :  { %945 = vtanh.f32 %v576_v44  ;;  %v574_v46 = vmul.f32 0.7978846, %v570_v45 }
 0x504   :  { %947 = vtanh.f32 %v574_v46 }
 0x50b   :  { %v942_v47 = vpop.eup %941 }
 0x50c   :  { %v583_v51 = vadd.f32 1.0, %v942_v47 }
 0x50d   :  { %v944_v48 = vpop.eup %943 }
 0x50e   :  { %v581_v49 = vadd.f32 1.0, %v944_v48  ;;  %v587_v57 = vmul.f32 0.5, %v583_v51 }
 0x50f   :  { %v946_v50 = vpop.eup %945 }
 0x510   :  { %v584_v52 = vadd.f32 1.0, %v946_v50  ;;  %v585_v56 = vmul.f32 0.5, %v581_v49  ;;  %v591_v62 = vmul.f32 %v587_v57, %v551_v20 }
 0x511   :  { %v948_v53 = vpop.eup %947 }
 0x512   :  { %v588_v54 = vmul.f32 0.5, %v584_v52  ;;  %v582_v55 = vadd.f32 1.0, %v948_v53  ;;  %v589_v60 = vmul.f32 %v585_v56, %v543_v23 }
 0x514   :  { %v586_v58 = vmul.f32 0.5, %v582_v55  ;;  %v592_v59 = vmul.f32 %v588_v54, %v554_v27 }
 0x516   :  { %v590_v61 = vmul.f32 %v586_v58, %v546_v32  ;;  %v610_v0 = vpack.c.bf16 %v592_v59, %v591_v62 }
 0x518   :  { %v609_v63 = vpack.c.bf16 %v590_v61, %v589_v60 }
 0x51a   :  { %889 = vmatprep.mubr.bf16.mxu0 %v609_v63 }
 0x51b   :  { %890 = vmatmul.mubr.bf16.vlgmr.msra.gmra.mxu0 %v610_v0 }
 0x5db   :  { %v891_v6 = vpop.f32.mrf.mxu0 }
 0x5dc   :  { %v709_v8 = vadd.f32 %v891_v6, %v771_v1 }
 0x5dd   :  { %v700_v10 = vpop.f32.mrf.mxu0 }
 0x5de   :  { %v717_v11 = vadd.f32 %v709_v8, %v1103_v9  ;;  %v701_v12 = vadd.f32 %v771_v1, %v700_v10 }
 0x5df   :  { %v892_v2 = vpop.f32.mrf.mxu0 }
 0x5e0   :  { %v786_v15 = vpack.c.bf16 %v717_v11, %v717_v11  ;;  %v715_v3 = vadd.f32 %v701_v12, %v1100_v7  ;;  %v712_v16 = vadd.f32 %v892_v2, %v771_v1 }
 0x5e1   :  { %v703_v17 = vpop.f32.mrf.mxu0 }
 0x5e2   :  { %738 = vst.msk [vmem:[%s1206_s13 + $0x8] sm:$0xf] %vm735_vm1, %v786_v15  ;;  %v784_v4 = vpack.c.bf16 %v715_v3, %v715_v3  ;;  %v718_v18 = vadd.f32 %v712_v16, %v1111_v14  ;;  %v704_v19 = vadd.f32 %v771_v1, %v703_v17 }
 0x5e4   :  { %736 = vst.msk [vmem:[%s1206_s13] sm:$0xf] %vm735_vm1, %v784_v4  ;;  %v787_v9 = vpack.c.bf16 %v718_v18, %v718_v18  ;;  %v716_v5 = vadd.f32 %v704_v19, %v1108_v13 }
 0x5e6   :  { %739 = vst.msk [vmem:[%s1206_s13 + $0xc] sm:$0xf] %vm735_vm1, %v787_v9  ;;  %v785_v7 = vpack.c.bf16 %v716_v5, %v716_v5 }
 0x5e8   :  { %737 = vst.msk [vmem:[%s1206_s13 + $0x4] sm:$0xf] %vm735_vm1, %v785_v7 }

// kernel: forward.16
= control target key start
LH: loop header
LB: loop body
LE: loop exit
PB: predicated region body
PF: predicated region fallthrough
CT: control target
= control target key end

     0   :  { %18 = vsyncpa [#allocation3], 0  ;;  %s1651_s0 = inlined_call_operand.vmem [shape: bf16[16,128], index: 0, kind: input, shape index: {}]   ;;  %s1652_s1 = inlined_call_operand.hbm [shape: f32[1,128], index: 1, kind: input, shape index: {}]   ;;  %s1653_s2 = inlined_call_operand.hbm [shape: f32[1,128], index: 2, kind: input, shape index: {}]   ;;  %s1654_s3 = inlined_call_operand.vmem [shape: bf16[128,256], index: 3, kind: input, shape index: {}]   ;;  %s1655_s4 = inlined_call_operand.vmem [shape: f32[1,256], index: 4, kind: input, shape index: {}]   ;;  %s1656_s5 = inlined_call_operand.vmem [shape: bf16[256,128], index: 5, kind: input, shape index: {}]   ;;  %s1657_s6 = inlined_call_operand.hbm [shape: f32[1,128], index: 6, kind: input, shape index: {}]   ;;  %s1658_s7 = inlined_call_operand.hbm [shape: f32[1,128], index: 7, kind: input, shape index: {}]   ;;  %s1659_s8 = inlined_call_operand.hbm [shape: f32[1,128], index: 8, kind: input, shape index: {}]   ;;  %s1660_s9 = inlined_call_operand.vmem [shape: bf16[128,256], index: 9, kind: input, shape index: {}]   ;;  %s1661_s10 = inlined_call_operand.vmem [shape: f32[1,256], index: 10, kind: input, shape index: {}]   ;;  %s1662_s11 = inlined_call_operand.vmem [shape: bf16[256,128], index: 11, kind: input, shape index: {}]   ;;  %s1663_s12 = inlined_call_operand.hbm [shape: f32[1,128], index: 12, kind: input, shape index: {}]   ;;  %s1664_s13 = inlined_call_operand.vmem [shape: bf16[16,128], index: 13, kind: output, shape index: {}]  }
   0x1   :  { %19 = vsyncpa [#allocation5], 0 }
   0x2   :  { %20 = vsyncpa [#allocation8], 0 }
   0x3   :  { %21 = vsyncpa [#allocation11], 0  ;;  %s1320_s25 = smov [#allocation4]   ;;  %s1321_s27 = smov [#allocation7]  }
   0x4   :  { %s40_s26 = sshll.u32 %s1320_s25, 4  ;;  %s66_s28 = sshll.u32 %s1321_s27, 4  ;;  %s41_s26 = int_to_ptr.vmem [resolvable:$true] %s40_s26  ;;  %s67_s28 = int_to_ptr.vmem [resolvable:$true] %s66_s28 }
   0x5   :  { %s1200_s29 = scalar_lea.vmem %s41_s26, 16  ;;  %s1204_s30 = scalar_lea.vmem %s41_s26, 32 }
   0x6   :  { %p1201_p0 = scmp.ne.s32.totalorder %s41_s26, %s1200_s29  ;;  %p1205_p1 = scmp.lt.s32.totalorder %s41_s26, %s41_s26 }
   0x7   :  { %p1206_p2 = scmp.lt.s32.totalorder %s1204_s30, %s1200_s29 }
   0x9   :  { %p1207_p3 = por %p1206_p2, %p1205_p1 }
   0xb   :  { %p1208_p4 = pnand %p1207_p3, %p1201_p0 }
   0xd   :  { %1211 = shalt.err (!%p1208_p4)
}
   0xe   :  { %43 = dma.hbm_to_vmem [thread:$0]  %s1653_s2, 16, %s41_s26, [#allocation5]  }
   0xf   :  { %s1220_s16 = scalar_lea.vmem %s67_s28, 16  ;;  %s1224_s17 = scalar_lea.vmem %s67_s28, 32 }
  0x10   :  { %p1221_p5 = scmp.ne.s32.totalorder %s67_s28, %s1220_s16  ;;  %p1225_p6 = scmp.lt.s32.totalorder %s67_s28, %s67_s28 }
  0x11   :  { %p1226_p7 = scmp.lt.s32.totalorder %s1224_s17, %s1220_s16 }
  0x13   :  { %p1227_p8 = por %p1226_p7, %p1225_p6 }
  0x15   :  { %p1228_p9 = pnand %p1227_p8, %p1221_p5 }
  0x17   :  { %1231 = shalt.err (!%p1228_p9)
}
  0x18   :  { %69 = dma.hbm_to_vmem [thread:$0]  %s1658_s7, 16, %s67_s28, [#allocation8]  }
  0x19   :  { %s1322_s20 = smov [#allocation2]   ;;  %s1323_s22 = smov [#allocation6]  }
  0x1a   :  { %s30_s21 = sshll.u32 %s1322_s20, 4  ;;  %s56_s23 = sshll.u32 %s1323_s22, 4  ;;  %s31_s21 = int_to_ptr.vmem [resolvable:$true] %s30_s21  ;;  %s57_s23 = int_to_ptr.vmem [resolvable:$true] %s56_s23 }
  0x1b   :  { %s1240_s24 = scalar_lea.vmem %s31_s21, 16  ;;  %s1244_s2 = scalar_lea.vmem %s31_s21, 32 }
  0x1c   :  { %p1241_p10 = scmp.ne.s32.totalorder %s31_s21, %s1240_s24  ;;  %p1245_p11 = scmp.lt.s32.totalorder %s31_s21, %s31_s21 }
  0x1d   :  { %p1246_p12 = scmp.lt.s32.totalorder %s1244_s2, %s1240_s24 }
  0x1f   :  { %p1247_p13 = por %p1246_p12, %p1245_p11 }
  0x21   :  { %p1248_p0 = pnand %p1247_p13, %p1241_p10 }
  0x23   :  { %1251 = shalt.err (!%p1248_p0)
}
  0x24   :  { %33 = dma.hbm_to_vmem [thread:$0]  %s1652_s1, 16, %s31_s21, [#allocation3]  }
  0x25   :  { %s1260_s27 = scalar_lea.vmem %s57_s23, 16  ;;  %s1264_s7 = scalar_lea.vmem %s57_s23, 32 }
  0x26   :  { %p1261_p1 = scmp.ne.s32.totalorder %s57_s23, %s1260_s27  ;;  %p1265_p2 = scmp.lt.s32.totalorder %s57_s23, %s57_s23 }
  0x27   :  { %p1266_p3 = scmp.lt.s32.totalorder %s1264_s7, %s1260_s27 }
  0x29   :  { %p1267_p4 = por %p1266_p3, %p1265_p2 }
  0x2b   :  { %p1268_p5 = pnand %p1267_p4, %p1261_p1 }
  0x2d   :  { %1271 = shalt.err (!%p1268_p5)
}
  0x2e   :  { %59 = dma.hbm_to_vmem [thread:$0]  %s1657_s6, 16, %s57_s23, [#allocation5]  }
  0x2f   :  { %s1324_s30 = smov [#allocation9]   ;;  %s1325_s15 = smov [#allocation10]  }
  0x30   :  { %s76_s14 = sshll.u32 %s1324_s30, 4  ;;  %s92_s16 = sshll.u32 %s1325_s15, 4  ;;  %s77_s14 = int_to_ptr.vmem [resolvable:$true] %s76_s14  ;;  %s93_s16 = int_to_ptr.vmem [resolvable:$true] %s92_s16 }
  0x31   :  { %s1280_s17 = scalar_lea.vmem %s77_s14, 16  ;;  %s1284_s1 = scalar_lea.vmem %s77_s14, 32 }
  0x32   :  { %p1281_p6 = scmp.ne.s32.totalorder %s77_s14, %s1280_s17  ;;  %p1285_p7 = scmp.lt.s32.totalorder %s77_s14, %s77_s14 }
  0x33   :  { %p1286_p8 = scmp.lt.s32.totalorder %s1284_s1, %s1280_s17 }
  0x35   :  { %p1287_p9 = por %p1286_p8, %p1285_p7 }
  0x37   :  { %p1288_p10 = pnand %p1287_p9, %p1281_p6 }
  0x39   :  { %1291 = shalt.err (!%p1288_p10)
}
  0x3a   :  { %79 = dma.hbm_to_vmem [thread:$0]  %s1659_s8, 16, %s77_s14, [#allocation8]  }
  0x3b   :  { %s1300_s20 = scalar_lea.vmem %s93_s16, 16  ;;  %s1304_s6 = scalar_lea.vmem %s93_s16, 32 }
  0x3c   :  { %p1301_p11 = scmp.ne.s32.totalorder %s93_s16, %s1300_s20  ;;  %p1305_p12 = scmp.lt.s32.totalorder %s93_s16, %s93_s16 }
  0x3d   :  { %p1306_p13 = scmp.lt.s32.totalorder %s1304_s6, %s1300_s20 }
  0x3f   :  { %p1307_p0 = por %p1306_p13, %p1305_p12 }
  0x41   :  { %p1308_p1 = pnand %p1307_p0, %p1301_p11 }
  0x43   :  { %1311 = shalt.err (!%p1308_p1)
}
  0x44   :  { %95 = dma.hbm_to_vmem [thread:$0]  %s1663_s12, 16, %s93_s16, [#allocation11]  }
  0x45   :  { %1312 = dma.done.wait [#allocation3], 16  }
  0x46   :  { %1313 = vsyncadd [#allocation3], 4294967280 }
  0x47   :  { %1314 = dma.done.wait [#allocation5], 32  }
  0x48   :  { %1315 = vsyncadd [#allocation5], 4294967264 }
  0x49   :  { %1316 = dma.done.wait [#allocation8], 32  }
  0x4a   :  { %1317 = vsyncadd [#allocation8], 4294967264 }
  0x4b   :  { %1318 = dma.done.wait [#allocation11], 16  }
  0x4c   :  { %1319 = vsyncadd [#allocation11], 4294967280  ;;  %v1029_v0 = vld [vmem:[%s1651_s0] sm:$0xff]   ;;  %v1088_v3 = vld [vmem:[%s1654_s3 + $0x74] ss:$8 sps:$4 sm:$0xff]   ;;  %v1326_v22 = vmov 0   ;;  %v179_v61 = vlaneseq }
  0x4d   :  { %v1418_v1 = vunpack.c.l.bf16 %v1029_v0  ;;  %v1421_v2 = vunpack.c.h.bf16 %v1029_v0  ;;  %v1090_v4 = vld [vmem:[%s1654_s3 + $0x70] ss:$8 sps:$4 sm:$0xff]   ;;  %269 = vmatprep.subr.bf16.mxu0 %v1088_v3  ;;  %v1091_v13 = vld [vmem:[%s1654_s3 + $0x64] ss:$8 sps:$4 sm:$0xff]   ;;  %v1093_v14 = vld [vmem:[%s1654_s3 + $0x60] ss:$8 sps:$4 sm:$0xff]   ;;  %301 = vmatprep.mubr.bf16.mxu0 %v1326_v22 }
  0x4e   :  { %270 = vmatpush1.bf16.msra.mxu0 %v1090_v4  ;;  %v1094_v15 = vld [vmem:[%s1654_s3 + $0x54] ss:$8 sps:$4 sm:$0xff]   ;;  %v1096_v16 = vld [vmem:[%s1654_s3 + $0x50] ss:$8 sps:$4 sm:$0xff]   ;;  %v1097_v17 = vld [vmem:[%s1654_s3 + $0x44] ss:$8 sps:$4 sm:$0xff]  }
  0x4f   :  { %121 = vadd.xlane.f32.xlu0 %v1418_v1  ;;  %271 = vmatprep.subr.bf16.mxu0 %v1091_v13  ;;  %v1099_v18 = vld [vmem:[%s1654_s3 + $0x40] ss:$8 sps:$4 sm:$0xff]   ;;  %v1100_v19 = vld [vmem:[%s1654_s3 + $0x34] ss:$8 sps:$4 sm:$0xff]   ;;  %v1102_v20 = vld [vmem:[%s1654_s3 + $0x30] ss:$8 sps:$4 sm:$0xff]  }
  0x50   :  { %v1103_v21 = vld [vmem:[%s1654_s3 + $0x24] ss:$8 sps:$4 sm:$0xff]   ;;  %v1105_v23 = vld [vmem:[%s1654_s3 + $0x20] ss:$8 sps:$4 sm:$0xff]   ;;  %v1106_v24 = vld [vmem:[%s1654_s3 + $0x14] ss:$8 sps:$4 sm:$0xff]  }
  0x51   :  { %v1108_v25 = vld [vmem:[%s1654_s3 + $0x10] ss:$8 sps:$4 sm:$0xff]   ;;  %v1109_v26 = vld [vmem:[%s1654_s3 + $0x4] ss:$8 sps:$4 sm:$0xff]   ;;  %v1111_v27 = vld [vmem:[%s1654_s3] ss:$8 sps:$4 sm:$0xff]  }
  0x52   :  { %272 = vmatpush1.bf16.msra.mxu0 %v1093_v14  ;;  %v954_v36 = vld [vmem:[#allocation2] ss:$0 sm:$0xff]  ;;  %v955_v40 = vld [vmem:[#allocation4] ss:$0 sm:$0xff]  ;;  %v1112_v45 = vld [vmem:[%s1656_s5 + $0x78] sm:$0xff]   ;;  %v1522_v62 = vshrl.u32 %v179_v61, 7 }
  0x53   :  { %123 = vadd.xlane.f32.xlu0 %v1421_v2  ;;  %273 = vmatprep.subr.bf16.mxu0 %v1094_v15  ;;  %v1113_v46 = vld [vmem:[%s1656_s5 + $0x38] sm:$0xff]   ;;  %v1114_v47 = vld [vmem:[%s1656_s5 + $0x70] sm:$0xff]   ;;  %v1116_v49 = vld [vmem:[%s1656_s5 + $0x68] sm:$0xff]  }
  0x54   :  { %1037 = vmatprep.subr.bf16.mxu1 %v1112_v45  ;;  %v1115_v48 = vld [vmem:[%s1656_s5 + $0x30] sm:$0xff]   ;;  %v1117_v50 = vld [vmem:[%s1656_s5 + $0x28] sm:$0xff]   ;;  %v1118_v51 = vld [vmem:[%s1656_s5 + $0x60] sm:$0xff]   ;;  %v181_v63 = vsub.s32 0, %v1522_v62  ;;  %v185_v3 = vsub.s32 1, %v1522_v62 }
  0x55   :  { %1038 = vmatpush3.bf16.msra.mxu1 %v1113_v46  ;;  %v1119_v52 = vld [vmem:[%s1656_s5 + $0x20] sm:$0xff]   ;;  %v1120_v53 = vld [vmem:[%s1656_s5 + $0x58] sm:$0xff]   ;;  %v1122_v55 = vld [vmem:[%s1656_s5 + $0x50] sm:$0xff]  }
  0x56   :  { %274 = vmatpush1.bf16.msra.mxu0 %v1096_v16  ;;  %1039 = vmatprep.subr.bf16.mxu1 %v1114_v47  ;;  %v1121_v54 = vld [vmem:[%s1656_s5 + $0x18] sm:$0xff]   ;;  %v1123_v56 = vld [vmem:[%s1656_s5 + $0x10] sm:$0xff]   ;;  %v1124_v57 = vld [vmem:[%s1656_s5 + $0x48] sm:$0xff]  }
  0x57   :  { %275 = vmatprep.subr.bf16.mxu0 %v1097_v17  ;;  %v1125_v58 = vld [vmem:[%s1656_s5 + $0x8] sm:$0xff]   ;;  %v1126_v59 = vld [vmem:[%s1656_s5 + $0x40] sm:$0xff]  }
  0x58   :  { %v1127_v60 = vld [vmem:[%s1656_s5] sm:$0xff]  }
  0x59   :  { %1040 = vmatpush3.bf16.msra.mxu1 %v1115_v48  ;;  %v177_v0 = vld [vmem:[%s1655_s4] sm:$0x3] }
  0x5a   :  { %276 = vmatpush1.bf16.msra.mxu0 %v1099_v18  ;;  %1041 = vmatprep.subr.bf16.mxu1 %v1116_v49  ;;  %v182_v4 = vrot.slane %v177_v0, %v181_v63 }
  0x5b   :  { %277 = vmatprep.subr.bf16.mxu0 %v1100_v19 }
  0x5d   :  { %1042 = vmatpush3.bf16.msra.mxu1 %v1117_v50 }
  0x5e   :  { %278 = vmatpush1.bf16.msra.mxu0 %v1102_v20  ;;  %1043 = vmatprep.subr.bf16.mxu1 %v1118_v51 }
  0x5f   :  { %279 = vmatprep.subr.bf16.mxu0 %v1103_v21 }
  0x61   :  { %1044 = vmatpush3.bf16.msra.mxu1 %v1119_v52 }
  0x62   :  { %280 = vmatpush1.bf16.msra.mxu0 %v1105_v23  ;;  %1045 = vmatprep.subr.bf16.mxu1 %v1120_v53  ;;  %v972_v53 = vld [vmem:[#allocation6] ss:$0 sm:$0xff] }
  0x63   :  { %281 = vmatprep.subr.bf16.mxu0 %v1106_v24 }
  0x65   :  { %1046 = vmatpush3.bf16.msra.mxu1 %v1121_v54 }
  0x66   :  { %282 = vmatpush1.bf16.msra.mxu0 %v1108_v25  ;;  %1047 = vmatprep.subr.bf16.mxu1 %v1122_v55 }
  0x67   :  { %283 = vmatprep.subr.bf16.mxu0 %v1109_v26 }
  0x69   :  { %1048 = vmatpush3.bf16.msra.mxu1 %v1123_v56 }
  0x6a   :  { %284 = vmatpush1.bf16.msra.mxu0 %v1111_v27  ;;  %1049 = vmatprep.subr.bf16.mxu1 %v1124_v57 }
  0x6d   :  { %1050 = vmatpush3.bf16.msra.mxu1 %v1125_v58 }
  0x6e   :  { %1051 = vmatprep.subr.bf16.mxu1 %v1126_v59 }
  0x71   :  { %1052 = vmatpush3.bf16.msra.mxu1 %v1127_v60 }
  0xd8   :  { %v122_v5 = vpop.xlane.xlu0 %121 }
  0xd9   :  { %v126_v6 = vmul.f32 0.0078125, %v122_v5  ;;  %v186_v5 = vrot.slane %v177_v0, %v185_v3 }
  0xdb   :  { %v128_v7 = vsub.f32 %v1418_v1, %v126_v6 }
  0xdc   :  { %v124_v8 = vpop.xlane.xlu0 %123 }
  0xdd   :  { %v127_v9 = vmul.f32 0.0078125, %v124_v8  ;;  %v130_v10 = vmul.f32 %v128_v7, %v128_v7 }
  0xdf   :  { %v129_v11 = vsub.f32 %v1421_v2, %v127_v9  ;;  %132 = vadd.xlane.f32.xlu1 %v130_v10 }
  0xe1   :  { %v131_v12 = vmul.f32 %v129_v11, %v129_v11 }
  0xe3   :  { %134 = vadd.xlane.f32.xlu1 %v131_v12 }
 0x168   :  { %v133_v28 = vpop.xlane.xlu1 %132 }
 0x169   :  { %v136_v29 = vmul.f32 0.0078125, %v133_v28 }
 0x16b   :  { %v138_v30 = vadd.f32 1e-05, %v136_v29 }
 0x16c   :  { %v135_v31 = vpop.xlane.xlu1 %134 }
 0x16d   :  { %1168 = vrsqrt.f32 %v138_v30  ;;  %v137_v32 = vmul.f32 0.0078125, %v135_v31 }
 0x16f   :  { %v139_v33 = vadd.f32 1e-05, %v137_v32 }
 0x171   :  { %1170 = vrsqrt.f32 %v139_v33 }
 0x17a   :  { %v1169_v34 = vpop.eup %1168 }
 0x17b   :  { %v142_v35 = vmul.f32 %v1169_v34, %v128_v7 }
 0x17d   :  { %v150_v39 = vmul.f32 %v954_v36, %v142_v35 }
 0x17e   :  { %v1171_v37 = vpop.eup %1170 }
 0x17f   :  { %v143_v38 = vmul.f32 %v1171_v37, %v129_v11  ;;  %v158_v42 = vadd.f32 %v955_v40, %v150_v39 }
 0x181   :  { %v151_v41 = vmul.f32 %v954_v36, %v143_v38 }
 0x183   :  { %v159_v43 = vadd.f32 %v955_v40, %v151_v41 }
 0x185   :  { %v176_v44 = vpack.c.bf16 %v159_v43, %v158_v42 }
 0x187   :  { %302 = vmatmul.mubr.bf16.vlgmr.msra.gmra.mxu0 %v176_v44 }
 0x188   :  { %709 = vmatprep.mubr.bf16.mxu0 %v1326_v22 }
 0x247   :  { %v303_v6 = vpop.f32.mrf.mxu0 }
 0x248   :  { %v304_v7 = vadd.f32 %v303_v6, %v182_v4 }
 0x249   :  { %v305_v8 = vpop.f32.mrf.mxu0 }
 0x24a   :  { %v312_v9 = vmul.f32 %v304_v7, %v304_v7  ;;  %v306_v10 = vadd.f32 %v305_v8, %v186_v5 }
 0x24b   :  { %v307_v11 = vpop.f32.mrf.mxu0 }
 0x24c   :  { %v316_v12 = vmul.f32 %v312_v9, %v304_v7  ;;  %v313_v13 = vmul.f32 %v306_v10, %v306_v10  ;;  %v308_v14 = vadd.f32 %v307_v11, %v182_v4  ;;  %v1128_v4 = vld [vmem:[%s1660_s9 + $0x70] ss:$8 sps:$4 sm:$0xff]  }
 0x24d   :  { %v309_v15 = vpop.f32.mrf.mxu0 }
 0x24e   :  { %v320_v16 = vmul.f32 0.044715, %v316_v12  ;;  %v317_v17 = vmul.f32 %v313_v13, %v306_v10  ;;  %v314_v18 = vmul.f32 %v308_v14, %v308_v14  ;;  %v310_v19 = vadd.f32 %v309_v15, %v186_v5  ;;  %v1130_v5 = vld [vmem:[%s1660_s9 + $0x74] ss:$8 sps:$4 sm:$0xff]   ;;  %v1133_v12 = vld [vmem:[%s1660_s9 + $0x64] ss:$8 sps:$4 sm:$0xff]  }
 0x24f   :  { %677 = vmatprep.subr.bf16.mxu0 %v1130_v5  ;;  %v1131_v13 = vld [vmem:[%s1660_s9 + $0x60] ss:$8 sps:$4 sm:$0xff]   ;;  %v1134_v15 = vld [vmem:[%s1660_s9 + $0x50] ss:$8 sps:$4 sm:$0xff]  }
 0x250   :  { %v324_v20 = vadd.f32 %v320_v16, %v304_v7  ;;  %v321_v21 = vmul.f32 0.044715, %v317_v17  ;;  %v318_v22 = vmul.f32 %v314_v18, %v308_v14  ;;  %v315_v23 = vmul.f32 %v310_v19, %v310_v19  ;;  %678 = vmatpush1.bf16.msra.mxu0 %v1128_v4  ;;  %v1137_v16 = vld [vmem:[%s1660_s9 + $0x40] ss:$8 sps:$4 sm:$0xff]   ;;  %v1139_v17 = vld [vmem:[%s1660_s9 + $0x44] ss:$8 sps:$4 sm:$0xff]  }
 0x251   :  { %679 = vmatprep.subr.bf16.mxu0 %v1133_v12  ;;  %v1142_v18 = vld [vmem:[%s1660_s9 + $0x34] ss:$8 sps:$4 sm:$0xff]  }
 0x252   :  { %v328_v24 = vmul.f32 0.7978846, %v324_v20  ;;  %v325_v25 = vadd.f32 %v321_v21, %v306_v10  ;;  %v322_v26 = vmul.f32 0.044715, %v318_v22  ;;  %v319_v27 = vmul.f32 %v315_v23, %v310_v19  ;;  %v1145_v20 = vld [vmem:[%s1660_s9 + $0x24] ss:$8 sps:$4 sm:$0xff]  }
 0x253   :  { %v1143_v21 = vld [vmem:[%s1660_s9 + $0x20] ss:$8 sps:$4 sm:$0xff]   ;;  %v1148_v22 = vld [vmem:[%s1660_s9 + $0x14] ss:$8 sps:$4 sm:$0xff]   ;;  %v1146_v23 = vld [vmem:[%s1660_s9 + $0x10] ss:$8 sps:$4 sm:$0xff]  }
 0x254   :  { %v326_v28 = vadd.f32 %v322_v26, %v308_v14  ;;  %v323_v29 = vmul.f32 0.044715, %v319_v27  ;;  %v329_v30 = vmul.f32 0.7978846, %v325_v25  ;;  %1172 = vtanh.f32 %v328_v24  ;;  %680 = vmatpush1.bf16.msra.mxu0 %v1131_v13  ;;  %v1151_v24 = vld [vmem:[%s1660_s9 + $0x4] ss:$8 sps:$4 sm:$0xff]  }
 0x255   :  { %v1149_v25 = vld [vmem:[%s1660_s9] ss:$8 sps:$4 sm:$0xff]  }
 0x256   :  { %v330_v31 = vmul.f32 0.7978846, %v326_v28  ;;  %v327_v32 = vadd.f32 %v323_v29, %v310_v19  ;;  %1174 = vtanh.f32 %v329_v30 }
 0x258   :  { %1176 = vtanh.f32 %v330_v31  ;;  %v331_v33 = vmul.f32 0.7978846, %v327_v32 }
 0x25a   :  { %1178 = vtanh.f32 %v331_v33 }
 0x261   :  { %v1173_v34 = vpop.eup %1172 }
 0x262   :  { %v336_v38 = vadd.f32 1.0, %v1173_v34  ;;  %v989_v34 = vld [vmem:[#allocation7] ss:$0 sm:$0xff] }
 0x263   :  { %v1175_v35 = vpop.eup %1174 }
 0x264   :  { %v337_v36 = vadd.f32 1.0, %v1175_v35  ;;  %v340_v44 = vmul.f32 0.5, %v336_v38  ;;  %v990_v38 = vld [vmem:[#allocation9] ss:$0 sm:$0xff] }
 0x265   :  { %v1177_v37 = vpop.eup %1176 }
 0x266   :  { %v338_v39 = vadd.f32 1.0, %v1177_v37  ;;  %v341_v42 = vmul.f32 0.5, %v337_v36  ;;  %v344_v49 = vmul.f32 %v340_v44, %v304_v7  ;;  %v1153_v44 = vld [vmem:[%s1662_s11 + $0x38] sm:$0xff]  }
 0x267   :  { %v1179_v40 = vpop.eup %1178 }
 0x268   :  { %v339_v41 = vadd.f32 1.0, %v1179_v40  ;;  %v342_v43 = vmul.f32 0.5, %v338_v39  ;;  %v345_v47 = vmul.f32 %v341_v42, %v306_v10 }
 0x26a   :  { %v343_v45 = vmul.f32 0.5, %v339_v41  ;;  %v346_v46 = vmul.f32 %v342_v43, %v308_v14  ;;  %v1136_v14 = vld [vmem:[%s1660_s9 + $0x54] ss:$8 sps:$4 sm:$0xff]  }
 0x26b   :  { %681 = vmatprep.subr.bf16.mxu0 %v1136_v14  ;;  %v1152_v43 = vld [vmem:[%s1662_s11 + $0x78] sm:$0xff]  }
 0x26c   :  { %v347_v48 = vmul.f32 %v343_v45, %v310_v19  ;;  %v380_v51 = vpack.c.bf16 %v346_v46, %v344_v49  ;;  %682 = vmatpush1.bf16.msra.mxu0 %v1134_v15  ;;  %v1140_v19 = vld [vmem:[%s1660_s9 + $0x30] ss:$8 sps:$4 sm:$0xff]   ;;  %1059 = vmatprep.subr.bf16.mxu1 %v1152_v43  ;;  %v1158_v49 = vld [vmem:[%s1662_s11 + $0x60] sm:$0xff]  }
 0x26d   :  { %683 = vmatprep.subr.bf16.mxu0 %v1139_v17  ;;  %v1154_v45 = vld [vmem:[%s1662_s11 + $0x70] sm:$0xff]  }
 0x26e   :  { %v381_v50 = vpack.c.bf16 %v347_v48, %v345_v47  ;;  %v1155_v46 = vld [vmem:[%s1662_s11 + $0x30] sm:$0xff]   ;;  %v1156_v47 = vld [vmem:[%s1662_s11 + $0x68] sm:$0xff]  }
 0x26f   :  { %v1157_v48 = vld [vmem:[%s1662_s11 + $0x28] sm:$0xff]  }
 0x270   :  { %517 = vmatprep.mubr.bf16.mxu1 %v381_v50  ;;  %684 = vmatpush1.bf16.msra.mxu0 %v1137_v16  ;;  %v1159_v50 = vld [vmem:[%s1662_s11 + $0x20] sm:$0xff]  }
 0x271   :  { %518 = vmatmul.mubr.bf16.vlgmr.msra.gmra.mxu1 %v380_v51  ;;  %685 = vmatprep.subr.bf16.mxu0 %v1142_v18  ;;  %v1160_v51 = vld [vmem:[%s1662_s11 + $0x58] sm:$0xff]  }
 0x272   :  { %1060 = vmatpush3.bf16.msra.mxu1 %v1153_v44 }
 0x273   :  { %1061 = vmatprep.subr.bf16.mxu1 %v1154_v45 }
 0x274   :  { %686 = vmatpush1.bf16.msra.mxu0 %v1140_v19 }
 0x275   :  { %687 = vmatprep.subr.bf16.mxu0 %v1145_v20 }
 0x276   :  { %1062 = vmatpush3.bf16.msra.mxu1 %v1155_v46 }
 0x277   :  { %1063 = vmatprep.subr.bf16.mxu1 %v1156_v47 }
 0x278   :  { %688 = vmatpush1.bf16.msra.mxu0 %v1143_v21 }
 0x279   :  { %689 = vmatprep.subr.bf16.mxu0 %v1148_v22 }
 0x27a   :  { %1064 = vmatpush3.bf16.msra.mxu1 %v1157_v48 }
 0x27b   :  { %1065 = vmatprep.subr.bf16.mxu1 %v1158_v49  ;;  %v1007_v49 = vld [vmem:[#allocation10] ss:$0 sm:$0xff] }
 0x27c   :  { %690 = vmatpush1.bf16.msra.mxu0 %v1146_v23 }
 0x27d   :  { %691 = vmatprep.subr.bf16.mxu0 %v1151_v24 }
 0x27e   :  { %1066 = vmatpush3.bf16.msra.mxu1 %v1159_v50 }
 0x27f   :  { %1067 = vmatprep.subr.bf16.mxu1 %v1160_v51 }
 0x280   :  { %692 = vmatpush1.bf16.msra.mxu0 %v1149_v25 }
 0x331   :  { %v1053_v52 = vpop.f32.mrf.mxu1 }
 0x333   :  { %v1054_v54 = vpop.f32.mrf.mxu1 }
 0x334   :  { %v1055_v55 = vadd.f32 %v1054_v54, %v1053_v52  ;;  %v1161_v52 = vld [vmem:[%s1662_s11 + $0x18] sm:$0xff]   ;;  %v1163_v54 = vld [vmem:[%s1662_s11 + $0x10] sm:$0xff]  }
 0x335   :  { %v1056_v56 = vpop.f32.mrf.mxu1  ;;  %1068 = vmatpush3.bf16.msra.mxu1 %v1161_v52 }
 0x336   :  { %v520_v57 = vadd.f32 %v1055_v55, %v972_v53  ;;  %v1164_v55 = vld [vmem:[%s1662_s11 + $0x48] sm:$0xff]  }
 0x337   :  { %v1057_v58 = vpop.f32.mrf.mxu1 }
 0x338   :  { %v1058_v59 = vadd.f32 %v1057_v58, %v1056_v56  ;;  %v1534_v60 = vadd.f32 %v1418_v1, %v520_v57  ;;  %v1165_v56 = vld [vmem:[%s1662_s11 + $0x8] sm:$0xff]   ;;  %v1166_v57 = vld [vmem:[%s1662_s11 + $0x40] sm:$0xff]  }
 0x339   :  { %v1167_v58 = vld [vmem:[%s1662_s11] sm:$0xff]  }
 0x33a   :  { %v523_v61 = vadd.f32 %v1058_v59, %v972_v53  ;;  %530 = vadd.xlane.f32.xlu0 %v1534_v60  ;;  %v1162_v53 = vld [vmem:[%s1662_s11 + $0x50] sm:$0xff]   ;;  %v585_v59 = vld [vmem:[%s1661_s10] sm:$0x3] }
 0x33b   :  { %1069 = vmatprep.subr.bf16.mxu1 %v1162_v53  ;;  %v594_v4 = vrot.slane %v585_v59, %v185_v3 }
 0x33c   :  { %v1538_v0 = vadd.f32 %v1421_v2, %v523_v61  ;;  %1070 = vmatpush3.bf16.msra.mxu1 %v1163_v54  ;;  %v590_v61 = vrot.slane %v585_v59, %v181_v63 }
 0x33d   :  { %1071 = vmatprep.subr.bf16.mxu1 %v1164_v55 }
 0x33e   :  { %532 = vadd.xlane.f32.xlu1 %v1538_v0 }
 0x340   :  { %1072 = vmatpush3.bf16.msra.mxu1 %v1165_v56 }
 0x341   :  { %1073 = vmatprep.subr.bf16.mxu1 %v1166_v57 }
 0x344   :  { %1074 = vmatpush3.bf16.msra.mxu1 %v1167_v58 }
 0x3c3   :  { %v531_v1 = vpop.xlane.xlu0 %530 }
 0x3c4   :  { %v534_v6 = vmul.f32 0.0078125, %v531_v1 }
 0x3c6   :  { %v536_v7 = vsub.f32 %v1534_v60, %v534_v6 }
 0x3c7   :  { %v533_v8 = vpop.xlane.xlu1 %532 }
 0x3c8   :  { %v535_v9 = vmul.f32 0.0078125, %v533_v8  ;;  %v538_v2 = vmul.f32 %v536_v7, %v536_v7 }
 0x3ca   :  { %v537_v10 = vsub.f32 %v1538_v0, %v535_v9  ;;  %540 = vadd.xlane.f32.xlu0 %v538_v2 }
 0x3cc   :  { %v539_v11 = vmul.f32 %v537_v10, %v537_v10 }
 0x3ce   :  { %542 = vadd.xlane.f32.xlu1 %v539_v11 }
 0x453   :  { %v541_v26 = vpop.xlane.xlu0 %540 }
 0x454   :  { %v544_v27 = vmul.f32 0.0078125, %v541_v26 }
 0x456   :  { %v546_v28 = vadd.f32 1e-05, %v544_v27 }
 0x457   :  { %v543_v29 = vpop.xlane.xlu1 %542 }
 0x458   :  { %1180 = vrsqrt.f32 %v546_v28  ;;  %v545_v30 = vmul.f32 0.0078125, %v543_v29 }
 0x45a   :  { %v547_v31 = vadd.f32 1e-05, %v545_v30 }
 0x45c   :  { %1182 = vrsqrt.f32 %v547_v31 }
 0x465   :  { %v1181_v32 = vpop.eup %1180 }
 0x466   :  { %v550_v33 = vmul.f32 %v1181_v32, %v536_v7 }
 0x468   :  { %v558_v37 = vmul.f32 %v989_v34, %v550_v33 }
 0x469   :  { %v1183_v35 = vpop.eup %1182 }
 0x46a   :  { %v551_v36 = vmul.f32 %v1183_v35, %v537_v10  ;;  %v566_v40 = vadd.f32 %v990_v38, %v558_v37 }
 0x46c   :  { %v559_v39 = vmul.f32 %v989_v34, %v551_v36 }
 0x46e   :  { %v567_v41 = vadd.f32 %v990_v38, %v559_v39 }
 0x470   :  { %v584_v42 = vpack.c.bf16 %v567_v41, %v566_v40 }
 0x472   :  { %710 = vmatmul.mubr.bf16.vlgmr.msra.gmra.mxu0 %v584_v42 }
 0x532   :  { %v711_v5 = vpop.f32.mrf.mxu0 }
 0x533   :  { %v712_v1 = vadd.f32 %v711_v5, %v590_v61 }
 0x534   :  { %v713_v6 = vpop.f32.mrf.mxu0 }
 0x535   :  { %v720_v7 = vmul.f32 %v712_v1, %v712_v1  ;;  %v714_v8 = vadd.f32 %v713_v6, %v594_v4 }
 0x536   :  { %v715_v9 = vpop.f32.mrf.mxu0 }
 0x537   :  { %v724_v2 = vmul.f32 %v720_v7, %v712_v1  ;;  %v721_v10 = vmul.f32 %v714_v8, %v714_v8  ;;  %v716_v11 = vadd.f32 %v715_v9, %v590_v61 }
 0x538   :  { %v717_v12 = vpop.f32.mrf.mxu0 }
 0x539   :  { %v728_v13 = vmul.f32 0.044715, %v724_v2  ;;  %v725_v14 = vmul.f32 %v721_v10, %v714_v8  ;;  %v722_v15 = vmul.f32 %v716_v11, %v716_v11  ;;  %v718_v16 = vadd.f32 %v717_v12, %v594_v4 }
 0x53b   :  { %v732_v17 = vadd.f32 %v728_v13, %v712_v1  ;;  %v729_v18 = vmul.f32 0.044715, %v725_v14  ;;  %v726_v63 = vmul.f32 %v722_v15, %v716_v11  ;;  %v723_v19 = vmul.f32 %v718_v16, %v718_v16 }
 0x53d   :  { %v736_v62 = vmul.f32 0.7978846, %v732_v17  ;;  %v733_v3 = vadd.f32 %v729_v18, %v714_v8  ;;  %v730_v20 = vmul.f32 0.044715, %v726_v63  ;;  %v727_v21 = vmul.f32 %v723_v19, %v718_v16 }
 0x53f   :  { %v737_v22 = vmul.f32 0.7978846, %v733_v3  ;;  %v734_v23 = vadd.f32 %v730_v20, %v716_v11  ;;  %v731_v24 = vmul.f32 0.044715, %v727_v21  ;;  %1184 = vtanh.f32 %v736_v62 }
 0x541   :  { %1186 = vtanh.f32 %v737_v22  ;;  %v738_v25 = vmul.f32 0.7978846, %v734_v23  ;;  %v735_v26 = vadd.f32 %v731_v24, %v718_v16 }
 0x543   :  { %1188 = vtanh.f32 %v738_v25  ;;  %v739_v27 = vmul.f32 0.7978846, %v735_v26 }
 0x545   :  { %1190 = vtanh.f32 %v739_v27 }
 0x54c   :  { %v1185_v28 = vpop.eup %1184 }
 0x54d   :  { %v744_v32 = vadd.f32 1.0, %v1185_v28 }
 0x54e   :  { %v1187_v29 = vpop.eup %1186 }
 0x54f   :  { %v745_v30 = vadd.f32 1.0, %v1187_v29  ;;  %v748_v38 = vmul.f32 0.5, %v744_v32 }
 0x550   :  { %v1189_v31 = vpop.eup %1188 }
 0x551   :  { %v746_v33 = vadd.f32 1.0, %v1189_v31  ;;  %v749_v37 = vmul.f32 0.5, %v745_v30  ;;  %v752_v43 = vmul.f32 %v748_v38, %v712_v1 }
 0x552   :  { %v1191_v34 = vpop.eup %1190 }
 0x553   :  { %v750_v35 = vmul.f32 0.5, %v746_v33  ;;  %v747_v36 = vadd.f32 1.0, %v1191_v34  ;;  %v753_v41 = vmul.f32 %v749_v37, %v714_v8 }
 0x555   :  { %v751_v39 = vmul.f32 0.5, %v747_v36  ;;  %v754_v40 = vmul.f32 %v750_v35, %v716_v11 }
 0x557   :  { %v755_v42 = vmul.f32 %v751_v39, %v718_v16  ;;  %v788_v45 = vpack.c.bf16 %v754_v40, %v752_v43 }
 0x559   :  { %v789_v44 = vpack.c.bf16 %v755_v42, %v753_v41 }
 0x55b   :  { %925 = vmatprep.mubr.bf16.mxu1 %v789_v44 }
 0x55c   :  { %926 = vmatmul.mubr.bf16.vlgmr.msra.gmra.mxu1 %v788_v45 }
 0x61c   :  { %v1075_v46 = vpop.f32.mrf.mxu1 }
 0x61e   :  { %v1076_v47 = vpop.f32.mrf.mxu1 }
 0x61f   :  { %v1077_v48 = vadd.f32 %v1076_v47, %v1075_v46 }
 0x620   :  { %v1078_v50 = vpop.f32.mrf.mxu1 }
 0x621   :  { %v928_v52 = vadd.f32 %v1077_v48, %v1007_v49 }
 0x622   :  { %v1079_v51 = vpop.f32.mrf.mxu1 }
 0x623   :  { %v1080_v53 = vadd.f32 %v1079_v51, %v1078_v50  ;;  %v934_v55 = vadd.f32 %v928_v52, %v1534_v60 }
 0x625   :  { %v931_v54 = vadd.f32 %v1080_v53, %v1007_v49 }
 0x627   :  { %v935_v56 = vadd.f32 %v931_v54, %v1538_v0 }
 0x629   :  { %v1035_v57 = vpack.c.bf16 %v935_v56, %v934_v55 }
 0x62b   :  { %1036 = vst [vmem:[%s1664_s13] sm:$0xff] %v1035_v57  }
 0x62c   :  { %950 = vsyncpa [#allocation3], 1 }
 0x62d   :  { %951 = vsyncpa [#allocation5], 1 }
 0x62e   :  { %952 = vsyncpa [#allocation8], 1 }
 0x62f   :  { %953 = vsyncpa [#allocation11], 1 }

// kernel: forward.17
= control target key start
LH: loop header
LB: loop body
LE: loop exit
PB: predicated region body
PF: predicated region fallthrough
CT: control target
= control target key end

     0   :  { %s1154_s0 = inlined_call_operand.vmem [shape: bf16[16,512], index: 0, kind: input, shape index: {}]   ;;  %s1155_s3 = inlined_call_operand.vmem [shape: bf16[512,256], index: 3, kind: input, shape index: {}]   ;;  %s1156_s1 = inlined_call_operand.vmem [shape: f32[1,512], index: 1, kind: input, shape index: {}]   ;;  %s1157_s2 = inlined_call_operand.vmem [shape: f32[1,512], index: 2, kind: input, shape index: {}]   ;;  %s1158_s4 = inlined_call_operand.vmem [shape: f32[1,256], index: 4, kind: input, shape index: {}]   ;;  %s1159_s5 = inlined_call_operand.vmem [shape: bf16[16,256], index: 5, kind: output, shape index: {}]  }
   0x1   :  { %v850_v0 = vld [vmem:[%s1154_s0] sm:$0xff]  ;;  %v855_v1 = vld [vmem:[%s1154_s0 + $0x8] sm:$0xff]  ;;  %v860_v2 = vld [vmem:[%s1154_s0 + $0x10] sm:$0xff] }
   0x2   :  { %v24_v3 = vunpack.c.l.bf16 %v850_v0  ;;  %v25_v4 = vunpack.c.h.bf16 %v850_v0  ;;  %v26_v5 = vunpack.c.l.bf16 %v855_v1  ;;  %v868_v6 = vld [vmem:[%s1154_s0 + $0x18] sm:$0xff]  ;;  %v28_v7 = vunpack.c.l.bf16 %v860_v2  ;;  %v723_v22 = vld [vmem:[%s1155_s3 + $0x64] ss:$8 sps:$4 sm:$0xff]   ;;  %v727_v24 = vld [vmem:[%s1155_s3 + $0x60] ss:$8 sps:$4 sm:$0xff]  }
   0x3   :  { %v29_v8 = vunpack.c.h.bf16 %v860_v2  ;;  %v30_v9 = vunpack.c.l.bf16 %v868_v6  ;;  %v27_v10 = vunpack.c.h.bf16 %v855_v1  ;;  %v31_v14 = vunpack.c.h.bf16 %v868_v6  ;;  %v717_v18 = vld [vmem:[%s1155_s3 + $0x74] ss:$8 sps:$4 sm:$0xff]   ;;  %v721_v20 = vld [vmem:[%s1155_s3 + $0x70] ss:$8 sps:$4 sm:$0xff]   ;;  %v725_v23 = vld [vmem:[%s1155_s3 + $0x164] ss:$8 sps:$4 sm:$0xff]  }
   0x4   :  { %v34_v11 = vadd.f32 %v25_v4, %v24_v3  ;;  %v719_v19 = vld [vmem:[%s1155_s3 + $0x174] ss:$8 sps:$4 sm:$0xff]   ;;  %545 = vmatprep.subr.bf16.mxu0 %v717_v18  ;;  %v722_v21 = vld [vmem:[%s1155_s3 + $0x170] ss:$8 sps:$4 sm:$0xff]   ;;  %v728_v25 = vld [vmem:[%s1155_s3 + $0x160] ss:$8 sps:$4 sm:$0xff]  }
   0x5   :  { %v39_v12 = vadd.f32 %v29_v8, %v28_v7  ;;  %588 = vmatprep.subr.bf16.mxu1 %v719_v19  ;;  %546 = vmatpush1.bf16.msra.mxu0 %v721_v20  ;;  %v729_v26 = vld [vmem:[%s1155_s3 + $0x54] ss:$8 sps:$4 sm:$0xff]   ;;  %v733_v28 = vld [vmem:[%s1155_s3 + $0x50] ss:$8 sps:$4 sm:$0xff]   ;;  %v735_v30 = vld [vmem:[%s1155_s3 + $0x44] ss:$8 sps:$4 sm:$0xff]  }
   0x6   :  { %v35_v13 = vadd.f32 %v34_v11, %v26_v5  ;;  %589 = vmatpush1.bf16.msra.mxu1 %v722_v21  ;;  %547 = vmatprep.subr.bf16.mxu0 %v723_v22  ;;  %v731_v27 = vld [vmem:[%s1155_s3 + $0x154] ss:$8 sps:$4 sm:$0xff]   ;;  %v734_v29 = vld [vmem:[%s1155_s3 + $0x150] ss:$8 sps:$4 sm:$0xff]   ;;  %v737_v31 = vld [vmem:[%s1155_s3 + $0x144] ss:$8 sps:$4 sm:$0xff]  }
   0x7   :  { %v40_v15 = vadd.f32 %v39_v12, %v30_v9  ;;  %590 = vmatprep.subr.bf16.mxu1 %v725_v23  ;;  %v739_v32 = vld [vmem:[%s1155_s3 + $0x40] ss:$8 sps:$4 sm:$0xff]   ;;  %v741_v34 = vld [vmem:[%s1155_s3 + $0x34] ss:$8 sps:$4 sm:$0xff]   ;;  %v745_v36 = vld [vmem:[%s1155_s3 + $0x30] ss:$8 sps:$4 sm:$0xff]  }
   0x8   :  { %v36_v16 = vadd.f32 %v35_v13, %v27_v10  ;;  %v740_v33 = vld [vmem:[%s1155_s3 + $0x140] ss:$8 sps:$4 sm:$0xff]   ;;  %v743_v35 = vld [vmem:[%s1155_s3 + $0x134] ss:$8 sps:$4 sm:$0xff]   ;;  %v746_v37 = vld [vmem:[%s1155_s3 + $0x130] ss:$8 sps:$4 sm:$0xff]  }
   0x9   :  { %v41_v17 = vadd.f32 %v40_v15, %v31_v14  ;;  %548 = vmatpush1.bf16.msra.mxu0 %v727_v24  ;;  %v747_v38 = vld [vmem:[%s1155_s3 + $0x24] ss:$8 sps:$4 sm:$0xff]   ;;  %v751_v40 = vld [vmem:[%s1155_s3 + $0x20] ss:$8 sps:$4 sm:$0xff]   ;;  %v753_v42 = vld [vmem:[%s1155_s3 + $0x14] ss:$8 sps:$4 sm:$0xff]  }
   0xa   :  { %37 = vadd.xlane.f32.xlu0 %v36_v16  ;;  %591 = vmatpush1.bf16.msra.mxu1 %v728_v25  ;;  %v749_v39 = vld [vmem:[%s1155_s3 + $0x124] ss:$8 sps:$4 sm:$0xff]   ;;  %v752_v41 = vld [vmem:[%s1155_s3 + $0x120] ss:$8 sps:$4 sm:$0xff]   ;;  %v755_v43 = vld [vmem:[%s1155_s3 + $0x114] ss:$8 sps:$4 sm:$0xff]  }
   0xb   :  { %549 = vmatprep.subr.bf16.mxu0 %v729_v26  ;;  %592 = vmatprep.subr.bf16.mxu1 %v731_v27  ;;  %v757_v44 = vld [vmem:[%s1155_s3 + $0x10] ss:$8 sps:$4 sm:$0xff]   ;;  %v759_v46 = vld [vmem:[%s1155_s3 + $0x4] ss:$8 sps:$4 sm:$0xff]   ;;  %v763_v48 = vld [vmem:[%s1155_s3] ss:$8 sps:$4 sm:$0xff]  }
   0xc   :  { %v758_v45 = vld [vmem:[%s1155_s3 + $0x110] ss:$8 sps:$4 sm:$0xff]   ;;  %v761_v47 = vld [vmem:[%s1155_s3 + $0x104] ss:$8 sps:$4 sm:$0xff]   ;;  %v764_v49 = vld [vmem:[%s1155_s3 + $0x100] ss:$8 sps:$4 sm:$0xff]  }
   0xd   :  { %550 = vmatpush1.bf16.msra.mxu0 %v733_v28  ;;  %v765_v50 = vld [vmem:[%s1155_s3 + $0xf4] ss:$8 sps:$4 sm:$0xff]   ;;  %v769_v6 = vld [vmem:[%s1155_s3 + $0xf0] ss:$8 sps:$4 sm:$0xff]   ;;  %v771_v16 = vld [vmem:[%s1155_s3 + $0xe4] ss:$8 sps:$4 sm:$0xff]  }
   0xe   :  { %42 = vadd.xlane.f32.xlu0 %v41_v17  ;;  %593 = vmatpush1.bf16.msra.mxu1 %v734_v29  ;;  %v767_v51 = vld [vmem:[%s1155_s3 + $0x1f4] ss:$8 sps:$4 sm:$0xff]   ;;  %v773_v17 = vld [vmem:[%s1155_s3 + $0x1e4] ss:$8 sps:$4 sm:$0xff]   ;;  %v775_v18 = vld [vmem:[%s1155_s3 + $0xe0] ss:$8 sps:$4 sm:$0xff]  }
   0xf   :  { %551 = vmatprep.subr.bf16.mxu0 %v735_v30  ;;  %594 = vmatprep.subr.bf16.mxu1 %v737_v31  ;;  %v776_v19 = vld [vmem:[%s1155_s3 + $0x1e0] ss:$8 sps:$4 sm:$0xff]   ;;  %v777_v20 = vld [vmem:[%s1155_s3 + $0xd4] ss:$8 sps:$4 sm:$0xff]   ;;  %v781_v22 = vld [vmem:[%s1155_s3 + $0xd0] ss:$8 sps:$4 sm:$0xff]  }
  0x10   :  { %v779_v21 = vld [vmem:[%s1155_s3 + $0x1d4] ss:$8 sps:$4 sm:$0xff]   ;;  %v782_v23 = vld [vmem:[%s1155_s3 + $0x1d0] ss:$8 sps:$4 sm:$0xff]   ;;  %v783_v24 = vld [vmem:[%s1155_s3 + $0xc4] ss:$8 sps:$4 sm:$0xff]  }
  0x11   :  { %552 = vmatpush1.bf16.msra.mxu0 %v739_v32  ;;  %v785_v25 = vld [vmem:[%s1155_s3 + $0x1c4] ss:$8 sps:$4 sm:$0xff]   ;;  %v787_v26 = vld [vmem:[%s1155_s3 + $0xc0] ss:$8 sps:$4 sm:$0xff]   ;;  %v789_v28 = vld [vmem:[%s1155_s3 + $0xb4] ss:$8 sps:$4 sm:$0xff]  }
  0x12   :  { %595 = vmatpush1.bf16.msra.mxu1 %v740_v33  ;;  %553 = vmatprep.subr.bf16.mxu0 %v741_v34  ;;  %v788_v27 = vld [vmem:[%s1155_s3 + $0x1c0] ss:$8 sps:$4 sm:$0xff]   ;;  %v791_v29 = vld [vmem:[%s1155_s3 + $0x1b4] ss:$8 sps:$4 sm:$0xff]   ;;  %v793_v30 = vld [vmem:[%s1155_s3 + $0xb0] ss:$8 sps:$4 sm:$0xff]  }
  0x13   :  { %596 = vmatprep.subr.bf16.mxu1 %v743_v35  ;;  %v794_v31 = vld [vmem:[%s1155_s3 + $0x1b0] ss:$8 sps:$4 sm:$0xff]   ;;  %v795_v32 = vld [vmem:[%s1155_s3 + $0xa4] ss:$8 sps:$4 sm:$0xff]   ;;  %v799_v34 = vld [vmem:[%s1155_s3 + $0xa0] ss:$8 sps:$4 sm:$0xff]  }
  0x14   :  { %v797_v33 = vld [vmem:[%s1155_s3 + $0x1a4] ss:$8 sps:$4 sm:$0xff]   ;;  %v800_v35 = vld [vmem:[%s1155_s3 + $0x1a0] ss:$8 sps:$4 sm:$0xff]  }
  0x15   :  { %554 = vmatpush1.bf16.msra.mxu0 %v745_v36  ;;  %v801_v36 = vld [vmem:[%s1155_s3 + $0x94] ss:$8 sps:$4 sm:$0xff]  }
  0x16   :  { %597 = vmatpush1.bf16.msra.mxu1 %v746_v37  ;;  %555 = vmatprep.subr.bf16.mxu0 %v747_v38  ;;  %v803_v37 = vld [vmem:[%s1155_s3 + $0x194] ss:$8 sps:$4 sm:$0xff]   ;;  %v805_v38 = vld [vmem:[%s1155_s3 + $0x90] ss:$8 sps:$4 sm:$0xff]  }
  0x17   :  { %598 = vmatprep.subr.bf16.mxu1 %v749_v39  ;;  %v806_v39 = vld [vmem:[%s1155_s3 + $0x190] ss:$8 sps:$4 sm:$0xff]  }
  0x19   :  { %556 = vmatpush1.bf16.msra.mxu0 %v751_v40  ;;  %v807_v40 = vld [vmem:[%s1155_s3 + $0x84] ss:$8 sps:$4 sm:$0xff]  }
  0x1a   :  { %599 = vmatpush1.bf16.msra.mxu1 %v752_v41  ;;  %557 = vmatprep.subr.bf16.mxu0 %v753_v42  ;;  %v809_v41 = vld [vmem:[%s1155_s3 + $0x184] ss:$8 sps:$4 sm:$0xff]   ;;  %v811_v42 = vld [vmem:[%s1155_s3 + $0x80] ss:$8 sps:$4 sm:$0xff]  }
  0x1b   :  { %600 = vmatprep.subr.bf16.mxu1 %v755_v43  ;;  %v812_v43 = vld [vmem:[%s1155_s3 + $0x180] ss:$8 sps:$4 sm:$0xff]  }
  0x1d   :  { %558 = vmatpush1.bf16.msra.mxu0 %v757_v44 }
  0x1e   :  { %601 = vmatpush1.bf16.msra.mxu1 %v758_v45  ;;  %559 = vmatprep.subr.bf16.mxu0 %v759_v46 }
  0x1f   :  { %602 = vmatprep.subr.bf16.mxu1 %v761_v47 }
  0x21   :  { %560 = vmatpush1.bf16.msra.mxu0 %v763_v48 }
  0x22   :  { %603 = vmatpush1.bf16.msra.mxu1 %v764_v49  ;;  %561 = vmatprep.subr.bf16.mxu0 %v765_v50  ;;  %v88_v50 = vlaneseq }
  0x23   :  { %604 = vmatprep.subr.bf16.mxu1 %v767_v51 }
  0x24   :  { %v89_v51 = vshrl.u32 %v88_v50, 7 }
  0x25   :  { %562 = vmatpush2.bf16.msra.mxu0 %v769_v6 }
  0x26   :  { %563 = vmatprep.subr.bf16.mxu0 %v771_v16 }
  0x29   :  { %564 = vmatpush2.bf16.msra.mxu0 %v775_v18 }
  0x2a   :  { %565 = vmatprep.subr.bf16.mxu0 %v777_v20 }
  0x2d   :  { %566 = vmatpush2.bf16.msra.mxu0 %v781_v22 }
  0x2e   :  { %567 = vmatprep.subr.bf16.mxu0 %v783_v24 }
  0x31   :  { %568 = vmatpush2.bf16.msra.mxu0 %v787_v26 }
  0x32   :  { %569 = vmatprep.subr.bf16.mxu0 %v789_v28 }
  0x35   :  { %570 = vmatpush2.bf16.msra.mxu0 %v793_v30 }
  0x36   :  { %571 = vmatprep.subr.bf16.mxu0 %v795_v32 }
  0x39   :  { %572 = vmatpush2.bf16.msra.mxu0 %v799_v34 }
  0x3a   :  { %573 = vmatprep.subr.bf16.mxu0 %v801_v36 }
  0x3d   :  { %574 = vmatpush2.bf16.msra.mxu0 %v805_v38 }
  0x3e   :  { %575 = vmatprep.subr.bf16.mxu0 %v807_v40 }
  0x41   :  { %576 = vmatpush2.bf16.msra.mxu0 %v811_v42 }
  0x93   :  { %v38_v52 = vpop.xlane.xlu0 %37 }
  0x94   :  { %v45_v53 = vmul.f32 0.001953125, %v38_v52  ;;  %v94_v52 = vsub.s32 1, %v89_v51 }
  0x96   :  { %v995_v54 = vsub.f32 %v24_v3, %v45_v53  ;;  %v999_v55 = vsub.f32 %v25_v4, %v45_v53  ;;  %v1003_v56 = vsub.f32 %v26_v5, %v45_v53  ;;  %v1007_v58 = vsub.f32 %v27_v10, %v45_v53 }
  0x97   :  { %v43_v57 = vpop.xlane.xlu0 %42  ;;  %v102_v53 = vsub.s32 3, %v89_v51 }
  0x98   :  { %v46_v59 = vmul.f32 0.001953125, %v43_v57  ;;  %v55_v60 = vmul.f32 %v995_v54, %v995_v54  ;;  %v56_v61 = vmul.f32 %v999_v55, %v999_v55  ;;  %v57_v62 = vmul.f32 %v1003_v56, %v1003_v56  ;;  %v32_v57 = vld [vmem:[%s1156_s1] sm:$0xf] }
  0x99   :  { %v58_v4 = vmul.f32 %v1007_v58, %v1007_v58 }
  0x9a   :  { %v1017_v63 = vsub.f32 %v28_v7, %v46_v59  ;;  %v1021_v0 = vsub.f32 %v29_v8, %v46_v59  ;;  %v63_v1 = vadd.f32 %v56_v61, %v55_v60  ;;  %v1025_v3 = vsub.f32 %v30_v9, %v46_v59 }
  0x9b   :  { %v1031_v10 = vsub.f32 %v31_v14, %v46_v59  ;;  %v770_v14 = vld [vmem:[%s1155_s3 + $0x1f0] ss:$8 sps:$4 sm:$0xff]   ;;  %v90_v59 = vsub.s32 0, %v89_v51  ;;  %v98_v60 = vsub.s32 2, %v89_v51 }
  0x9c   :  { %v64_v5 = vadd.f32 %v63_v1, %v57_v62  ;;  %v59_v7 = vmul.f32 %v1017_v63, %v1017_v63  ;;  %v60_v2 = vmul.f32 %v1021_v0, %v1021_v0  ;;  %v61_v11 = vmul.f32 %v1025_v3, %v1025_v3  ;;  %605 = vmatpush2.bf16.msra.mxu1 %v770_v14  ;;  %v33_v62 = vld [vmem:[%s1157_s2] sm:$0xf] }
  0x9d   :  { %v62_v12 = vmul.f32 %v1031_v10, %v1031_v10  ;;  %606 = vmatprep.subr.bf16.mxu1 %v773_v17  ;;  %v120_v6 = vrot.slane %v33_v62, %v90_v59  ;;  %v128_v14 = vrot.slane %v33_v62, %v98_v60 }
  0x9e   :  { %v65_v8 = vadd.f32 %v64_v5, %v58_v4  ;;  %v68_v9 = vadd.f32 %v60_v2, %v59_v7  ;;  %v95_v4 = vrot.slane %v32_v57, %v94_v52  ;;  %v103_v7 = vrot.slane %v32_v57, %v102_v53 }
  0xa0   :  { %66 = vadd.xlane.f32.xlu1 %v65_v8  ;;  %v69_v13 = vadd.f32 %v68_v9, %v61_v11  ;;  %607 = vmatpush2.bf16.msra.mxu1 %v776_v19  ;;  %v91_v8 = vrot.slane %v32_v57, %v90_v59  ;;  %v99_v9 = vrot.slane %v32_v57, %v98_v60 }
  0xa1   :  { %608 = vmatprep.subr.bf16.mxu1 %v779_v21 }
  0xa2   :  { %v70_v15 = vadd.f32 %v69_v13, %v62_v12  ;;  %v124_v13 = vrot.slane %v33_v62, %v94_v52 }
  0xa4   :  { %71 = vadd.xlane.f32.xlu1 %v70_v15  ;;  %609 = vmatpush2.bf16.msra.mxu1 %v782_v23  ;;  %v132_v15 = vrot.slane %v33_v62, %v102_v53 }
  0xa5   :  { %610 = vmatprep.subr.bf16.mxu1 %v785_v25 }
  0xa8   :  { %611 = vmatpush2.bf16.msra.mxu1 %v788_v27 }
  0xa9   :  { %612 = vmatprep.subr.bf16.mxu1 %v791_v29 }
  0xac   :  { %613 = vmatpush2.bf16.msra.mxu1 %v794_v31 }
  0xad   :  { %614 = vmatprep.subr.bf16.mxu1 %v797_v33 }
  0xb0   :  { %615 = vmatpush2.bf16.msra.mxu1 %v800_v35 }
  0xb1   :  { %616 = vmatprep.subr.bf16.mxu1 %v803_v37 }
  0xb4   :  { %617 = vmatpush2.bf16.msra.mxu1 %v806_v39 }
  0xb5   :  { %618 = vmatprep.subr.bf16.mxu1 %v809_v41 }
  0xb8   :  { %619 = vmatpush2.bf16.msra.mxu1 %v812_v43 }
 0x129   :  { %v67_v44 = vpop.xlane.xlu1 %66 }
 0x12a   :  { %v73_v45 = vmul.f32 0.001953125, %v67_v44 }
 0x12c   :  { %v75_v46 = vadd.f32 1e-05, %v73_v45 }
 0x12d   :  { %v72_v47 = vpop.xlane.xlu1 %71 }
 0x12e   :  { %813 = vrsqrt.f32 %v75_v46  ;;  %v74_v48 = vmul.f32 0.001953125, %v72_v47 }
 0x130   :  { %v76_v49 = vadd.f32 1e-05, %v74_v48 }
 0x132   :  { %815 = vrsqrt.f32 %v76_v49 }
 0x13b   :  { %v814_v61 = vpop.eup %813 }
 0x13c   :  { %v80_v1 = vmul.f32 %v814_v61, %v999_v55  ;;  %v82_v5 = vmul.f32 %v814_v61, %v1007_v58  ;;  %v79_v2 = vmul.f32 %v814_v61, %v995_v54  ;;  %v81_v11 = vmul.f32 %v814_v61, %v1003_v56 }
 0x13e   :  { %v109_v17 = vmul.f32 %v95_v4, %v80_v1  ;;  %v111_v18 = vmul.f32 %v103_v7, %v82_v5  ;;  %v108_v19 = vmul.f32 %v91_v8, %v79_v2  ;;  %v110_v20 = vmul.f32 %v99_v9, %v81_v11 }
 0x13f   :  { %v816_v12 = vpop.eup %815 }
 0x140   :  { %v84_v16 = vmul.f32 %v816_v12, %v1021_v0  ;;  %v86_v55 = vmul.f32 %v816_v12, %v1031_v10  ;;  %v83_v58 = vmul.f32 %v816_v12, %v1017_v63  ;;  %v85_v54 = vmul.f32 %v816_v12, %v1025_v3  ;;  %v213_v3 = vld [vmem:[%s1158_s4] sm:$0x3] }
 0x141   :  { %v138_v24 = vadd.f32 %v124_v13, %v109_v17  ;;  %v140_v26 = vadd.f32 %v132_v15, %v111_v18  ;;  %v137_v28 = vadd.f32 %v120_v6, %v108_v19  ;;  %v139_v29 = vadd.f32 %v128_v14, %v110_v20 }
 0x142   :  { %v113_v21 = vmul.f32 %v95_v4, %v84_v16  ;;  %v115_v56 = vmul.f32 %v103_v7, %v86_v55  ;;  %v112_v22 = vmul.f32 %v91_v8, %v83_v58  ;;  %v114_v23 = vmul.f32 %v99_v9, %v85_v54 }
 0x143   :  { %v218_v33 = vrot.slane %v213_v3, %v90_v59  ;;  %v222_v34 = vrot.slane %v213_v3, %v94_v52 }
 0x144   :  { %v142_v25 = vadd.f32 %v124_v13, %v113_v21  ;;  %v144_v27 = vadd.f32 %v132_v15, %v115_v56  ;;  %v141_v0 = vadd.f32 %v120_v6, %v112_v22  ;;  %v143_v30 = vadd.f32 %v128_v14, %v114_v23 }
 0x146   :  { %v210_v10 = vpack.c.bf16 %v142_v25, %v138_v24  ;;  %v212_v31 = vpack.c.bf16 %v144_v27, %v140_v26  ;;  %v209_v32 = vpack.c.bf16 %v141_v0, %v137_v28  ;;  %v211_v63 = vpack.c.bf16 %v143_v30, %v139_v29 }
 0x148   :  { %577 = vmatprep.mubr.bf16.mxu0 %v210_v10  ;;  %620 = vmatprep.mubr.bf16.mxu1 %v212_v31 }
 0x149   :  { %578 = vmatmul.mubr.bf16.vlgmr.msra.gmra.mxu0 %v209_v32  ;;  %621 = vmatmul.mubr.bf16.vlgmr.msra.gmra.mxu1 %v211_v63 }
 0x209   :  { %v579_v35 = vpop.f32.mrf.mxu0  ;;  %v622_v36 = vpop.f32.mrf.mxu1 }
 0x20a   :  { %v580_v37 = vadd.f32 %v579_v35, %v218_v33 }
 0x20b   :  { %v581_v38 = vpop.f32.mrf.mxu0  ;;  %v624_v39 = vpop.f32.mrf.mxu1 }
 0x20c   :  { %v582_v40 = vadd.f32 %v581_v38, %v222_v34  ;;  %v623_v43 = vadd.f32 %v622_v36, %v580_v37 }
 0x20d   :  { %v583_v41 = vpop.f32.mrf.mxu0  ;;  %v626_v42 = vpop.f32.mrf.mxu1 }
 0x20e   :  { %v625_v44 = vadd.f32 %v624_v39, %v582_v40  ;;  %v584_v45 = vadd.f32 %v583_v41, %v218_v33 }
 0x20f   :  { %v585_v46 = vpop.f32.mrf.mxu0  ;;  %v628_v49 = vpop.f32.mrf.mxu1 }
 0x210   :  { %v715_v47 = vpack.c.bf16 %v625_v44, %v623_v43  ;;  %v586_v48 = vadd.f32 %v585_v46, %v222_v34  ;;  %v627_v50 = vadd.f32 %v626_v42, %v584_v45 }
 0x212   :  { %643 = vst [vmem:[%s1159_s5] sm:$0xff] %v715_v47  ;;  %v629_v51 = vadd.f32 %v628_v49, %v586_v48 }
 0x214   :  { %v716_v52 = vpack.c.bf16 %v629_v51, %v627_v50 }
 0x216   :  { %644 = vst [vmem:[%s1159_s5 + $0x8] sm:$0xff] %v716_v52 }

// kernel: forward.19
= control target key start
LH: loop header
LB: loop body
LE: loop exit
PB: predicated region body
PF: predicated region fallthrough
CT: control target
= control target key end

     0   :  { %s520_s0 = inlined_call_operand.vmem [shape: bf16[16,256], index: 0, kind: input, shape index: {}]   ;;  %s521_s1 = inlined_call_operand.vmem [shape: bf16[128,256], index: 1, kind: input, shape index: {}]   ;;  %s522_s2 = inlined_call_operand.vmem [shape: f32[1,128], index: 2, kind: input, shape index: {}]   ;;  %s523_s3 = inlined_call_operand.vmem [shape: bf16[16,256], index: 3, kind: output, shape index: {0}]   ;;  %s524_s4 = inlined_call_operand.hbm [shape: f32[1], index: 4, kind: output, shape index: {1}]  }
   0x1   :  { %v377_v0 = vld [vmem:[%s521_s1 + $0x74] ss:$8 sps:$4 sm:$0xff]   ;;  %v379_v1 = vld [vmem:[%s521_s1 + $0x70] ss:$8 sps:$4 sm:$0xff]   ;;  %v380_v2 = vld [vmem:[%s521_s1 + $0x64] ss:$8 sps:$4 sm:$0xff]  }
   0x2   :  { %126 = vmatprep.subr.bf16.mxu0 %v377_v0  ;;  %226 = vmatprep.subr.bf16.mxu1 %v377_v0  ;;  %v382_v3 = vld [vmem:[%s521_s1 + $0x60] ss:$8 sps:$4 sm:$0xff]   ;;  %v383_v4 = vld [vmem:[%s521_s1 + $0x54] ss:$8 sps:$4 sm:$0xff]   ;;  %v385_v5 = vld [vmem:[%s521_s1 + $0x50] ss:$8 sps:$4 sm:$0xff]  }
   0x3   :  { %127 = vmatpush1.bf16.xpose.msra.mxu0 %v379_v1  ;;  %227 = vmatpush1.bf16.msra.mxu1 %v379_v1  ;;  %v386_v6 = vld [vmem:[%s521_s1 + $0x44] ss:$8 sps:$4 sm:$0xff]  }
   0x4   :  { %128 = vmatprep.subr.bf16.mxu0 %v380_v2  ;;  %228 = vmatprep.subr.bf16.mxu1 %v380_v2  ;;  %v466_v7 = vld [vmem:[%s520_s0] sm:$0xff]  ;;  %v471_v8 = vld [vmem:[%s520_s0 + $0x8] sm:$0xff] }
   0x7   :  { %229 = vmatpush1.bf16.msra.mxu1 %v382_v3 }
   0x8   :  { %230 = vmatprep.subr.bf16.mxu1 %v383_v4 }
   0xb   :  { %129 = vmatpush1.bf16.xpose.msra.mxu0 %v382_v3  ;;  %231 = vmatpush1.bf16.msra.mxu1 %v385_v5 }
   0xc   :  { %10 = vsyncpa [#allocation3], 0  ;;  %130 = vmatprep.subr.bf16.mxu0 %v383_v4  ;;  %v344_v9 = vcombine.high %v466_v7, %v471_v8  ;;  %232 = vmatprep.subr.bf16.mxu1 %v386_v6  ;;  %v388_v10 = vld [vmem:[%s521_s1 + $0x40] ss:$8 sps:$4 sm:$0xff]   ;;  %v389_v11 = vld [vmem:[%s521_s1 + $0x34] ss:$8 sps:$4 sm:$0xff]   ;;  %v343_v19 = vcombine.low %v466_v7, %v471_v8  ;;  %v178_v20 = vlaneseq  ;;  %v292_v62 = vunpack.c.l.bf16 %v466_v7 }
   0xd   :  { %v391_v12 = vld [vmem:[%s521_s1 + $0x30] ss:$8 sps:$4 sm:$0xff]   ;;  %v392_v13 = vld [vmem:[%s521_s1 + $0x24] ss:$8 sps:$4 sm:$0xff]   ;;  %v394_v14 = vld [vmem:[%s521_s1 + $0x20] ss:$8 sps:$4 sm:$0xff]   ;;  %v293_v63 = vunpack.c.h.bf16 %v466_v7  ;;  %v294_v4 = vunpack.c.l.bf16 %v471_v8 }
   0xe   :  { %158 = vmatprep.mubr.bf16.mxu0 %v344_v9  ;;  %v395_v15 = vld [vmem:[%s521_s1 + $0x14] ss:$8 sps:$4 sm:$0xff]   ;;  %v397_v16 = vld [vmem:[%s521_s1 + $0x10] ss:$8 sps:$4 sm:$0xff]   ;;  %v398_v17 = vld [vmem:[%s521_s1 + $0x4] ss:$8 sps:$4 sm:$0xff]  }
   0xf   :  { %233 = vmatpush1.bf16.msra.mxu1 %v388_v10  ;;  %v400_v18 = vld [vmem:[%s521_s1] ss:$8 sps:$4 sm:$0xff]   ;;  %v179_v21 = vand.u32 127, %v178_v20  ;;  %v413_v49 = vmov 0   ;;  %v414_v60 = vmov 1.0|1.0  }
  0x10   :  { %234 = vmatprep.subr.bf16.mxu1 %v389_v11  ;;  %v361_v23 = vld [vmem:[%s522_s2] ss:$0 sm:$0xff]  ;;  %258 = vmatprep.mubr.bf16.mxu1 %v413_v49  ;;  %v284_v61 = vshrl.u32 %v178_v20, 7  ;;  %v415_v1 = vmov 0.0   ;;  %s416_s5 = smov [#allocation2]  }
  0x11   :  { %vm180_vm0 = vcmp.lt.s32.totalorder %v179_v21, 50 }
  0x12   :  { %vm286_vm8 = vcmp.lt.s32.totalorder %v284_v61, 2 }
  0x13   :  { %131 = vmatpush1.bf16.xpose.msra.mxu0 %v385_v5  ;;  %235 = vmatpush1.bf16.msra.mxu1 %v391_v12  ;;  %v368_v2 = vsel %vm286_vm8, 1.0, %v415_v1 }
  0x14   :  { %132 = vmatprep.subr.bf16.mxu0 %v386_v6  ;;  %236 = vmatprep.subr.bf16.mxu1 %v392_v13 }
  0x17   :  { %237 = vmatpush1.bf16.msra.mxu1 %v394_v14 }
  0x18   :  { %238 = vmatprep.subr.bf16.mxu1 %v395_v15 }
  0x1b   :  { %133 = vmatpush1.bf16.xpose.msra.mxu0 %v388_v10  ;;  %239 = vmatpush1.bf16.msra.mxu1 %v397_v16 }
  0x1c   :  { %134 = vmatprep.subr.bf16.mxu0 %v389_v11  ;;  %240 = vmatprep.subr.bf16.mxu1 %v398_v17  ;;  %v295_v11 = vunpack.c.h.bf16 %v471_v8 }
  0x1f   :  { %241 = vmatpush1.bf16.msra.mxu1 %v400_v18 }
  0x23   :  { %135 = vmatpush1.bf16.xpose.msra.mxu0 %v391_v12 }
  0x24   :  { %136 = vmatprep.subr.bf16.mxu0 %v392_v13 }
  0x2b   :  { %137 = vmatpush1.bf16.xpose.msra.mxu0 %v394_v14 }
  0x2c   :  { %138 = vmatprep.subr.bf16.mxu0 %v395_v15 }
  0x33   :  { %139 = vmatpush1.bf16.xpose.msra.mxu0 %v397_v16 }
  0x34   :  { %140 = vmatprep.subr.bf16.mxu0 %v398_v17 }
  0x3b   :  { %141 = vmatpush1.bf16.xpose.msra.mxu0 %v400_v18 }
  0x42   :  { %159 = vmatmul.mubr.bf16.vlgmr.msra.gmra.mxu0 %v343_v19 }
 0x102   :  { %v160_v22 = vpop.f32.mrf.mxu0 }
 0x103   :  { %v168_v24 = vmul.f32 2.0, %v160_v22 }
 0x104   :  { %v162_v25 = vpop.f32.mrf.mxu0 }
 0x105   :  { %v176_v26 = vsub.f32 %v361_v23, %v168_v24 }
 0x106   :  { %v163_v27 = vpop.f32.mrf.mxu0 }
 0x107   :  { %v169_v28 = vmul.f32 2.0, %v163_v27  ;;  %v181_v29 = vsel %vm180_vm0, %v176_v26, 1e+30 }
 0x108   :  { %183 = vmin.xlane.f32.xlu0 %v181_v29  ;;  %v165_v30 = vpop.f32.mrf.mxu0 }
 0x109   :  { %v177_v31 = vsub.f32 %v361_v23, %v169_v28 }
 0x10b   :  { %v182_v32 = vsel %vm180_vm0, %v177_v31, 1e+30 }
 0x10c   :  { %185 = vmin.xlane.f32.xlu0 %v182_v32 }
 0x191   :  { %v184_v33 = vpop.xlane.xlu0 %183 }
 0x192   :  { %vm187_vm1 = vcmp.le.f32.partialorder %v181_v29, %v184_v33 }
 0x193   :  { %v189_v34 = vsel %vm187_vm1, %v179_v21, 128 }
 0x194   :  { %v192_v35 = vshra.s32 %v189_v34, 16  ;;  %v191_v41 = vand.u32 65535, %v189_v34 }
 0x195   :  { %v186_v36 = vpop.xlane.xlu0 %185 }
 0x196   :  { %vm188_vm2 = vcmp.le.f32.partialorder %v182_v32, %v186_v36  ;;  %v194_v37 = vcvt.s32.f32 %v192_v35  ;;  %v193_v44 = vcvt.s32.f32 %v191_v41 }
 0x197   :  { %v190_v38 = vsel %vm188_vm2, %v179_v21, 128 }
 0x198   :  { %195 = vmin.xlane.f32.xlu1 %v194_v37  ;;  %v206_v39 = vshra.s32 %v190_v38, 16  ;;  %v205_v42 = vand.u32 65535, %v190_v38 }
 0x19a   :  { %v208_v40 = vcvt.s32.f32 %v206_v39  ;;  %v207_v47 = vcvt.s32.f32 %v205_v42 }
 0x19c   :  { %209 = vmin.xlane.f32.xlu1 %v208_v40 }
 0x221   :  { %v196_v43 = vpop.xlane.xlu1 %195 }
 0x222   :  { %vm197_vm3 = vcmp.eq.f32.partialorder %v194_v37, %v196_v43  ;;  %v202_v50 = vcvt.f32.s32 %v196_v43 }
 0x223   :  { %v198_v45 = vsel %vm197_vm3, %v193_v44, inf }
 0x224   :  { %199 = vmin.xlane.f32.xlu0 %v198_v45  ;;  %v203_v54 = vshll.u32 %v202_v50, 16 }
 0x225   :  { %v210_v46 = vpop.xlane.xlu1 %209 }
 0x226   :  { %vm211_vm4 = vcmp.eq.f32.partialorder %v208_v40, %v210_v46  ;;  %v216_v52 = vcvt.f32.s32 %v210_v46 }
 0x227   :  { %v212_v48 = vsel %vm211_vm4, %v207_v47, inf }
 0x228   :  { %213 = vmin.xlane.f32.xlu1 %v212_v48  ;;  %v217_v56 = vshll.u32 %v216_v52, 16 }
 0x2ad   :  { %v200_v51 = vpop.xlane.xlu0 %199 }
 0x2ae   :  { %v201_v53 = vcvt.f32.s32 %v200_v51 }
 0x2b0   :  { %v204_v57 = vadd.s32 %v203_v54, %v201_v53 }
 0x2b1   :  { %v214_v55 = vpop.xlane.xlu1 %213 }
 0x2b2   :  { %v215_v58 = vcvt.f32.s32 %v214_v55  ;;  %vm219_vm6 = vcmp.eq.s32.totalorder %v179_v21, %v204_v57 }
 0x2b4   :  { %v218_v59 = vadd.s32 %v217_v56, %v215_v58 }
 0x2b6   :  { %vm220_vm5 = vcmp.eq.s32.totalorder %v179_v21, %v218_v59 }
 0x2b7   :  { %vm364_vm7 = vmpackc.low %vm220_vm5, %vm219_vm6 }
 0x2b8   :  { %365 = vmatmul.mubr.msk.bf16.vlgmr.msra.gmra.mxu1 %vm364_vm7, %v414_v60 }
 0x378   :  { %v260_v0 = vpop.f32.mrf.mxu1 }
 0x379   :  { %v296_v3 = vsub.f32 %v260_v0, %v292_v62 }
 0x37a   :  { %v262_v5 = vpop.f32.mrf.mxu1 }
 0x37b   :  { %v300_v6 = vmul.f32 %v368_v2, %v296_v3  ;;  %v369_v9 = vpack.c.bf16 %v262_v5, %v260_v0  ;;  %v297_v10 = vsub.f32 %v262_v5, %v293_v63 }
 0x37c   :  { %v264_v12 = vpop.f32.mrf.mxu1 }
 0x37d   :  { %281 = vst [vmem:[%s523_s3] sm:$0xff] %v369_v9  ;;  %v301_v13 = vmul.f32 %v368_v2, %v297_v10  ;;  %v298_v14 = vsub.f32 %v264_v12, %v294_v4  ;;  %v304_v7 = vmul.f32 %v300_v6, %v300_v6 }
 0x37e   :  { %v266_v15 = vpop.f32.mrf.mxu1 }
 0x37f   :  { %v305_v16 = vmul.f32 %v301_v13, %v301_v13  ;;  %v302_v17 = vmul.f32 0.0, %v298_v14  ;;  %v370_v18 = vpack.c.bf16 %v266_v15, %v264_v12  ;;  %v299_v19 = vsub.f32 %v266_v15, %v295_v11 }
 0x381   :  { %v306_v20 = vmul.f32 %v302_v17, %v302_v17  ;;  %282 = vst [vmem:[%s523_s3 + $0x8] sm:$0xff] %v370_v18  ;;  %v303_v21 = vmul.f32 0.0, %v299_v19  ;;  %v308_v8 = vadd.f32 %v305_v16, %v304_v7 }
 0x383   :  { %v307_v22 = vmul.f32 %v303_v21, %v303_v21  ;;  %v309_v23 = vadd.f32 %v308_v8, %v306_v20 }
 0x385   :  { %v310_v24 = vadd.f32 %v309_v23, %v307_v22 }
 0x387   :  { %311 = vadd.xlane.f32.xlu0 %v310_v24 }
 0x410   :  { %v312_v25 = vpop.xlane.xlu0 %311 }
 0x411   :  { %v313_v26 = vrot.slane %v312_v25, 4 }
 0x413   :  { %v314_v27 = vadd.f32 %v313_v26, %v312_v25 }
 0x415   :  { %v315_v28 = vrot.slane %v314_v27, 2 }
 0x417   :  { %v316_v29 = vadd.f32 %v315_v28, %v314_v27 }
 0x419   :  { %v317_v30 = vrot.slane %v316_v29, 1 }
 0x41b   :  { %v318_v31 = vadd.f32 %v317_v30, %v316_v29 }
 0x41d   :  { %371 = vpush %v318_v31 }
 0x44e   :  { %s372_s28 = spop %371 }
 0x44f   :  { %s322_s29 = smul.f32 0.001953125, %s372_s28 }
 0x451   :  { %s323_s30 = smul.f32 1.25, %s322_s29 }
 0x453   :  { %325 = sst [smem:[#allocation2]] %s323_s30 }
 0x454   :  { %335 = dma.smem_to_hbm %s416_s5, 16, %s524_s4, [#allocation3]  }
 0x455   :  { %411 = dma.done.wait [#allocation3], 16  }
 0x456   :  { %412 = vsyncadd [#allocation3], 4294967280 }
 0x457   :  { %341 = sfence }
 0x458   :  { %342 = vsyncpa [#allocation3], 1 }

// kernel: forward.18
= control target key start
LH: loop header
LB: loop body
LE: loop exit
PB: predicated region body
PF: predicated region fallthrough
CT: control target
= control target key end

     0   :  { %s4093_s0 = inlined_call_operand.vmem [shape: bf16[16,256], index: 0, kind: input, shape index: {}]   ;;  %s4094_s3 = inlined_call_operand.vmem [shape: bf16[256,512], index: 3, kind: input, shape index: {}]   ;;  %s4095_s5 = inlined_call_operand.vmem [shape: bf16[512,256], index: 5, kind: input, shape index: {}]   ;;  %s4096_s1 = inlined_call_operand.vmem [shape: f32[1,256], index: 1, kind: input, shape index: {}]   ;;  %s4097_s2 = inlined_call_operand.vmem [shape: f32[1,256], index: 2, kind: input, shape index: {}]   ;;  %s4098_s4 = inlined_call_operand.vmem [shape: f32[1,512], index: 4, kind: input, shape index: {}]   ;;  %s4099_s6 = inlined_call_operand.vmem [shape: f32[1,256], index: 6, kind: input, shape index: {}]   ;;  %s4100_s9 = inlined_call_operand.vmem [shape: bf16[256,512], index: 9, kind: input, shape index: {}]   ;;  %s4101_s11 = inlined_call_operand.vmem [shape: bf16[512,256], index: 11, kind: input, shape index: {}]   ;;  %s4102_s7 = inlined_call_operand.vmem [shape: f32[1,256], index: 7, kind: input, shape index: {}]   ;;  %s4103_s8 = inlined_call_operand.vmem [shape: f32[1,256], index: 8, kind: input, shape index: {}]   ;;  %s4104_s10 = inlined_call_operand.vmem [shape: f32[1,512], index: 10, kind: input, shape index: {}]   ;;  %s4105_s12 = inlined_call_operand.vmem [shape: f32[1,256], index: 12, kind: input, shape index: {}]   ;;  %s4106_s13 = inlined_call_operand.vmem [shape: bf16[16,256], index: 13, kind: output, shape index: {}]  }
   0x1   :  { %v44_v0 = vld [vmem:[%s4093_s0] sm:$0xff]  ;;  %v45_v1 = vld [vmem:[%s4093_s0 + $0x8] sm:$0xff] }
   0x2   :  { %v3069_v2 = vunpack.c.l.bf16 %v44_v0  ;;  %v3071_v3 = vunpack.c.h.bf16 %v44_v0  ;;  %v3073_v4 = vunpack.c.l.bf16 %v45_v1  ;;  %v3075_v5 = vunpack.c.h.bf16 %v45_v1  ;;  %v2569_v8 = vld [vmem:[%s4094_s3 + $0xe4] ss:$16 sps:$4 sm:$0xff]   ;;  %v2571_v9 = vld [vmem:[%s4094_s3 + $0xec] ss:$16 sps:$4 sm:$0xff]   ;;  %v2573_v10 = vld [vmem:[%s4094_s3 + $0xe0] ss:$16 sps:$4 sm:$0xff]  }
   0x3   :  { %523 = vmatprep.subr.bf16.mxu0 %v2569_v8  ;;  %v2574_v11 = vld [vmem:[%s4094_s3 + $0xe8] ss:$16 sps:$4 sm:$0xff]   ;;  %566 = vmatprep.subr.bf16.mxu1 %v2571_v9  ;;  %v2575_v12 = vld [vmem:[%s4094_s3 + $0xc4] ss:$16 sps:$4 sm:$0xff]   ;;  %v2577_v13 = vld [vmem:[%s4094_s3 + $0xcc] ss:$16 sps:$4 sm:$0xff]  }
   0x4   :  { %v52_v6 = vadd.f32 %v3071_v3, %v3069_v2  ;;  %v55_v7 = vadd.f32 %v3075_v5, %v3073_v4  ;;  %524 = vmatpush1.bf16.msra.mxu0 %v2573_v10  ;;  %567 = vmatpush1.bf16.msra.mxu1 %v2574_v11  ;;  %v2579_v14 = vld [vmem:[%s4094_s3 + $0xc0] ss:$16 sps:$4 sm:$0xff]   ;;  %v2580_v15 = vld [vmem:[%s4094_s3 + $0xc8] ss:$16 sps:$4 sm:$0xff]   ;;  %v2581_v16 = vld [vmem:[%s4094_s3 + $0xa4] ss:$16 sps:$4 sm:$0xff]  }
   0x5   :  { %525 = vmatprep.subr.bf16.mxu0 %v2575_v12  ;;  %568 = vmatprep.subr.bf16.mxu1 %v2577_v13  ;;  %v2583_v17 = vld [vmem:[%s4094_s3 + $0xac] ss:$16 sps:$4 sm:$0xff]   ;;  %v2585_v18 = vld [vmem:[%s4094_s3 + $0xa0] ss:$16 sps:$4 sm:$0xff]   ;;  %v2586_v19 = vld [vmem:[%s4094_s3 + $0xa8] ss:$16 sps:$4 sm:$0xff]  }
   0x6   :  { %53 = vadd.xlane.f32.xlu0 %v52_v6  ;;  %v2587_v20 = vld [vmem:[%s4094_s3 + $0x84] ss:$16 sps:$4 sm:$0xff]   ;;  %v2589_v21 = vld [vmem:[%s4094_s3 + $0x8c] ss:$16 sps:$4 sm:$0xff]   ;;  %v2591_v22 = vld [vmem:[%s4094_s3 + $0x80] ss:$16 sps:$4 sm:$0xff]  }
   0x7   :  { %v2592_v23 = vld [vmem:[%s4094_s3 + $0x88] ss:$16 sps:$4 sm:$0xff]   ;;  %v2593_v24 = vld [vmem:[%s4094_s3 + $0x64] ss:$16 sps:$4 sm:$0xff]   ;;  %v2595_v25 = vld [vmem:[%s4094_s3 + $0x6c] ss:$16 sps:$4 sm:$0xff]  }
   0x8   :  { %526 = vmatpush1.bf16.msra.mxu0 %v2579_v14  ;;  %569 = vmatpush1.bf16.msra.mxu1 %v2580_v15  ;;  %v2597_v26 = vld [vmem:[%s4094_s3 + $0x60] ss:$16 sps:$4 sm:$0xff]   ;;  %v2598_v27 = vld [vmem:[%s4094_s3 + $0x68] ss:$16 sps:$4 sm:$0xff]   ;;  %v2599_v28 = vld [vmem:[%s4094_s3 + $0x44] ss:$16 sps:$4 sm:$0xff]  }
   0x9   :  { %527 = vmatprep.subr.bf16.mxu0 %v2581_v16  ;;  %570 = vmatprep.subr.bf16.mxu1 %v2583_v17  ;;  %v2601_v29 = vld [vmem:[%s4094_s3 + $0x4c] ss:$16 sps:$4 sm:$0xff]   ;;  %v2603_v30 = vld [vmem:[%s4094_s3 + $0x40] ss:$16 sps:$4 sm:$0xff]   ;;  %v2604_v31 = vld [vmem:[%s4094_s3 + $0x48] ss:$16 sps:$4 sm:$0xff]  }
   0xa   :  { %56 = vadd.xlane.f32.xlu0 %v55_v7  ;;  %v2605_v32 = vld [vmem:[%s4094_s3 + $0x24] ss:$16 sps:$4 sm:$0xff]   ;;  %v2607_v33 = vld [vmem:[%s4094_s3 + $0x2c] ss:$16 sps:$4 sm:$0xff]   ;;  %v2609_v34 = vld [vmem:[%s4094_s3 + $0x20] ss:$16 sps:$4 sm:$0xff]  }
   0xb   :  { %v2610_v35 = vld [vmem:[%s4094_s3 + $0x28] ss:$16 sps:$4 sm:$0xff]   ;;  %v2611_v36 = vld [vmem:[%s4094_s3 + $0x4] ss:$16 sps:$4 sm:$0xff]   ;;  %v2613_v37 = vld [vmem:[%s4094_s3 + $0xc] ss:$16 sps:$4 sm:$0xff]  }
   0xc   :  { %528 = vmatpush1.bf16.msra.mxu0 %v2585_v18  ;;  %571 = vmatpush1.bf16.msra.mxu1 %v2586_v19  ;;  %v2615_v38 = vld [vmem:[%s4094_s3] ss:$16 sps:$4 sm:$0xff]   ;;  %v2616_v39 = vld [vmem:[%s4094_s3 + $0x8] ss:$16 sps:$4 sm:$0xff]   ;;  %v2617_v40 = vld [vmem:[%s4094_s3 + $0x1e4] ss:$16 sps:$4 sm:$0xff]  }
   0xd   :  { %529 = vmatprep.subr.bf16.mxu0 %v2587_v20  ;;  %572 = vmatprep.subr.bf16.mxu1 %v2589_v21  ;;  %v2619_v41 = vld [vmem:[%s4094_s3 + $0x1ec] ss:$16 sps:$4 sm:$0xff]   ;;  %v2621_v56 = vld [vmem:[%s4094_s3 + $0x1e0] ss:$16 sps:$4 sm:$0xff]   ;;  %v2622_v57 = vld [vmem:[%s4094_s3 + $0x1e8] ss:$16 sps:$4 sm:$0xff]  }
   0xe   :  { %v2623_v58 = vld [vmem:[%s4094_s3 + $0x1c4] ss:$16 sps:$4 sm:$0xff]   ;;  %v2625_v59 = vld [vmem:[%s4094_s3 + $0x1cc] ss:$16 sps:$4 sm:$0xff]   ;;  %v2627_v60 = vld [vmem:[%s4094_s3 + $0x1c0] ss:$16 sps:$4 sm:$0xff]  }
   0xf   :  { %v2628_v61 = vld [vmem:[%s4094_s3 + $0x1c8] ss:$16 sps:$4 sm:$0xff]   ;;  %v2629_v62 = vld [vmem:[%s4094_s3 + $0x1a4] ss:$16 sps:$4 sm:$0xff]   ;;  %v2631_v63 = vld [vmem:[%s4094_s3 + $0x1ac] ss:$16 sps:$4 sm:$0xff]  }
  0x10   :  { %530 = vmatpush1.bf16.msra.mxu0 %v2591_v22  ;;  %573 = vmatpush1.bf16.msra.mxu1 %v2592_v23  ;;  %v2633_v0 = vld [vmem:[%s4094_s3 + $0x1a0] ss:$16 sps:$4 sm:$0xff]   ;;  %v2634_v1 = vld [vmem:[%s4094_s3 + $0x1a8] ss:$16 sps:$4 sm:$0xff]   ;;  %v2635_v6 = vld [vmem:[%s4094_s3 + $0x184] ss:$16 sps:$4 sm:$0xff]  }
  0x11   :  { %531 = vmatprep.subr.bf16.mxu0 %v2593_v24  ;;  %574 = vmatprep.subr.bf16.mxu1 %v2595_v25  ;;  %v2637_v7 = vld [vmem:[%s4094_s3 + $0x18c] ss:$16 sps:$4 sm:$0xff]   ;;  %v2639_v8 = vld [vmem:[%s4094_s3 + $0x180] ss:$16 sps:$4 sm:$0xff]   ;;  %v2640_v9 = vld [vmem:[%s4094_s3 + $0x188] ss:$16 sps:$4 sm:$0xff]  }
  0x12   :  { %v2641_v10 = vld [vmem:[%s4094_s3 + $0x164] ss:$16 sps:$4 sm:$0xff]   ;;  %v2643_v11 = vld [vmem:[%s4094_s3 + $0x16c] ss:$16 sps:$4 sm:$0xff]   ;;  %v2645_v12 = vld [vmem:[%s4094_s3 + $0x160] ss:$16 sps:$4 sm:$0xff]  }
  0x13   :  { %v2646_v13 = vld [vmem:[%s4094_s3 + $0x168] ss:$16 sps:$4 sm:$0xff]   ;;  %v2647_v14 = vld [vmem:[%s4094_s3 + $0x144] ss:$16 sps:$4 sm:$0xff]   ;;  %v2649_v15 = vld [vmem:[%s4094_s3 + $0x14c] ss:$16 sps:$4 sm:$0xff]  }
  0x14   :  { %532 = vmatpush1.bf16.msra.mxu0 %v2597_v26  ;;  %575 = vmatpush1.bf16.msra.mxu1 %v2598_v27  ;;  %v2651_v16 = vld [vmem:[%s4094_s3 + $0x140] ss:$16 sps:$4 sm:$0xff]   ;;  %v2652_v17 = vld [vmem:[%s4094_s3 + $0x148] ss:$16 sps:$4 sm:$0xff]   ;;  %v2653_v18 = vld [vmem:[%s4094_s3 + $0x124] ss:$16 sps:$4 sm:$0xff]  }
  0x15   :  { %533 = vmatprep.subr.bf16.mxu0 %v2599_v28  ;;  %576 = vmatprep.subr.bf16.mxu1 %v2601_v29  ;;  %v2655_v19 = vld [vmem:[%s4094_s3 + $0x12c] ss:$16 sps:$4 sm:$0xff]   ;;  %v2657_v20 = vld [vmem:[%s4094_s3 + $0x120] ss:$16 sps:$4 sm:$0xff]   ;;  %v2658_v21 = vld [vmem:[%s4094_s3 + $0x128] ss:$16 sps:$4 sm:$0xff]  }
  0x16   :  { %v2659_v22 = vld [vmem:[%s4094_s3 + $0x104] ss:$16 sps:$4 sm:$0xff]   ;;  %v2661_v23 = vld [vmem:[%s4094_s3 + $0x10c] ss:$16 sps:$4 sm:$0xff]   ;;  %v2663_v24 = vld [vmem:[%s4094_s3 + $0x100] ss:$16 sps:$4 sm:$0xff]  }
  0x17   :  { %v2664_v25 = vld [vmem:[%s4094_s3 + $0x108] ss:$16 sps:$4 sm:$0xff]   ;;  %v2667_v26 = vld [vmem:[%s4095_s5 + $0x74] ss:$8 sps:$4 sm:$0xff]  }
  0x18   :  { %534 = vmatpush1.bf16.msra.mxu0 %v2603_v30  ;;  %577 = vmatpush1.bf16.msra.mxu1 %v2604_v31  ;;  %v2670_v27 = vld [vmem:[%s4095_s5 + $0x174] ss:$8 sps:$4 sm:$0xff]  }
  0x19   :  { %535 = vmatprep.subr.bf16.mxu0 %v2605_v32  ;;  %578 = vmatprep.subr.bf16.mxu1 %v2607_v33 }
  0x1c   :  { %536 = vmatpush1.bf16.msra.mxu0 %v2609_v34  ;;  %579 = vmatpush1.bf16.msra.mxu1 %v2610_v35  ;;  %v86_v34 = vlaneseq }
  0x1d   :  { %537 = vmatprep.subr.bf16.mxu0 %v2611_v36  ;;  %580 = vmatprep.subr.bf16.mxu1 %v2613_v37 }
  0x1e   :  { %v3299_v35 = vshrl.u32 %v86_v34, 7  ;;  %v2721_v34 = vld [vmem:[%s4095_s5 + $0xe4] ss:$8 sps:$4 sm:$0xff]  }
  0x20   :  { %538 = vmatpush1.bf16.msra.mxu0 %v2615_v38  ;;  %581 = vmatpush1.bf16.msra.mxu1 %v2616_v39  ;;  %v3302_v36 = vsub.s32 0, %v3299_v35  ;;  %v3305_v37 = vsub.s32 1, %v3299_v35  ;;  %v50_v38 = vld [vmem:[%s4096_s1] sm:$0x3] }
  0x21   :  { %539 = vmatprep.subr.bf16.mxu0 %v2617_v40  ;;  %582 = vmatprep.subr.bf16.mxu1 %v2619_v41  ;;  %v51_v40 = vld [vmem:[%s4097_s2] sm:$0x3] }
  0x24   :  { %540 = vmatpush2.bf16.msra.mxu0 %v2621_v56  ;;  %583 = vmatpush2.bf16.msra.mxu1 %v2622_v57 }
  0x25   :  { %541 = vmatprep.subr.bf16.mxu0 %v2623_v58  ;;  %584 = vmatprep.subr.bf16.mxu1 %v2625_v59 }
  0x28   :  { %542 = vmatpush2.bf16.msra.mxu0 %v2627_v60  ;;  %585 = vmatpush2.bf16.msra.mxu1 %v2628_v61 }
  0x29   :  { %543 = vmatprep.subr.bf16.mxu0 %v2629_v62  ;;  %586 = vmatprep.subr.bf16.mxu1 %v2631_v63  ;;  %v2676_v63 = vld [vmem:[%s4095_s5 + $0x164] ss:$8 sps:$4 sm:$0xff]  }
  0x2c   :  { %544 = vmatpush2.bf16.msra.mxu0 %v2633_v0  ;;  %587 = vmatpush2.bf16.msra.mxu1 %v2634_v1  ;;  %v2671_v0 = vld [vmem:[%s4095_s5 + $0x60] ss:$8 sps:$4 sm:$0xff]  }
  0x2d   :  { %545 = vmatprep.subr.bf16.mxu0 %v2635_v6  ;;  %588 = vmatprep.subr.bf16.mxu1 %v2637_v7  ;;  %v2674_v1 = vld [vmem:[%s4095_s5 + $0x160] ss:$8 sps:$4 sm:$0xff]   ;;  %v2679_v6 = vld [vmem:[%s4095_s5 + $0x54] ss:$8 sps:$4 sm:$0xff]  }
  0x2e   :  { %v2682_v7 = vld [vmem:[%s4095_s5 + $0x154] ss:$8 sps:$4 sm:$0xff]  }
  0x30   :  { %546 = vmatpush2.bf16.msra.mxu0 %v2639_v8  ;;  %589 = vmatpush2.bf16.msra.mxu1 %v2640_v9  ;;  %v2677_v8 = vld [vmem:[%s4095_s5 + $0x50] ss:$8 sps:$4 sm:$0xff]  }
  0x31   :  { %547 = vmatprep.subr.bf16.mxu0 %v2641_v10  ;;  %590 = vmatprep.subr.bf16.mxu1 %v2643_v11  ;;  %v2680_v9 = vld [vmem:[%s4095_s5 + $0x150] ss:$8 sps:$4 sm:$0xff]   ;;  %v2685_v10 = vld [vmem:[%s4095_s5 + $0x44] ss:$8 sps:$4 sm:$0xff]  }
  0x32   :  { %v2688_v11 = vld [vmem:[%s4095_s5 + $0x144] ss:$8 sps:$4 sm:$0xff]  }
  0x34   :  { %548 = vmatpush2.bf16.msra.mxu0 %v2645_v12  ;;  %591 = vmatpush2.bf16.msra.mxu1 %v2646_v13  ;;  %v2683_v12 = vld [vmem:[%s4095_s5 + $0x40] ss:$8 sps:$4 sm:$0xff]  }
  0x35   :  { %549 = vmatprep.subr.bf16.mxu0 %v2647_v14  ;;  %592 = vmatprep.subr.bf16.mxu1 %v2649_v15  ;;  %v2686_v13 = vld [vmem:[%s4095_s5 + $0x140] ss:$8 sps:$4 sm:$0xff]   ;;  %v2691_v14 = vld [vmem:[%s4095_s5 + $0x34] ss:$8 sps:$4 sm:$0xff]  }
  0x36   :  { %v2694_v15 = vld [vmem:[%s4095_s5 + $0x134] ss:$8 sps:$4 sm:$0xff]  }
  0x38   :  { %550 = vmatpush2.bf16.msra.mxu0 %v2651_v16  ;;  %593 = vmatpush2.bf16.msra.mxu1 %v2652_v17  ;;  %v2689_v16 = vld [vmem:[%s4095_s5 + $0x30] ss:$8 sps:$4 sm:$0xff]  }
  0x39   :  { %551 = vmatprep.subr.bf16.mxu0 %v2653_v18  ;;  %594 = vmatprep.subr.bf16.mxu1 %v2655_v19  ;;  %v2692_v17 = vld [vmem:[%s4095_s5 + $0x130] ss:$8 sps:$4 sm:$0xff]   ;;  %v2697_v18 = vld [vmem:[%s4095_s5 + $0x24] ss:$8 sps:$4 sm:$0xff]  }
  0x3a   :  { %v2700_v19 = vld [vmem:[%s4095_s5 + $0x124] ss:$8 sps:$4 sm:$0xff]  }
  0x3c   :  { %552 = vmatpush2.bf16.msra.mxu0 %v2657_v20  ;;  %595 = vmatpush2.bf16.msra.mxu1 %v2658_v21  ;;  %v2695_v20 = vld [vmem:[%s4095_s5 + $0x20] ss:$8 sps:$4 sm:$0xff]  }
  0x3d   :  { %553 = vmatprep.subr.bf16.mxu0 %v2659_v22  ;;  %596 = vmatprep.subr.bf16.mxu1 %v2661_v23  ;;  %v2698_v21 = vld [vmem:[%s4095_s5 + $0x120] ss:$8 sps:$4 sm:$0xff]   ;;  %v2703_v22 = vld [vmem:[%s4095_s5 + $0x14] ss:$8 sps:$4 sm:$0xff]  }
  0x3e   :  { %v2706_v23 = vld [vmem:[%s4095_s5 + $0x114] ss:$8 sps:$4 sm:$0xff]  }
  0x40   :  { %554 = vmatpush2.bf16.msra.mxu0 %v2663_v24  ;;  %597 = vmatpush2.bf16.msra.mxu1 %v2664_v25  ;;  %v2701_v24 = vld [vmem:[%s4095_s5 + $0x10] ss:$8 sps:$4 sm:$0xff]  }
  0x41   :  { %1081 = vmatprep.subr.bf16.mxu0 %v2667_v26  ;;  %1124 = vmatprep.subr.bf16.mxu1 %v2670_v27  ;;  %v2704_v25 = vld [vmem:[%s4095_s5 + $0x110] ss:$8 sps:$4 sm:$0xff]   ;;  %v2709_v26 = vld [vmem:[%s4095_s5 + $0x4] ss:$8 sps:$4 sm:$0xff]  }
  0x42   :  { %v2712_v27 = vld [vmem:[%s4095_s5 + $0x104] ss:$8 sps:$4 sm:$0xff]  }
  0x8f   :  { %v54_v42 = vpop.xlane.xlu0 %53 }
  0x90   :  { %v59_v43 = vmul.f32 0.00390625, %v54_v42  ;;  %v89_v42 = vrot.slane %v50_v38, %v3302_v36 }
  0x92   :  { %v3184_v44 = vsub.f32 %v3069_v2, %v59_v43  ;;  %v3187_v45 = vsub.f32 %v3071_v3, %v59_v43  ;;  %v93_v43 = vrot.slane %v50_v38, %v3305_v37  ;;  %v2724_v38 = vld [vmem:[%s4095_s5 + $0x1e4] ss:$8 sps:$4 sm:$0xff]  }
  0x93   :  { %v57_v46 = vpop.xlane.xlu0 %56 }
  0x94   :  { %v60_v47 = vmul.f32 0.00390625, %v57_v46  ;;  %v65_v48 = vmul.f32 %v3184_v44, %v3184_v44  ;;  %v66_v49 = vmul.f32 %v3187_v45, %v3187_v45 }
  0x96   :  { %v3194_v50 = vsub.f32 %v3073_v4, %v60_v47  ;;  %v3197_v51 = vsub.f32 %v3075_v5, %v60_v47  ;;  %v69_v52 = vadd.f32 %v66_v49, %v65_v48  ;;  %v104_v48 = vrot.slane %v51_v40, %v3302_v36 }
  0x97   :  { %v108_v49 = vrot.slane %v51_v40, %v3305_v37  ;;  %v2722_v40 = vld [vmem:[%s4095_s5 + $0x1e0] ss:$8 sps:$4 sm:$0xff]  }
  0x98   :  { %70 = vadd.xlane.f32.xlu1 %v69_v52  ;;  %v67_v53 = vmul.f32 %v3194_v50, %v3194_v50  ;;  %v68_v54 = vmul.f32 %v3197_v51, %v3197_v51 }
  0x9a   :  { %v72_v55 = vadd.f32 %v68_v54, %v67_v53 }
  0x9c   :  { %73 = vadd.xlane.f32.xlu1 %v72_v55 }
 0x121   :  { %v71_v28 = vpop.xlane.xlu1 %70 }
 0x122   :  { %v75_v29 = vmul.f32 0.00390625, %v71_v28  ;;  %v2707_v28 = vld [vmem:[%s4095_s5] ss:$8 sps:$4 sm:$0xff]  }
 0x124   :  { %v77_v30 = vadd.f32 1e-05, %v75_v29  ;;  %v2710_v29 = vld [vmem:[%s4095_s5 + $0x100] ss:$8 sps:$4 sm:$0xff]  }
 0x125   :  { %v74_v31 = vpop.xlane.xlu1 %73 }
 0x126   :  { %2953 = vrsqrt.f32 %v77_v30  ;;  %v76_v32 = vmul.f32 0.00390625, %v74_v31  ;;  %v2715_v30 = vld [vmem:[%s4095_s5 + $0xf4] ss:$8 sps:$4 sm:$0xff]  }
 0x127   :  { %v2718_v31 = vld [vmem:[%s4095_s5 + $0x1f4] ss:$8 sps:$4 sm:$0xff]  }
 0x128   :  { %v78_v33 = vadd.f32 1e-05, %v76_v32  ;;  %v2713_v32 = vld [vmem:[%s4095_s5 + $0xf0] ss:$8 sps:$4 sm:$0xff]  }
 0x12a   :  { %2955 = vrsqrt.f32 %v78_v33  ;;  %v2716_v33 = vld [vmem:[%s4095_s5 + $0x1f0] ss:$8 sps:$4 sm:$0xff]  }
 0x133   :  { %v2954_v39 = vpop.eup %2953 }
 0x134   :  { %v82_v41 = vmul.f32 %v2954_v39, %v3187_v45  ;;  %v81_v46 = vmul.f32 %v2954_v39, %v3184_v44  ;;  %v2665_v44 = vld [vmem:[%s4095_s5 + $0x70] ss:$8 sps:$4 sm:$0xff]   ;;  %v2719_v39 = vld [vmem:[%s4095_s5 + $0xe0] ss:$8 sps:$4 sm:$0xff]  }
 0x136   :  { %v97_v53 = vmul.f32 %v93_v43, %v82_v41  ;;  %v96_v55 = vmul.f32 %v89_v42, %v81_v46  ;;  %v2727_v41 = vld [vmem:[%s4095_s5 + $0xd4] ss:$8 sps:$4 sm:$0xff]   ;;  %v2728_v46 = vld [vmem:[%s4095_s5 + $0x1d0] ss:$8 sps:$4 sm:$0xff]  }
 0x137   :  { %v2956_v47 = vpop.eup %2955 }
 0x138   :  { %v84_v52 = vmul.f32 %v2956_v47, %v3197_v51  ;;  %v83_v54 = vmul.f32 %v2956_v47, %v3194_v50  ;;  %v112_v45 = vadd.f32 %v108_v49, %v97_v53  ;;  %v111_v59 = vadd.f32 %v104_v48, %v96_v55  ;;  %v2668_v51 = vld [vmem:[%s4095_s5 + $0x170] ss:$8 sps:$4 sm:$0xff]   ;;  %v2673_v50 = vld [vmem:[%s4095_s5 + $0x64] ss:$8 sps:$4 sm:$0xff]   ;;  %v2739_v53 = vld [vmem:[%s4095_s5 + $0xb4] ss:$8 sps:$4 sm:$0xff]  }
 0x139   :  { %v2733_v47 = vld [vmem:[%s4095_s5 + $0xc4] ss:$8 sps:$4 sm:$0xff]   ;;  %v2737_v55 = vld [vmem:[%s4095_s5 + $0xb0] ss:$8 sps:$4 sm:$0xff]  }
 0x13a   :  { %v99_v56 = vmul.f32 %v93_v43, %v84_v52  ;;  %v98_v57 = vmul.f32 %v89_v42, %v83_v54  ;;  %v2730_v42 = vld [vmem:[%s4095_s5 + $0x1d4] ss:$8 sps:$4 sm:$0xff]   ;;  %v2725_v43 = vld [vmem:[%s4095_s5 + $0xd0] ss:$8 sps:$4 sm:$0xff]   ;;  %v2734_v52 = vld [vmem:[%s4095_s5 + $0x1c0] ss:$8 sps:$4 sm:$0xff]  }
 0x13b   :  { %v2742_v54 = vld [vmem:[%s4095_s5 + $0x1b4] ss:$8 sps:$4 sm:$0xff]  }
 0x13c   :  { %v114_v58 = vadd.f32 %v108_v49, %v99_v56  ;;  %v113_v60 = vadd.f32 %v104_v48, %v98_v57  ;;  %v2736_v48 = vld [vmem:[%s4095_s5 + $0x1c4] ss:$8 sps:$4 sm:$0xff]   ;;  %v2731_v49 = vld [vmem:[%s4095_s5 + $0xc0] ss:$8 sps:$4 sm:$0xff]   ;;  %v2740_v56 = vld [vmem:[%s4095_s5 + $0x1b0] ss:$8 sps:$4 sm:$0xff]  }
 0x13d   :  { %v2745_v57 = vld [vmem:[%s4095_s5 + $0xa4] ss:$8 sps:$4 sm:$0xff]  }
 0x13e   :  { %v180_v61 = vpack.c.bf16 %v114_v58, %v112_v45  ;;  %v179_v62 = vpack.c.bf16 %v113_v60, %v111_v59  ;;  %v2748_v45 = vld [vmem:[%s4095_s5 + $0x1a4] ss:$8 sps:$4 sm:$0xff]   ;;  %v2743_v58 = vld [vmem:[%s4095_s5 + $0xa0] ss:$8 sps:$4 sm:$0xff]   ;;  %v2751_v60 = vld [vmem:[%s4095_s5 + $0x94] ss:$8 sps:$4 sm:$0xff]  }
 0x13f   :  { %v2746_v59 = vld [vmem:[%s4095_s5 + $0x1a0] ss:$8 sps:$4 sm:$0xff]  }
 0x140   :  { %555 = vmatprep.mubr.bf16.mxu0 %v180_v61  ;;  %598 = vmatprep.mubr.bf16.mxu1 %v180_v61  ;;  %v2754_v61 = vld [vmem:[%s4095_s5 + $0x194] ss:$8 sps:$4 sm:$0xff]  }
 0x141   :  { %556 = vmatmul.mubr.bf16.vlgmr.msra.gmra.mxu0 %v179_v62  ;;  %599 = vmatmul.mubr.bf16.vlgmr.msra.gmra.mxu1 %v179_v62  ;;  %v2749_v62 = vld [vmem:[%s4095_s5 + $0x90] ss:$8 sps:$4 sm:$0xff]  }
 0x142   :  { %1082 = vmatpush1.bf16.msra.mxu0 %v2665_v44  ;;  %1125 = vmatpush1.bf16.msra.mxu1 %v2668_v51  ;;  %v2752_v44 = vld [vmem:[%s4095_s5 + $0x190] ss:$8 sps:$4 sm:$0xff]   ;;  %v2755_v51 = vld [vmem:[%s4095_s5 + $0x80] ss:$8 sps:$4 sm:$0xff]  }
 0x143   :  { %1083 = vmatprep.subr.bf16.mxu0 %v2673_v50  ;;  %1126 = vmatprep.subr.bf16.mxu1 %v2676_v63  ;;  %v2757_v50 = vld [vmem:[%s4095_s5 + $0x84] ss:$8 sps:$4 sm:$0xff]   ;;  %v2758_v63 = vld [vmem:[%s4095_s5 + $0x180] ss:$8 sps:$4 sm:$0xff]  }
 0x146   :  { %1084 = vmatpush1.bf16.msra.mxu0 %v2671_v0  ;;  %1127 = vmatpush1.bf16.msra.mxu1 %v2674_v1  ;;  %v2760_v0 = vld [vmem:[%s4095_s5 + $0x184] ss:$8 sps:$4 sm:$0xff]   ;;  %v193_v1 = vsub.s32 2, %v3299_v35 }
 0x147   :  { %1085 = vmatprep.subr.bf16.mxu0 %v2679_v6  ;;  %1128 = vmatprep.subr.bf16.mxu1 %v2682_v7  ;;  %v181_v6 = vld [vmem:[%s4098_s4] sm:$0xf]  ;;  %v197_v7 = vsub.s32 3, %v3299_v35 }
 0x14a   :  { %1086 = vmatpush1.bf16.msra.mxu0 %v2677_v8  ;;  %1129 = vmatpush1.bf16.msra.mxu1 %v2680_v9  ;;  %v186_v8 = vrot.slane %v181_v6, %v3302_v36  ;;  %v194_v9 = vrot.slane %v181_v6, %v193_v1 }
 0x14b   :  { %1087 = vmatprep.subr.bf16.mxu0 %v2685_v10  ;;  %1130 = vmatprep.subr.bf16.mxu1 %v2688_v11  ;;  %v190_v10 = vrot.slane %v181_v6, %v3305_v37  ;;  %v198_v11 = vrot.slane %v181_v6, %v197_v7 }
 0x14e   :  { %1088 = vmatpush1.bf16.msra.mxu0 %v2683_v12  ;;  %1131 = vmatpush1.bf16.msra.mxu1 %v2686_v13 }
 0x14f   :  { %1089 = vmatprep.subr.bf16.mxu0 %v2691_v14  ;;  %1132 = vmatprep.subr.bf16.mxu1 %v2694_v15 }
 0x152   :  { %1090 = vmatpush1.bf16.msra.mxu0 %v2689_v16  ;;  %1133 = vmatpush1.bf16.msra.mxu1 %v2692_v17 }
 0x153   :  { %1091 = vmatprep.subr.bf16.mxu0 %v2697_v18  ;;  %1134 = vmatprep.subr.bf16.mxu1 %v2700_v19 }
 0x156   :  { %1092 = vmatpush1.bf16.msra.mxu0 %v2695_v20  ;;  %1135 = vmatpush1.bf16.msra.mxu1 %v2698_v21 }
 0x157   :  { %1093 = vmatprep.subr.bf16.mxu0 %v2703_v22  ;;  %1136 = vmatprep.subr.bf16.mxu1 %v2706_v23 }
 0x15a   :  { %1094 = vmatpush1.bf16.msra.mxu0 %v2701_v24  ;;  %1137 = vmatpush1.bf16.msra.mxu1 %v2704_v25 }
 0x15b   :  { %1095 = vmatprep.subr.bf16.mxu0 %v2709_v26  ;;  %1138 = vmatprep.subr.bf16.mxu1 %v2712_v27 }
 0x15e   :  { %1096 = vmatpush1.bf16.msra.mxu0 %v2707_v28  ;;  %1139 = vmatpush1.bf16.msra.mxu1 %v2710_v29 }
 0x15f   :  { %1097 = vmatprep.subr.bf16.mxu0 %v2715_v30  ;;  %1140 = vmatprep.subr.bf16.mxu1 %v2718_v31 }
 0x162   :  { %1098 = vmatpush2.bf16.msra.mxu0 %v2713_v32  ;;  %1141 = vmatpush2.bf16.msra.mxu1 %v2716_v33 }
 0x163   :  { %1099 = vmatprep.subr.bf16.mxu0 %v2721_v34  ;;  %1142 = vmatprep.subr.bf16.mxu1 %v2724_v38 }
 0x166   :  { %1100 = vmatpush2.bf16.msra.mxu0 %v2719_v39  ;;  %1143 = vmatpush2.bf16.msra.mxu1 %v2722_v40 }
 0x167   :  { %1101 = vmatprep.subr.bf16.mxu0 %v2727_v41  ;;  %1144 = vmatprep.subr.bf16.mxu1 %v2730_v42 }
 0x16a   :  { %1102 = vmatpush2.bf16.msra.mxu0 %v2725_v43  ;;  %1145 = vmatpush2.bf16.msra.mxu1 %v2728_v46 }
 0x16b   :  { %1103 = vmatprep.subr.bf16.mxu0 %v2733_v47  ;;  %1146 = vmatprep.subr.bf16.mxu1 %v2736_v48 }
 0x16e   :  { %1104 = vmatpush2.bf16.msra.mxu0 %v2731_v49  ;;  %1147 = vmatpush2.bf16.msra.mxu1 %v2734_v52 }
 0x16f   :  { %1105 = vmatprep.subr.bf16.mxu0 %v2739_v53  ;;  %1148 = vmatprep.subr.bf16.mxu1 %v2742_v54 }
 0x172   :  { %1106 = vmatpush2.bf16.msra.mxu0 %v2737_v55  ;;  %1149 = vmatpush2.bf16.msra.mxu1 %v2740_v56 }
 0x173   :  { %1107 = vmatprep.subr.bf16.mxu0 %v2745_v57  ;;  %1150 = vmatprep.subr.bf16.mxu1 %v2748_v45 }
 0x176   :  { %1108 = vmatpush2.bf16.msra.mxu0 %v2743_v58  ;;  %1151 = vmatpush2.bf16.msra.mxu1 %v2746_v59 }
 0x177   :  { %1109 = vmatprep.subr.bf16.mxu0 %v2751_v60  ;;  %1152 = vmatprep.subr.bf16.mxu1 %v2754_v61 }
 0x17a   :  { %1110 = vmatpush2.bf16.msra.mxu0 %v2749_v62  ;;  %1153 = vmatpush2.bf16.msra.mxu1 %v2752_v44 }
 0x17b   :  { %1111 = vmatprep.subr.bf16.mxu0 %v2757_v50  ;;  %1154 = vmatprep.subr.bf16.mxu1 %v2760_v0 }
 0x17e   :  { %1112 = vmatpush2.bf16.msra.mxu0 %v2755_v51  ;;  %1155 = vmatpush2.bf16.msra.mxu1 %v2758_v63 }
 0x201   :  { %v557_v12 = vpop.f32.mrf.mxu0  ;;  %v600_v13 = vpop.f32.mrf.mxu1 }
 0x202   :  { %v3518_v14 = vadd.f32 %v557_v12, %v186_v8  ;;  %v3520_v15 = vadd.f32 %v600_v13, %v194_v9 }
 0x203   :  { %v559_v16 = vpop.f32.mrf.mxu0  ;;  %v602_v17 = vpop.f32.mrf.mxu1 }
 0x204   :  { %v609_v18 = vmul.f32 %v3518_v14, %v3518_v14  ;;  %v611_v19 = vmul.f32 %v3520_v15, %v3520_v15  ;;  %v3526_v20 = vadd.f32 %v559_v16, %v190_v10  ;;  %v3528_v21 = vadd.f32 %v602_v17, %v198_v11 }
 0x205   :  { %v561_v22 = vpop.f32.mrf.mxu0  ;;  %v604_v23 = vpop.f32.mrf.mxu1 }
 0x206   :  { %v617_v24 = vmul.f32 %v609_v18, %v3518_v14  ;;  %v619_v25 = vmul.f32 %v611_v19, %v3520_v15  ;;  %v610_v26 = vmul.f32 %v3526_v20, %v3526_v20  ;;  %v612_v27 = vmul.f32 %v3528_v21, %v3528_v21 }
 0x207   :  { %v3536_v28 = vadd.f32 %v561_v22, %v186_v8  ;;  %v3538_v29 = vadd.f32 %v604_v23, %v194_v9  ;;  %v563_v30 = vpop.f32.mrf.mxu0  ;;  %v606_v31 = vpop.f32.mrf.mxu1 }
 0x208   :  { %v625_v32 = vmul.f32 0.044715, %v617_v24  ;;  %v627_v33 = vmul.f32 0.044715, %v619_v25  ;;  %v618_v34 = vmul.f32 %v610_v26, %v3526_v20  ;;  %v620_v38 = vmul.f32 %v612_v27, %v3528_v21 }
 0x209   :  { %v613_v39 = vmul.f32 %v3536_v28, %v3536_v28  ;;  %v615_v40 = vmul.f32 %v3538_v29, %v3538_v29  ;;  %v3546_v41 = vadd.f32 %v563_v30, %v190_v10  ;;  %v3548_v42 = vadd.f32 %v606_v31, %v198_v11 }
 0x20a   :  { %v633_v43 = vadd.f32 %v625_v32, %v3518_v14  ;;  %v635_v46 = vadd.f32 %v627_v33, %v3520_v15  ;;  %v626_v47 = vmul.f32 0.044715, %v618_v34  ;;  %v628_v48 = vmul.f32 0.044715, %v620_v38 }
 0x20b   :  { %v621_v49 = vmul.f32 %v613_v39, %v3536_v28  ;;  %v623_v52 = vmul.f32 %v615_v40, %v3538_v29  ;;  %v614_v53 = vmul.f32 %v3546_v41, %v3546_v41  ;;  %v616_v54 = vmul.f32 %v3548_v42, %v3548_v42 }
 0x20c   :  { %v641_v55 = vmul.f32 0.7978846, %v633_v43  ;;  %v643_v56 = vmul.f32 0.7978846, %v635_v46  ;;  %v634_v57 = vadd.f32 %v626_v47, %v3526_v20  ;;  %v636_v45 = vadd.f32 %v628_v48, %v3528_v21 }
 0x20d   :  { %v629_v58 = vmul.f32 0.044715, %v621_v49  ;;  %v631_v59 = vmul.f32 0.044715, %v623_v52  ;;  %v622_v60 = vmul.f32 %v614_v53, %v3546_v41  ;;  %v624_v61 = vmul.f32 %v616_v54, %v3548_v42 }
 0x20e   :  { %2957 = vtanh.f32 %v641_v55  ;;  %v642_v62 = vmul.f32 0.7978846, %v634_v57  ;;  %v644_v44 = vmul.f32 0.7978846, %v636_v45 }
 0x20f   :  { %2959 = vtanh.f32 %v643_v56  ;;  %v637_v51 = vadd.f32 %v629_v58, %v3536_v28  ;;  %v639_v50 = vadd.f32 %v631_v59, %v3538_v29  ;;  %v630_v63 = vmul.f32 0.044715, %v622_v60 }
 0x210   :  { %2961 = vtanh.f32 %v642_v62  ;;  %v632_v0 = vmul.f32 0.044715, %v624_v61 }
 0x211   :  { %2963 = vtanh.f32 %v644_v44  ;;  %v645_v6 = vmul.f32 0.7978846, %v637_v51  ;;  %v647_v8 = vmul.f32 0.7978846, %v639_v50  ;;  %v638_v9 = vadd.f32 %v630_v63, %v3546_v41 }
 0x212   :  { %v640_v10 = vadd.f32 %v632_v0, %v3548_v42 }
 0x213   :  { %2965 = vtanh.f32 %v645_v6  ;;  %v646_v11 = vmul.f32 0.7978846, %v638_v9 }
 0x214   :  { %2967 = vtanh.f32 %v647_v8  ;;  %v648_v12 = vmul.f32 0.7978846, %v640_v10 }
 0x215   :  { %2969 = vtanh.f32 %v646_v11 }
 0x216   :  { %2971 = vtanh.f32 %v648_v12 }
 0x21b   :  { %v2958_v13 = vpop.eup %2957 }
 0x21c   :  { %v2960_v16 = vpop.eup %2959  ;;  %v657_v23 = vadd.f32 1.0, %v2958_v13 }
 0x21d   :  { %v2962_v17 = vpop.eup %2961  ;;  %v659_v26 = vadd.f32 1.0, %v2960_v16 }
 0x21e   :  { %v2964_v18 = vpop.eup %2963  ;;  %v658_v19 = vadd.f32 1.0, %v2962_v17  ;;  %v665_v39 = vmul.f32 0.5, %v657_v23  ;;  %v2767_v23 = vld [vmem:[%s4100_s9 + $0xc0] ss:$16 sps:$4 sm:$0xff]  }
 0x21f   :  { %v660_v24 = vadd.f32 1.0, %v2964_v18  ;;  %v667_v47 = vmul.f32 0.5, %v659_v26  ;;  %v2772_v26 = vld [vmem:[%s4100_s9 + $0xcc] ss:$16 sps:$4 sm:$0xff]  }
 0x220   :  { %v2966_v22 = vpop.eup %2965  ;;  %v666_v38 = vmul.f32 0.5, %v658_v19  ;;  %v673_v56 = vmul.f32 %v665_v39, %v3518_v14  ;;  %v2782_v39 = vld [vmem:[%s4100_s9 + $0x88] ss:$16 sps:$4 sm:$0xff]  }
 0x221   :  { %v2968_v25 = vpop.eup %2967  ;;  %v661_v27 = vadd.f32 1.0, %v2966_v22  ;;  %v668_v46 = vmul.f32 0.5, %v660_v24  ;;  %v675_v58 = vmul.f32 %v667_v47, %v3520_v15  ;;  %v2763_v22 = vld [vmem:[%s4100_s9 + $0xe4] ss:$16 sps:$4 sm:$0xff]   ;;  %v2788_v47 = vld [vmem:[%s4100_s9 + $0x68] ss:$16 sps:$4 sm:$0xff]  }
 0x222   :  { %v2970_v30 = vpop.eup %2969  ;;  %v663_v31 = vadd.f32 1.0, %v2968_v25  ;;  %v674_v54 = vmul.f32 %v666_v38, %v3526_v20  ;;  %v749_v20 = vld [vmem:[%s4099_s6] sm:$0x3]  ;;  %1643 = vmatprep.subr.bf16.mxu0 %v2763_v22  ;;  %v2769_v24 = vld [vmem:[%s4100_s9 + $0xc4] ss:$16 sps:$4 sm:$0xff]  }
 0x223   :  { %v2972_v32 = vpop.eup %2971  ;;  %v669_v33 = vmul.f32 0.5, %v661_v27  ;;  %v662_v34 = vadd.f32 1.0, %v2970_v30  ;;  %v676_v57 = vmul.f32 %v668_v46, %v3528_v21  ;;  %v754_v14 = vrot.slane %v749_v20, %v3302_v36  ;;  %v2770_v25 = vld [vmem:[%s4100_s9 + $0xc8] ss:$16 sps:$4 sm:$0xff]   ;;  %v2775_v27 = vld [vmem:[%s4100_s9 + $0xa4] ss:$16 sps:$4 sm:$0xff]  }
 0x224   :  { %v671_v40 = vmul.f32 0.5, %v663_v31  ;;  %v664_v43 = vadd.f32 1.0, %v2972_v32  ;;  %v758_v21 = vrot.slane %v749_v20, %v3305_v37  ;;  %v2773_v30 = vld [vmem:[%s4100_s9 + $0xa0] ss:$16 sps:$4 sm:$0xff]   ;;  %v2778_v31 = vld [vmem:[%s4100_s9 + $0xac] ss:$16 sps:$4 sm:$0xff]  }
 0x225   :  { %v670_v48 = vmul.f32 0.5, %v662_v34  ;;  %v677_v49 = vmul.f32 %v669_v33, %v3536_v28  ;;  %v2776_v32 = vld [vmem:[%s4100_s9 + $0xa8] ss:$16 sps:$4 sm:$0xff]   ;;  %v2781_v33 = vld [vmem:[%s4100_s9 + $0x84] ss:$16 sps:$4 sm:$0xff]  }
 0x226   :  { %v672_v52 = vmul.f32 0.5, %v664_v43  ;;  %v679_v53 = vmul.f32 %v671_v40, %v3538_v29  ;;  %v2784_v34 = vld [vmem:[%s4100_s9 + $0x8c] ss:$16 sps:$4 sm:$0xff]   ;;  %v2779_v38 = vld [vmem:[%s4100_s9 + $0x80] ss:$16 sps:$4 sm:$0xff]  }
 0x227   :  { %v678_v55 = vmul.f32 %v670_v48, %v3546_v41  ;;  %v745_v61 = vpack.c.bf16 %v677_v49, %v673_v56  ;;  %v2787_v40 = vld [vmem:[%s4100_s9 + $0x64] ss:$16 sps:$4 sm:$0xff]   ;;  %v2790_v43 = vld [vmem:[%s4100_s9 + $0x6c] ss:$16 sps:$4 sm:$0xff]   ;;  %v2785_v46 = vld [vmem:[%s4100_s9 + $0x60] ss:$16 sps:$4 sm:$0xff]  }
 0x228   :  { %v680_v45 = vmul.f32 %v672_v52, %v3548_v42  ;;  %v747_v28 = vpack.c.bf16 %v679_v53, %v675_v58  ;;  %v2793_v48 = vld [vmem:[%s4100_s9 + $0x44] ss:$16 sps:$4 sm:$0xff]   ;;  %v2796_v49 = vld [vmem:[%s4100_s9 + $0x4c] ss:$16 sps:$4 sm:$0xff]   ;;  %v2791_v52 = vld [vmem:[%s4100_s9 + $0x40] ss:$16 sps:$4 sm:$0xff]  }
 0x229   :  { %v746_v59 = vpack.c.bf16 %v678_v55, %v674_v54  ;;  %v2794_v53 = vld [vmem:[%s4100_s9 + $0x48] ss:$16 sps:$4 sm:$0xff]   ;;  %v2799_v54 = vld [vmem:[%s4100_s9 + $0x24] ss:$16 sps:$4 sm:$0xff]   ;;  %v2797_v55 = vld [vmem:[%s4100_s9 + $0x20] ss:$16 sps:$4 sm:$0xff]  }
 0x22a   :  { %v748_v60 = vpack.c.bf16 %v680_v45, %v676_v57  ;;  %v2802_v56 = vld [vmem:[%s4100_s9 + $0x2c] ss:$16 sps:$4 sm:$0xff]   ;;  %v2800_v57 = vld [vmem:[%s4100_s9 + $0x28] ss:$16 sps:$4 sm:$0xff]   ;;  %v2805_v45 = vld [vmem:[%s4100_s9 + $0x4] ss:$16 sps:$4 sm:$0xff]  }
 0x22b   :  { %1113 = vmatprep.mubr.bf16.mxu0 %v746_v59  ;;  %v2808_v58 = vld [vmem:[%s4100_s9 + $0xc] ss:$16 sps:$4 sm:$0xff]   ;;  %v2803_v59 = vld [vmem:[%s4100_s9] ss:$16 sps:$4 sm:$0xff]  }
 0x22c   :  { %1156 = vmatprep.mubr.bf16.mxu1 %v748_v60  ;;  %1114 = vmatmul.mubr.bf16.vlgmr.msra.gmra.mxu0 %v745_v61  ;;  %v2806_v60 = vld [vmem:[%s4100_s9 + $0x8] ss:$16 sps:$4 sm:$0xff]   ;;  %v2811_v61 = vld [vmem:[%s4100_s9 + $0x1e4] ss:$16 sps:$4 sm:$0xff]   ;;  %v2809_v20 = vld [vmem:[%s4100_s9 + $0x1e0] ss:$16 sps:$4 sm:$0xff]  }
 0x22d   :  { %1157 = vmatmul.mubr.bf16.vlgmr.msra.gmra.mxu1 %v747_v28  ;;  %v2814_v28 = vld [vmem:[%s4100_s9 + $0x1ec] ss:$16 sps:$4 sm:$0xff]   ;;  %v2821_v22 = vld [vmem:[%s4100_s9 + $0x1a0] ss:$16 sps:$4 sm:$0xff]  }
 0x2ec   :  { %v1115_v29 = vpop.f32.mrf.mxu0 }
 0x2ed   :  { %v1116_v41 = vadd.f32 %v1115_v29, %v754_v14  ;;  %v1158_v42 = vpop.f32.mrf.mxu1 }
 0x2ee   :  { %v1117_v15 = vpop.f32.mrf.mxu0 }
 0x2ef   :  { %v1159_v62 = vadd.f32 %v1158_v42, %v1116_v41  ;;  %v1118_v44 = vadd.f32 %v1117_v15, %v758_v21  ;;  %v1160_v51 = vpop.f32.mrf.mxu1 }
 0x2f0   :  { %v1119_v50 = vpop.f32.mrf.mxu0 }
 0x2f1   :  { %v1161_v63 = vadd.f32 %v1160_v51, %v1118_v44  ;;  %v1120_v0 = vadd.f32 %v1119_v50, %v754_v14  ;;  %v1162_v6 = vpop.f32.mrf.mxu1  ;;  %v3580_v9 = vadd.f32 %v1159_v62, %v3069_v2  ;;  %v2812_v14 = vld [vmem:[%s4100_s9 + $0x1e8] ss:$16 sps:$4 sm:$0xff]  }
 0x2f2   :  { %v1121_v8 = vpop.f32.mrf.mxu0 }
 0x2f3   :  { %v3583_v10 = vadd.f32 %v1161_v63, %v3071_v3  ;;  %v1163_v11 = vadd.f32 %v1162_v6, %v1120_v0  ;;  %v1122_v12 = vadd.f32 %v1121_v8, %v758_v21  ;;  %v1164_v13 = vpop.f32.mrf.mxu1  ;;  %v2761_v3 = vld [vmem:[%s4100_s9 + $0xe0] ss:$16 sps:$4 sm:$0xff]  }
 0x2f4   :  { %1644 = vmatpush1.bf16.msra.mxu0 %v2761_v3  ;;  %v2826_v3 = vld [vmem:[%s4100_s9 + $0x1ac] ss:$16 sps:$4 sm:$0xff]  }
 0x2f5   :  { %v1165_v16 = vadd.f32 %v1164_v13, %v1122_v12  ;;  %v1173_v17 = vadd.f32 %v3583_v10, %v3580_v9  ;;  %v3588_v18 = vadd.f32 %v1163_v11, %v3073_v4  ;;  %v2764_v4 = vld [vmem:[%s4100_s9 + $0xe8] ss:$16 sps:$4 sm:$0xff]   ;;  %1645 = vmatprep.subr.bf16.mxu0 %v2769_v24  ;;  %v2817_v12 = vld [vmem:[%s4100_s9 + $0x1c4] ss:$16 sps:$4 sm:$0xff]   ;;  %v2820_v13 = vld [vmem:[%s4100_s9 + $0x1cc] ss:$16 sps:$4 sm:$0xff]  }
 0x2f6   :  { %v2830_v24 = vld [vmem:[%s4100_s9 + $0x188] ss:$16 sps:$4 sm:$0xff]  }
 0x2f7   :  { %v3591_v19 = vadd.f32 %v1165_v16, %v3075_v5  ;;  %1174 = vadd.xlane.f32.xlu0 %v1173_v17  ;;  %v2766_v5 = vld [vmem:[%s4100_s9 + $0xec] ss:$16 sps:$4 sm:$0xff]   ;;  %v2815_v16 = vld [vmem:[%s4100_s9 + $0x1c0] ss:$16 sps:$4 sm:$0xff]   ;;  %v2818_v17 = vld [vmem:[%s4100_s9 + $0x1c8] ss:$16 sps:$4 sm:$0xff]  }
 0x2f8   :  { %1686 = vmatprep.subr.bf16.mxu1 %v2766_v5  ;;  %1646 = vmatpush1.bf16.msra.mxu0 %v2767_v23  ;;  %v2829_v5 = vld [vmem:[%s4100_s9 + $0x184] ss:$16 sps:$4 sm:$0xff]   ;;  %v2827_v23 = vld [vmem:[%s4100_s9 + $0x180] ss:$16 sps:$4 sm:$0xff]  }
 0x2f9   :  { %v1176_v2 = vadd.f32 %v3591_v19, %v3588_v18  ;;  %1687 = vmatpush1.bf16.msra.mxu1 %v2764_v4  ;;  %1647 = vmatprep.subr.bf16.mxu0 %v2775_v27  ;;  %v2824_v4 = vld [vmem:[%s4100_s9 + $0x1a8] ss:$16 sps:$4 sm:$0xff]   ;;  %v2838_v27 = vld [vmem:[%s4100_s9 + $0x16c] ss:$16 sps:$4 sm:$0xff]  }
 0x2fa   :  { %1688 = vmatprep.subr.bf16.mxu1 %v2772_v26  ;;  %v2835_v26 = vld [vmem:[%s4100_s9 + $0x164] ss:$16 sps:$4 sm:$0xff]  }
 0x2fb   :  { %1177 = vadd.xlane.f32.xlu1 %v1176_v2  ;;  %v2823_v2 = vld [vmem:[%s4100_s9 + $0x1a4] ss:$16 sps:$4 sm:$0xff]  }
 0x2fc   :  { %1648 = vmatpush1.bf16.msra.mxu0 %v2773_v30  ;;  %v2833_v30 = vld [vmem:[%s4100_s9 + $0x160] ss:$16 sps:$4 sm:$0xff]  }
 0x2fd   :  { %1689 = vmatpush1.bf16.msra.mxu1 %v2770_v25  ;;  %1649 = vmatprep.subr.bf16.mxu0 %v2781_v33  ;;  %v2832_v25 = vld [vmem:[%s4100_s9 + $0x18c] ss:$16 sps:$4 sm:$0xff]  }
 0x2fe   :  { %1690 = vmatprep.subr.bf16.mxu1 %v2778_v31  ;;  %v2836_v31 = vld [vmem:[%s4100_s9 + $0x168] ss:$16 sps:$4 sm:$0xff]   ;;  %v2844_v33 = vld [vmem:[%s4100_s9 + $0x14c] ss:$16 sps:$4 sm:$0xff]  }
 0x300   :  { %1650 = vmatpush1.bf16.msra.mxu0 %v2779_v38  ;;  %v2842_v38 = vld [vmem:[%s4100_s9 + $0x148] ss:$16 sps:$4 sm:$0xff]  }
 0x301   :  { %1691 = vmatpush1.bf16.msra.mxu1 %v2776_v32  ;;  %1651 = vmatprep.subr.bf16.mxu0 %v2787_v40  ;;  %v2841_v32 = vld [vmem:[%s4100_s9 + $0x144] ss:$16 sps:$4 sm:$0xff]   ;;  %v2850_v40 = vld [vmem:[%s4100_s9 + $0x12c] ss:$16 sps:$4 sm:$0xff]  }
 0x302   :  { %1692 = vmatprep.subr.bf16.mxu1 %v2784_v34  ;;  %v2839_v34 = vld [vmem:[%s4100_s9 + $0x140] ss:$16 sps:$4 sm:$0xff]  }
 0x304   :  { %1652 = vmatpush1.bf16.msra.mxu0 %v2785_v46  ;;  %v2848_v46 = vld [vmem:[%s4100_s9 + $0x128] ss:$16 sps:$4 sm:$0xff]  }
 0x305   :  { %1693 = vmatpush1.bf16.msra.mxu1 %v2782_v39  ;;  %1653 = vmatprep.subr.bf16.mxu0 %v2793_v48  ;;  %v2847_v39 = vld [vmem:[%s4100_s9 + $0x124] ss:$16 sps:$4 sm:$0xff]   ;;  %v2856_v48 = vld [vmem:[%s4100_s9 + $0x10c] ss:$16 sps:$4 sm:$0xff]  }
 0x306   :  { %1694 = vmatprep.subr.bf16.mxu1 %v2790_v43  ;;  %v2845_v43 = vld [vmem:[%s4100_s9 + $0x120] ss:$16 sps:$4 sm:$0xff]  }
 0x308   :  { %1654 = vmatpush1.bf16.msra.mxu0 %v2791_v52  ;;  %v2854_v52 = vld [vmem:[%s4100_s9 + $0x108] ss:$16 sps:$4 sm:$0xff]  }
 0x309   :  { %1695 = vmatpush1.bf16.msra.mxu1 %v2788_v47  ;;  %1655 = vmatprep.subr.bf16.mxu0 %v2799_v54  ;;  %v2853_v47 = vld [vmem:[%s4100_s9 + $0x104] ss:$16 sps:$4 sm:$0xff]  }
 0x30a   :  { %1696 = vmatprep.subr.bf16.mxu1 %v2796_v49  ;;  %v2851_v49 = vld [vmem:[%s4100_s9 + $0x100] ss:$16 sps:$4 sm:$0xff]   ;;  %v2862_v54 = vld [vmem:[%s4101_s11 + $0x174] ss:$8 sps:$4 sm:$0xff]  }
 0x30c   :  { %1656 = vmatpush1.bf16.msra.mxu0 %v2797_v55 }
 0x30d   :  { %1697 = vmatpush1.bf16.msra.mxu1 %v2794_v53  ;;  %1657 = vmatprep.subr.bf16.mxu0 %v2805_v45  ;;  %v2859_v53 = vld [vmem:[%s4101_s11 + $0x74] ss:$8 sps:$4 sm:$0xff]  }
 0x30e   :  { %1698 = vmatprep.subr.bf16.mxu1 %v2802_v56 }
 0x310   :  { %1658 = vmatpush1.bf16.msra.mxu0 %v2803_v59 }
 0x311   :  { %1699 = vmatpush1.bf16.msra.mxu1 %v2800_v57  ;;  %1659 = vmatprep.subr.bf16.mxu0 %v2811_v61 }
 0x312   :  { %1700 = vmatprep.subr.bf16.mxu1 %v2808_v58 }
 0x314   :  { %1660 = vmatpush2.bf16.msra.mxu0 %v2809_v20 }
 0x315   :  { %1701 = vmatpush1.bf16.msra.mxu1 %v2806_v60  ;;  %1661 = vmatprep.subr.bf16.mxu0 %v2817_v12  ;;  %v1171_v60 = vld [vmem:[%s4102_s7] sm:$0x3] }
 0x316   :  { %1702 = vmatprep.subr.bf16.mxu1 %v2814_v28  ;;  %v1172_v28 = vld [vmem:[%s4103_s8] sm:$0x3] }
 0x318   :  { %1662 = vmatpush2.bf16.msra.mxu0 %v2815_v16 }
 0x319   :  { %1703 = vmatpush2.bf16.msra.mxu1 %v2812_v14  ;;  %1663 = vmatprep.subr.bf16.mxu0 %v2823_v2  ;;  %v1209_v14 = vrot.slane %v1171_v60, %v3302_v36 }
 0x31a   :  { %1704 = vmatprep.subr.bf16.mxu1 %v2820_v13 }
 0x31c   :  { %1664 = vmatpush2.bf16.msra.mxu0 %v2821_v22  ;;  %v2868_v22 = vld [vmem:[%s4101_s11 + $0x164] ss:$8 sps:$4 sm:$0xff]  }
 0x31d   :  { %1705 = vmatpush2.bf16.msra.mxu1 %v2818_v17  ;;  %1665 = vmatprep.subr.bf16.mxu0 %v2829_v5  ;;  %v2866_v5 = vld [vmem:[%s4101_s11 + $0x160] ss:$8 sps:$4 sm:$0xff]  }
 0x31e   :  { %1706 = vmatprep.subr.bf16.mxu1 %v2826_v3 }
 0x320   :  { %1666 = vmatpush2.bf16.msra.mxu0 %v2827_v23  ;;  %v2871_v23 = vld [vmem:[%s4101_s11 + $0x54] ss:$8 sps:$4 sm:$0xff]  }
 0x321   :  { %1707 = vmatpush2.bf16.msra.mxu1 %v2824_v4  ;;  %1667 = vmatprep.subr.bf16.mxu0 %v2835_v26  ;;  %v2863_v4 = vld [vmem:[%s4101_s11 + $0x60] ss:$8 sps:$4 sm:$0xff]   ;;  %v2872_v26 = vld [vmem:[%s4101_s11 + $0x150] ss:$8 sps:$4 sm:$0xff]  }
 0x322   :  { %1708 = vmatprep.subr.bf16.mxu1 %v2832_v25  ;;  %v2869_v25 = vld [vmem:[%s4101_s11 + $0x50] ss:$8 sps:$4 sm:$0xff]  }
 0x324   :  { %1668 = vmatpush2.bf16.msra.mxu0 %v2833_v30  ;;  %v2880_v30 = vld [vmem:[%s4101_s11 + $0x144] ss:$8 sps:$4 sm:$0xff]  }
 0x325   :  { %1709 = vmatpush2.bf16.msra.mxu1 %v2830_v24  ;;  %1669 = vmatprep.subr.bf16.mxu0 %v2841_v32  ;;  %v2874_v24 = vld [vmem:[%s4101_s11 + $0x154] ss:$8 sps:$4 sm:$0xff]   ;;  %v2878_v32 = vld [vmem:[%s4101_s11 + $0x140] ss:$8 sps:$4 sm:$0xff]  }
 0x326   :  { %1710 = vmatprep.subr.bf16.mxu1 %v2838_v27  ;;  %v2877_v27 = vld [vmem:[%s4101_s11 + $0x44] ss:$8 sps:$4 sm:$0xff]  }
 0x328   :  { %1670 = vmatpush2.bf16.msra.mxu0 %v2839_v34  ;;  %v2886_v34 = vld [vmem:[%s4101_s11 + $0x134] ss:$8 sps:$4 sm:$0xff]  }
 0x329   :  { %1711 = vmatpush2.bf16.msra.mxu1 %v2836_v31  ;;  %1671 = vmatprep.subr.bf16.mxu0 %v2847_v39  ;;  %v2875_v31 = vld [vmem:[%s4101_s11 + $0x40] ss:$8 sps:$4 sm:$0xff]   ;;  %v2884_v39 = vld [vmem:[%s4101_s11 + $0x130] ss:$8 sps:$4 sm:$0xff]  }
 0x32a   :  { %1712 = vmatprep.subr.bf16.mxu1 %v2844_v33  ;;  %v2883_v33 = vld [vmem:[%s4101_s11 + $0x34] ss:$8 sps:$4 sm:$0xff]  }
 0x32c   :  { %1672 = vmatpush2.bf16.msra.mxu0 %v2845_v43  ;;  %v2892_v43 = vld [vmem:[%s4101_s11 + $0x124] ss:$8 sps:$4 sm:$0xff]  }
 0x32d   :  { %1713 = vmatpush2.bf16.msra.mxu1 %v2842_v38  ;;  %1673 = vmatprep.subr.bf16.mxu0 %v2853_v47  ;;  %v2881_v38 = vld [vmem:[%s4101_s11 + $0x30] ss:$8 sps:$4 sm:$0xff]   ;;  %v2890_v47 = vld [vmem:[%s4101_s11 + $0x120] ss:$8 sps:$4 sm:$0xff]  }
 0x32e   :  { %1714 = vmatprep.subr.bf16.mxu1 %v2850_v40  ;;  %v2889_v40 = vld [vmem:[%s4101_s11 + $0x24] ss:$8 sps:$4 sm:$0xff]  }
 0x330   :  { %1674 = vmatpush2.bf16.msra.mxu0 %v2851_v49  ;;  %v2898_v49 = vld [vmem:[%s4101_s11 + $0x114] ss:$8 sps:$4 sm:$0xff]  }
 0x331   :  { %1715 = vmatpush2.bf16.msra.mxu1 %v2848_v46  ;;  %2201 = vmatprep.subr.bf16.mxu0 %v2859_v53  ;;  %v2887_v46 = vld [vmem:[%s4101_s11 + $0x20] ss:$8 sps:$4 sm:$0xff]   ;;  %v2896_v53 = vld [vmem:[%s4101_s11 + $0x110] ss:$8 sps:$4 sm:$0xff]  }
 0x332   :  { %1716 = vmatprep.subr.bf16.mxu1 %v2856_v48  ;;  %v2895_v48 = vld [vmem:[%s4101_s11 + $0x14] ss:$8 sps:$4 sm:$0xff]  }
 0x335   :  { %1717 = vmatpush2.bf16.msra.mxu1 %v2854_v52  ;;  %v2893_v52 = vld [vmem:[%s4101_s11 + $0x10] ss:$8 sps:$4 sm:$0xff]  }
 0x336   :  { %2244 = vmatprep.subr.bf16.mxu1 %v2862_v54  ;;  %v2901_v54 = vld [vmem:[%s4101_s11 + $0x4] ss:$8 sps:$4 sm:$0xff]  }
 0x380   :  { %v1175_v21 = vpop.xlane.xlu0 %1174 }
 0x381   :  { %v1179_v29 = vmul.f32 0.00390625, %v1175_v21  ;;  %v1213_v21 = vrot.slane %v1171_v60, %v3305_v37  ;;  %v2908_v60 = vld [vmem:[%s4101_s11 + $0x1f0] ss:$8 sps:$4 sm:$0xff]  }
 0x383   :  { %v3704_v41 = vsub.f32 %v3580_v9, %v1179_v29  ;;  %v3707_v42 = vsub.f32 %v3583_v10, %v1179_v29 }
 0x384   :  { %v1178_v15 = vpop.xlane.xlu1 %1177 }
 0x385   :  { %v1180_v62 = vmul.f32 0.00390625, %v1178_v15  ;;  %v1185_v44 = vmul.f32 %v3704_v41, %v3704_v41  ;;  %v1186_v51 = vmul.f32 %v3707_v42, %v3707_v42 }
 0x387   :  { %v3714_v50 = vsub.f32 %v3588_v18, %v1180_v62  ;;  %v3717_v63 = vsub.f32 %v3591_v19, %v1180_v62  ;;  %v1189_v0 = vadd.f32 %v1186_v51, %v1185_v44  ;;  %v1224_v62 = vrot.slane %v1172_v28, %v3302_v36 }
 0x388   :  { %v1228_v44 = vrot.slane %v1172_v28, %v3305_v37  ;;  %v2916_v28 = vld [vmem:[%s4101_s11 + $0x1e4] ss:$8 sps:$4 sm:$0xff]  }
 0x389   :  { %1190 = vadd.xlane.f32.xlu0 %v1189_v0  ;;  %v1187_v6 = vmul.f32 %v3714_v50, %v3714_v50  ;;  %v1188_v8 = vmul.f32 %v3717_v63, %v3717_v63 }
 0x38b   :  { %v1192_v11 = vadd.f32 %v1188_v8, %v1187_v6 }
 0x38d   :  { %1193 = vadd.xlane.f32.xlu1 %v1192_v11 }
 0x412   :  { %v1191_v55 = vpop.xlane.xlu0 %1190 }
 0x413   :  { %v1195_v56 = vmul.f32 0.00390625, %v1191_v55  ;;  %v2904_v55 = vld [vmem:[%s4101_s11 + $0x104] ss:$8 sps:$4 sm:$0xff]  }
 0x415   :  { %v1197_v57 = vadd.f32 1e-05, %v1195_v56  ;;  %v2899_v56 = vld [vmem:[%s4101_s11] ss:$8 sps:$4 sm:$0xff]  }
 0x416   :  { %v1194_v45 = vpop.xlane.xlu1 %1193 }
 0x417   :  { %2973 = vrsqrt.f32 %v1197_v57  ;;  %v1196_v58 = vmul.f32 0.00390625, %v1194_v45  ;;  %v2902_v57 = vld [vmem:[%s4101_s11 + $0x100] ss:$8 sps:$4 sm:$0xff]   ;;  %v2907_v45 = vld [vmem:[%s4101_s11 + $0xf4] ss:$8 sps:$4 sm:$0xff]  }
 0x419   :  { %v1198_v59 = vadd.f32 1e-05, %v1196_v58  ;;  %v2910_v58 = vld [vmem:[%s4101_s11 + $0x1f4] ss:$8 sps:$4 sm:$0xff]  }
 0x41b   :  { %2975 = vrsqrt.f32 %v1198_v59  ;;  %v2905_v59 = vld [vmem:[%s4101_s11 + $0xf0] ss:$8 sps:$4 sm:$0xff]  }
 0x424   :  { %v2974_v61 = vpop.eup %2973 }
 0x425   :  { %v1202_v20 = vmul.f32 %v2974_v61, %v3707_v42  ;;  %v1201_v29 = vmul.f32 %v2974_v61, %v3704_v41  ;;  %v2857_v41 = vld [vmem:[%s4101_s11 + $0x70] ss:$8 sps:$4 sm:$0xff]   ;;  %v2913_v61 = vld [vmem:[%s4101_s11 + $0xe4] ss:$8 sps:$4 sm:$0xff]  }
 0x427   :  { %v1217_v0 = vmul.f32 %v1213_v21, %v1202_v20  ;;  %v1216_v8 = vmul.f32 %v1209_v14, %v1201_v29  ;;  %v2911_v20 = vld [vmem:[%s4101_s11 + $0xe0] ss:$8 sps:$4 sm:$0xff]   ;;  %v2922_v29 = vld [vmem:[%s4101_s11 + $0x1d4] ss:$8 sps:$4 sm:$0xff]  }
 0x428   :  { %v2976_v15 = vpop.eup %2975 }
 0x429   :  { %v1204_v51 = vmul.f32 %v2976_v15, %v3717_v63  ;;  %v1203_v6 = vmul.f32 %v2976_v15, %v3714_v50  ;;  %v1232_v42 = vadd.f32 %v1228_v44, %v1217_v0  ;;  %v1231_v16 = vadd.f32 %v1224_v62, %v1216_v8  ;;  %v2860_v63 = vld [vmem:[%s4101_s11 + $0x170] ss:$8 sps:$4 sm:$0xff]   ;;  %v2865_v50 = vld [vmem:[%s4101_s11 + $0x64] ss:$8 sps:$4 sm:$0xff]   ;;  %v2923_v0 = vld [vmem:[%s4101_s11 + $0xc0] ss:$8 sps:$4 sm:$0xff]  }
 0x42a   :  { %v2917_v15 = vld [vmem:[%s4101_s11 + $0xd0] ss:$8 sps:$4 sm:$0xff]   ;;  %v2931_v8 = vld [vmem:[%s4101_s11 + $0xb4] ss:$8 sps:$4 sm:$0xff]  }
 0x42b   :  { %v1219_v11 = vmul.f32 %v1213_v21, %v1204_v51  ;;  %v1218_v12 = vmul.f32 %v1209_v14, %v1203_v6  ;;  %v2914_v14 = vld [vmem:[%s4101_s11 + $0x1e0] ss:$8 sps:$4 sm:$0xff]   ;;  %v2919_v21 = vld [vmem:[%s4101_s11 + $0xd4] ss:$8 sps:$4 sm:$0xff]   ;;  %v2928_v51 = vld [vmem:[%s4101_s11 + $0x1c4] ss:$8 sps:$4 sm:$0xff]  }
 0x42c   :  { %v2926_v6 = vld [vmem:[%s4101_s11 + $0x1c0] ss:$8 sps:$4 sm:$0xff]  }
 0x42d   :  { %v1234_v13 = vadd.f32 %v1228_v44, %v1219_v11  ;;  %v1233_v17 = vadd.f32 %v1224_v62, %v1218_v12  ;;  %v2920_v62 = vld [vmem:[%s4101_s11 + $0x1d0] ss:$8 sps:$4 sm:$0xff]   ;;  %v2925_v44 = vld [vmem:[%s4101_s11 + $0xc4] ss:$8 sps:$4 sm:$0xff]   ;;  %v2934_v11 = vld [vmem:[%s4101_s11 + $0x1b4] ss:$8 sps:$4 sm:$0xff]  }
 0x42e   :  { %v2929_v12 = vld [vmem:[%s4101_s11 + $0xb0] ss:$8 sps:$4 sm:$0xff]  }
 0x42f   :  { %v1300_v2 = vpack.c.bf16 %v1234_v13, %v1232_v42  ;;  %v1299_v3 = vpack.c.bf16 %v1233_v17, %v1231_v16  ;;  %v2932_v42 = vld [vmem:[%s4101_s11 + $0x1b0] ss:$8 sps:$4 sm:$0xff]   ;;  %v2937_v13 = vld [vmem:[%s4101_s11 + $0xa4] ss:$8 sps:$4 sm:$0xff]   ;;  %v2935_v17 = vld [vmem:[%s4101_s11 + $0xa0] ss:$8 sps:$4 sm:$0xff]  }
 0x430   :  { %v2940_v16 = vld [vmem:[%s4101_s11 + $0x1a4] ss:$8 sps:$4 sm:$0xff]  }
 0x431   :  { %1675 = vmatprep.mubr.bf16.mxu0 %v1300_v2  ;;  %1718 = vmatprep.mubr.bf16.mxu1 %v1300_v2  ;;  %v2938_v2 = vld [vmem:[%s4101_s11 + $0x1a0] ss:$8 sps:$4 sm:$0xff]  }
 0x432   :  { %1676 = vmatmul.mubr.bf16.vlgmr.msra.gmra.mxu0 %v1299_v3  ;;  %1719 = vmatmul.mubr.bf16.vlgmr.msra.gmra.mxu1 %v1299_v3  ;;  %v2943_v3 = vld [vmem:[%s4101_s11 + $0x94] ss:$8 sps:$4 sm:$0xff]  }
 0x433   :  { %2202 = vmatpush1.bf16.msra.mxu0 %v2857_v41  ;;  %2245 = vmatpush1.bf16.msra.mxu1 %v2860_v63  ;;  %v2946_v41 = vld [vmem:[%s4101_s11 + $0x194] ss:$8 sps:$4 sm:$0xff]   ;;  %v2941_v63 = vld [vmem:[%s4101_s11 + $0x90] ss:$8 sps:$4 sm:$0xff]  }
 0x434   :  { %2203 = vmatprep.subr.bf16.mxu0 %v2865_v50  ;;  %2246 = vmatprep.subr.bf16.mxu1 %v2868_v22  ;;  %v2944_v50 = vld [vmem:[%s4101_s11 + $0x190] ss:$8 sps:$4 sm:$0xff]   ;;  %v2947_v22 = vld [vmem:[%s4101_s11 + $0x80] ss:$8 sps:$4 sm:$0xff]  }
 0x437   :  { %2204 = vmatpush1.bf16.msra.mxu0 %v2863_v4  ;;  %2247 = vmatpush1.bf16.msra.mxu1 %v2866_v5  ;;  %v2949_v4 = vld [vmem:[%s4101_s11 + $0x84] ss:$8 sps:$4 sm:$0xff]   ;;  %v2950_v5 = vld [vmem:[%s4101_s11 + $0x180] ss:$8 sps:$4 sm:$0xff]  }
 0x438   :  { %2205 = vmatprep.subr.bf16.mxu0 %v2871_v23  ;;  %2248 = vmatprep.subr.bf16.mxu1 %v2874_v24  ;;  %v2952_v23 = vld [vmem:[%s4101_s11 + $0x184] ss:$8 sps:$4 sm:$0xff]   ;;  %v1301_v24 = vld [vmem:[%s4104_s10] sm:$0xf] }
 0x43b   :  { %2206 = vmatpush1.bf16.msra.mxu0 %v2869_v25  ;;  %2249 = vmatpush1.bf16.msra.mxu1 %v2872_v26  ;;  %v1306_v25 = vrot.slane %v1301_v24, %v3302_v36  ;;  %v1314_v26 = vrot.slane %v1301_v24, %v193_v1 }
 0x43c   :  { %2207 = vmatprep.subr.bf16.mxu0 %v2877_v27  ;;  %2250 = vmatprep.subr.bf16.mxu1 %v2880_v30  ;;  %v1310_v27 = vrot.slane %v1301_v24, %v3305_v37  ;;  %v1318_v30 = vrot.slane %v1301_v24, %v197_v7 }
 0x43f   :  { %2208 = vmatpush1.bf16.msra.mxu0 %v2875_v31  ;;  %2251 = vmatpush1.bf16.msra.mxu1 %v2878_v32 }
 0x440   :  { %2209 = vmatprep.subr.bf16.mxu0 %v2883_v33  ;;  %2252 = vmatprep.subr.bf16.mxu1 %v2886_v34 }
 0x443   :  { %2210 = vmatpush1.bf16.msra.mxu0 %v2881_v38  ;;  %2253 = vmatpush1.bf16.msra.mxu1 %v2884_v39 }
 0x444   :  { %2211 = vmatprep.subr.bf16.mxu0 %v2889_v40  ;;  %2254 = vmatprep.subr.bf16.mxu1 %v2892_v43 }
 0x447   :  { %2212 = vmatpush1.bf16.msra.mxu0 %v2887_v46  ;;  %2255 = vmatpush1.bf16.msra.mxu1 %v2890_v47 }
 0x448   :  { %2213 = vmatprep.subr.bf16.mxu0 %v2895_v48  ;;  %2256 = vmatprep.subr.bf16.mxu1 %v2898_v49 }
 0x44b   :  { %2214 = vmatpush1.bf16.msra.mxu0 %v2893_v52  ;;  %2257 = vmatpush1.bf16.msra.mxu1 %v2896_v53 }
 0x44c   :  { %2215 = vmatprep.subr.bf16.mxu0 %v2901_v54  ;;  %2258 = vmatprep.subr.bf16.mxu1 %v2904_v55 }
 0x44f   :  { %2216 = vmatpush1.bf16.msra.mxu0 %v2899_v56  ;;  %2259 = vmatpush1.bf16.msra.mxu1 %v2902_v57 }
 0x450   :  { %2217 = vmatprep.subr.bf16.mxu0 %v2907_v45  ;;  %2260 = vmatprep.subr.bf16.mxu1 %v2910_v58 }
 0x453   :  { %2218 = vmatpush2.bf16.msra.mxu0 %v2905_v59  ;;  %2261 = vmatpush2.bf16.msra.mxu1 %v2908_v60 }
 0x454   :  { %2219 = vmatprep.subr.bf16.mxu0 %v2913_v61  ;;  %2262 = vmatprep.subr.bf16.mxu1 %v2916_v28 }
 0x457   :  { %2220 = vmatpush2.bf16.msra.mxu0 %v2911_v20  ;;  %2263 = vmatpush2.bf16.msra.mxu1 %v2914_v14 }
 0x458   :  { %2221 = vmatprep.subr.bf16.mxu0 %v2919_v21  ;;  %2264 = vmatprep.subr.bf16.mxu1 %v2922_v29 }
 0x45b   :  { %2222 = vmatpush2.bf16.msra.mxu0 %v2917_v15  ;;  %2265 = vmatpush2.bf16.msra.mxu1 %v2920_v62 }
 0x45c   :  { %2223 = vmatprep.subr.bf16.mxu0 %v2925_v44  ;;  %2266 = vmatprep.subr.bf16.mxu1 %v2928_v51 }
 0x45f   :  { %2224 = vmatpush2.bf16.msra.mxu0 %v2923_v0  ;;  %2267 = vmatpush2.bf16.msra.mxu1 %v2926_v6 }
 0x460   :  { %2225 = vmatprep.subr.bf16.mxu0 %v2931_v8  ;;  %2268 = vmatprep.subr.bf16.mxu1 %v2934_v11 }
 0x463   :  { %2226 = vmatpush2.bf16.msra.mxu0 %v2929_v12  ;;  %2269 = vmatpush2.bf16.msra.mxu1 %v2932_v42 }
 0x464   :  { %2227 = vmatprep.subr.bf16.mxu0 %v2937_v13  ;;  %2270 = vmatprep.subr.bf16.mxu1 %v2940_v16 }
 0x467   :  { %2228 = vmatpush2.bf16.msra.mxu0 %v2935_v17  ;;  %2271 = vmatpush2.bf16.msra.mxu1 %v2938_v2 }
 0x468   :  { %2229 = vmatprep.subr.bf16.mxu0 %v2943_v3  ;;  %2272 = vmatprep.subr.bf16.mxu1 %v2946_v41 }
 0x46b   :  { %2230 = vmatpush2.bf16.msra.mxu0 %v2941_v63  ;;  %2273 = vmatpush2.bf16.msra.mxu1 %v2944_v50 }
 0x46c   :  { %2231 = vmatprep.subr.bf16.mxu0 %v2949_v4  ;;  %2274 = vmatprep.subr.bf16.mxu1 %v2952_v23 }
 0x46f   :  { %2232 = vmatpush2.bf16.msra.mxu0 %v2947_v22  ;;  %2275 = vmatpush2.bf16.msra.mxu1 %v2950_v5 }
 0x4f2   :  { %v1677_v31 = vpop.f32.mrf.mxu0  ;;  %v1720_v32 = vpop.f32.mrf.mxu1 }
 0x4f3   :  { %v4022_v33 = vadd.f32 %v1677_v31, %v1306_v25  ;;  %v4024_v34 = vadd.f32 %v1720_v32, %v1314_v26 }
 0x4f4   :  { %v1679_v38 = vpop.f32.mrf.mxu0  ;;  %v1722_v39 = vpop.f32.mrf.mxu1 }
 0x4f5   :  { %v1729_v40 = vmul.f32 %v4022_v33, %v4022_v33  ;;  %v1731_v43 = vmul.f32 %v4024_v34, %v4024_v34  ;;  %v4030_v1 = vadd.f32 %v1679_v38, %v1310_v27  ;;  %v4032_v46 = vadd.f32 %v1722_v39, %v1318_v30 }
 0x4f6   :  { %v1681_v35 = vpop.f32.mrf.mxu0  ;;  %v1724_v7 = vpop.f32.mrf.mxu1 }
 0x4f7   :  { %v1737_v47 = vmul.f32 %v1729_v40, %v4022_v33  ;;  %v1739_v48 = vmul.f32 %v1731_v43, %v4024_v34  ;;  %v1730_v49 = vmul.f32 %v4030_v1, %v4030_v1  ;;  %v1732_v52 = vmul.f32 %v4032_v46, %v4032_v46 }
 0x4f8   :  { %v4040_v53 = vadd.f32 %v1681_v35, %v1306_v25  ;;  %v4042_v54 = vadd.f32 %v1724_v7, %v1314_v26  ;;  %v1683_v55 = vpop.f32.mrf.mxu0  ;;  %v1726_v56 = vpop.f32.mrf.mxu1 }
 0x4f9   :  { %v1745_v57 = vmul.f32 0.044715, %v1737_v47  ;;  %v1747_v45 = vmul.f32 0.044715, %v1739_v48  ;;  %v1738_v58 = vmul.f32 %v1730_v49, %v4030_v1  ;;  %v1740_v59 = vmul.f32 %v1732_v52, %v4032_v46 }
 0x4fa   :  { %v1733_v60 = vmul.f32 %v4040_v53, %v4040_v53  ;;  %v1735_v61 = vmul.f32 %v4042_v54, %v4042_v54  ;;  %v4050_v28 = vadd.f32 %v1683_v55, %v1310_v27  ;;  %v4052_v20 = vadd.f32 %v1726_v56, %v1318_v30 }
 0x4fb   :  { %v1753_v14 = vadd.f32 %v1745_v57, %v4022_v33  ;;  %v1755_v21 = vadd.f32 %v1747_v45, %v4024_v34  ;;  %v1746_v29 = vmul.f32 0.044715, %v1738_v58  ;;  %v1748_v15 = vmul.f32 0.044715, %v1740_v59 }
 0x4fc   :  { %v1741_v62 = vmul.f32 %v1733_v60, %v4040_v53  ;;  %v1743_v44 = vmul.f32 %v1735_v61, %v4042_v54  ;;  %v1734_v51 = vmul.f32 %v4050_v28, %v4050_v28  ;;  %v1736_v0 = vmul.f32 %v4052_v20, %v4052_v20 }
 0x4fd   :  { %v1761_v6 = vmul.f32 0.7978846, %v1753_v14  ;;  %v1763_v8 = vmul.f32 0.7978846, %v1755_v21  ;;  %v1754_v11 = vadd.f32 %v1746_v29, %v4030_v1  ;;  %v1756_v12 = vadd.f32 %v1748_v15, %v4032_v46 }
 0x4fe   :  { %v1749_v42 = vmul.f32 0.044715, %v1741_v62  ;;  %v1751_v13 = vmul.f32 0.044715, %v1743_v44  ;;  %v1742_v16 = vmul.f32 %v1734_v51, %v4050_v28  ;;  %v1744_v17 = vmul.f32 %v1736_v0, %v4052_v20 }
 0x4ff   :  { %2977 = vtanh.f32 %v1761_v6  ;;  %v1762_v2 = vmul.f32 0.7978846, %v1754_v11  ;;  %v1764_v3 = vmul.f32 0.7978846, %v1756_v12 }
 0x500   :  { %2979 = vtanh.f32 %v1763_v8  ;;  %v1757_v41 = vadd.f32 %v1749_v42, %v4040_v53  ;;  %v1759_v63 = vadd.f32 %v1751_v13, %v4042_v54  ;;  %v1750_v50 = vmul.f32 0.044715, %v1742_v16 }
 0x501   :  { %2981 = vtanh.f32 %v1762_v2  ;;  %v1752_v22 = vmul.f32 0.044715, %v1744_v17 }
 0x502   :  { %2983 = vtanh.f32 %v1764_v3  ;;  %v1765_v4 = vmul.f32 0.7978846, %v1757_v41  ;;  %v1767_v5 = vmul.f32 0.7978846, %v1759_v63  ;;  %v1758_v23 = vadd.f32 %v1750_v50, %v4050_v28 }
 0x503   :  { %v1760_v24 = vadd.f32 %v1752_v22, %v4052_v20 }
 0x504   :  { %2985 = vtanh.f32 %v1765_v4  ;;  %v1766_v25 = vmul.f32 0.7978846, %v1758_v23 }
 0x505   :  { %2987 = vtanh.f32 %v1767_v5  ;;  %v1768_v26 = vmul.f32 0.7978846, %v1760_v24 }
 0x506   :  { %2989 = vtanh.f32 %v1766_v25 }
 0x507   :  { %2991 = vtanh.f32 %v1768_v26 }
 0x50c   :  { %v2978_v27 = vpop.eup %2977 }
 0x50d   :  { %v2980_v30 = vpop.eup %2979  ;;  %v1777_v40 = vadd.f32 1.0, %v2978_v27 }
 0x50e   :  { %v2982_v31 = vpop.eup %2981  ;;  %v1779_v7 = vadd.f32 1.0, %v2980_v30 }
 0x50f   :  { %v2984_v32 = vpop.eup %2983  ;;  %v1778_v38 = vadd.f32 1.0, %v2982_v31  ;;  %v1785_v45 = vmul.f32 0.5, %v1777_v40 }
 0x510   :  { %v1780_v43 = vadd.f32 1.0, %v2984_v32  ;;  %v1787_v61 = vmul.f32 0.5, %v1779_v7 }
 0x511   :  { %v2986_v39 = vpop.eup %2985  ;;  %v1786_v57 = vmul.f32 0.5, %v1778_v38  ;;  %v1793_v51 = vmul.f32 %v1785_v45, %v4022_v33 }
 0x512   :  { %v2988_v35 = vpop.eup %2987  ;;  %v1781_v47 = vadd.f32 1.0, %v2986_v39  ;;  %v1788_v60 = vmul.f32 0.5, %v1780_v43  ;;  %v1795_v8 = vmul.f32 %v1787_v61, %v4024_v34 }
 0x513   :  { %v2990_v48 = vpop.eup %2989  ;;  %v1783_v49 = vadd.f32 1.0, %v2988_v35  ;;  %v1794_v62 = vmul.f32 %v1786_v57, %v4030_v1  ;;  %v1869_v1 = vld [vmem:[%s4105_s12] sm:$0x3] }
 0x514   :  { %v2992_v52 = vpop.eup %2991  ;;  %v1789_v55 = vmul.f32 0.5, %v1781_v47  ;;  %v1782_v56 = vadd.f32 1.0, %v2990_v48  ;;  %v1796_v0 = vmul.f32 %v1788_v60, %v4032_v46  ;;  %v1874_v33 = vrot.slane %v1869_v1, %v3302_v36 }
 0x515   :  { %v1791_v58 = vmul.f32 0.5, %v1783_v49  ;;  %v1784_v59 = vadd.f32 1.0, %v2992_v52  ;;  %v1878_v46 = vrot.slane %v1869_v1, %v3305_v37 }
 0x516   :  { %v1790_v14 = vmul.f32 0.5, %v1782_v56  ;;  %v1797_v21 = vmul.f32 %v1789_v55, %v4040_v53 }
 0x517   :  { %v1792_v29 = vmul.f32 0.5, %v1784_v59  ;;  %v1799_v15 = vmul.f32 %v1791_v58, %v4042_v54 }
 0x518   :  { %v1798_v44 = vmul.f32 %v1790_v14, %v4050_v28  ;;  %v1865_v42 = vpack.c.bf16 %v1797_v21, %v1793_v51 }
 0x519   :  { %v1800_v6 = vmul.f32 %v1792_v29, %v4052_v20  ;;  %v1867_v53 = vpack.c.bf16 %v1799_v15, %v1795_v8 }
 0x51a   :  { %v1866_v11 = vpack.c.bf16 %v1798_v44, %v1794_v62 }
 0x51b   :  { %v1868_v12 = vpack.c.bf16 %v1800_v6, %v1796_v0 }
 0x51c   :  { %2233 = vmatprep.mubr.bf16.mxu0 %v1866_v11 }
 0x51d   :  { %2276 = vmatprep.mubr.bf16.mxu1 %v1868_v12  ;;  %2234 = vmatmul.mubr.bf16.vlgmr.msra.gmra.mxu0 %v1865_v42 }
 0x51e   :  { %2277 = vmatmul.mubr.bf16.vlgmr.msra.gmra.mxu1 %v1867_v53 }
 0x5dd   :  { %v2235_v54 = vpop.f32.mrf.mxu0 }
 0x5de   :  { %v2236_v28 = vadd.f32 %v2235_v54, %v1874_v33  ;;  %v2278_v20 = vpop.f32.mrf.mxu1 }
 0x5df   :  { %v2237_v34 = vpop.f32.mrf.mxu0 }
 0x5e0   :  { %v2279_v13 = vadd.f32 %v2278_v20, %v2236_v28  ;;  %v2238_v16 = vadd.f32 %v2237_v34, %v1878_v46  ;;  %v2280_v17 = vpop.f32.mrf.mxu1 }
 0x5e1   :  { %v2239_v2 = vpop.f32.mrf.mxu0 }
 0x5e2   :  { %v2281_v3 = vadd.f32 %v2280_v17, %v2238_v16  ;;  %v2240_v41 = vadd.f32 %v2239_v2, %v1874_v33  ;;  %v2282_v63 = vpop.f32.mrf.mxu1  ;;  %v2287_v22 = vadd.f32 %v2279_v13, %v3580_v9 }
 0x5e3   :  { %v2241_v50 = vpop.f32.mrf.mxu0 }
 0x5e4   :  { %v2288_v4 = vadd.f32 %v2281_v3, %v3583_v10  ;;  %v2283_v5 = vadd.f32 %v2282_v63, %v2240_v41  ;;  %v2242_v36 = vadd.f32 %v2241_v50, %v1878_v46  ;;  %v2284_v23 = vpop.f32.mrf.mxu1 }
 0x5e6   :  { %v2567_v37 = vpack.c.bf16 %v2288_v4, %v2287_v22  ;;  %v2285_v24 = vadd.f32 %v2284_v23, %v2242_v36  ;;  %v2289_v25 = vadd.f32 %v2283_v5, %v3588_v18 }
 0x5e8   :  { %2303 = vst [vmem:[%s4106_s13] sm:$0xff] %v2567_v37  ;;  %v2290_v26 = vadd.f32 %v2285_v24, %v3591_v19 }
 0x5ea   :  { %v2568_v27 = vpack.c.bf16 %v2290_v26, %v2289_v25 }
 0x5ec   :  { %2304 = vst [vmem:[%s4106_s13 + $0x8] sm:$0xff] %v2568_v27 }

// kernel: forward.21
= control target key start
LH: loop header
LB: loop body
LE: loop exit
PB: predicated region body
PF: predicated region fallthrough
CT: control target
= control target key end

     0   :  { %s956_s1 = inlined_call_operand.vmem [shape: bf16[256,512], index: 1, kind: input, shape index: {}]   ;;  %s957_s0 = inlined_call_operand.vmem [shape: bf16[16,256], index: 0, kind: input, shape index: {}]   ;;  %s958_s2 = inlined_call_operand.vmem [shape: f32[1,512], index: 2, kind: input, shape index: {}]   ;;  %s959_s3 = inlined_call_operand.vmem [shape: bf16[16,512], index: 3, kind: output, shape index: {}]  }
   0x1   :  { %v624_v0 = vld [vmem:[%s956_s1 + $0xe4] ss:$16 sps:$4 sm:$0xff]   ;;  %v626_v1 = vld [vmem:[%s956_s1 + $0xec] ss:$16 sps:$4 sm:$0xff]   ;;  %v628_v2 = vld [vmem:[%s956_s1 + $0xe0] ss:$16 sps:$4 sm:$0xff]  }
   0x2   :  { %432 = vmatprep.subr.bf16.mxu0 %v624_v0  ;;  %v629_v3 = vld [vmem:[%s956_s1 + $0xe8] ss:$16 sps:$4 sm:$0xff]   ;;  %475 = vmatprep.subr.bf16.mxu1 %v626_v1  ;;  %v630_v4 = vld [vmem:[%s956_s1 + $0xc4] ss:$16 sps:$4 sm:$0xff]   ;;  %v632_v5 = vld [vmem:[%s956_s1 + $0xcc] ss:$16 sps:$4 sm:$0xff]  }
   0x3   :  { %433 = vmatpush1.bf16.msra.mxu0 %v628_v2  ;;  %476 = vmatpush1.bf16.msra.mxu1 %v629_v3  ;;  %v634_v6 = vld [vmem:[%s956_s1 + $0xc0] ss:$16 sps:$4 sm:$0xff]   ;;  %v635_v7 = vld [vmem:[%s956_s1 + $0xc8] ss:$16 sps:$4 sm:$0xff]   ;;  %v636_v8 = vld [vmem:[%s956_s1 + $0xa4] ss:$16 sps:$4 sm:$0xff]   ;;  %v82_v2 = vlaneseq }
   0x4   :  { %434 = vmatprep.subr.bf16.mxu0 %v630_v4  ;;  %477 = vmatprep.subr.bf16.mxu1 %v632_v5  ;;  %v638_v9 = vld [vmem:[%s956_s1 + $0xac] ss:$16 sps:$4 sm:$0xff]   ;;  %v640_v10 = vld [vmem:[%s956_s1 + $0xa0] ss:$16 sps:$4 sm:$0xff]   ;;  %v641_v11 = vld [vmem:[%s956_s1 + $0xa8] ss:$16 sps:$4 sm:$0xff]  }
   0x5   :  { %v642_v12 = vld [vmem:[%s956_s1 + $0x84] ss:$16 sps:$4 sm:$0xff]   ;;  %v644_v13 = vld [vmem:[%s956_s1 + $0x8c] ss:$16 sps:$4 sm:$0xff]   ;;  %v646_v14 = vld [vmem:[%s956_s1 + $0x80] ss:$16 sps:$4 sm:$0xff]  }
   0x6   :  { %v647_v15 = vld [vmem:[%s956_s1 + $0x88] ss:$16 sps:$4 sm:$0xff]   ;;  %v648_v16 = vld [vmem:[%s956_s1 + $0x64] ss:$16 sps:$4 sm:$0xff]   ;;  %v650_v17 = vld [vmem:[%s956_s1 + $0x6c] ss:$16 sps:$4 sm:$0xff]  }
   0x7   :  { %435 = vmatpush1.bf16.msra.mxu0 %v634_v6  ;;  %478 = vmatpush1.bf16.msra.mxu1 %v635_v7  ;;  %v652_v18 = vld [vmem:[%s956_s1 + $0x60] ss:$16 sps:$4 sm:$0xff]   ;;  %v653_v19 = vld [vmem:[%s956_s1 + $0x68] ss:$16 sps:$4 sm:$0xff]   ;;  %v654_v20 = vld [vmem:[%s956_s1 + $0x44] ss:$16 sps:$4 sm:$0xff]  }
   0x8   :  { %436 = vmatprep.subr.bf16.mxu0 %v636_v8  ;;  %479 = vmatprep.subr.bf16.mxu1 %v638_v9  ;;  %v656_v21 = vld [vmem:[%s956_s1 + $0x4c] ss:$16 sps:$4 sm:$0xff]   ;;  %v658_v22 = vld [vmem:[%s956_s1 + $0x40] ss:$16 sps:$4 sm:$0xff]   ;;  %v659_v23 = vld [vmem:[%s956_s1 + $0x48] ss:$16 sps:$4 sm:$0xff]  }
   0x9   :  { %v660_v24 = vld [vmem:[%s956_s1 + $0x24] ss:$16 sps:$4 sm:$0xff]   ;;  %v662_v25 = vld [vmem:[%s956_s1 + $0x2c] ss:$16 sps:$4 sm:$0xff]   ;;  %v664_v26 = vld [vmem:[%s956_s1 + $0x20] ss:$16 sps:$4 sm:$0xff]  }
   0xa   :  { %v665_v27 = vld [vmem:[%s956_s1 + $0x28] ss:$16 sps:$4 sm:$0xff]   ;;  %v666_v28 = vld [vmem:[%s956_s1 + $0x4] ss:$16 sps:$4 sm:$0xff]   ;;  %v668_v29 = vld [vmem:[%s956_s1 + $0xc] ss:$16 sps:$4 sm:$0xff]  }
   0xb   :  { %437 = vmatpush1.bf16.msra.mxu0 %v640_v10  ;;  %480 = vmatpush1.bf16.msra.mxu1 %v641_v11  ;;  %v670_v30 = vld [vmem:[%s956_s1] ss:$16 sps:$4 sm:$0xff]   ;;  %v671_v31 = vld [vmem:[%s956_s1 + $0x8] ss:$16 sps:$4 sm:$0xff]   ;;  %v672_v32 = vld [vmem:[%s956_s1 + $0x1e4] ss:$16 sps:$4 sm:$0xff]  }
   0xc   :  { %438 = vmatprep.subr.bf16.mxu0 %v642_v12  ;;  %481 = vmatprep.subr.bf16.mxu1 %v644_v13  ;;  %v674_v33 = vld [vmem:[%s956_s1 + $0x1ec] ss:$16 sps:$4 sm:$0xff]   ;;  %v676_v34 = vld [vmem:[%s956_s1 + $0x1e0] ss:$16 sps:$4 sm:$0xff]   ;;  %v677_v35 = vld [vmem:[%s956_s1 + $0x1e8] ss:$16 sps:$4 sm:$0xff]  }
   0xd   :  { %v678_v36 = vld [vmem:[%s956_s1 + $0x1c4] ss:$16 sps:$4 sm:$0xff]   ;;  %v680_v37 = vld [vmem:[%s956_s1 + $0x1cc] ss:$16 sps:$4 sm:$0xff]   ;;  %v682_v38 = vld [vmem:[%s956_s1 + $0x1c0] ss:$16 sps:$4 sm:$0xff]  }
   0xe   :  { %v683_v39 = vld [vmem:[%s956_s1 + $0x1c8] ss:$16 sps:$4 sm:$0xff]   ;;  %v684_v40 = vld [vmem:[%s956_s1 + $0x1a4] ss:$16 sps:$4 sm:$0xff]   ;;  %v686_v41 = vld [vmem:[%s956_s1 + $0x1ac] ss:$16 sps:$4 sm:$0xff]  }
   0xf   :  { %439 = vmatpush1.bf16.msra.mxu0 %v646_v14  ;;  %482 = vmatpush1.bf16.msra.mxu1 %v647_v15  ;;  %v688_v42 = vld [vmem:[%s956_s1 + $0x1a0] ss:$16 sps:$4 sm:$0xff]   ;;  %v689_v43 = vld [vmem:[%s956_s1 + $0x1a8] ss:$16 sps:$4 sm:$0xff]   ;;  %v690_v44 = vld [vmem:[%s956_s1 + $0x184] ss:$16 sps:$4 sm:$0xff]  }
  0x10   :  { %440 = vmatprep.subr.bf16.mxu0 %v648_v16  ;;  %483 = vmatprep.subr.bf16.mxu1 %v650_v17  ;;  %v692_v45 = vld [vmem:[%s956_s1 + $0x18c] ss:$16 sps:$4 sm:$0xff]   ;;  %v694_v47 = vld [vmem:[%s956_s1 + $0x180] ss:$16 sps:$4 sm:$0xff]   ;;  %v695_v48 = vld [vmem:[%s956_s1 + $0x188] ss:$16 sps:$4 sm:$0xff]  }
  0x11   :  { %v722_v46 = vld [vmem:[%s957_s0 + $0x4] ss:$8 sps:$4 sm:$0xff]   ;;  %v700_v51 = vld [vmem:[%s956_s1 + $0x160] ss:$16 sps:$4 sm:$0xff]   ;;  %v701_v52 = vld [vmem:[%s956_s1 + $0x168] ss:$16 sps:$4 sm:$0xff]  }
  0x12   :  { %v696_v49 = vld [vmem:[%s956_s1 + $0x164] ss:$16 sps:$4 sm:$0xff]   ;;  %v698_v50 = vld [vmem:[%s956_s1 + $0x16c] ss:$16 sps:$4 sm:$0xff]   ;;  %464 = vmatprep.mubr.bf16.mxu0 %v722_v46  ;;  %507 = vmatprep.mubr.bf16.mxu1 %v722_v46  ;;  %v706_v55 = vld [vmem:[%s956_s1 + $0x140] ss:$16 sps:$4 sm:$0xff]  }
  0x13   :  { %441 = vmatpush1.bf16.msra.mxu0 %v652_v18  ;;  %484 = vmatpush1.bf16.msra.mxu1 %v653_v19  ;;  %v702_v53 = vld [vmem:[%s956_s1 + $0x144] ss:$16 sps:$4 sm:$0xff]   ;;  %v704_v54 = vld [vmem:[%s956_s1 + $0x14c] ss:$16 sps:$4 sm:$0xff]   ;;  %v707_v56 = vld [vmem:[%s956_s1 + $0x148] ss:$16 sps:$4 sm:$0xff]  }
  0x14   :  { %442 = vmatprep.subr.bf16.mxu0 %v654_v20  ;;  %485 = vmatprep.subr.bf16.mxu1 %v656_v21  ;;  %v708_v57 = vld [vmem:[%s956_s1 + $0x124] ss:$16 sps:$4 sm:$0xff]   ;;  %v710_v58 = vld [vmem:[%s956_s1 + $0x12c] ss:$16 sps:$4 sm:$0xff]   ;;  %v712_v59 = vld [vmem:[%s956_s1 + $0x120] ss:$16 sps:$4 sm:$0xff]  }
  0x15   :  { %v713_v60 = vld [vmem:[%s956_s1 + $0x128] ss:$16 sps:$4 sm:$0xff]   ;;  %v714_v61 = vld [vmem:[%s956_s1 + $0x104] ss:$16 sps:$4 sm:$0xff]   ;;  %v716_v62 = vld [vmem:[%s956_s1 + $0x10c] ss:$16 sps:$4 sm:$0xff]  }
  0x16   :  { %v718_v63 = vld [vmem:[%s956_s1 + $0x100] ss:$16 sps:$4 sm:$0xff]   ;;  %v719_v0 = vld [vmem:[%s956_s1 + $0x108] ss:$16 sps:$4 sm:$0xff]   ;;  %v83_v3 = vshrl.u32 %v82_v2, 7 }
  0x17   :  { %443 = vmatpush1.bf16.msra.mxu0 %v658_v22  ;;  %486 = vmatpush1.bf16.msra.mxu1 %v659_v23  ;;  %v720_v1 = vld [vmem:[%s957_s0] ss:$8 sps:$4 sm:$0xff]  }
  0x18   :  { %444 = vmatprep.subr.bf16.mxu0 %v660_v24  ;;  %487 = vmatprep.subr.bf16.mxu1 %v662_v25  ;;  %v84_v4 = vsub.s32 0, %v83_v3  ;;  %v92_v5 = vsub.s32 2, %v83_v3  ;;  %v88_v6 = vsub.s32 1, %v83_v3  ;;  %v96_v7 = vsub.s32 3, %v83_v3  ;;  %v80_v8 = vld [vmem:[%s958_s2] sm:$0xf] }
  0x1a   :  { %v85_v9 = vrot.slane %v80_v8, %v84_v4  ;;  %v93_v10 = vrot.slane %v80_v8, %v92_v5  ;;  %v89_v11 = vrot.slane %v80_v8, %v88_v6  ;;  %v97_v12 = vrot.slane %v80_v8, %v96_v7 }
  0x1b   :  { %445 = vmatpush1.bf16.msra.mxu0 %v664_v26  ;;  %488 = vmatpush1.bf16.msra.mxu1 %v665_v27 }
  0x1c   :  { %446 = vmatprep.subr.bf16.mxu0 %v666_v28  ;;  %489 = vmatprep.subr.bf16.mxu1 %v668_v29 }
  0x1f   :  { %447 = vmatpush1.bf16.msra.mxu0 %v670_v30  ;;  %490 = vmatpush1.bf16.msra.mxu1 %v671_v31 }
  0x20   :  { %448 = vmatprep.subr.bf16.mxu0 %v672_v32  ;;  %491 = vmatprep.subr.bf16.mxu1 %v674_v33 }
  0x23   :  { %449 = vmatpush2.bf16.msra.mxu0 %v676_v34  ;;  %492 = vmatpush2.bf16.msra.mxu1 %v677_v35 }
  0x24   :  { %450 = vmatprep.subr.bf16.mxu0 %v678_v36  ;;  %493 = vmatprep.subr.bf16.mxu1 %v680_v37 }
  0x27   :  { %451 = vmatpush2.bf16.msra.mxu0 %v682_v38  ;;  %494 = vmatpush2.bf16.msra.mxu1 %v683_v39 }
  0x28   :  { %452 = vmatprep.subr.bf16.mxu0 %v684_v40  ;;  %495 = vmatprep.subr.bf16.mxu1 %v686_v41 }
  0x2b   :  { %453 = vmatpush2.bf16.msra.mxu0 %v688_v42  ;;  %496 = vmatpush2.bf16.msra.mxu1 %v689_v43 }
  0x2c   :  { %454 = vmatprep.subr.bf16.mxu0 %v690_v44  ;;  %497 = vmatprep.subr.bf16.mxu1 %v692_v45 }
  0x2f   :  { %455 = vmatpush2.bf16.msra.mxu0 %v694_v47  ;;  %498 = vmatpush2.bf16.msra.mxu1 %v695_v48 }
  0x30   :  { %456 = vmatprep.subr.bf16.mxu0 %v696_v49  ;;  %499 = vmatprep.subr.bf16.mxu1 %v698_v50 }
  0x33   :  { %457 = vmatpush2.bf16.msra.mxu0 %v700_v51  ;;  %500 = vmatpush2.bf16.msra.mxu1 %v701_v52 }
  0x34   :  { %458 = vmatprep.subr.bf16.mxu0 %v702_v53  ;;  %501 = vmatprep.subr.bf16.mxu1 %v704_v54 }
  0x37   :  { %459 = vmatpush2.bf16.msra.mxu0 %v706_v55  ;;  %502 = vmatpush2.bf16.msra.mxu1 %v707_v56 }
  0x38   :  { %460 = vmatprep.subr.bf16.mxu0 %v708_v57  ;;  %503 = vmatprep.subr.bf16.mxu1 %v710_v58 }
  0x3b   :  { %461 = vmatpush2.bf16.msra.mxu0 %v712_v59  ;;  %504 = vmatpush2.bf16.msra.mxu1 %v713_v60 }
  0x3c   :  { %462 = vmatprep.subr.bf16.mxu0 %v714_v61  ;;  %505 = vmatprep.subr.bf16.mxu1 %v716_v62 }
  0x3f   :  { %463 = vmatpush2.bf16.msra.mxu0 %v718_v63  ;;  %506 = vmatpush2.bf16.msra.mxu1 %v719_v0 }
  0x42   :  { %465 = vmatmul.mubr.bf16.vlgmr.msra.gmra.mxu0 %v720_v1  ;;  %508 = vmatmul.mubr.bf16.vlgmr.msra.gmra.mxu1 %v720_v1 }
 0x102   :  { %v466_v13 = vpop.f32.mrf.mxu0  ;;  %v509_v14 = vpop.f32.mrf.mxu1 }
 0x103   :  { %v467_v17 = vadd.f32 %v466_v13, %v85_v9  ;;  %v510_v18 = vadd.f32 %v509_v14, %v93_v10 }
 0x104   :  { %v468_v15 = vpop.f32.mrf.mxu0  ;;  %v511_v16 = vpop.f32.mrf.mxu1 }
 0x105   :  { %v469_v19 = vadd.f32 %v468_v15, %v89_v11  ;;  %v512_v20 = vadd.f32 %v511_v16, %v97_v12 }
 0x106   :  { %v470_v21 = vpop.f32.mrf.mxu0  ;;  %v513_v22 = vpop.f32.mrf.mxu1 }
 0x107   :  { %v620_v23 = vpack.c.bf16 %v469_v19, %v467_v17  ;;  %v621_v24 = vpack.c.bf16 %v512_v20, %v510_v18  ;;  %v471_v27 = vadd.f32 %v470_v21, %v85_v9  ;;  %v514_v28 = vadd.f32 %v513_v22, %v93_v10 }
 0x108   :  { %v472_v25 = vpop.f32.mrf.mxu0  ;;  %v515_v26 = vpop.f32.mrf.mxu1 }
 0x109   :  { %542 = vst [vmem:[%s959_s3] sm:$0xff] %v620_v23  ;;  %543 = vst [vmem:[%s959_s3 + $0x8] sm:$0xff] %v621_v24  ;;  %v473_v29 = vadd.f32 %v472_v25, %v89_v11  ;;  %v516_v30 = vadd.f32 %v515_v26, %v97_v12 }
 0x10b   :  { %v622_v31 = vpack.c.bf16 %v473_v29, %v471_v27  ;;  %v623_v32 = vpack.c.bf16 %v516_v30, %v514_v28 }
 0x10d   :  { %544 = vst [vmem:[%s959_s3 + $0x10] sm:$0xff] %v622_v31  ;;  %545 = vst [vmem:[%s959_s3 + $0x18] sm:$0xff] %v623_v32 }

// kernel: forward.20
= control target key start
LH: loop header
LB: loop body
LE: loop exit
PB: predicated region body
PF: predicated region fallthrough
CT: control target
= control target key end

     0   :  { %s2077_s0 = inlined_call_operand.vmem [shape: bf16[16,256], index: 0, kind: input, shape index: {}]   ;;  %s2078_s3 = inlined_call_operand.vmem [shape: bf16[256,512], index: 3, kind: input, shape index: {}]   ;;  %s2079_s5 = inlined_call_operand.vmem [shape: bf16[512,256], index: 5, kind: input, shape index: {}]   ;;  %s2080_s1 = inlined_call_operand.vmem [shape: f32[1,256], index: 1, kind: input, shape index: {}]   ;;  %s2081_s2 = inlined_call_operand.vmem [shape: f32[1,256], index: 2, kind: input, shape index: {}]   ;;  %s2082_s4 = inlined_call_operand.vmem [shape: f32[1,512], index: 4, kind: input, shape index: {}]   ;;  %s2083_s6 = inlined_call_operand.vmem [shape: f32[1,256], index: 6, kind: input, shape index: {}]   ;;  %s2084_s7 = inlined_call_operand.vmem [shape: bf16[16,256], index: 7, kind: output, shape index: {}]  }
   0x1   :  { %v26_v0 = vld [vmem:[%s2077_s0] sm:$0xff]  ;;  %v27_v1 = vld [vmem:[%s2077_s0 + $0x8] sm:$0xff] }
   0x2   :  { %v1561_v2 = vunpack.c.l.bf16 %v26_v0  ;;  %v1563_v3 = vunpack.c.h.bf16 %v26_v0  ;;  %v1565_v4 = vunpack.c.l.bf16 %v27_v1  ;;  %v1567_v5 = vunpack.c.h.bf16 %v27_v1  ;;  %v1303_v8 = vld [vmem:[%s2078_s3 + $0xe4] ss:$16 sps:$4 sm:$0xff]   ;;  %v1305_v9 = vld [vmem:[%s2078_s3 + $0xec] ss:$16 sps:$4 sm:$0xff]   ;;  %v1307_v10 = vld [vmem:[%s2078_s3 + $0xe0] ss:$16 sps:$4 sm:$0xff]  }
   0x3   :  { %505 = vmatprep.subr.bf16.mxu0 %v1303_v8  ;;  %v1308_v11 = vld [vmem:[%s2078_s3 + $0xe8] ss:$16 sps:$4 sm:$0xff]   ;;  %548 = vmatprep.subr.bf16.mxu1 %v1305_v9  ;;  %v1309_v12 = vld [vmem:[%s2078_s3 + $0xc4] ss:$16 sps:$4 sm:$0xff]   ;;  %v1311_v13 = vld [vmem:[%s2078_s3 + $0xcc] ss:$16 sps:$4 sm:$0xff]  }
   0x4   :  { %v34_v6 = vadd.f32 %v1563_v3, %v1561_v2  ;;  %v37_v7 = vadd.f32 %v1567_v5, %v1565_v4  ;;  %506 = vmatpush1.bf16.msra.mxu0 %v1307_v10  ;;  %549 = vmatpush1.bf16.msra.mxu1 %v1308_v11  ;;  %v1313_v14 = vld [vmem:[%s2078_s3 + $0xc0] ss:$16 sps:$4 sm:$0xff]   ;;  %v1314_v15 = vld [vmem:[%s2078_s3 + $0xc8] ss:$16 sps:$4 sm:$0xff]   ;;  %v1315_v16 = vld [vmem:[%s2078_s3 + $0xa4] ss:$16 sps:$4 sm:$0xff]  }
   0x5   :  { %507 = vmatprep.subr.bf16.mxu0 %v1309_v12  ;;  %550 = vmatprep.subr.bf16.mxu1 %v1311_v13  ;;  %v1317_v17 = vld [vmem:[%s2078_s3 + $0xac] ss:$16 sps:$4 sm:$0xff]   ;;  %v1319_v18 = vld [vmem:[%s2078_s3 + $0xa0] ss:$16 sps:$4 sm:$0xff]   ;;  %v1320_v19 = vld [vmem:[%s2078_s3 + $0xa8] ss:$16 sps:$4 sm:$0xff]  }
   0x6   :  { %35 = vadd.xlane.f32.xlu0 %v34_v6  ;;  %v1321_v20 = vld [vmem:[%s2078_s3 + $0x84] ss:$16 sps:$4 sm:$0xff]   ;;  %v1323_v21 = vld [vmem:[%s2078_s3 + $0x8c] ss:$16 sps:$4 sm:$0xff]   ;;  %v1325_v22 = vld [vmem:[%s2078_s3 + $0x80] ss:$16 sps:$4 sm:$0xff]  }
   0x7   :  { %v1326_v23 = vld [vmem:[%s2078_s3 + $0x88] ss:$16 sps:$4 sm:$0xff]   ;;  %v1327_v24 = vld [vmem:[%s2078_s3 + $0x64] ss:$16 sps:$4 sm:$0xff]   ;;  %v1329_v25 = vld [vmem:[%s2078_s3 + $0x6c] ss:$16 sps:$4 sm:$0xff]  }
   0x8   :  { %508 = vmatpush1.bf16.msra.mxu0 %v1313_v14  ;;  %551 = vmatpush1.bf16.msra.mxu1 %v1314_v15  ;;  %v1331_v26 = vld [vmem:[%s2078_s3 + $0x60] ss:$16 sps:$4 sm:$0xff]   ;;  %v1332_v27 = vld [vmem:[%s2078_s3 + $0x68] ss:$16 sps:$4 sm:$0xff]   ;;  %v1333_v28 = vld [vmem:[%s2078_s3 + $0x44] ss:$16 sps:$4 sm:$0xff]  }
   0x9   :  { %509 = vmatprep.subr.bf16.mxu0 %v1315_v16  ;;  %552 = vmatprep.subr.bf16.mxu1 %v1317_v17  ;;  %v1335_v29 = vld [vmem:[%s2078_s3 + $0x4c] ss:$16 sps:$4 sm:$0xff]   ;;  %v1337_v30 = vld [vmem:[%s2078_s3 + $0x40] ss:$16 sps:$4 sm:$0xff]   ;;  %v1338_v31 = vld [vmem:[%s2078_s3 + $0x48] ss:$16 sps:$4 sm:$0xff]  }
   0xa   :  { %38 = vadd.xlane.f32.xlu0 %v37_v7  ;;  %v1339_v32 = vld [vmem:[%s2078_s3 + $0x24] ss:$16 sps:$4 sm:$0xff]   ;;  %v1341_v33 = vld [vmem:[%s2078_s3 + $0x2c] ss:$16 sps:$4 sm:$0xff]   ;;  %v1343_v34 = vld [vmem:[%s2078_s3 + $0x20] ss:$16 sps:$4 sm:$0xff]  }
   0xb   :  { %v1344_v35 = vld [vmem:[%s2078_s3 + $0x28] ss:$16 sps:$4 sm:$0xff]   ;;  %v1345_v36 = vld [vmem:[%s2078_s3 + $0x4] ss:$16 sps:$4 sm:$0xff]   ;;  %v1347_v37 = vld [vmem:[%s2078_s3 + $0xc] ss:$16 sps:$4 sm:$0xff]  }
   0xc   :  { %510 = vmatpush1.bf16.msra.mxu0 %v1319_v18  ;;  %553 = vmatpush1.bf16.msra.mxu1 %v1320_v19  ;;  %v1349_v38 = vld [vmem:[%s2078_s3] ss:$16 sps:$4 sm:$0xff]   ;;  %v1350_v39 = vld [vmem:[%s2078_s3 + $0x8] ss:$16 sps:$4 sm:$0xff]   ;;  %v1351_v40 = vld [vmem:[%s2078_s3 + $0x1e4] ss:$16 sps:$4 sm:$0xff]  }
   0xd   :  { %511 = vmatprep.subr.bf16.mxu0 %v1321_v20  ;;  %554 = vmatprep.subr.bf16.mxu1 %v1323_v21  ;;  %v1353_v41 = vld [vmem:[%s2078_s3 + $0x1ec] ss:$16 sps:$4 sm:$0xff]   ;;  %v1355_v56 = vld [vmem:[%s2078_s3 + $0x1e0] ss:$16 sps:$4 sm:$0xff]   ;;  %v1356_v57 = vld [vmem:[%s2078_s3 + $0x1e8] ss:$16 sps:$4 sm:$0xff]  }
   0xe   :  { %v1357_v58 = vld [vmem:[%s2078_s3 + $0x1c4] ss:$16 sps:$4 sm:$0xff]   ;;  %v1359_v59 = vld [vmem:[%s2078_s3 + $0x1cc] ss:$16 sps:$4 sm:$0xff]   ;;  %v1361_v60 = vld [vmem:[%s2078_s3 + $0x1c0] ss:$16 sps:$4 sm:$0xff]  }
   0xf   :  { %v1362_v61 = vld [vmem:[%s2078_s3 + $0x1c8] ss:$16 sps:$4 sm:$0xff]   ;;  %v1363_v62 = vld [vmem:[%s2078_s3 + $0x1a4] ss:$16 sps:$4 sm:$0xff]   ;;  %v1365_v63 = vld [vmem:[%s2078_s3 + $0x1ac] ss:$16 sps:$4 sm:$0xff]  }
  0x10   :  { %512 = vmatpush1.bf16.msra.mxu0 %v1325_v22  ;;  %555 = vmatpush1.bf16.msra.mxu1 %v1326_v23  ;;  %v1367_v0 = vld [vmem:[%s2078_s3 + $0x1a0] ss:$16 sps:$4 sm:$0xff]   ;;  %v1368_v1 = vld [vmem:[%s2078_s3 + $0x1a8] ss:$16 sps:$4 sm:$0xff]   ;;  %v1369_v6 = vld [vmem:[%s2078_s3 + $0x184] ss:$16 sps:$4 sm:$0xff]  }
  0x11   :  { %513 = vmatprep.subr.bf16.mxu0 %v1327_v24  ;;  %556 = vmatprep.subr.bf16.mxu1 %v1329_v25  ;;  %v1371_v7 = vld [vmem:[%s2078_s3 + $0x18c] ss:$16 sps:$4 sm:$0xff]   ;;  %v1373_v8 = vld [vmem:[%s2078_s3 + $0x180] ss:$16 sps:$4 sm:$0xff]   ;;  %v1374_v9 = vld [vmem:[%s2078_s3 + $0x188] ss:$16 sps:$4 sm:$0xff]  }
  0x12   :  { %v1375_v10 = vld [vmem:[%s2078_s3 + $0x164] ss:$16 sps:$4 sm:$0xff]   ;;  %v1377_v11 = vld [vmem:[%s2078_s3 + $0x16c] ss:$16 sps:$4 sm:$0xff]   ;;  %v1379_v12 = vld [vmem:[%s2078_s3 + $0x160] ss:$16 sps:$4 sm:$0xff]  }
  0x13   :  { %v1380_v13 = vld [vmem:[%s2078_s3 + $0x168] ss:$16 sps:$4 sm:$0xff]   ;;  %v1381_v14 = vld [vmem:[%s2078_s3 + $0x144] ss:$16 sps:$4 sm:$0xff]   ;;  %v1383_v15 = vld [vmem:[%s2078_s3 + $0x14c] ss:$16 sps:$4 sm:$0xff]  }
  0x14   :  { %514 = vmatpush1.bf16.msra.mxu0 %v1331_v26  ;;  %557 = vmatpush1.bf16.msra.mxu1 %v1332_v27  ;;  %v1385_v16 = vld [vmem:[%s2078_s3 + $0x140] ss:$16 sps:$4 sm:$0xff]   ;;  %v1386_v17 = vld [vmem:[%s2078_s3 + $0x148] ss:$16 sps:$4 sm:$0xff]   ;;  %v1387_v18 = vld [vmem:[%s2078_s3 + $0x124] ss:$16 sps:$4 sm:$0xff]  }
  0x15   :  { %515 = vmatprep.subr.bf16.mxu0 %v1333_v28  ;;  %558 = vmatprep.subr.bf16.mxu1 %v1335_v29  ;;  %v1389_v19 = vld [vmem:[%s2078_s3 + $0x12c] ss:$16 sps:$4 sm:$0xff]   ;;  %v1391_v20 = vld [vmem:[%s2078_s3 + $0x120] ss:$16 sps:$4 sm:$0xff]   ;;  %v1392_v21 = vld [vmem:[%s2078_s3 + $0x128] ss:$16 sps:$4 sm:$0xff]  }
  0x16   :  { %v1393_v22 = vld [vmem:[%s2078_s3 + $0x104] ss:$16 sps:$4 sm:$0xff]   ;;  %v1395_v23 = vld [vmem:[%s2078_s3 + $0x10c] ss:$16 sps:$4 sm:$0xff]   ;;  %v1397_v24 = vld [vmem:[%s2078_s3 + $0x100] ss:$16 sps:$4 sm:$0xff]  }
  0x17   :  { %v1398_v25 = vld [vmem:[%s2078_s3 + $0x108] ss:$16 sps:$4 sm:$0xff]   ;;  %v1401_v26 = vld [vmem:[%s2079_s5 + $0x74] ss:$8 sps:$4 sm:$0xff]  }
  0x18   :  { %516 = vmatpush1.bf16.msra.mxu0 %v1337_v30  ;;  %559 = vmatpush1.bf16.msra.mxu1 %v1338_v31  ;;  %v1404_v27 = vld [vmem:[%s2079_s5 + $0x174] ss:$8 sps:$4 sm:$0xff]  }
  0x19   :  { %517 = vmatprep.subr.bf16.mxu0 %v1339_v32  ;;  %560 = vmatprep.subr.bf16.mxu1 %v1341_v33 }
  0x1c   :  { %518 = vmatpush1.bf16.msra.mxu0 %v1343_v34  ;;  %561 = vmatpush1.bf16.msra.mxu1 %v1344_v35  ;;  %v68_v34 = vlaneseq }
  0x1d   :  { %519 = vmatprep.subr.bf16.mxu0 %v1345_v36  ;;  %562 = vmatprep.subr.bf16.mxu1 %v1347_v37 }
  0x1e   :  { %v1791_v35 = vshrl.u32 %v68_v34, 7  ;;  %v1455_v34 = vld [vmem:[%s2079_s5 + $0xe4] ss:$8 sps:$4 sm:$0xff]  }
  0x20   :  { %520 = vmatpush1.bf16.msra.mxu0 %v1349_v38  ;;  %563 = vmatpush1.bf16.msra.mxu1 %v1350_v39  ;;  %v1794_v36 = vsub.s32 0, %v1791_v35  ;;  %v1797_v37 = vsub.s32 1, %v1791_v35  ;;  %v32_v38 = vld [vmem:[%s2080_s1] sm:$0x3] }
  0x21   :  { %521 = vmatprep.subr.bf16.mxu0 %v1351_v40  ;;  %564 = vmatprep.subr.bf16.mxu1 %v1353_v41  ;;  %v33_v40 = vld [vmem:[%s2081_s2] sm:$0x3] }
  0x24   :  { %522 = vmatpush2.bf16.msra.mxu0 %v1355_v56  ;;  %565 = vmatpush2.bf16.msra.mxu1 %v1356_v57 }
  0x25   :  { %523 = vmatprep.subr.bf16.mxu0 %v1357_v58  ;;  %566 = vmatprep.subr.bf16.mxu1 %v1359_v59 }
  0x28   :  { %524 = vmatpush2.bf16.msra.mxu0 %v1361_v60  ;;  %567 = vmatpush2.bf16.msra.mxu1 %v1362_v61 }
  0x29   :  { %525 = vmatprep.subr.bf16.mxu0 %v1363_v62  ;;  %568 = vmatprep.subr.bf16.mxu1 %v1365_v63  ;;  %v1410_v63 = vld [vmem:[%s2079_s5 + $0x164] ss:$8 sps:$4 sm:$0xff]  }
  0x2c   :  { %526 = vmatpush2.bf16.msra.mxu0 %v1367_v0  ;;  %569 = vmatpush2.bf16.msra.mxu1 %v1368_v1  ;;  %v1405_v0 = vld [vmem:[%s2079_s5 + $0x60] ss:$8 sps:$4 sm:$0xff]  }
  0x2d   :  { %527 = vmatprep.subr.bf16.mxu0 %v1369_v6  ;;  %570 = vmatprep.subr.bf16.mxu1 %v1371_v7  ;;  %v1408_v1 = vld [vmem:[%s2079_s5 + $0x160] ss:$8 sps:$4 sm:$0xff]   ;;  %v1413_v6 = vld [vmem:[%s2079_s5 + $0x54] ss:$8 sps:$4 sm:$0xff]  }
  0x2e   :  { %v1416_v7 = vld [vmem:[%s2079_s5 + $0x154] ss:$8 sps:$4 sm:$0xff]  }
  0x30   :  { %528 = vmatpush2.bf16.msra.mxu0 %v1373_v8  ;;  %571 = vmatpush2.bf16.msra.mxu1 %v1374_v9  ;;  %v1411_v8 = vld [vmem:[%s2079_s5 + $0x50] ss:$8 sps:$4 sm:$0xff]  }
  0x31   :  { %529 = vmatprep.subr.bf16.mxu0 %v1375_v10  ;;  %572 = vmatprep.subr.bf16.mxu1 %v1377_v11  ;;  %v1414_v9 = vld [vmem:[%s2079_s5 + $0x150] ss:$8 sps:$4 sm:$0xff]   ;;  %v1419_v10 = vld [vmem:[%s2079_s5 + $0x44] ss:$8 sps:$4 sm:$0xff]  }
  0x32   :  { %v1422_v11 = vld [vmem:[%s2079_s5 + $0x144] ss:$8 sps:$4 sm:$0xff]  }
  0x34   :  { %530 = vmatpush2.bf16.msra.mxu0 %v1379_v12  ;;  %573 = vmatpush2.bf16.msra.mxu1 %v1380_v13  ;;  %v1417_v12 = vld [vmem:[%s2079_s5 + $0x40] ss:$8 sps:$4 sm:$0xff]  }
  0x35   :  { %531 = vmatprep.subr.bf16.mxu0 %v1381_v14  ;;  %574 = vmatprep.subr.bf16.mxu1 %v1383_v15  ;;  %v1420_v13 = vld [vmem:[%s2079_s5 + $0x140] ss:$8 sps:$4 sm:$0xff]   ;;  %v1425_v14 = vld [vmem:[%s2079_s5 + $0x34] ss:$8 sps:$4 sm:$0xff]  }
  0x36   :  { %v1428_v15 = vld [vmem:[%s2079_s5 + $0x134] ss:$8 sps:$4 sm:$0xff]  }
  0x38   :  { %532 = vmatpush2.bf16.msra.mxu0 %v1385_v16  ;;  %575 = vmatpush2.bf16.msra.mxu1 %v1386_v17  ;;  %v1423_v16 = vld [vmem:[%s2079_s5 + $0x30] ss:$8 sps:$4 sm:$0xff]  }
  0x39   :  { %533 = vmatprep.subr.bf16.mxu0 %v1387_v18  ;;  %576 = vmatprep.subr.bf16.mxu1 %v1389_v19  ;;  %v1426_v17 = vld [vmem:[%s2079_s5 + $0x130] ss:$8 sps:$4 sm:$0xff]   ;;  %v1431_v18 = vld [vmem:[%s2079_s5 + $0x24] ss:$8 sps:$4 sm:$0xff]  }
  0x3a   :  { %v1434_v19 = vld [vmem:[%s2079_s5 + $0x124] ss:$8 sps:$4 sm:$0xff]  }
  0x3c   :  { %534 = vmatpush2.bf16.msra.mxu0 %v1391_v20  ;;  %577 = vmatpush2.bf16.msra.mxu1 %v1392_v21  ;;  %v1429_v20 = vld [vmem:[%s2079_s5 + $0x20] ss:$8 sps:$4 sm:$0xff]  }
  0x3d   :  { %535 = vmatprep.subr.bf16.mxu0 %v1393_v22  ;;  %578 = vmatprep.subr.bf16.mxu1 %v1395_v23  ;;  %v1432_v21 = vld [vmem:[%s2079_s5 + $0x120] ss:$8 sps:$4 sm:$0xff]   ;;  %v1437_v22 = vld [vmem:[%s2079_s5 + $0x14] ss:$8 sps:$4 sm:$0xff]  }
  0x3e   :  { %v1440_v23 = vld [vmem:[%s2079_s5 + $0x114] ss:$8 sps:$4 sm:$0xff]  }
  0x40   :  { %536 = vmatpush2.bf16.msra.mxu0 %v1397_v24  ;;  %579 = vmatpush2.bf16.msra.mxu1 %v1398_v25  ;;  %v1435_v24 = vld [vmem:[%s2079_s5 + $0x10] ss:$8 sps:$4 sm:$0xff]  }
  0x41   :  { %1063 = vmatprep.subr.bf16.mxu0 %v1401_v26  ;;  %1106 = vmatprep.subr.bf16.mxu1 %v1404_v27  ;;  %v1438_v25 = vld [vmem:[%s2079_s5 + $0x110] ss:$8 sps:$4 sm:$0xff]   ;;  %v1443_v26 = vld [vmem:[%s2079_s5 + $0x4] ss:$8 sps:$4 sm:$0xff]  }
  0x42   :  { %v1446_v27 = vld [vmem:[%s2079_s5 + $0x104] ss:$8 sps:$4 sm:$0xff]  }
  0x8f   :  { %v36_v42 = vpop.xlane.xlu0 %35 }
  0x90   :  { %v41_v43 = vmul.f32 0.00390625, %v36_v42  ;;  %v71_v42 = vrot.slane %v32_v38, %v1794_v36 }
  0x92   :  { %v1676_v44 = vsub.f32 %v1561_v2, %v41_v43  ;;  %v1679_v45 = vsub.f32 %v1563_v3, %v41_v43  ;;  %v75_v43 = vrot.slane %v32_v38, %v1797_v37  ;;  %v1458_v38 = vld [vmem:[%s2079_s5 + $0x1e4] ss:$8 sps:$4 sm:$0xff]  }
  0x93   :  { %v39_v46 = vpop.xlane.xlu0 %38 }
  0x94   :  { %v42_v47 = vmul.f32 0.00390625, %v39_v46  ;;  %v47_v48 = vmul.f32 %v1676_v44, %v1676_v44  ;;  %v48_v49 = vmul.f32 %v1679_v45, %v1679_v45 }
  0x96   :  { %v1686_v50 = vsub.f32 %v1565_v4, %v42_v47  ;;  %v1689_v51 = vsub.f32 %v1567_v5, %v42_v47  ;;  %v51_v52 = vadd.f32 %v48_v49, %v47_v48  ;;  %v86_v48 = vrot.slane %v33_v40, %v1794_v36 }
  0x97   :  { %v90_v49 = vrot.slane %v33_v40, %v1797_v37  ;;  %v1456_v40 = vld [vmem:[%s2079_s5 + $0x1e0] ss:$8 sps:$4 sm:$0xff]  }
  0x98   :  { %52 = vadd.xlane.f32.xlu1 %v51_v52  ;;  %v49_v53 = vmul.f32 %v1686_v50, %v1686_v50  ;;  %v50_v54 = vmul.f32 %v1689_v51, %v1689_v51 }
  0x9a   :  { %v54_v55 = vadd.f32 %v50_v54, %v49_v53 }
  0x9c   :  { %55 = vadd.xlane.f32.xlu1 %v54_v55 }
 0x121   :  { %v53_v28 = vpop.xlane.xlu1 %52 }
 0x122   :  { %v57_v29 = vmul.f32 0.00390625, %v53_v28  ;;  %v1441_v28 = vld [vmem:[%s2079_s5] ss:$8 sps:$4 sm:$0xff]  }
 0x124   :  { %v59_v30 = vadd.f32 1e-05, %v57_v29  ;;  %v1444_v29 = vld [vmem:[%s2079_s5 + $0x100] ss:$8 sps:$4 sm:$0xff]  }
 0x125   :  { %v56_v31 = vpop.xlane.xlu1 %55 }
 0x126   :  { %1495 = vrsqrt.f32 %v59_v30  ;;  %v58_v32 = vmul.f32 0.00390625, %v56_v31  ;;  %v1449_v30 = vld [vmem:[%s2079_s5 + $0xf4] ss:$8 sps:$4 sm:$0xff]  }
 0x127   :  { %v1452_v31 = vld [vmem:[%s2079_s5 + $0x1f4] ss:$8 sps:$4 sm:$0xff]  }
 0x128   :  { %v60_v33 = vadd.f32 1e-05, %v58_v32  ;;  %v1447_v32 = vld [vmem:[%s2079_s5 + $0xf0] ss:$8 sps:$4 sm:$0xff]  }
 0x12a   :  { %1497 = vrsqrt.f32 %v60_v33  ;;  %v1450_v33 = vld [vmem:[%s2079_s5 + $0x1f0] ss:$8 sps:$4 sm:$0xff]  }
 0x133   :  { %v1496_v39 = vpop.eup %1495 }
 0x134   :  { %v64_v41 = vmul.f32 %v1496_v39, %v1679_v45  ;;  %v63_v46 = vmul.f32 %v1496_v39, %v1676_v44  ;;  %v1399_v44 = vld [vmem:[%s2079_s5 + $0x70] ss:$8 sps:$4 sm:$0xff]   ;;  %v1453_v39 = vld [vmem:[%s2079_s5 + $0xe0] ss:$8 sps:$4 sm:$0xff]  }
 0x136   :  { %v79_v53 = vmul.f32 %v75_v43, %v64_v41  ;;  %v78_v55 = vmul.f32 %v71_v42, %v63_v46  ;;  %v1461_v41 = vld [vmem:[%s2079_s5 + $0xd4] ss:$8 sps:$4 sm:$0xff]   ;;  %v1462_v46 = vld [vmem:[%s2079_s5 + $0x1d0] ss:$8 sps:$4 sm:$0xff]  }
 0x137   :  { %v1498_v47 = vpop.eup %1497 }
 0x138   :  { %v66_v52 = vmul.f32 %v1498_v47, %v1689_v51  ;;  %v65_v54 = vmul.f32 %v1498_v47, %v1686_v50  ;;  %v94_v45 = vadd.f32 %v90_v49, %v79_v53  ;;  %v93_v59 = vadd.f32 %v86_v48, %v78_v55  ;;  %v1402_v51 = vld [vmem:[%s2079_s5 + $0x170] ss:$8 sps:$4 sm:$0xff]   ;;  %v1407_v50 = vld [vmem:[%s2079_s5 + $0x64] ss:$8 sps:$4 sm:$0xff]   ;;  %v1473_v53 = vld [vmem:[%s2079_s5 + $0xb4] ss:$8 sps:$4 sm:$0xff]  }
 0x139   :  { %v1467_v47 = vld [vmem:[%s2079_s5 + $0xc4] ss:$8 sps:$4 sm:$0xff]   ;;  %v1471_v55 = vld [vmem:[%s2079_s5 + $0xb0] ss:$8 sps:$4 sm:$0xff]  }
 0x13a   :  { %v81_v56 = vmul.f32 %v75_v43, %v66_v52  ;;  %v80_v57 = vmul.f32 %v71_v42, %v65_v54  ;;  %v1464_v42 = vld [vmem:[%s2079_s5 + $0x1d4] ss:$8 sps:$4 sm:$0xff]   ;;  %v1459_v43 = vld [vmem:[%s2079_s5 + $0xd0] ss:$8 sps:$4 sm:$0xff]   ;;  %v1468_v52 = vld [vmem:[%s2079_s5 + $0x1c0] ss:$8 sps:$4 sm:$0xff]  }
 0x13b   :  { %v1476_v54 = vld [vmem:[%s2079_s5 + $0x1b4] ss:$8 sps:$4 sm:$0xff]  }
 0x13c   :  { %v96_v58 = vadd.f32 %v90_v49, %v81_v56  ;;  %v95_v60 = vadd.f32 %v86_v48, %v80_v57  ;;  %v1470_v48 = vld [vmem:[%s2079_s5 + $0x1c4] ss:$8 sps:$4 sm:$0xff]   ;;  %v1465_v49 = vld [vmem:[%s2079_s5 + $0xc0] ss:$8 sps:$4 sm:$0xff]   ;;  %v1474_v56 = vld [vmem:[%s2079_s5 + $0x1b0] ss:$8 sps:$4 sm:$0xff]  }
 0x13d   :  { %v1479_v57 = vld [vmem:[%s2079_s5 + $0xa4] ss:$8 sps:$4 sm:$0xff]  }
 0x13e   :  { %v162_v61 = vpack.c.bf16 %v96_v58, %v94_v45  ;;  %v161_v62 = vpack.c.bf16 %v95_v60, %v93_v59  ;;  %v1482_v45 = vld [vmem:[%s2079_s5 + $0x1a4] ss:$8 sps:$4 sm:$0xff]   ;;  %v1477_v58 = vld [vmem:[%s2079_s5 + $0xa0] ss:$8 sps:$4 sm:$0xff]   ;;  %v1485_v60 = vld [vmem:[%s2079_s5 + $0x94] ss:$8 sps:$4 sm:$0xff]  }
 0x13f   :  { %v1480_v59 = vld [vmem:[%s2079_s5 + $0x1a0] ss:$8 sps:$4 sm:$0xff]  }
 0x140   :  { %537 = vmatprep.mubr.bf16.mxu0 %v162_v61  ;;  %580 = vmatprep.mubr.bf16.mxu1 %v162_v61  ;;  %v1488_v61 = vld [vmem:[%s2079_s5 + $0x194] ss:$8 sps:$4 sm:$0xff]  }
 0x141   :  { %538 = vmatmul.mubr.bf16.vlgmr.msra.gmra.mxu0 %v161_v62  ;;  %581 = vmatmul.mubr.bf16.vlgmr.msra.gmra.mxu1 %v161_v62  ;;  %v1483_v62 = vld [vmem:[%s2079_s5 + $0x90] ss:$8 sps:$4 sm:$0xff]  }
 0x142   :  { %1064 = vmatpush1.bf16.msra.mxu0 %v1399_v44  ;;  %1107 = vmatpush1.bf16.msra.mxu1 %v1402_v51  ;;  %v1486_v44 = vld [vmem:[%s2079_s5 + $0x190] ss:$8 sps:$4 sm:$0xff]   ;;  %v1489_v51 = vld [vmem:[%s2079_s5 + $0x80] ss:$8 sps:$4 sm:$0xff]  }
 0x143   :  { %1065 = vmatprep.subr.bf16.mxu0 %v1407_v50  ;;  %1108 = vmatprep.subr.bf16.mxu1 %v1410_v63  ;;  %v1491_v50 = vld [vmem:[%s2079_s5 + $0x84] ss:$8 sps:$4 sm:$0xff]   ;;  %v1492_v63 = vld [vmem:[%s2079_s5 + $0x180] ss:$8 sps:$4 sm:$0xff]  }
 0x146   :  { %1066 = vmatpush1.bf16.msra.mxu0 %v1405_v0  ;;  %1109 = vmatpush1.bf16.msra.mxu1 %v1408_v1  ;;  %v1494_v0 = vld [vmem:[%s2079_s5 + $0x184] ss:$8 sps:$4 sm:$0xff]   ;;  %v175_v1 = vsub.s32 2, %v1791_v35 }
 0x147   :  { %1067 = vmatprep.subr.bf16.mxu0 %v1413_v6  ;;  %1110 = vmatprep.subr.bf16.mxu1 %v1416_v7  ;;  %v163_v6 = vld [vmem:[%s2082_s4] sm:$0xf]  ;;  %v179_v7 = vsub.s32 3, %v1791_v35 }
 0x14a   :  { %1068 = vmatpush1.bf16.msra.mxu0 %v1411_v8  ;;  %1111 = vmatpush1.bf16.msra.mxu1 %v1414_v9  ;;  %v168_v8 = vrot.slane %v163_v6, %v1794_v36  ;;  %v176_v9 = vrot.slane %v163_v6, %v175_v1 }
 0x14b   :  { %1069 = vmatprep.subr.bf16.mxu0 %v1419_v10  ;;  %1112 = vmatprep.subr.bf16.mxu1 %v1422_v11  ;;  %v172_v10 = vrot.slane %v163_v6, %v1797_v37  ;;  %v180_v11 = vrot.slane %v163_v6, %v179_v7 }
 0x14e   :  { %1070 = vmatpush1.bf16.msra.mxu0 %v1417_v12  ;;  %1113 = vmatpush1.bf16.msra.mxu1 %v1420_v13 }
 0x14f   :  { %1071 = vmatprep.subr.bf16.mxu0 %v1425_v14  ;;  %1114 = vmatprep.subr.bf16.mxu1 %v1428_v15 }
 0x152   :  { %1072 = vmatpush1.bf16.msra.mxu0 %v1423_v16  ;;  %1115 = vmatpush1.bf16.msra.mxu1 %v1426_v17 }
 0x153   :  { %1073 = vmatprep.subr.bf16.mxu0 %v1431_v18  ;;  %1116 = vmatprep.subr.bf16.mxu1 %v1434_v19 }
 0x156   :  { %1074 = vmatpush1.bf16.msra.mxu0 %v1429_v20  ;;  %1117 = vmatpush1.bf16.msra.mxu1 %v1432_v21 }
 0x157   :  { %1075 = vmatprep.subr.bf16.mxu0 %v1437_v22  ;;  %1118 = vmatprep.subr.bf16.mxu1 %v1440_v23 }
 0x15a   :  { %1076 = vmatpush1.bf16.msra.mxu0 %v1435_v24  ;;  %1119 = vmatpush1.bf16.msra.mxu1 %v1438_v25 }
 0x15b   :  { %1077 = vmatprep.subr.bf16.mxu0 %v1443_v26  ;;  %1120 = vmatprep.subr.bf16.mxu1 %v1446_v27 }
 0x15e   :  { %1078 = vmatpush1.bf16.msra.mxu0 %v1441_v28  ;;  %1121 = vmatpush1.bf16.msra.mxu1 %v1444_v29 }
 0x15f   :  { %1079 = vmatprep.subr.bf16.mxu0 %v1449_v30  ;;  %1122 = vmatprep.subr.bf16.mxu1 %v1452_v31 }
 0x162   :  { %1080 = vmatpush2.bf16.msra.mxu0 %v1447_v32  ;;  %1123 = vmatpush2.bf16.msra.mxu1 %v1450_v33 }
 0x163   :  { %1081 = vmatprep.subr.bf16.mxu0 %v1455_v34  ;;  %1124 = vmatprep.subr.bf16.mxu1 %v1458_v38 }
 0x166   :  { %1082 = vmatpush2.bf16.msra.mxu0 %v1453_v39  ;;  %1125 = vmatpush2.bf16.msra.mxu1 %v1456_v40 }
 0x167   :  { %1083 = vmatprep.subr.bf16.mxu0 %v1461_v41  ;;  %1126 = vmatprep.subr.bf16.mxu1 %v1464_v42 }
 0x16a   :  { %1084 = vmatpush2.bf16.msra.mxu0 %v1459_v43  ;;  %1127 = vmatpush2.bf16.msra.mxu1 %v1462_v46 }
 0x16b   :  { %1085 = vmatprep.subr.bf16.mxu0 %v1467_v47  ;;  %1128 = vmatprep.subr.bf16.mxu1 %v1470_v48 }
 0x16e   :  { %1086 = vmatpush2.bf16.msra.mxu0 %v1465_v49  ;;  %1129 = vmatpush2.bf16.msra.mxu1 %v1468_v52 }
 0x16f   :  { %1087 = vmatprep.subr.bf16.mxu0 %v1473_v53  ;;  %1130 = vmatprep.subr.bf16.mxu1 %v1476_v54 }
 0x172   :  { %1088 = vmatpush2.bf16.msra.mxu0 %v1471_v55  ;;  %1131 = vmatpush2.bf16.msra.mxu1 %v1474_v56 }
 0x173   :  { %1089 = vmatprep.subr.bf16.mxu0 %v1479_v57  ;;  %1132 = vmatprep.subr.bf16.mxu1 %v1482_v45 }
 0x176   :  { %1090 = vmatpush2.bf16.msra.mxu0 %v1477_v58  ;;  %1133 = vmatpush2.bf16.msra.mxu1 %v1480_v59 }
 0x177   :  { %1091 = vmatprep.subr.bf16.mxu0 %v1485_v60  ;;  %1134 = vmatprep.subr.bf16.mxu1 %v1488_v61 }
 0x17a   :  { %1092 = vmatpush2.bf16.msra.mxu0 %v1483_v62  ;;  %1135 = vmatpush2.bf16.msra.mxu1 %v1486_v44 }
 0x17b   :  { %1093 = vmatprep.subr.bf16.mxu0 %v1491_v50  ;;  %1136 = vmatprep.subr.bf16.mxu1 %v1494_v0 }
 0x17e   :  { %1094 = vmatpush2.bf16.msra.mxu0 %v1489_v51  ;;  %1137 = vmatpush2.bf16.msra.mxu1 %v1492_v63 }
 0x201   :  { %v539_v12 = vpop.f32.mrf.mxu0  ;;  %v582_v13 = vpop.f32.mrf.mxu1 }
 0x202   :  { %v2006_v14 = vadd.f32 %v539_v12, %v168_v8  ;;  %v2008_v15 = vadd.f32 %v582_v13, %v176_v9 }
 0x203   :  { %v541_v16 = vpop.f32.mrf.mxu0  ;;  %v584_v17 = vpop.f32.mrf.mxu1 }
 0x204   :  { %v591_v18 = vmul.f32 %v2006_v14, %v2006_v14  ;;  %v593_v35 = vmul.f32 %v2008_v15, %v2008_v15  ;;  %v2014_v19 = vadd.f32 %v541_v16, %v172_v10  ;;  %v2016_v20 = vadd.f32 %v584_v17, %v180_v11 }
 0x205   :  { %v543_v21 = vpop.f32.mrf.mxu0  ;;  %v586_v22 = vpop.f32.mrf.mxu1 }
 0x206   :  { %v599_v23 = vmul.f32 %v591_v18, %v2006_v14  ;;  %v601_v24 = vmul.f32 %v593_v35, %v2008_v15  ;;  %v592_v25 = vmul.f32 %v2014_v19, %v2014_v19  ;;  %v594_v26 = vmul.f32 %v2016_v20, %v2016_v20 }
 0x207   :  { %v2024_v27 = vadd.f32 %v543_v21, %v168_v8  ;;  %v2026_v28 = vadd.f32 %v586_v22, %v176_v9  ;;  %v545_v29 = vpop.f32.mrf.mxu0  ;;  %v588_v30 = vpop.f32.mrf.mxu1 }
 0x208   :  { %v607_v31 = vmul.f32 0.044715, %v599_v23  ;;  %v609_v32 = vmul.f32 0.044715, %v601_v24  ;;  %v600_v33 = vmul.f32 %v592_v25, %v2014_v19  ;;  %v602_v34 = vmul.f32 %v594_v26, %v2016_v20 }
 0x209   :  { %v595_v38 = vmul.f32 %v2024_v27, %v2024_v27  ;;  %v597_v39 = vmul.f32 %v2026_v28, %v2026_v28  ;;  %v2034_v40 = vadd.f32 %v545_v29, %v172_v10  ;;  %v2036_v41 = vadd.f32 %v588_v30, %v180_v11 }
 0x20a   :  { %v615_v42 = vadd.f32 %v607_v31, %v2006_v14  ;;  %v617_v43 = vadd.f32 %v609_v32, %v2008_v15  ;;  %v608_v46 = vmul.f32 0.044715, %v600_v33  ;;  %v610_v47 = vmul.f32 0.044715, %v602_v34 }
 0x20b   :  { %v603_v48 = vmul.f32 %v595_v38, %v2024_v27  ;;  %v605_v49 = vmul.f32 %v597_v39, %v2026_v28  ;;  %v596_v52 = vmul.f32 %v2034_v40, %v2034_v40  ;;  %v598_v53 = vmul.f32 %v2036_v41, %v2036_v41 }
 0x20c   :  { %v623_v54 = vmul.f32 0.7978846, %v615_v42  ;;  %v625_v55 = vmul.f32 0.7978846, %v617_v43  ;;  %v616_v56 = vadd.f32 %v608_v46, %v2014_v19  ;;  %v618_v57 = vadd.f32 %v610_v47, %v2016_v20 }
 0x20d   :  { %v611_v45 = vmul.f32 0.044715, %v603_v48  ;;  %v613_v58 = vmul.f32 0.044715, %v605_v49  ;;  %v604_v59 = vmul.f32 %v596_v52, %v2034_v40  ;;  %v606_v60 = vmul.f32 %v598_v53, %v2036_v41 }
 0x20e   :  { %1499 = vtanh.f32 %v623_v54  ;;  %v624_v61 = vmul.f32 0.7978846, %v616_v56  ;;  %v626_v62 = vmul.f32 0.7978846, %v618_v57 }
 0x20f   :  { %1501 = vtanh.f32 %v625_v55  ;;  %v619_v44 = vadd.f32 %v611_v45, %v2024_v27  ;;  %v621_v51 = vadd.f32 %v613_v58, %v2026_v28  ;;  %v612_v50 = vmul.f32 0.044715, %v604_v59 }
 0x210   :  { %1503 = vtanh.f32 %v624_v61  ;;  %v614_v63 = vmul.f32 0.044715, %v606_v60 }
 0x211   :  { %1505 = vtanh.f32 %v626_v62  ;;  %v627_v0 = vmul.f32 0.7978846, %v619_v44  ;;  %v629_v1 = vmul.f32 0.7978846, %v621_v51  ;;  %v620_v6 = vadd.f32 %v612_v50, %v2034_v40 }
 0x212   :  { %v622_v7 = vadd.f32 %v614_v63, %v2036_v41 }
 0x213   :  { %1507 = vtanh.f32 %v627_v0  ;;  %v628_v8 = vmul.f32 0.7978846, %v620_v6 }
 0x214   :  { %1509 = vtanh.f32 %v629_v1  ;;  %v630_v9 = vmul.f32 0.7978846, %v622_v7 }
 0x215   :  { %1511 = vtanh.f32 %v628_v8 }
 0x216   :  { %1513 = vtanh.f32 %v630_v9 }
 0x21b   :  { %v1500_v10 = vpop.eup %1499 }
 0x21c   :  { %v1502_v11 = vpop.eup %1501  ;;  %v639_v18 = vadd.f32 1.0, %v1500_v10 }
 0x21d   :  { %v1504_v12 = vpop.eup %1503  ;;  %v641_v22 = vadd.f32 1.0, %v1502_v11 }
 0x21e   :  { %v1506_v13 = vpop.eup %1505  ;;  %v640_v16 = vadd.f32 1.0, %v1504_v12  ;;  %v647_v32 = vmul.f32 0.5, %v639_v18 }
 0x21f   :  { %v642_v35 = vadd.f32 1.0, %v1506_v13  ;;  %v649_v39 = vmul.f32 0.5, %v641_v22 }
 0x220   :  { %v1508_v17 = vpop.eup %1507  ;;  %v648_v31 = vmul.f32 0.5, %v640_v16  ;;  %v655_v52 = vmul.f32 %v647_v32, %v2006_v14 }
 0x221   :  { %v1510_v21 = vpop.eup %1509  ;;  %v643_v23 = vadd.f32 1.0, %v1508_v17  ;;  %v650_v38 = vmul.f32 0.5, %v642_v35  ;;  %v657_v55 = vmul.f32 %v649_v39, %v2008_v15 }
 0x222   :  { %v1512_v24 = vpop.eup %1511  ;;  %v645_v25 = vadd.f32 1.0, %v1510_v21  ;;  %v656_v48 = vmul.f32 %v648_v31, %v2014_v19  ;;  %v731_v19 = vld [vmem:[%s2083_s6] sm:$0x3] }
 0x223   :  { %v1514_v26 = vpop.eup %1513  ;;  %v651_v29 = vmul.f32 0.5, %v643_v23  ;;  %v644_v30 = vadd.f32 1.0, %v1512_v24  ;;  %v658_v53 = vmul.f32 %v650_v38, %v2016_v20  ;;  %v736_v14 = vrot.slane %v731_v19, %v1794_v36 }
 0x224   :  { %v653_v33 = vmul.f32 0.5, %v645_v25  ;;  %v646_v34 = vadd.f32 1.0, %v1514_v26  ;;  %v740_v20 = vrot.slane %v731_v19, %v1797_v37 }
 0x225   :  { %v652_v42 = vmul.f32 0.5, %v644_v30  ;;  %v659_v43 = vmul.f32 %v651_v29, %v2024_v27 }
 0x226   :  { %v654_v46 = vmul.f32 0.5, %v646_v34  ;;  %v661_v47 = vmul.f32 %v653_v33, %v2026_v28 }
 0x227   :  { %v660_v49 = vmul.f32 %v652_v42, %v2034_v40  ;;  %v727_v45 = vpack.c.bf16 %v659_v43, %v655_v52 }
 0x228   :  { %v662_v54 = vmul.f32 %v654_v46, %v2036_v41  ;;  %v729_v27 = vpack.c.bf16 %v661_v47, %v657_v55 }
 0x229   :  { %v728_v56 = vpack.c.bf16 %v660_v49, %v656_v48 }
 0x22a   :  { %v730_v57 = vpack.c.bf16 %v662_v54, %v658_v53 }
 0x22b   :  { %1095 = vmatprep.mubr.bf16.mxu0 %v728_v56 }
 0x22c   :  { %1138 = vmatprep.mubr.bf16.mxu1 %v730_v57  ;;  %1096 = vmatmul.mubr.bf16.vlgmr.msra.gmra.mxu0 %v727_v45 }
 0x22d   :  { %1139 = vmatmul.mubr.bf16.vlgmr.msra.gmra.mxu1 %v729_v27 }
 0x2ec   :  { %v1097_v28 = vpop.f32.mrf.mxu0 }
 0x2ed   :  { %v1098_v40 = vadd.f32 %v1097_v28, %v736_v14  ;;  %v1140_v41 = vpop.f32.mrf.mxu1 }
 0x2ee   :  { %v1099_v15 = vpop.f32.mrf.mxu0 }
 0x2ef   :  { %v1141_v58 = vadd.f32 %v1140_v41, %v1098_v40  ;;  %v1100_v59 = vadd.f32 %v1099_v15, %v740_v20  ;;  %v1142_v60 = vpop.f32.mrf.mxu1 }
 0x2f0   :  { %v1101_v61 = vpop.f32.mrf.mxu0 }
 0x2f1   :  { %v1143_v62 = vadd.f32 %v1142_v60, %v1100_v59  ;;  %v1102_v44 = vadd.f32 %v1101_v61, %v736_v14  ;;  %v1144_v51 = vpop.f32.mrf.mxu1  ;;  %v1149_v63 = vadd.f32 %v1141_v58, %v1561_v2 }
 0x2f2   :  { %v1103_v50 = vpop.f32.mrf.mxu0 }
 0x2f3   :  { %v1150_v0 = vadd.f32 %v1143_v62, %v1563_v3  ;;  %v1145_v1 = vadd.f32 %v1144_v51, %v1102_v44  ;;  %v1104_v36 = vadd.f32 %v1103_v50, %v740_v20  ;;  %v1146_v6 = vpop.f32.mrf.mxu1 }
 0x2f5   :  { %v1301_v37 = vpack.c.bf16 %v1150_v0, %v1149_v63  ;;  %v1147_v7 = vadd.f32 %v1146_v6, %v1104_v36  ;;  %v1151_v8 = vadd.f32 %v1145_v1, %v1565_v4 }
 0x2f7   :  { %1165 = vst [vmem:[%s2084_s7] sm:$0xff] %v1301_v37  ;;  %v1152_v9 = vadd.f32 %v1147_v7, %v1567_v5 }
 0x2f9   :  { %v1302_v10 = vpack.c.bf16 %v1152_v9, %v1151_v8 }
 0x2fb   :  { %1166 = vst [vmem:[%s2084_s7 + $0x8] sm:$0xff] %v1302_v10 }

// kernel: forward.25
= control target key start
LH: loop header
LB: loop body
LE: loop exit
PB: predicated region body
PF: predicated region fallthrough
CT: control target
= control target key end

     0   :  { %vm68_vm0 = vcmask 523264   ;;  %s218_s1 = inlined_call_operand.vmem [shape: bf16[64,128], index: 1, kind: input, shape index: {}]   ;;  %s219_s0 = inlined_call_operand.vmem [shape: bf16[32,64], index: 0, kind: input, shape index: {}]   ;;  %s220_s2 = inlined_call_operand.vmem [shape: f32[1,128], index: 2, kind: input, shape index: {}]   ;;  %s221_s3 = inlined_call_operand.vmem [shape: f32[32,128], index: 3, kind: output, shape index: {}]  }
   0x1   :  { %v159_v0 = vld [vmem:[%s218_s1 + $0x18] sm:$0xff]   ;;  %v160_v1 = vld [vmem:[%s218_s1 + $0x10] sm:$0xff]   ;;  %v161_v2 = vld [vmem:[%s218_s1 + $0x8] sm:$0xff]  }
   0x2   :  { %147 = vmatprep.subr.bf16.mxu0 %v159_v0  ;;  %v163_v3 = vld [vmem:[%s219_s0] sm:$0xff]   ;;  %v164_v5 = vld [vmem:[%s219_s0 + $0x8] sm:$0xff]  }
   0x3   :  { %148 = vmatpush3.bf16.msra.mxu0 %v159_v0  ;;  %155 = vmatprep.mubr.msk.bf16.mxu0 %vm68_vm0, %v163_v3  ;;  %v162_v4 = vld [vmem:[%s218_s1] sm:$0xff]  }
   0x4   :  { %149 = vmatprep.subr.bf16.mxu0 %v160_v1  ;;  %v132_v6 = vld [vmem:[%s220_s2] ss:$0 sm:$0xff] }
   0x7   :  { %150 = vmatpush3.bf16.msra.mxu0 %v160_v1 }
   0x8   :  { %151 = vmatprep.subr.bf16.mxu0 %v161_v2 }
   0xb   :  { %152 = vmatpush3.bf16.msra.mxu0 %v161_v2 }
   0xc   :  { %153 = vmatprep.subr.bf16.mxu0 %v162_v4 }
   0xf   :  { %154 = vmatpush3.bf16.msra.mxu0 %v162_v4 }
  0x12   :  { %156 = vmatmul.mubr.msk.bf16.vlgmr.msra.gmra.mxu0 %vm68_vm0, %v164_v5 }
  0xd2   :  { %v157_v7 = vpop.f32.mrf.mxu0 }
  0xd3   :  { %v118_v8 = vadd.f32 %v157_v7, %v132_v6 }
  0xd4   :  { %v109_v9 = vpop.f32.mrf.mxu0 }
  0xd5   :  { %126 = vst [vmem:[%s221_s3 + $0x10] sm:$0xff] %v118_v8  ;;  %v110_v10 = vadd.f32 %v132_v6, %v109_v9 }
  0xd6   :  { %v158_v11 = vpop.f32.mrf.mxu0 }
  0xd7   :  { %124 = vst [vmem:[%s221_s3] sm:$0xff] %v110_v10  ;;  %v121_v12 = vadd.f32 %v158_v11, %v132_v6 }
  0xd8   :  { %v112_v13 = vpop.f32.mrf.mxu0 }
  0xd9   :  { %127 = vst [vmem:[%s221_s3 + $0x18] sm:$0xff] %v121_v12  ;;  %v113_v14 = vadd.f32 %v132_v6, %v112_v13 }
  0xdb   :  { %125 = vst [vmem:[%s221_s3 + $0x8] sm:$0xff] %v113_v14 }

// kernel: forward.22
= control target key start
LH: loop header
LB: loop body
LE: loop exit
PB: predicated region body
PF: predicated region fallthrough
CT: control target
= control target key end

     0   :  { %v1125_v27 = vmov 0   ;;  %s1458_s0 = inlined_call_operand.vmem [shape: bf16[16,128], index: 0, kind: input, shape index: {}]   ;;  %s1459_s1 = inlined_call_operand.vmem [shape: bf16[16,128], index: 1, kind: input, shape index: {}]   ;;  %s1460_s4 = inlined_call_operand.vmem [shape: bf16[128,256], index: 4, kind: input, shape index: {}]   ;;  %s1461_s2 = inlined_call_operand.vmem [shape: f32[1,128], index: 2, kind: input, shape index: {}]   ;;  %s1462_s3 = inlined_call_operand.vmem [shape: f32[1,128], index: 3, kind: input, shape index: {}]   ;;  %s1463_s6 = inlined_call_operand.vmem [shape: bf16[256,128], index: 6, kind: input, shape index: {}]   ;;  %s1464_s5 = inlined_call_operand.vmem [shape: f32[1,256], index: 5, kind: input, shape index: {}]   ;;  %s1465_s7 = inlined_call_operand.vmem [shape: f32[1,128], index: 7, kind: input, shape index: {}]   ;;  %s1466_s10 = inlined_call_operand.vmem [shape: bf16[128,256], index: 10, kind: input, shape index: {}]   ;;  %s1467_s8 = inlined_call_operand.vmem [shape: f32[1,128], index: 8, kind: input, shape index: {}]   ;;  %s1468_s9 = inlined_call_operand.vmem [shape: f32[1,128], index: 9, kind: input, shape index: {}]   ;;  %s1469_s12 = inlined_call_operand.vmem [shape: bf16[256,128], index: 12, kind: input, shape index: {}]   ;;  %s1470_s11 = inlined_call_operand.vmem [shape: f32[1,256], index: 11, kind: input, shape index: {}]   ;;  %s1471_s13 = inlined_call_operand.vmem [shape: f32[1,128], index: 13, kind: input, shape index: {}]   ;;  %s1472_s14 = inlined_call_operand.vmem [shape: bf16[16,128], index: 14, kind: output, shape index: {}]  }
   0x1   :  { %v964_v0 = vld [vmem:[%s1458_s0] sm:$0xff]   ;;  %v1021_v8 = vld [vmem:[%s1460_s4 + $0x74] ss:$8 sps:$4 sm:$0xff]   ;;  %v1023_v9 = vld [vmem:[%s1460_s4 + $0x70] ss:$8 sps:$4 sm:$0xff]   ;;  %240 = vmatprep.mubr.bf16.mxu0 %v1125_v27 }
   0x2   :  { %v968_v1 = vld [vmem:[%s1459_s1] sm:$0xff]   ;;  %v965_v2 = vunpack.c.l.bf16 %v964_v0  ;;  %v966_v4 = vunpack.c.h.bf16 %v964_v0  ;;  %208 = vmatprep.subr.bf16.mxu0 %v1021_v8  ;;  %v1027_v20 = vld [vmem:[%s1460_s4 + $0x54] ss:$8 sps:$4 sm:$0xff]   ;;  %v1029_v21 = vld [vmem:[%s1460_s4 + $0x50] ss:$8 sps:$4 sm:$0xff]  }
   0x3   :  { %v969_v3 = vunpack.c.l.bf16 %v968_v1  ;;  %v970_v5 = vunpack.c.h.bf16 %v968_v1  ;;  %209 = vmatpush1.bf16.msra.mxu0 %v1023_v9  ;;  %v1024_v18 = vld [vmem:[%s1460_s4 + $0x64] ss:$8 sps:$4 sm:$0xff]   ;;  %v1026_v19 = vld [vmem:[%s1460_s4 + $0x60] ss:$8 sps:$4 sm:$0xff]   ;;  %v1033_v24 = vld [vmem:[%s1460_s4 + $0x34] ss:$8 sps:$4 sm:$0xff]  }
   0x4   :  { %210 = vmatprep.subr.bf16.mxu0 %v1024_v18  ;;  %v1030_v22 = vld [vmem:[%s1460_s4 + $0x44] ss:$8 sps:$4 sm:$0xff]   ;;  %v1032_v23 = vld [vmem:[%s1460_s4 + $0x40] ss:$8 sps:$4 sm:$0xff]   ;;  %v1035_v25 = vld [vmem:[%s1460_s4 + $0x30] ss:$8 sps:$4 sm:$0xff]  }
   0x5   :  { %v1207_v6 = vadd.f32 %v969_v3, %v965_v2  ;;  %v1210_v7 = vadd.f32 %v970_v5, %v966_v4  ;;  %v1036_v26 = vld [vmem:[%s1460_s4 + $0x24] ss:$8 sps:$4 sm:$0xff]   ;;  %v1038_v28 = vld [vmem:[%s1460_s4 + $0x20] ss:$8 sps:$4 sm:$0xff]   ;;  %v1039_v29 = vld [vmem:[%s1460_s4 + $0x14] ss:$8 sps:$4 sm:$0xff]   ;;  %v118_v2 = vlaneseq }
   0x6   :  { %v1041_v30 = vld [vmem:[%s1460_s4 + $0x10] ss:$8 sps:$4 sm:$0xff]   ;;  %v1042_v31 = vld [vmem:[%s1460_s4 + $0x4] ss:$8 sps:$4 sm:$0xff]   ;;  %v1044_v32 = vld [vmem:[%s1460_s4] ss:$8 sps:$4 sm:$0xff]  }
   0x7   :  { %60 = vadd.xlane.f32.xlu0 %v1207_v6  ;;  %211 = vmatpush1.bf16.msra.mxu0 %v1026_v19  ;;  %v889_v41 = vld [vmem:[%s1461_s2] ss:$0 sm:$0xff]  ;;  %v1045_v50 = vld [vmem:[%s1463_s6 + $0x78] sm:$0xff]   ;;  %v1047_v52 = vld [vmem:[%s1463_s6 + $0x70] sm:$0xff]   ;;  %v1317_v3 = vshrl.u32 %v118_v2, 7 }
   0x8   :  { %212 = vmatprep.subr.bf16.mxu0 %v1027_v20  ;;  %v890_v45 = vld [vmem:[%s1462_s3] ss:$0 sm:$0xff]  ;;  %v1046_v51 = vld [vmem:[%s1463_s6 + $0x38] sm:$0xff]   ;;  %976 = vmatprep.subr.bf16.mxu1 %v1045_v50  ;;  %v1048_v53 = vld [vmem:[%s1463_s6 + $0x30] sm:$0xff]  }
   0x9   :  { %977 = vmatpush3.bf16.msra.mxu1 %v1046_v51  ;;  %v1049_v54 = vld [vmem:[%s1463_s6 + $0x68] sm:$0xff]   ;;  %v1051_v56 = vld [vmem:[%s1463_s6 + $0x60] sm:$0xff]   ;;  %v1053_v58 = vld [vmem:[%s1463_s6 + $0x58] sm:$0xff]   ;;  %v120_v4 = vsub.s32 0, %v1317_v3  ;;  %v124_v8 = vsub.s32 1, %v1317_v3 }
   0xa   :  { %978 = vmatprep.subr.bf16.mxu1 %v1047_v52  ;;  %v1050_v55 = vld [vmem:[%s1463_s6 + $0x28] sm:$0xff]   ;;  %v1052_v57 = vld [vmem:[%s1463_s6 + $0x20] sm:$0xff]   ;;  %v1054_v59 = vld [vmem:[%s1463_s6 + $0x18] sm:$0xff]  }
   0xb   :  { %62 = vadd.xlane.f32.xlu0 %v1210_v7  ;;  %213 = vmatpush1.bf16.msra.mxu0 %v1029_v21  ;;  %v1055_v60 = vld [vmem:[%s1463_s6 + $0x50] sm:$0xff]   ;;  %v1057_v62 = vld [vmem:[%s1463_s6 + $0x48] sm:$0xff]   ;;  %v1059_v0 = vld [vmem:[%s1463_s6 + $0x40] sm:$0xff]  }
   0xc   :  { %214 = vmatprep.subr.bf16.mxu0 %v1030_v22  ;;  %v1056_v61 = vld [vmem:[%s1463_s6 + $0x10] sm:$0xff]   ;;  %v1058_v63 = vld [vmem:[%s1463_s6 + $0x8] sm:$0xff]   ;;  %v1060_v1 = vld [vmem:[%s1463_s6] sm:$0xff]  }
   0xd   :  { %979 = vmatpush3.bf16.msra.mxu1 %v1048_v53  ;;  %v116_v5 = vld [vmem:[%s1464_s5] sm:$0x3] }
   0xe   :  { %980 = vmatprep.subr.bf16.mxu1 %v1049_v54  ;;  %v121_v9 = vrot.slane %v116_v5, %v120_v4 }
   0xf   :  { %215 = vmatpush1.bf16.msra.mxu0 %v1032_v23 }
  0x10   :  { %216 = vmatprep.subr.bf16.mxu0 %v1033_v24 }
  0x11   :  { %981 = vmatpush3.bf16.msra.mxu1 %v1050_v55 }
  0x12   :  { %982 = vmatprep.subr.bf16.mxu1 %v1051_v56 }
  0x13   :  { %217 = vmatpush1.bf16.msra.mxu0 %v1035_v25 }
  0x14   :  { %218 = vmatprep.subr.bf16.mxu0 %v1036_v26 }
  0x15   :  { %983 = vmatpush3.bf16.msra.mxu1 %v1052_v57 }
  0x16   :  { %984 = vmatprep.subr.bf16.mxu1 %v1053_v58  ;;  %v907_v58 = vld [vmem:[%s1465_s7] ss:$0 sm:$0xff] }
  0x17   :  { %219 = vmatpush1.bf16.msra.mxu0 %v1038_v28 }
  0x18   :  { %220 = vmatprep.subr.bf16.mxu0 %v1039_v29 }
  0x19   :  { %985 = vmatpush3.bf16.msra.mxu1 %v1054_v59 }
  0x1a   :  { %986 = vmatprep.subr.bf16.mxu1 %v1055_v60 }
  0x1b   :  { %221 = vmatpush1.bf16.msra.mxu0 %v1041_v30 }
  0x1c   :  { %222 = vmatprep.subr.bf16.mxu0 %v1042_v31 }
  0x1d   :  { %987 = vmatpush3.bf16.msra.mxu1 %v1056_v61 }
  0x1e   :  { %988 = vmatprep.subr.bf16.mxu1 %v1057_v62 }
  0x1f   :  { %223 = vmatpush1.bf16.msra.mxu0 %v1044_v32 }
  0x21   :  { %989 = vmatpush3.bf16.msra.mxu1 %v1058_v63 }
  0x22   :  { %990 = vmatprep.subr.bf16.mxu1 %v1059_v0 }
  0x25   :  { %991 = vmatpush3.bf16.msra.mxu1 %v1060_v1 }
  0x90   :  { %v61_v10 = vpop.xlane.xlu0 %60 }
  0x91   :  { %v65_v11 = vmul.f32 0.0078125, %v61_v10  ;;  %v125_v10 = vrot.slane %v116_v5, %v124_v8 }
  0x93   :  { %v67_v12 = vsub.f32 %v1207_v6, %v65_v11 }
  0x94   :  { %v63_v13 = vpop.xlane.xlu0 %62 }
  0x95   :  { %v66_v14 = vmul.f32 0.0078125, %v63_v13  ;;  %v69_v15 = vmul.f32 %v67_v12, %v67_v12 }
  0x97   :  { %v68_v16 = vsub.f32 %v1210_v7, %v66_v14  ;;  %71 = vadd.xlane.f32.xlu1 %v69_v15 }
  0x99   :  { %v70_v17 = vmul.f32 %v68_v16, %v68_v16 }
  0x9b   :  { %73 = vadd.xlane.f32.xlu1 %v70_v17 }
 0x120   :  { %v72_v33 = vpop.xlane.xlu1 %71 }
 0x121   :  { %v75_v34 = vmul.f32 0.0078125, %v72_v33 }
 0x123   :  { %v77_v35 = vadd.f32 1e-05, %v75_v34 }
 0x124   :  { %v74_v36 = vpop.xlane.xlu1 %73 }
 0x125   :  { %1101 = vrsqrt.f32 %v77_v35  ;;  %v76_v37 = vmul.f32 0.0078125, %v74_v36 }
 0x127   :  { %v78_v38 = vadd.f32 1e-05, %v76_v37 }
 0x129   :  { %1103 = vrsqrt.f32 %v78_v38 }
 0x132   :  { %v1102_v39 = vpop.eup %1101 }
 0x133   :  { %v81_v40 = vmul.f32 %v1102_v39, %v67_v12 }
 0x135   :  { %v89_v44 = vmul.f32 %v889_v41, %v81_v40 }
 0x136   :  { %v1104_v42 = vpop.eup %1103 }
 0x137   :  { %v82_v43 = vmul.f32 %v1104_v42, %v68_v16  ;;  %v97_v47 = vadd.f32 %v890_v45, %v89_v44 }
 0x139   :  { %v90_v46 = vmul.f32 %v889_v41, %v82_v43 }
 0x13b   :  { %v98_v48 = vadd.f32 %v890_v45, %v90_v46 }
 0x13d   :  { %v115_v49 = vpack.c.bf16 %v98_v48, %v97_v47 }
 0x13f   :  { %241 = vmatmul.mubr.bf16.vlgmr.msra.gmra.mxu0 %v115_v49 }
 0x140   :  { %648 = vmatprep.mubr.bf16.mxu0 %v1125_v27 }
 0x1ff   :  { %v242_v11 = vpop.f32.mrf.mxu0 }
 0x200   :  { %v243_v12 = vadd.f32 %v242_v11, %v121_v9 }
 0x201   :  { %v244_v13 = vpop.f32.mrf.mxu0 }
 0x202   :  { %v251_v14 = vmul.f32 %v243_v12, %v243_v12  ;;  %v245_v15 = vadd.f32 %v244_v13, %v125_v10 }
 0x203   :  { %v246_v16 = vpop.f32.mrf.mxu0 }
 0x204   :  { %v255_v17 = vmul.f32 %v251_v14, %v243_v12  ;;  %v252_v18 = vmul.f32 %v245_v15, %v245_v15  ;;  %v247_v19 = vadd.f32 %v246_v16, %v121_v9  ;;  %v1061_v9 = vld [vmem:[%s1466_s10 + $0x70] ss:$8 sps:$4 sm:$0xff]  }
 0x205   :  { %v248_v20 = vpop.f32.mrf.mxu0 }
 0x206   :  { %v259_v21 = vmul.f32 0.044715, %v255_v17  ;;  %v256_v22 = vmul.f32 %v252_v18, %v245_v15  ;;  %v253_v23 = vmul.f32 %v247_v19, %v247_v19  ;;  %v249_v24 = vadd.f32 %v248_v20, %v125_v10  ;;  %v1063_v10 = vld [vmem:[%s1466_s10 + $0x74] ss:$8 sps:$4 sm:$0xff]   ;;  %v1066_v17 = vld [vmem:[%s1466_s10 + $0x64] ss:$8 sps:$4 sm:$0xff]  }
 0x207   :  { %616 = vmatprep.subr.bf16.mxu0 %v1063_v10  ;;  %v1064_v18 = vld [vmem:[%s1466_s10 + $0x60] ss:$8 sps:$4 sm:$0xff]   ;;  %v1067_v20 = vld [vmem:[%s1466_s10 + $0x50] ss:$8 sps:$4 sm:$0xff]  }
 0x208   :  { %v263_v25 = vadd.f32 %v259_v21, %v243_v12  ;;  %v260_v26 = vmul.f32 0.044715, %v256_v22  ;;  %v257_v27 = vmul.f32 %v253_v23, %v247_v19  ;;  %v254_v28 = vmul.f32 %v249_v24, %v249_v24  ;;  %617 = vmatpush1.bf16.msra.mxu0 %v1061_v9  ;;  %v1070_v21 = vld [vmem:[%s1466_s10 + $0x40] ss:$8 sps:$4 sm:$0xff]   ;;  %v1072_v22 = vld [vmem:[%s1466_s10 + $0x44] ss:$8 sps:$4 sm:$0xff]  }
 0x209   :  { %618 = vmatprep.subr.bf16.mxu0 %v1066_v17  ;;  %v1075_v23 = vld [vmem:[%s1466_s10 + $0x34] ss:$8 sps:$4 sm:$0xff]  }
 0x20a   :  { %v267_v29 = vmul.f32 0.7978846, %v263_v25  ;;  %v264_v30 = vadd.f32 %v260_v26, %v245_v15  ;;  %v261_v31 = vmul.f32 0.044715, %v257_v27  ;;  %v258_v32 = vmul.f32 %v254_v28, %v249_v24  ;;  %v1078_v25 = vld [vmem:[%s1466_s10 + $0x24] ss:$8 sps:$4 sm:$0xff]  }
 0x20b   :  { %v1076_v26 = vld [vmem:[%s1466_s10 + $0x20] ss:$8 sps:$4 sm:$0xff]   ;;  %v1081_v27 = vld [vmem:[%s1466_s10 + $0x14] ss:$8 sps:$4 sm:$0xff]   ;;  %v1079_v28 = vld [vmem:[%s1466_s10 + $0x10] ss:$8 sps:$4 sm:$0xff]  }
 0x20c   :  { %v265_v33 = vadd.f32 %v261_v31, %v247_v19  ;;  %v262_v34 = vmul.f32 0.044715, %v258_v32  ;;  %v268_v35 = vmul.f32 0.7978846, %v264_v30  ;;  %1105 = vtanh.f32 %v267_v29  ;;  %619 = vmatpush1.bf16.msra.mxu0 %v1064_v18  ;;  %v1084_v29 = vld [vmem:[%s1466_s10 + $0x4] ss:$8 sps:$4 sm:$0xff]  }
 0x20d   :  { %v1082_v30 = vld [vmem:[%s1466_s10] ss:$8 sps:$4 sm:$0xff]  }
 0x20e   :  { %v269_v36 = vmul.f32 0.7978846, %v265_v33  ;;  %v266_v37 = vadd.f32 %v262_v34, %v249_v24  ;;  %1107 = vtanh.f32 %v268_v35 }
 0x210   :  { %1109 = vtanh.f32 %v269_v36  ;;  %v270_v38 = vmul.f32 0.7978846, %v266_v37 }
 0x212   :  { %1111 = vtanh.f32 %v270_v38 }
 0x219   :  { %v1106_v39 = vpop.eup %1105 }
 0x21a   :  { %v275_v43 = vadd.f32 1.0, %v1106_v39  ;;  %v924_v39 = vld [vmem:[%s1467_s8] ss:$0 sm:$0xff] }
 0x21b   :  { %v1108_v40 = vpop.eup %1107 }
 0x21c   :  { %v276_v41 = vadd.f32 1.0, %v1108_v40  ;;  %v279_v49 = vmul.f32 0.5, %v275_v43  ;;  %v925_v43 = vld [vmem:[%s1468_s9] ss:$0 sm:$0xff] }
 0x21d   :  { %v1110_v42 = vpop.eup %1109 }
 0x21e   :  { %v277_v44 = vadd.f32 1.0, %v1110_v42  ;;  %v280_v47 = vmul.f32 0.5, %v276_v41  ;;  %v283_v54 = vmul.f32 %v279_v49, %v243_v12  ;;  %v1086_v49 = vld [vmem:[%s1469_s12 + $0x38] sm:$0xff]  }
 0x21f   :  { %v1112_v45 = vpop.eup %1111 }
 0x220   :  { %v278_v46 = vadd.f32 1.0, %v1112_v45  ;;  %v281_v48 = vmul.f32 0.5, %v277_v44  ;;  %v284_v52 = vmul.f32 %v280_v47, %v245_v15 }
 0x222   :  { %v282_v50 = vmul.f32 0.5, %v278_v46  ;;  %v285_v51 = vmul.f32 %v281_v48, %v247_v19  ;;  %v1069_v19 = vld [vmem:[%s1466_s10 + $0x54] ss:$8 sps:$4 sm:$0xff]  }
 0x223   :  { %620 = vmatprep.subr.bf16.mxu0 %v1069_v19  ;;  %v1085_v48 = vld [vmem:[%s1469_s12 + $0x78] sm:$0xff]  }
 0x224   :  { %v286_v53 = vmul.f32 %v282_v50, %v249_v24  ;;  %v319_v56 = vpack.c.bf16 %v285_v51, %v283_v54  ;;  %621 = vmatpush1.bf16.msra.mxu0 %v1067_v20  ;;  %v1073_v24 = vld [vmem:[%s1466_s10 + $0x30] ss:$8 sps:$4 sm:$0xff]   ;;  %998 = vmatprep.subr.bf16.mxu1 %v1085_v48  ;;  %v1091_v54 = vld [vmem:[%s1469_s12 + $0x60] sm:$0xff]  }
 0x225   :  { %622 = vmatprep.subr.bf16.mxu0 %v1072_v22  ;;  %v1087_v50 = vld [vmem:[%s1469_s12 + $0x70] sm:$0xff]  }
 0x226   :  { %v320_v55 = vpack.c.bf16 %v286_v53, %v284_v52  ;;  %v1088_v51 = vld [vmem:[%s1469_s12 + $0x30] sm:$0xff]   ;;  %v1089_v52 = vld [vmem:[%s1469_s12 + $0x68] sm:$0xff]  }
 0x227   :  { %v1090_v53 = vld [vmem:[%s1469_s12 + $0x28] sm:$0xff]  }
 0x228   :  { %456 = vmatprep.mubr.bf16.mxu1 %v320_v55  ;;  %623 = vmatpush1.bf16.msra.mxu0 %v1070_v21  ;;  %v1092_v55 = vld [vmem:[%s1469_s12 + $0x20] sm:$0xff]  }
 0x229   :  { %457 = vmatmul.mubr.bf16.vlgmr.msra.gmra.mxu1 %v319_v56  ;;  %624 = vmatprep.subr.bf16.mxu0 %v1075_v23  ;;  %v1093_v56 = vld [vmem:[%s1469_s12 + $0x58] sm:$0xff]  }
 0x22a   :  { %999 = vmatpush3.bf16.msra.mxu1 %v1086_v49 }
 0x22b   :  { %1000 = vmatprep.subr.bf16.mxu1 %v1087_v50 }
 0x22c   :  { %625 = vmatpush1.bf16.msra.mxu0 %v1073_v24 }
 0x22d   :  { %626 = vmatprep.subr.bf16.mxu0 %v1078_v25 }
 0x22e   :  { %1001 = vmatpush3.bf16.msra.mxu1 %v1088_v51 }
 0x22f   :  { %1002 = vmatprep.subr.bf16.mxu1 %v1089_v52 }
 0x230   :  { %627 = vmatpush1.bf16.msra.mxu0 %v1076_v26 }
 0x231   :  { %628 = vmatprep.subr.bf16.mxu0 %v1081_v27 }
 0x232   :  { %1003 = vmatpush3.bf16.msra.mxu1 %v1090_v53 }
 0x233   :  { %1004 = vmatprep.subr.bf16.mxu1 %v1091_v54  ;;  %v942_v54 = vld [vmem:[%s1471_s13] ss:$0 sm:$0xff] }
 0x234   :  { %629 = vmatpush1.bf16.msra.mxu0 %v1079_v28 }
 0x235   :  { %630 = vmatprep.subr.bf16.mxu0 %v1084_v29 }
 0x236   :  { %1005 = vmatpush3.bf16.msra.mxu1 %v1092_v55 }
 0x237   :  { %1006 = vmatprep.subr.bf16.mxu1 %v1093_v56 }
 0x238   :  { %631 = vmatpush1.bf16.msra.mxu0 %v1082_v30 }
 0x2e9   :  { %v992_v57 = vpop.f32.mrf.mxu1 }
 0x2eb   :  { %v993_v59 = vpop.f32.mrf.mxu1 }
 0x2ec   :  { %v994_v60 = vadd.f32 %v993_v59, %v992_v57  ;;  %v1094_v57 = vld [vmem:[%s1469_s12 + $0x18] sm:$0xff]   ;;  %v1096_v59 = vld [vmem:[%s1469_s12 + $0x10] sm:$0xff]  }
 0x2ed   :  { %v995_v61 = vpop.f32.mrf.mxu1  ;;  %1007 = vmatpush3.bf16.msra.mxu1 %v1094_v57 }
 0x2ee   :  { %v459_v62 = vadd.f32 %v994_v60, %v907_v58  ;;  %v1097_v60 = vld [vmem:[%s1469_s12 + $0x48] sm:$0xff]  }
 0x2ef   :  { %v996_v63 = vpop.f32.mrf.mxu1 }
 0x2f0   :  { %v997_v0 = vadd.f32 %v996_v63, %v995_v61  ;;  %v1332_v1 = vadd.f32 %v459_v62, %v1207_v6  ;;  %v1098_v61 = vld [vmem:[%s1469_s12 + $0x8] sm:$0xff]   ;;  %v1099_v62 = vld [vmem:[%s1469_s12 + $0x40] sm:$0xff]  }
 0x2f1   :  { %v1100_v63 = vld [vmem:[%s1469_s12] sm:$0xff]  }
 0x2f2   :  { %v462_v2 = vadd.f32 %v997_v0, %v907_v58  ;;  %469 = vadd.xlane.f32.xlu0 %v1332_v1  ;;  %v1095_v58 = vld [vmem:[%s1469_s12 + $0x50] sm:$0xff]   ;;  %v524_v0 = vld [vmem:[%s1470_s11] sm:$0x3] }
 0x2f3   :  { %1008 = vmatprep.subr.bf16.mxu1 %v1095_v58  ;;  %v533_v9 = vrot.slane %v524_v0, %v124_v8 }
 0x2f4   :  { %v1336_v5 = vadd.f32 %v462_v2, %v1210_v7  ;;  %1009 = vmatpush3.bf16.msra.mxu1 %v1096_v59  ;;  %v529_v2 = vrot.slane %v524_v0, %v120_v4 }
 0x2f5   :  { %1010 = vmatprep.subr.bf16.mxu1 %v1097_v60 }
 0x2f6   :  { %471 = vadd.xlane.f32.xlu1 %v1336_v5 }
 0x2f8   :  { %1011 = vmatpush3.bf16.msra.mxu1 %v1098_v61 }
 0x2f9   :  { %1012 = vmatprep.subr.bf16.mxu1 %v1099_v62 }
 0x2fc   :  { %1013 = vmatpush3.bf16.msra.mxu1 %v1100_v63 }
 0x37b   :  { %v470_v6 = vpop.xlane.xlu0 %469 }
 0x37c   :  { %v473_v11 = vmul.f32 0.0078125, %v470_v6 }
 0x37e   :  { %v475_v12 = vsub.f32 %v1332_v1, %v473_v11 }
 0x37f   :  { %v472_v13 = vpop.xlane.xlu1 %471 }
 0x380   :  { %v474_v14 = vmul.f32 0.0078125, %v472_v13  ;;  %v477_v7 = vmul.f32 %v475_v12, %v475_v12 }
 0x382   :  { %v476_v15 = vsub.f32 %v1336_v5, %v474_v14  ;;  %479 = vadd.xlane.f32.xlu0 %v477_v7 }
 0x384   :  { %v478_v16 = vmul.f32 %v476_v15, %v476_v15 }
 0x386   :  { %481 = vadd.xlane.f32.xlu1 %v478_v16 }
 0x40b   :  { %v480_v31 = vpop.xlane.xlu0 %479 }
 0x40c   :  { %v483_v32 = vmul.f32 0.0078125, %v480_v31 }
 0x40e   :  { %v485_v33 = vadd.f32 1e-05, %v483_v32 }
 0x40f   :  { %v482_v34 = vpop.xlane.xlu1 %481 }
 0x410   :  { %1113 = vrsqrt.f32 %v485_v33  ;;  %v484_v35 = vmul.f32 0.0078125, %v482_v34 }
 0x412   :  { %v486_v36 = vadd.f32 1e-05, %v484_v35 }
 0x414   :  { %1115 = vrsqrt.f32 %v486_v36 }
 0x41d   :  { %v1114_v37 = vpop.eup %1113 }
 0x41e   :  { %v489_v38 = vmul.f32 %v1114_v37, %v475_v12 }
 0x420   :  { %v497_v42 = vmul.f32 %v924_v39, %v489_v38 }
 0x421   :  { %v1116_v40 = vpop.eup %1115 }
 0x422   :  { %v490_v41 = vmul.f32 %v1116_v40, %v476_v15  ;;  %v505_v45 = vadd.f32 %v925_v43, %v497_v42 }
 0x424   :  { %v498_v44 = vmul.f32 %v924_v39, %v490_v41 }
 0x426   :  { %v506_v46 = vadd.f32 %v925_v43, %v498_v44 }
 0x428   :  { %v523_v47 = vpack.c.bf16 %v506_v46, %v505_v45 }
 0x42a   :  { %649 = vmatmul.mubr.bf16.vlgmr.msra.gmra.mxu0 %v523_v47 }
 0x4ea   :  { %v650_v10 = vpop.f32.mrf.mxu0 }
 0x4eb   :  { %v651_v6 = vadd.f32 %v650_v10, %v529_v2 }
 0x4ec   :  { %v652_v11 = vpop.f32.mrf.mxu0 }
 0x4ed   :  { %v659_v12 = vmul.f32 %v651_v6, %v651_v6  ;;  %v653_v13 = vadd.f32 %v652_v11, %v533_v9 }
 0x4ee   :  { %v654_v14 = vpop.f32.mrf.mxu0 }
 0x4ef   :  { %v663_v7 = vmul.f32 %v659_v12, %v651_v6  ;;  %v660_v15 = vmul.f32 %v653_v13, %v653_v13  ;;  %v655_v16 = vadd.f32 %v654_v14, %v529_v2 }
 0x4f0   :  { %v656_v17 = vpop.f32.mrf.mxu0 }
 0x4f1   :  { %v667_v18 = vmul.f32 0.044715, %v663_v7  ;;  %v664_v19 = vmul.f32 %v660_v15, %v653_v13  ;;  %v661_v20 = vmul.f32 %v655_v16, %v655_v16  ;;  %v657_v21 = vadd.f32 %v656_v17, %v533_v9 }
 0x4f3   :  { %v671_v22 = vadd.f32 %v667_v18, %v651_v6  ;;  %v668_v23 = vmul.f32 0.044715, %v664_v19  ;;  %v665_v4 = vmul.f32 %v661_v20, %v655_v16  ;;  %v662_v24 = vmul.f32 %v657_v21, %v657_v21 }
 0x4f5   :  { %v675_v3 = vmul.f32 0.7978846, %v671_v22  ;;  %v672_v8 = vadd.f32 %v668_v23, %v653_v13  ;;  %v669_v25 = vmul.f32 0.044715, %v665_v4  ;;  %v666_v26 = vmul.f32 %v662_v24, %v657_v21 }
 0x4f7   :  { %v676_v27 = vmul.f32 0.7978846, %v672_v8  ;;  %v673_v28 = vadd.f32 %v669_v25, %v655_v16  ;;  %v670_v29 = vmul.f32 0.044715, %v666_v26  ;;  %1117 = vtanh.f32 %v675_v3 }
 0x4f9   :  { %1119 = vtanh.f32 %v676_v27  ;;  %v677_v30 = vmul.f32 0.7978846, %v673_v28  ;;  %v674_v31 = vadd.f32 %v670_v29, %v657_v21 }
 0x4fb   :  { %1121 = vtanh.f32 %v677_v30  ;;  %v678_v32 = vmul.f32 0.7978846, %v674_v31 }
 0x4fd   :  { %1123 = vtanh.f32 %v678_v32 }
 0x504   :  { %v1118_v33 = vpop.eup %1117 }
 0x505   :  { %v683_v37 = vadd.f32 1.0, %v1118_v33 }
 0x506   :  { %v1120_v34 = vpop.eup %1119 }
 0x507   :  { %v684_v35 = vadd.f32 1.0, %v1120_v34  ;;  %v687_v43 = vmul.f32 0.5, %v683_v37 }
 0x508   :  { %v1122_v36 = vpop.eup %1121 }
 0x509   :  { %v685_v38 = vadd.f32 1.0, %v1122_v36  ;;  %v688_v42 = vmul.f32 0.5, %v684_v35  ;;  %v691_v48 = vmul.f32 %v687_v43, %v651_v6 }
 0x50a   :  { %v1124_v39 = vpop.eup %1123 }
 0x50b   :  { %v689_v40 = vmul.f32 0.5, %v685_v38  ;;  %v686_v41 = vadd.f32 1.0, %v1124_v39  ;;  %v692_v46 = vmul.f32 %v688_v42, %v653_v13 }
 0x50d   :  { %v690_v44 = vmul.f32 0.5, %v686_v41  ;;  %v693_v45 = vmul.f32 %v689_v40, %v655_v16 }
 0x50f   :  { %v694_v47 = vmul.f32 %v690_v44, %v657_v21  ;;  %v727_v50 = vpack.c.bf16 %v693_v45, %v691_v48 }
 0x511   :  { %v728_v49 = vpack.c.bf16 %v694_v47, %v692_v46 }
 0x513   :  { %864 = vmatprep.mubr.bf16.mxu1 %v728_v49 }
 0x514   :  { %865 = vmatmul.mubr.bf16.vlgmr.msra.gmra.mxu1 %v727_v50 }
 0x5d4   :  { %v1014_v51 = vpop.f32.mrf.mxu1 }
 0x5d6   :  { %v1015_v52 = vpop.f32.mrf.mxu1 }
 0x5d7   :  { %v1016_v53 = vadd.f32 %v1015_v52, %v1014_v51 }
 0x5d8   :  { %v1017_v55 = vpop.f32.mrf.mxu1 }
 0x5d9   :  { %v867_v57 = vadd.f32 %v1016_v53, %v942_v54 }
 0x5da   :  { %v1018_v56 = vpop.f32.mrf.mxu1 }
 0x5db   :  { %v1019_v58 = vadd.f32 %v1018_v56, %v1017_v55  ;;  %v873_v60 = vadd.f32 %v867_v57, %v1332_v1 }
 0x5dd   :  { %v870_v59 = vadd.f32 %v1019_v58, %v942_v54 }
 0x5df   :  { %v874_v61 = vadd.f32 %v870_v59, %v1336_v5 }
 0x5e1   :  { %v974_v62 = vpack.c.bf16 %v874_v61, %v873_v60 }
 0x5e3   :  { %975 = vst [vmem:[%s1472_s14] sm:$0xff] %v974_v62  }

// kernel: forward.23
= control target key start
LH: loop header
LB: loop body
LE: loop exit
PB: predicated region body
PF: predicated region fallthrough
CT: control target
= control target key end

     0   :  { %v239_v1 = vmov 0   ;;  %v35_v18 = vlaneseq  ;;  %s320_s1 = inlined_call_operand.vmem [shape: bf16[128,256], index: 1, kind: input, shape index: {}]   ;;  %s321_s0 = inlined_call_operand.vmem [shape: bf16[16,128], index: 0, kind: input, shape index: {}]   ;;  %s322_s2 = inlined_call_operand.vmem [shape: f32[1,256], index: 2, kind: input, shape index: {}]   ;;  %s323_s3 = inlined_call_operand.vmem [shape: bf16[16,256], index: 3, kind: output, shape index: {}]  }
   0x1   :  { %v214_v0 = vld [vmem:[%s320_s1 + $0x74] ss:$8 sps:$4 sm:$0xff]   ;;  %163 = vmatprep.mubr.bf16.mxu0 %v239_v1  ;;  %v216_v2 = vld [vmem:[%s320_s1 + $0x70] ss:$8 sps:$4 sm:$0xff]   ;;  %v217_v3 = vld [vmem:[%s320_s1 + $0x64] ss:$8 sps:$4 sm:$0xff]  }
   0x2   :  { %131 = vmatprep.subr.bf16.mxu0 %v214_v0  ;;  %v219_v4 = vld [vmem:[%s320_s1 + $0x60] ss:$8 sps:$4 sm:$0xff]   ;;  %v220_v5 = vld [vmem:[%s320_s1 + $0x54] ss:$8 sps:$4 sm:$0xff]   ;;  %v222_v6 = vld [vmem:[%s320_s1 + $0x50] ss:$8 sps:$4 sm:$0xff]  }
   0x3   :  { %132 = vmatpush1.bf16.msra.mxu0 %v216_v2  ;;  %v223_v7 = vld [vmem:[%s320_s1 + $0x44] ss:$8 sps:$4 sm:$0xff]   ;;  %v225_v8 = vld [vmem:[%s320_s1 + $0x40] ss:$8 sps:$4 sm:$0xff]   ;;  %v226_v9 = vld [vmem:[%s320_s1 + $0x34] ss:$8 sps:$4 sm:$0xff]  }
   0x4   :  { %133 = vmatprep.subr.bf16.mxu0 %v217_v3  ;;  %v228_v10 = vld [vmem:[%s320_s1 + $0x30] ss:$8 sps:$4 sm:$0xff]   ;;  %v229_v11 = vld [vmem:[%s320_s1 + $0x24] ss:$8 sps:$4 sm:$0xff]   ;;  %v231_v12 = vld [vmem:[%s320_s1 + $0x20] ss:$8 sps:$4 sm:$0xff]  }
   0x5   :  { %v232_v13 = vld [vmem:[%s320_s1 + $0x14] ss:$8 sps:$4 sm:$0xff]   ;;  %v234_v14 = vld [vmem:[%s320_s1 + $0x10] ss:$8 sps:$4 sm:$0xff]   ;;  %v235_v15 = vld [vmem:[%s320_s1 + $0x4] ss:$8 sps:$4 sm:$0xff]  }
   0x6   :  { %v237_v16 = vld [vmem:[%s320_s1] ss:$8 sps:$4 sm:$0xff]   ;;  %v36_v19 = vshrl.u32 %v35_v18, 7 }
   0x7   :  { %134 = vmatpush1.bf16.msra.mxu0 %v219_v4  ;;  %v238_v17 = vld [vmem:[%s321_s0] sm:$0xff]  }
   0x8   :  { %135 = vmatprep.subr.bf16.mxu0 %v220_v5  ;;  %v37_v20 = vsub.s32 0, %v36_v19  ;;  %v41_v21 = vsub.s32 1, %v36_v19  ;;  %v33_v22 = vld [vmem:[%s322_s2] sm:$0x3] }
   0xa   :  { %v38_v23 = vrot.slane %v33_v22, %v37_v20  ;;  %v42_v24 = vrot.slane %v33_v22, %v41_v21 }
   0xb   :  { %136 = vmatpush1.bf16.msra.mxu0 %v222_v6 }
   0xc   :  { %137 = vmatprep.subr.bf16.mxu0 %v223_v7 }
   0xf   :  { %138 = vmatpush1.bf16.msra.mxu0 %v225_v8 }
  0x10   :  { %139 = vmatprep.subr.bf16.mxu0 %v226_v9 }
  0x13   :  { %140 = vmatpush1.bf16.msra.mxu0 %v228_v10 }
  0x14   :  { %141 = vmatprep.subr.bf16.mxu0 %v229_v11 }
  0x17   :  { %142 = vmatpush1.bf16.msra.mxu0 %v231_v12 }
  0x18   :  { %143 = vmatprep.subr.bf16.mxu0 %v232_v13 }
  0x1b   :  { %144 = vmatpush1.bf16.msra.mxu0 %v234_v14 }
  0x1c   :  { %145 = vmatprep.subr.bf16.mxu0 %v235_v15 }
  0x1f   :  { %146 = vmatpush1.bf16.msra.mxu0 %v237_v16 }
  0x22   :  { %164 = vmatmul.mubr.bf16.vlgmr.msra.gmra.mxu0 %v238_v17 }
  0xe2   :  { %v165_v25 = vpop.f32.mrf.mxu0 }
  0xe3   :  { %v166_v27 = vadd.f32 %v165_v25, %v38_v23 }
  0xe4   :  { %v167_v26 = vpop.f32.mrf.mxu0 }
  0xe5   :  { %v168_v28 = vadd.f32 %v167_v26, %v42_v24 }
  0xe6   :  { %v169_v29 = vpop.f32.mrf.mxu0 }
  0xe7   :  { %v211_v30 = vpack.c.bf16 %v168_v28, %v166_v27  ;;  %v170_v32 = vadd.f32 %v169_v29, %v38_v23 }
  0xe8   :  { %v171_v31 = vpop.f32.mrf.mxu0 }
  0xe9   :  { %186 = vst [vmem:[%s323_s3] sm:$0xff] %v211_v30  ;;  %v172_v33 = vadd.f32 %v171_v31, %v42_v24 }
  0xeb   :  { %v212_v34 = vpack.c.bf16 %v172_v33, %v170_v32 }
  0xed   :  { %187 = vst [vmem:[%s323_s3 + $0x8] sm:$0xff] %v212_v34 }

// kernel: forward.24
= control target key start
LH: loop header
LB: loop body
LE: loop exit
PB: predicated region body
PF: predicated region fallthrough
CT: control target
= control target key end

     0   :  { %vm70_vm0 = vcmask 523264   ;;  %vm750_vm1 = vcmask 519168   ;;  %s1228_s0 = inlined_call_operand.vmem [shape: bf16[32,64], index: 0, kind: input, shape index: {}]   ;;  %s1229_s1 = inlined_call_operand.vmem [shape: bf16[32,64], index: 1, kind: input, shape index: {}]   ;;  %s1230_s4 = inlined_call_operand.vmem [shape: bf16[64,128], index: 4, kind: input, shape index: {}]   ;;  %s1231_s2 = inlined_call_operand.vmem [shape: f32[1,64], index: 2, kind: input, shape index: {}]   ;;  %s1232_s3 = inlined_call_operand.vmem [shape: f32[1,64], index: 3, kind: input, shape index: {}]   ;;  %s1233_s6 = inlined_call_operand.vmem [shape: bf16[128,64], index: 6, kind: input, shape index: {}]   ;;  %s1234_s5 = inlined_call_operand.vmem [shape: f32[1,128], index: 5, kind: input, shape index: {}]   ;;  %s1235_s7 = inlined_call_operand.vmem [shape: f32[1,64], index: 7, kind: input, shape index: {}]   ;;  %s1236_s10 = inlined_call_operand.vmem [shape: bf16[64,128], index: 10, kind: input, shape index: {}]   ;;  %s1237_s8 = inlined_call_operand.vmem [shape: f32[1,64], index: 8, kind: input, shape index: {}]   ;;  %s1238_s9 = inlined_call_operand.vmem [shape: f32[1,64], index: 9, kind: input, shape index: {}]   ;;  %s1239_s12 = inlined_call_operand.vmem [shape: bf16[128,64], index: 12, kind: input, shape index: {}]   ;;  %s1240_s11 = inlined_call_operand.vmem [shape: f32[1,128], index: 11, kind: input, shape index: {}]   ;;  %s1241_s13 = inlined_call_operand.vmem [shape: f32[1,64], index: 13, kind: input, shape index: {}]   ;;  %s1242_s14 = inlined_call_operand.vmem [shape: bf16[32,64], index: 14, kind: output, shape index: {}]  }
   0x1   :  { %v804_v0 = vld [vmem:[%s1228_s0] sm:$0xff]   ;;  %v819_v2 = vld [vmem:[%s1228_s0 + $0x8] sm:$0xff]   ;;  %v917_v40 = vld [vmem:[%s1230_s4 + $0x18] sm:$0xff]  }
   0x2   :  { %v812_v1 = vld [vmem:[%s1229_s1] sm:$0xff]   ;;  %v805_v3 = vunpack.c.l.bf16 %v804_v0  ;;  %v809_v5 = vunpack.c.l.bf16 %v819_v2  ;;  %v820_v6 = vld [vmem:[%s1229_s1 + $0x8] sm:$0xff]   ;;  %v806_v7 = vunpack.c.h.bf16 %v804_v0  ;;  %v810_v10 = vunpack.c.h.bf16 %v819_v2  ;;  %v918_v41 = vld [vmem:[%s1230_s4 + $0x10] sm:$0xff]   ;;  %853 = vmatprep.subr.bf16.mxu1 %v917_v40 }
   0x3   :  { %v813_v4 = vunpack.c.l.bf16 %v812_v1  ;;  %v817_v8 = vunpack.c.l.bf16 %v820_v6  ;;  %v814_v9 = vunpack.c.h.bf16 %v812_v1  ;;  %v818_v11 = vunpack.c.h.bf16 %v820_v6  ;;  %854 = vmatpush3.bf16.msra.mxu1 %v917_v40  ;;  %v919_v42 = vld [vmem:[%s1230_s4 + $0x8] sm:$0xff]   ;;  %v920_v43 = vld [vmem:[%s1230_s4] sm:$0xff]  }
   0x4   :  { %855 = vmatprep.subr.bf16.mxu1 %v918_v41  ;;  %v759_v58 = vld [vmem:[%s1231_s2] ss:$0 sm:$0xff] }
   0x5   :  { %v1060_v12 = vadd.f32 %v813_v4, %v805_v3  ;;  %v1062_v13 = vadd.f32 %v817_v8, %v809_v5  ;;  %v1064_v14 = vadd.f32 %v814_v9, %v806_v7  ;;  %v1066_v15 = vadd.f32 %v818_v11, %v810_v10  ;;  %v760_v63 = vld [vmem:[%s1232_s3] ss:$0 sm:$0xff] }
   0x7   :  { %v71_v16 = vsel %vm70_vm0, %v1060_v12, 0.0  ;;  %v77_v17 = vsel %vm70_vm0, %v1062_v13, 0.0  ;;  %v74_v18 = vsel %vm70_vm0, %v1064_v14, 0.0  ;;  %v80_v19 = vsel %vm70_vm0, %v1066_v15, 0.0  ;;  %856 = vmatpush3.bf16.msra.mxu1 %v918_v41 }
   0x8   :  { %72 = vadd.xlane.f32.xlu0 %v71_v16  ;;  %78 = vadd.xlane.f32.xlu1 %v77_v17  ;;  %v921_v16 = vld [vmem:[%s1233_s6 + $0x38] sm:$0xff]   ;;  %v922_v17 = vld [vmem:[%s1233_s6 + $0x30] sm:$0xff]  }
   0x9   :  { %857 = vmatprep.subr.bf16.mxu1 %v919_v42 }
   0xb   :  { %858 = vmatpush3.bf16.msra.mxu1 %v919_v42 }
   0xc   :  { %75 = vadd.xlane.f32.xlu0 %v74_v18  ;;  %81 = vadd.xlane.f32.xlu1 %v80_v19  ;;  %v923_v18 = vld [vmem:[%s1233_s6 + $0x28] sm:$0xff]   ;;  %v924_v19 = vld [vmem:[%s1233_s6 + $0x20] sm:$0xff]  }
   0xd   :  { %859 = vmatprep.subr.bf16.mxu1 %v920_v43 }
   0xf   :  { %860 = vmatpush3.bf16.msra.mxu1 %v920_v43 }
  0x10   :  { %865 = vmatprep.subr.bf16.mxu1 %v921_v16 }
  0x91   :  { %v73_v20 = vpop.xlane.xlu0 %72  ;;  %v79_v22 = vpop.xlane.xlu1 %78 }
  0x92   :  { %v84_v21 = vmul.f32 0.015625, %v73_v20  ;;  %v86_v23 = vmul.f32 0.015625, %v79_v22  ;;  %v925_v20 = vld [vmem:[%s1233_s6 + $0x18] sm:$0xff]   ;;  %v927_v22 = vld [vmem:[%s1233_s6 + $0x8] sm:$0xff]  }
  0x94   :  { %v88_v24 = vsub.f32 %v1060_v12, %v84_v21  ;;  %v90_v25 = vsub.f32 %v1062_v13, %v86_v23  ;;  %v926_v21 = vld [vmem:[%s1233_s6 + $0x10] sm:$0xff]   ;;  %v928_v23 = vld [vmem:[%s1233_s6] sm:$0xff]  }
  0x95   :  { %v76_v26 = vpop.xlane.xlu0 %75  ;;  %v82_v28 = vpop.xlane.xlu1 %81 }
  0x96   :  { %v85_v27 = vmul.f32 0.015625, %v76_v26  ;;  %v92_v29 = vmul.f32 %v88_v24, %v88_v24  ;;  %v87_v30 = vmul.f32 0.015625, %v82_v28  ;;  %v94_v31 = vmul.f32 %v90_v25, %v90_v25 }
  0x98   :  { %v89_v32 = vsub.f32 %v1064_v14, %v85_v27  ;;  %v96_v33 = vsel %vm70_vm0, %v92_v29, 0.0  ;;  %v91_v34 = vsub.f32 %v1066_v15, %v87_v30  ;;  %v102_v35 = vsel %vm70_vm0, %v94_v31, 0.0 }
  0x99   :  { %97 = vadd.xlane.f32.xlu0 %v96_v33 }
  0x9a   :  { %v93_v36 = vmul.f32 %v89_v32, %v89_v32  ;;  %v95_v37 = vmul.f32 %v91_v34, %v91_v34 }
  0x9c   :  { %v99_v38 = vsel %vm70_vm0, %v93_v36, 0.0  ;;  %v105_v39 = vsel %vm70_vm0, %v95_v37, 0.0 }
  0x9d   :  { %103 = vadd.xlane.f32.xlu0 %v102_v35  ;;  %100 = vadd.xlane.f32.xlu1 %v99_v38 }
  0xa1   :  { %106 = vadd.xlane.f32.xlu1 %v105_v39 }
 0x122   :  { %v98_v44 = vpop.xlane.xlu0 %97 }
 0x123   :  { %v108_v45 = vmul.f32 0.015625, %v98_v44 }
 0x125   :  { %v112_v46 = vadd.f32 1e-05, %v108_v45 }
 0x126   :  { %v101_v47 = vpop.xlane.xlu1 %100  ;;  %v104_v48 = vpop.xlane.xlu0 %103 }
 0x127   :  { %941 = vrsqrt.f32 %v112_v46  ;;  %v109_v49 = vmul.f32 0.015625, %v101_v47  ;;  %v110_v50 = vmul.f32 0.015625, %v104_v48 }
 0x129   :  { %v113_v51 = vadd.f32 1e-05, %v109_v49  ;;  %v114_v52 = vadd.f32 1e-05, %v110_v50 }
 0x12a   :  { %v107_v53 = vpop.xlane.xlu1 %106 }
 0x12b   :  { %943 = vrsqrt.f32 %v113_v51  ;;  %v111_v54 = vmul.f32 0.015625, %v107_v53 }
 0x12c   :  { %945 = vrsqrt.f32 %v114_v52 }
 0x12d   :  { %v115_v55 = vadd.f32 1e-05, %v111_v54 }
 0x12f   :  { %947 = vrsqrt.f32 %v115_v55 }
 0x134   :  { %v942_v56 = vpop.eup %941 }
 0x135   :  { %v120_v57 = vmul.f32 %v942_v56, %v88_v24  ;;  %v761_v24 = vld [vmem:[%s1234_s5] ss:$0 sm:$0xff] }
 0x137   :  { %v130_v62 = vmul.f32 %v759_v58, %v120_v57 }
 0x138   :  { %v944_v59 = vpop.eup %943 }
 0x139   :  { %v946_v60 = vpop.eup %945  ;;  %v121_v61 = vmul.f32 %v944_v59, %v89_v32  ;;  %v140_v3 = vadd.f32 %v760_v63, %v130_v62 }
 0x13a   :  { %v122_v0 = vmul.f32 %v946_v60, %v90_v25 }
 0x13b   :  { %v131_v1 = vmul.f32 %v759_v58, %v121_v61 }
 0x13c   :  { %v948_v2 = vpop.eup %947  ;;  %v132_v6 = vmul.f32 %v759_v58, %v122_v0 }
 0x13d   :  { %v141_v4 = vadd.f32 %v760_v63, %v131_v1  ;;  %v123_v5 = vmul.f32 %v948_v2, %v91_v34 }
 0x13e   :  { %v142_v9 = vadd.f32 %v760_v63, %v132_v6 }
 0x13f   :  { %v152_v7 = vpack.c.bf16 %v141_v4, %v140_v3  ;;  %v133_v8 = vmul.f32 %v759_v58, %v123_v5 }
 0x141   :  { %861 = vmatprep.mubr.msk.bf16.mxu1 %vm70_vm0, %v152_v7  ;;  %v143_v10 = vadd.f32 %v760_v63, %v133_v8  ;;  %v768_v8 = vld [vmem:[%s1235_s7] ss:$0 sm:$0xff] }
 0x143   :  { %v153_v11 = vpack.c.bf16 %v143_v10, %v142_v9 }
 0x145   :  { %862 = vmatmul.mubr.msk.bf16.vlgmr.msra.gmra.mxu1 %vm70_vm0, %v153_v11 }
 0x146   :  { %866 = vmatpush3.bf16.msra.mxu1 %v921_v16 }
 0x147   :  { %867 = vmatprep.subr.bf16.mxu1 %v922_v17 }
 0x14a   :  { %868 = vmatpush3.bf16.msra.mxu1 %v922_v17 }
 0x14b   :  { %869 = vmatprep.subr.bf16.mxu1 %v923_v18 }
 0x14e   :  { %870 = vmatpush3.bf16.msra.mxu1 %v923_v18 }
 0x14f   :  { %871 = vmatprep.subr.bf16.mxu1 %v924_v19 }
 0x152   :  { %872 = vmatpush3.bf16.msra.mxu1 %v924_v19 }
 0x153   :  { %873 = vmatprep.subr.bf16.mxu1 %v925_v20 }
 0x156   :  { %874 = vmatpush3.bf16.msra.mxu1 %v925_v20 }
 0x157   :  { %875 = vmatprep.subr.bf16.mxu1 %v926_v21 }
 0x15a   :  { %876 = vmatpush3.bf16.msra.mxu1 %v926_v21 }
 0x15b   :  { %877 = vmatprep.subr.bf16.mxu1 %v927_v22 }
 0x15e   :  { %878 = vmatpush3.bf16.msra.mxu1 %v927_v22 }
 0x15f   :  { %879 = vmatprep.subr.bf16.mxu1 %v928_v23 }
 0x162   :  { %880 = vmatpush3.bf16.msra.mxu1 %v928_v23 }
 0x205   :  { %v863_v25 = vpop.f32.mrf.mxu1 }
 0x206   :  { %v234_v26 = vadd.f32 %v863_v25, %v761_v24 }
 0x207   :  { %v225_v27 = vpop.f32.mrf.mxu1 }
 0x208   :  { %v242_v28 = vmul.f32 %v234_v26, %v234_v26  ;;  %v226_v29 = vadd.f32 %v761_v24, %v225_v27 }
 0x209   :  { %v864_v30 = vpop.f32.mrf.mxu1 }
 0x20a   :  { %v246_v31 = vmul.f32 %v242_v28, %v234_v26  ;;  %v240_v32 = vmul.f32 %v226_v29, %v226_v29  ;;  %v237_v33 = vadd.f32 %v864_v30, %v761_v24 }
 0x20b   :  { %v228_v34 = vpop.f32.mrf.mxu1 }
 0x20c   :  { %v250_v35 = vmul.f32 0.044715, %v246_v31  ;;  %v244_v36 = vmul.f32 %v240_v32, %v226_v29  ;;  %v243_v37 = vmul.f32 %v237_v33, %v237_v33  ;;  %v229_v38 = vadd.f32 %v761_v24, %v228_v34 }
 0x20e   :  { %v254_v39 = vadd.f32 %v250_v35, %v234_v26  ;;  %v248_v40 = vmul.f32 0.044715, %v244_v36  ;;  %v247_v41 = vmul.f32 %v243_v37, %v237_v33  ;;  %v241_v42 = vmul.f32 %v229_v38, %v229_v38 }
 0x210   :  { %v258_v43 = vmul.f32 0.7978846, %v254_v39  ;;  %v252_v44 = vadd.f32 %v248_v40, %v226_v29  ;;  %v251_v45 = vmul.f32 0.044715, %v247_v41  ;;  %v245_v46 = vmul.f32 %v241_v42, %v229_v38 }
 0x212   :  { %v256_v47 = vmul.f32 0.7978846, %v252_v44  ;;  %v255_v48 = vadd.f32 %v251_v45, %v237_v33  ;;  %v249_v49 = vmul.f32 0.044715, %v245_v46  ;;  %949 = vtanh.f32 %v258_v43  ;;  %v929_v44 = vld [vmem:[%s1236_s10 + $0x18] sm:$0xff]   ;;  %v930_v45 = vld [vmem:[%s1236_s10 + $0x10] sm:$0xff]  }
 0x213   :  { %885 = vmatprep.subr.bf16.mxu0 %v929_v44  ;;  %v931_v46 = vld [vmem:[%s1236_s10 + $0x8] sm:$0xff]  }
 0x214   :  { %951 = vtanh.f32 %v256_v47  ;;  %v259_v50 = vmul.f32 0.7978846, %v255_v48  ;;  %v253_v51 = vadd.f32 %v249_v49, %v229_v38  ;;  %886 = vmatpush3.bf16.msra.mxu0 %v929_v44  ;;  %v932_v47 = vld [vmem:[%s1236_s10] sm:$0xff]  }
 0x215   :  { %887 = vmatprep.subr.bf16.mxu0 %v930_v45 }
 0x216   :  { %953 = vtanh.f32 %v259_v50  ;;  %v257_v52 = vmul.f32 0.7978846, %v253_v51 }
 0x218   :  { %955 = vtanh.f32 %v257_v52  ;;  %888 = vmatpush3.bf16.msra.mxu0 %v930_v45 }
 0x219   :  { %889 = vmatprep.subr.bf16.mxu0 %v931_v46 }
 0x21c   :  { %890 = vmatpush3.bf16.msra.mxu0 %v931_v46 }
 0x21d   :  { %891 = vmatprep.subr.bf16.mxu0 %v932_v47 }
 0x21f   :  { %v950_v53 = vpop.eup %949 }
 0x220   :  { %v266_v57 = vadd.f32 1.0, %v950_v53  ;;  %892 = vmatpush3.bf16.msra.mxu0 %v932_v47 }
 0x221   :  { %v952_v54 = vpop.eup %951 }
 0x222   :  { %v264_v55 = vadd.f32 1.0, %v952_v54  ;;  %v270_v63 = vmul.f32 0.5, %v266_v57 }
 0x223   :  { %v954_v56 = vpop.eup %953 }
 0x224   :  { %v267_v58 = vadd.f32 1.0, %v954_v56  ;;  %v268_v62 = vmul.f32 0.5, %v264_v55  ;;  %v274_v4 = vmul.f32 %v270_v63, %v234_v26 }
 0x225   :  { %v956_v59 = vpop.eup %955 }
 0x226   :  { %v271_v60 = vmul.f32 0.5, %v267_v58  ;;  %v265_v61 = vadd.f32 1.0, %v956_v59  ;;  %v272_v2 = vmul.f32 %v268_v62, %v226_v29  ;;  %v777_v62 = vld [vmem:[%s1237_s8] ss:$0 sm:$0xff] }
 0x228   :  { %v269_v0 = vmul.f32 0.5, %v265_v61  ;;  %v275_v1 = vmul.f32 %v271_v60, %v237_v33 }
 0x22a   :  { %v273_v3 = vmul.f32 %v269_v0, %v229_v38  ;;  %v293_v6 = vpack.c.bf16 %v275_v1, %v274_v4 }
 0x22c   :  { %v292_v5 = vpack.c.bf16 %v273_v3, %v272_v2  ;;  %v778_v3 = vld [vmem:[%s1238_s9] ss:$0 sm:$0xff] }
 0x22e   :  { %881 = vmatprep.mubr.bf16.mxu1 %v292_v5 }
 0x22f   :  { %882 = vmatmul.mubr.bf16.vlgmr.msra.gmra.mxu1 %v293_v6 }
 0x2ef   :  { %v883_v7 = vpop.f32.mrf.mxu1 }
 0x2f0   :  { %v392_v10 = vadd.f32 %v883_v7, %v768_v8 }
 0x2f1   :  { %v383_v9 = vpop.f32.mrf.mxu1 }
 0x2f2   :  { %v384_v11 = vadd.f32 %v768_v8, %v383_v9  ;;  %v1138_v19 = vadd.f32 %v392_v10, %v1062_v13 }
 0x2f3   :  { %v884_v16 = vpop.f32.mrf.mxu1 }
 0x2f4   :  { %v1135_v17 = vadd.f32 %v384_v11, %v1060_v12  ;;  %v395_v20 = vadd.f32 %v884_v16, %v768_v8  ;;  %v410_v25 = vsel %vm70_vm0, %v1138_v19, 0.0 }
 0x2f5   :  { %v386_v18 = vpop.f32.mrf.mxu1 }
 0x2f6   :  { %v387_v21 = vadd.f32 %v768_v8, %v386_v18  ;;  %v404_v22 = vsel %vm70_vm0, %v1135_v17, 0.0  ;;  %v1146_v24 = vadd.f32 %v395_v20, %v1066_v15 }
 0x2f7   :  { %405 = vadd.xlane.f32.xlu0 %v404_v22  ;;  %v933_v22 = vld [vmem:[%s1239_s12 + $0x38] sm:$0xff]  }
 0x2f8   :  { %v1143_v23 = vadd.f32 %v387_v21, %v1064_v14  ;;  %v413_v13 = vsel %vm70_vm0, %v1146_v24, 0.0  ;;  %897 = vmatprep.subr.bf16.mxu0 %v933_v22 }
 0x2fa   :  { %v407_v12 = vsel %vm70_vm0, %v1143_v23, 0.0 }
 0x2fb   :  { %408 = vadd.xlane.f32.xlu1 %v407_v12  ;;  %411 = vadd.xlane.f32.xlu0 %v410_v25  ;;  %v934_v12 = vld [vmem:[%s1239_s12 + $0x30] sm:$0xff]   ;;  %v935_v25 = vld [vmem:[%s1239_s12 + $0x28] sm:$0xff]  }
 0x2ff   :  { %414 = vadd.xlane.f32.xlu1 %v413_v13  ;;  %v936_v13 = vld [vmem:[%s1239_s12 + $0x20] sm:$0xff]  }
 0x380   :  { %v406_v26 = vpop.xlane.xlu0 %405 }
 0x381   :  { %v416_v27 = vmul.f32 0.015625, %v406_v26  ;;  %v937_v26 = vld [vmem:[%s1239_s12 + $0x18] sm:$0xff]  }
 0x383   :  { %v420_v14 = vsub.f32 %v1135_v17, %v416_v27  ;;  %v938_v27 = vld [vmem:[%s1239_s12 + $0x10] sm:$0xff]  }
 0x384   :  { %v409_v28 = vpop.xlane.xlu1 %408  ;;  %v412_v29 = vpop.xlane.xlu0 %411 }
 0x385   :  { %v417_v15 = vmul.f32 0.015625, %v409_v28  ;;  %v418_v30 = vmul.f32 0.015625, %v412_v29  ;;  %v424_v31 = vmul.f32 %v420_v14, %v420_v14  ;;  %v940_v28 = vld [vmem:[%s1239_s12] sm:$0xff]  }
 0x386   :  { %v779_v29 = vld [vmem:[%s1240_s11] ss:$0 sm:$0xff] }
 0x387   :  { %v421_v32 = vsub.f32 %v1143_v23, %v417_v15  ;;  %v422_v33 = vsub.f32 %v1138_v19, %v418_v30  ;;  %v428_v34 = vsel %vm70_vm0, %v424_v31, 0.0 }
 0x388   :  { %v415_v35 = vpop.xlane.xlu1 %414  ;;  %429 = vadd.xlane.f32.xlu0 %v428_v34 }
 0x389   :  { %v419_v36 = vmul.f32 0.015625, %v415_v35  ;;  %v425_v37 = vmul.f32 %v421_v32, %v421_v32  ;;  %v426_v38 = vmul.f32 %v422_v33, %v422_v33 }
 0x38b   :  { %v423_v39 = vsub.f32 %v1146_v24, %v419_v36  ;;  %v431_v40 = vsel %vm70_vm0, %v425_v37, 0.0  ;;  %v434_v41 = vsel %vm70_vm0, %v426_v38, 0.0 }
 0x38c   :  { %432 = vadd.xlane.f32.xlu1 %v431_v40  ;;  %435 = vadd.xlane.f32.xlu0 %v434_v41 }
 0x38d   :  { %v427_v42 = vmul.f32 %v423_v39, %v423_v39 }
 0x38f   :  { %v437_v43 = vsel %vm70_vm0, %v427_v42, 0.0 }
 0x390   :  { %438 = vadd.xlane.f32.xlu1 %v437_v43 }
 0x411   :  { %v430_v48 = vpop.xlane.xlu0 %429 }
 0x412   :  { %v440_v49 = vmul.f32 0.015625, %v430_v48 }
 0x414   :  { %v444_v50 = vadd.f32 1e-05, %v440_v49 }
 0x415   :  { %v433_v51 = vpop.xlane.xlu1 %432  ;;  %v436_v52 = vpop.xlane.xlu0 %435 }
 0x416   :  { %957 = vrsqrt.f32 %v444_v50  ;;  %v441_v53 = vmul.f32 0.015625, %v433_v51  ;;  %v442_v54 = vmul.f32 0.015625, %v436_v52 }
 0x418   :  { %v445_v55 = vadd.f32 1e-05, %v441_v53  ;;  %v446_v56 = vadd.f32 1e-05, %v442_v54 }
 0x419   :  { %v439_v57 = vpop.xlane.xlu1 %438 }
 0x41a   :  { %959 = vrsqrt.f32 %v445_v55  ;;  %v443_v58 = vmul.f32 0.015625, %v439_v57 }
 0x41b   :  { %961 = vrsqrt.f32 %v446_v56 }
 0x41c   :  { %v447_v59 = vadd.f32 1e-05, %v443_v58 }
 0x41e   :  { %963 = vrsqrt.f32 %v447_v59 }
 0x423   :  { %v958_v60 = vpop.eup %957 }
 0x424   :  { %v452_v61 = vmul.f32 %v958_v60, %v420_v14  ;;  %v939_v14 = vld [vmem:[%s1239_s12 + $0x8] sm:$0xff]  }
 0x426   :  { %v462_v2 = vmul.f32 %v777_v62, %v452_v61 }
 0x427   :  { %v960_v63 = vpop.eup %959 }
 0x428   :  { %v962_v0 = vpop.eup %961  ;;  %v453_v1 = vmul.f32 %v960_v63, %v421_v32  ;;  %v472_v7 = vadd.f32 %v778_v3, %v462_v2 }
 0x429   :  { %v454_v4 = vmul.f32 %v962_v0, %v422_v33 }
 0x42a   :  { %v463_v5 = vmul.f32 %v777_v62, %v453_v1 }
 0x42b   :  { %v964_v6 = vpop.eup %963  ;;  %v464_v10 = vmul.f32 %v777_v62, %v454_v4 }
 0x42c   :  { %v473_v8 = vadd.f32 %v778_v3, %v463_v5  ;;  %v455_v9 = vmul.f32 %v964_v6, %v423_v39 }
 0x42d   :  { %v474_v18 = vadd.f32 %v778_v3, %v464_v10 }
 0x42e   :  { %v484_v11 = vpack.c.bf16 %v473_v8, %v472_v7  ;;  %v465_v16 = vmul.f32 %v777_v62, %v455_v9 }
 0x430   :  { %893 = vmatprep.mubr.msk.bf16.mxu0 %vm70_vm0, %v484_v11  ;;  %v475_v20 = vadd.f32 %v778_v3, %v465_v16  ;;  %v786_v11 = vld [vmem:[%s1241_s13] ss:$0 sm:$0xff] }
 0x432   :  { %v485_v21 = vpack.c.bf16 %v475_v20, %v474_v18 }
 0x434   :  { %894 = vmatmul.mubr.msk.bf16.vlgmr.msra.gmra.mxu0 %vm70_vm0, %v485_v21 }
 0x435   :  { %898 = vmatpush3.bf16.msra.mxu0 %v933_v22 }
 0x436   :  { %899 = vmatprep.subr.bf16.mxu0 %v934_v12 }
 0x439   :  { %900 = vmatpush3.bf16.msra.mxu0 %v934_v12 }
 0x43a   :  { %901 = vmatprep.subr.bf16.mxu0 %v935_v25 }
 0x43d   :  { %902 = vmatpush3.bf16.msra.mxu0 %v935_v25 }
 0x43e   :  { %903 = vmatprep.subr.bf16.mxu0 %v936_v13 }
 0x441   :  { %904 = vmatpush3.bf16.msra.mxu0 %v936_v13 }
 0x442   :  { %905 = vmatprep.subr.bf16.mxu0 %v937_v26 }
 0x445   :  { %906 = vmatpush3.bf16.msra.mxu0 %v937_v26 }
 0x446   :  { %907 = vmatprep.subr.bf16.mxu0 %v938_v27 }
 0x449   :  { %908 = vmatpush3.bf16.msra.mxu0 %v938_v27 }
 0x44a   :  { %909 = vmatprep.subr.bf16.mxu0 %v939_v14 }
 0x44d   :  { %910 = vmatpush3.bf16.msra.mxu0 %v939_v14 }
 0x44e   :  { %911 = vmatprep.subr.bf16.mxu0 %v940_v28 }
 0x451   :  { %912 = vmatpush3.bf16.msra.mxu0 %v940_v28 }
 0x4f4   :  { %v895_v15 = vpop.f32.mrf.mxu0 }
 0x4f5   :  { %v566_v30 = vadd.f32 %v895_v15, %v779_v29 }
 0x4f6   :  { %v557_v31 = vpop.f32.mrf.mxu0 }
 0x4f7   :  { %v574_v32 = vmul.f32 %v566_v30, %v566_v30  ;;  %v558_v33 = vadd.f32 %v779_v29, %v557_v31 }
 0x4f8   :  { %v896_v34 = vpop.f32.mrf.mxu0 }
 0x4f9   :  { %v578_v35 = vmul.f32 %v574_v32, %v566_v30  ;;  %v572_v36 = vmul.f32 %v558_v33, %v558_v33  ;;  %v569_v37 = vadd.f32 %v896_v34, %v779_v29 }
 0x4fa   :  { %v560_v38 = vpop.f32.mrf.mxu0 }
 0x4fb   :  { %v582_v39 = vmul.f32 0.044715, %v578_v35  ;;  %v576_v40 = vmul.f32 %v572_v36, %v558_v33  ;;  %v575_v41 = vmul.f32 %v569_v37, %v569_v37  ;;  %v561_v42 = vadd.f32 %v779_v29, %v560_v38 }
 0x4fd   :  { %v586_v43 = vadd.f32 %v582_v39, %v566_v30  ;;  %v580_v44 = vmul.f32 0.044715, %v576_v40  ;;  %v579_v45 = vmul.f32 %v575_v41, %v569_v37  ;;  %v573_v46 = vmul.f32 %v561_v42, %v561_v42 }
 0x4ff   :  { %v590_v47 = vmul.f32 0.7978846, %v586_v43  ;;  %v584_v48 = vadd.f32 %v580_v44, %v558_v33  ;;  %v583_v49 = vmul.f32 0.044715, %v579_v45  ;;  %v577_v50 = vmul.f32 %v573_v46, %v561_v42 }
 0x501   :  { %v588_v51 = vmul.f32 0.7978846, %v584_v48  ;;  %v587_v52 = vadd.f32 %v583_v49, %v569_v37  ;;  %v581_v53 = vmul.f32 0.044715, %v577_v50  ;;  %965 = vtanh.f32 %v590_v47 }
 0x503   :  { %967 = vtanh.f32 %v588_v51  ;;  %v591_v54 = vmul.f32 0.7978846, %v587_v52  ;;  %v585_v55 = vadd.f32 %v581_v53, %v561_v42 }
 0x505   :  { %969 = vtanh.f32 %v591_v54  ;;  %v589_v56 = vmul.f32 0.7978846, %v585_v55 }
 0x507   :  { %971 = vtanh.f32 %v589_v56 }
 0x50e   :  { %v966_v57 = vpop.eup %965 }
 0x50f   :  { %v598_v61 = vadd.f32 1.0, %v966_v57 }
 0x510   :  { %v968_v58 = vpop.eup %967 }
 0x511   :  { %v596_v59 = vadd.f32 1.0, %v968_v58  ;;  %v602_v3 = vmul.f32 0.5, %v598_v61 }
 0x512   :  { %v970_v60 = vpop.eup %969 }
 0x513   :  { %v599_v62 = vadd.f32 1.0, %v970_v60  ;;  %v600_v2 = vmul.f32 0.5, %v596_v59  ;;  %v606_v8 = vmul.f32 %v602_v3, %v566_v30 }
 0x514   :  { %v972_v63 = vpop.eup %971 }
 0x515   :  { %v603_v0 = vmul.f32 0.5, %v599_v62  ;;  %v597_v1 = vadd.f32 1.0, %v972_v63  ;;  %v604_v6 = vmul.f32 %v600_v2, %v558_v33 }
 0x517   :  { %v601_v4 = vmul.f32 0.5, %v597_v1  ;;  %v607_v5 = vmul.f32 %v603_v0, %v569_v37 }
 0x519   :  { %v605_v7 = vmul.f32 %v601_v4, %v561_v42  ;;  %v625_v10 = vpack.c.bf16 %v607_v5, %v606_v8 }
 0x51b   :  { %v624_v9 = vpack.c.bf16 %v605_v7, %v604_v6 }
 0x51d   :  { %913 = vmatprep.mubr.bf16.mxu0 %v624_v9 }
 0x51e   :  { %914 = vmatmul.mubr.bf16.vlgmr.msra.gmra.mxu0 %v625_v10 }
 0x5de   :  { %v915_v16 = vpop.f32.mrf.mxu0 }
 0x5df   :  { %v724_v18 = vadd.f32 %v915_v16, %v786_v11 }
 0x5e0   :  { %v715_v20 = vpop.f32.mrf.mxu0 }
 0x5e1   :  { %v732_v21 = vadd.f32 %v724_v18, %v1138_v19  ;;  %v716_v22 = vadd.f32 %v786_v11, %v715_v20 }
 0x5e2   :  { %v916_v12 = vpop.f32.mrf.mxu0 }
 0x5e3   :  { %v801_v25 = vpack.c.bf16 %v732_v21, %v732_v21  ;;  %v730_v13 = vadd.f32 %v716_v22, %v1135_v17  ;;  %v727_v26 = vadd.f32 %v916_v12, %v786_v11 }
 0x5e4   :  { %v718_v27 = vpop.f32.mrf.mxu0 }
 0x5e5   :  { %753 = vst.msk [vmem:[%s1242_s14 + $0x8] sm:$0xf] %vm750_vm1, %v801_v25  ;;  %v799_v14 = vpack.c.bf16 %v730_v13, %v730_v13  ;;  %v733_v28 = vadd.f32 %v727_v26, %v1146_v24  ;;  %v719_v29 = vadd.f32 %v786_v11, %v718_v27 }
 0x5e7   :  { %751 = vst.msk [vmem:[%s1242_s14] sm:$0xf] %vm750_vm1, %v799_v14  ;;  %v802_v19 = vpack.c.bf16 %v733_v28, %v733_v28  ;;  %v731_v15 = vadd.f32 %v719_v29, %v1143_v23 }
 0x5e9   :  { %754 = vst.msk [vmem:[%s1242_s14 + $0xc] sm:$0xf] %vm750_vm1, %v802_v19  ;;  %v800_v17 = vpack.c.bf16 %v731_v15, %v731_v15 }
 0x5eb   :  { %752 = vst.msk [vmem:[%s1242_s14 + $0x4] sm:$0xf] %vm750_vm1, %v800_v17 }

</bundles_post_ra>
